<compile_context>
chip_gen: v7x
topology: tpu7x:2x2x1
jax: 0.10.0
libtpu: 0.0.40
codegen_flags: <defaults>
</compile_context>

<pallas_src>
import functools
import numpy as np
import jax
import jax.numpy as jnp
from jax.experimental import pallas as pl
from jax.experimental.pallas import tpu as pltpu


# ---------------------------------------------------------------------------
# Fused 3x3 conv (stride 1, pad 1) + bias/BN + activation Pallas kernel
# ---------------------------------------------------------------------------

def _conv3x3_kernel(x_ref, w_ref, s_ref, b_ref, o_ref, *, th, w_out, act):
    """One grid step = `th` output rows of one image.

    x_ref : (1, th+2, W+2, Cin)   bf16   padded input tile (with halo)
    w_ref : (9, Cin, Cop)         bf16   packed 3x3 weights (tap-major)
    s_ref : (1, Cop)              f32    per-channel scale (BN folded)
    b_ref : (1, Cop)              f32    per-channel shift (bias/BN folded)
    o_ref : (1, th*W, Cop)               output rows (channel-last, lane-dense)
    """
    cin = x_ref.shape[-1]
    cop = o_ref.shape[-1]

    acc = jnp.zeros((th * w_out, cop), jnp.float32)
    for di in range(3):
        for dj in range(3):
            a = x_ref[0, di:di + th, dj:dj + w_out, :].reshape(th * w_out, cin)
            acc = acc + jnp.dot(a, w_ref[di * 3 + dj],
                                preferred_element_type=jnp.float32)

    # Fused epilogue: y = act(conv * scale + shift)
    y = acc * s_ref[...] + b_ref[...]
    if act == "relu":
        y = jnp.maximum(y, 0.0)
    o_ref[0] = y.astype(o_ref.dtype)


def _pick_th(h, w, c):
    """Largest divisor of H such that the GEMM row-tile and VMEM tile stay small."""
    best = 1
    for th in range(1, h + 1):
        if h % th:
            continue
        rows = th * w
        tile_bytes = (th + 2) * (w + 2) * max(c, 1) * 2  # bf16 input tile
        if rows <= 4096 and tile_bytes <= 2 * 1024 * 1024:
            best = th
    return best


def conv3x3(x, w9, scale, shift, act, out_dtype=jnp.bfloat16):
    """x: (N, H, W, Cin) NHWC. w9: (9, Cin, Cop). Returns (N, H, W, Cop)."""
    n, h, w, cin = x.shape
    _, _, cop = w9.shape
    th = _pick_th(h, w, cin)
    ht = h // th

    xp = jnp.pad(x, ((0, 0), (1, 1), (1, 1), (0, 0)))           # (N, H+2, W+2, Cin)
    if ht == 1:
        xt = xp.reshape(n, 1, h + 2, w + 2, cin)
    else:
        # Overlapping row tiles with a 2-row halo (only ~(th+2)/th duplication,
        # never the 9x of im2col).
        xt = jnp.stack([xp[:, t * th: t * th + th + 2] for t in range(ht)], axis=1)
    xt = xt.reshape(n * ht, th + 2, w + 2, cin)

    flops = 2 * n * h * w * (9 * cin) * cop
    bytes_accessed = (xt.size * 2 + w9.size * 2
                      + (scale.size + shift.size) * 4
                      + n * h * w * cop * jnp.dtype(out_dtype).itemsize)

    out = pl.pallas_call(
        functools.partial(_conv3x3_kernel, th=th, w_out=w, act=act),
        out_shape=jax.ShapeDtypeStruct((n * ht, th * w, cop), out_dtype),
        grid=(n * ht,),
        in_specs=[
            pl.BlockSpec((1, th + 2, w + 2, cin), lambda m: (m, 0, 0, 0)),
            pl.BlockSpec((9, cin, cop), lambda m: (0, 0, 0)),
            pl.BlockSpec((1, cop), lambda m: (0, 0)),
            pl.BlockSpec((1, cop), lambda m: (0, 0)),
        ],
        out_specs=pl.BlockSpec((1, th * w, cop), lambda m: (m, 0, 0)),
        compiler_params=pltpu.CompilerParams(
            dimension_semantics=("parallel",)),
        cost_estimate=pl.CostEstimate(
            flops=int(flops), transcendentals=0,
            bytes_accessed=int(bytes_accessed)),
    )(xt, w9, scale, shift)

    return out.reshape(n, h, w, cop)


# ---------------------------------------------------------------------------
# Model forward (NCHW at the boundary, NHWC bf16 internally)
# ---------------------------------------------------------------------------

def dncnn_forward(params, x):
    """x: (N, in_channels, H, W) float32 -> (N, out_channels, H, W) float32."""
    h = jnp.transpose(x, (0, 2, 3, 1)).astype(jnp.bfloat16)     # NHWC activations
    n_layers = len(params["layers"])
    for i, layer in enumerate(params["layers"]):
        out_dtype = jnp.float32 if i == n_layers - 1 else jnp.bfloat16
        h = conv3x3(h, layer["w"], layer["scale"], layer["shift"],
                    layer["act"], out_dtype=out_dtype)
    out = h[..., :params["out_channels"]]                       # drop lane padding
    return jnp.transpose(out, (0, 3, 1, 2))


# ---------------------------------------------------------------------------
# Deterministic parameters (same shapes as the nn.Module), pre-packed for TPU
# ---------------------------------------------------------------------------

class ParamGen:
    def __init__(self, seed=0):
        self.rng = np.random.default_rng(seed)

    def conv(self, co, ci):
        fan_in = ci * 9
        w = self.rng.standard_normal((co, ci, 3, 3), dtype=np.float32)
        return (w * np.sqrt(2.0 / fan_in)).astype(np.float32)

    def bias(self, c):
        return (0.01 * self.rng.standard_normal((c,), dtype=np.float32))

    def bn(self, c):
        g = 1.0 + 0.1 * self.rng.standard_normal((c,), dtype=np.float32)
        b = 0.1 * self.rng.standard_normal((c,), dtype=np.float32)
        m = 0.1 * self.rng.standard_normal((c,), dtype=np.float32)
        v = 1.0 + 0.1 * np.abs(self.rng.standard_normal((c,), dtype=np.float32))
        return g, b, m, v


def _pack_layer(w, bias, bn=None, act="relu", pad_co_to=None):
    """Fold bias/BN into (scale, shift), transpose+pad the weight once."""
    co, ci, _, _ = w.shape
    cop = co if pad_co_to is None else max(co, pad_co_to)

    w9 = np.transpose(w, (2, 3, 1, 0)).reshape(9, ci, co)       # (kh*kw, Cin, Co)
    if cop != co:
        w9 = np.concatenate([w9, np.zeros((9, ci, cop - co), np.float32)], axis=-1)

    if bn is not None:
        gamma, beta, mean, var = bn
        s = gamma / np.sqrt(var + 1e-5)
        scale = s
        shift = beta + (bias - mean) * s
    else:
        scale = np.ones((co,), np.float32)
        shift = bias.astype(np.float32)
    if cop != co:
        scale = np.concatenate([scale, np.zeros((cop - co,), np.float32)])
        shift = np.concatenate([shift, np.zeros((cop - co,), np.float32)])

    return dict(
        w=jnp.asarray(w9, jnp.bfloat16),
        scale=jnp.asarray(scale.reshape(1, cop), jnp.float32),
        shift=jnp.asarray(shift.reshape(1, cop), jnp.float32),
        act=act,
    )


def build_params(in_channels=1, out_channels=1, num_layers=17, features=64, seed=0):
    pg = ParamGen(seed)
    layers = []
    # Conv(in -> features) + ReLU
    layers.append(_pack_layer(pg.conv(features, in_channels), pg.bias(features),
                              bn=None, act="relu"))
    # (num_layers - 2) x [Conv(features -> features) + BN + ReLU]
    for _ in range(num_layers - 2):
        layers.append(_pack_layer(pg.conv(features, features), pg.bias(features),
                                  bn=pg.bn(features), act="relu"))
    # Conv(features -> out_channels); pad Co to 128 lanes, caller slices.
    layers.append(_pack_layer(pg.conv(out_channels, features), pg.bias(out_channels),
                              bn=None, act="none", pad_co_to=128))
    return dict(layers=layers, out_channels=out_channels)


if __name__ == "__main__":
    N, H, W = 2, 16, 16
    in_channels, out_channels = 1, 1

    params = build_params(in_channels=in_channels, out_channels=out_channels,
                          num_layers=17, features=64, seed=0)

    key = jax.random.PRNGKey(0)
    x = jax.random.normal(key, (N, in_channels, H, W), jnp.float32)

    fwd = jax.jit(lambda inp: dncnn_forward(params, inp))
    out = fwd(x)
    jax.block_until_ready(out)

    assert out.shape == (N, out_channels, H, W), out.shape
    assert bool(jnp.all(jnp.isfinite(out)))
    print("KERNEL_OK")
</pallas_src>

<mosaic_0001>
module attributes {stable_mosaic.version = 11 : i64} {
  func.func @_conv3x3_kernel(%arg0: i32, %arg1: memref<1x18x18x64xbf16, #tpu.memory_space<vmem>>, %arg2: memref<9x64x64xbf16, #tpu.memory_space<vmem>>, %arg3: memref<1x64xf32, #tpu.memory_space<vmem>>, %arg4: memref<1x64xf32, #tpu.memory_space<vmem>>, %arg5: memref<1x256x64xbf16, #tpu.memory_space<vmem>>) attributes {dimension_semantics = [#tpu.dimension_semantics<parallel>], iteration_bounds = array<i64: 2>, scalar_prefetch = 0 : i64, scratch_operands = 0 : i64, tpu.core_type = #tpu.core_type<tc>, window_params = [{transform_indices = @transform_0, window_bounds = array<i64: 1, 18, 18, 64>}, {pipeline_mode = #tpu.pipeline_mode<synchronous>, transform_indices = @transform_1, window_bounds = array<i64: 9, 64, 64>}, {pipeline_mode = #tpu.pipeline_mode<synchronous>, transform_indices = @transform_2, window_bounds = array<i64: 1, 64>}, {pipeline_mode = #tpu.pipeline_mode<synchronous>, transform_indices = @transform_3, window_bounds = array<i64: 1, 64>}, {transform_indices = @transform_4, window_bounds = array<i64: 1, 256, 64>}]} {
    %cst = arith.constant 0.000000e+00 : f32
    %0 = vector.broadcast %cst : f32 to vector<256x64xf32>
    %c0 = arith.constant 0 : index
    %c0_0 = arith.constant 0 : index
    %c0_1 = arith.constant 0 : index
    %c0_2 = arith.constant 0 : index
    %1 = vector.load %arg1[%c0, %c0_0, %c0_1, %c0_2] : memref<1x18x18x64xbf16, #tpu.memory_space<vmem>>, vector<1x16x16x64xbf16>
    %2 = vector.shape_cast %1 : vector<1x16x16x64xbf16> to vector<16x16x64xbf16>
    %3 = vector.shape_cast %2 : vector<16x16x64xbf16> to vector<256x64xbf16>
    %c0_3 = arith.constant 0 : index
    %c0_4 = arith.constant 0 : index
    %c0_5 = arith.constant 0 : index
    %4 = vector.load %arg2[%c0_3, %c0_4, %c0_5] : memref<9x64x64xbf16, #tpu.memory_space<vmem>>, vector<1x64x64xbf16>
    %5 = vector.shape_cast %4 : vector<1x64x64xbf16> to vector<64x64xbf16>
    %cst_6 = arith.constant dense<0.000000e+00> : vector<256x64xf32>
    %6 = tpu.matmul %3, %5, %cst_6 {dimension_numbers = #tpu.dot_dimension_numbers<[1], [0], [0], [1], [0, 0, 1, 1], [], []>} : vector<256x64xbf16>, vector<64x64xbf16>, vector<256x64xf32> -> vector<256x64xf32>
    %7 = arith.addf %0, %6 : vector<256x64xf32>
    %c0_7 = arith.constant 0 : index
    %c0_8 = arith.constant 0 : index
    %c1 = arith.constant 1 : index
    %c0_9 = arith.constant 0 : index
    %8 = vector.load %arg1[%c0_7, %c0_8, %c1, %c0_9] : memref<1x18x18x64xbf16, #tpu.memory_space<vmem>>, vector<1x16x16x64xbf16>
    %9 = vector.shape_cast %8 : vector<1x16x16x64xbf16> to vector<16x16x64xbf16>
    %10 = vector.shape_cast %9 : vector<16x16x64xbf16> to vector<256x64xbf16>
    %c1_10 = arith.constant 1 : index
    %c0_11 = arith.constant 0 : index
    %c0_12 = arith.constant 0 : index
    %11 = vector.load %arg2[%c1_10, %c0_11, %c0_12] : memref<9x64x64xbf16, #tpu.memory_space<vmem>>, vector<1x64x64xbf16>
    %12 = vector.shape_cast %11 : vector<1x64x64xbf16> to vector<64x64xbf16>
    %cst_13 = arith.constant dense<0.000000e+00> : vector<256x64xf32>
    %13 = tpu.matmul %10, %12, %cst_13 {dimension_numbers = #tpu.dot_dimension_numbers<[1], [0], [0], [1], [0, 0, 1, 1], [], []>} : vector<256x64xbf16>, vector<64x64xbf16>, vector<256x64xf32> -> vector<256x64xf32>
    %14 = arith.addf %7, %13 : vector<256x64xf32>
    %c0_14 = arith.constant 0 : index
    %c0_15 = arith.constant 0 : index
    %c2 = arith.constant 2 : index
    %c0_16 = arith.constant 0 : index
    %15 = vector.load %arg1[%c0_14, %c0_15, %c2, %c0_16] : memref<1x18x18x64xbf16, #tpu.memory_space<vmem>>, vector<1x16x16x64xbf16>
    %16 = vector.shape_cast %15 : vector<1x16x16x64xbf16> to vector<16x16x64xbf16>
    %17 = vector.shape_cast %16 : vector<16x16x64xbf16> to vector<256x64xbf16>
    %c2_17 = arith.constant 2 : index
    %c0_18 = arith.constant 0 : index
    %c0_19 = arith.constant 0 : index
    %18 = vector.load %arg2[%c2_17, %c0_18, %c0_19] : memref<9x64x64xbf16, #tpu.memory_space<vmem>>, vector<1x64x64xbf16>
    %19 = vector.shape_cast %18 : vector<1x64x64xbf16> to vector<64x64xbf16>
    %cst_20 = arith.constant dense<0.000000e+00> : vector<256x64xf32>
    %20 = tpu.matmul %17, %19, %cst_20 {dimension_numbers = #tpu.dot_dimension_numbers<[1], [0], [0], [1], [0, 0, 1, 1], [], []>} : vector<256x64xbf16>, vector<64x64xbf16>, vector<256x64xf32> -> vector<256x64xf32>
    %21 = arith.addf %14, %20 : vector<256x64xf32>
    %c0_21 = arith.constant 0 : index
    %c1_22 = arith.constant 1 : index
    %c0_23 = arith.constant 0 : index
    %c0_24 = arith.constant 0 : index
    %22 = vector.load %arg1[%c0_21, %c1_22, %c0_23, %c0_24] : memref<1x18x18x64xbf16, #tpu.memory_space<vmem>>, vector<1x16x16x64xbf16>
    %23 = vector.shape_cast %22 : vector<1x16x16x64xbf16> to vector<16x16x64xbf16>
    %24 = vector.shape_cast %23 : vector<16x16x64xbf16> to vector<256x64xbf16>
    %c3 = arith.constant 3 : index
    %c0_25 = arith.constant 0 : index
    %c0_26 = arith.constant 0 : index
    %25 = vector.load %arg2[%c3, %c0_25, %c0_26] : memref<9x64x64xbf16, #tpu.memory_space<vmem>>, vector<1x64x64xbf16>
    %26 = vector.shape_cast %25 : vector<1x64x64xbf16> to vector<64x64xbf16>
    %cst_27 = arith.constant dense<0.000000e+00> : vector<256x64xf32>
    %27 = tpu.matmul %24, %26, %cst_27 {dimension_numbers = #tpu.dot_dimension_numbers<[1], [0], [0], [1], [0, 0, 1, 1], [], []>} : vector<256x64xbf16>, vector<64x64xbf16>, vector<256x64xf32> -> vector<256x64xf32>
    %28 = arith.addf %21, %27 : vector<256x64xf32>
    %c0_28 = arith.constant 0 : index
    %c1_29 = arith.constant 1 : index
    %c1_30 = arith.constant 1 : index
    %c0_31 = arith.constant 0 : index
    %29 = vector.load %arg1[%c0_28, %c1_29, %c1_30, %c0_31] : memref<1x18x18x64xbf16, #tpu.memory_space<vmem>>, vector<1x16x16x64xbf16>
    %30 = vector.shape_cast %29 : vector<1x16x16x64xbf16> to vector<16x16x64xbf16>
    %31 = vector.shape_cast %30 : vector<16x16x64xbf16> to vector<256x64xbf16>
    %c4 = arith.constant 4 : index
    %c0_32 = arith.constant 0 : index
    %c0_33 = arith.constant 0 : index
    %32 = vector.load %arg2[%c4, %c0_32, %c0_33] : memref<9x64x64xbf16, #tpu.memory_space<vmem>>, vector<1x64x64xbf16>
    %33 = vector.shape_cast %32 : vector<1x64x64xbf16> to vector<64x64xbf16>
    %cst_34 = arith.constant dense<0.000000e+00> : vector<256x64xf32>
    %34 = tpu.matmul %31, %33, %cst_34 {dimension_numbers = #tpu.dot_dimension_numbers<[1], [0], [0], [1], [0, 0, 1, 1], [], []>} : vector<256x64xbf16>, vector<64x64xbf16>, vector<256x64xf32> -> vector<256x64xf32>
    %35 = arith.addf %28, %34 : vector<256x64xf32>
    %c0_35 = arith.constant 0 : index
    %c1_36 = arith.constant 1 : index
    %c2_37 = arith.constant 2 : index
    %c0_38 = arith.constant 0 : index
    %36 = vector.load %arg1[%c0_35, %c1_36, %c2_37, %c0_38] : memref<1x18x18x64xbf16, #tpu.memory_space<vmem>>, vector<1x16x16x64xbf16>
    %37 = vector.shape_cast %36 : vector<1x16x16x64xbf16> to vector<16x16x64xbf16>
    %38 = vector.shape_cast %37 : vector<16x16x64xbf16> to vector<256x64xbf16>
    %c5 = arith.constant 5 : index
    %c0_39 = arith.constant 0 : index
    %c0_40 = arith.constant 0 : index
    %39 = vector.load %arg2[%c5, %c0_39, %c0_40] : memref<9x64x64xbf16, #tpu.memory_space<vmem>>, vector<1x64x64xbf16>
    %40 = vector.shape_cast %39 : vector<1x64x64xbf16> to vector<64x64xbf16>
    %cst_41 = arith.constant dense<0.000000e+00> : vector<256x64xf32>
    %41 = tpu.matmul %38, %40, %cst_41 {dimension_numbers = #tpu.dot_dimension_numbers<[1], [0], [0], [1], [0, 0, 1, 1], [], []>} : vector<256x64xbf16>, vector<64x64xbf16>, vector<256x64xf32> -> vector<256x64xf32>
    %42 = arith.addf %35, %41 : vector<256x64xf32>
    %c0_42 = arith.constant 0 : index
    %c2_43 = arith.constant 2 : index
    %c0_44 = arith.constant 0 : index
    %c0_45 = arith.constant 0 : index
    %43 = vector.load %arg1[%c0_42, %c2_43, %c0_44, %c0_45] : memref<1x18x18x64xbf16, #tpu.memory_space<vmem>>, vector<1x16x16x64xbf16>
    %44 = vector.shape_cast %43 : vector<1x16x16x64xbf16> to vector<16x16x64xbf16>
    %45 = vector.shape_cast %44 : vector<16x16x64xbf16> to vector<256x64xbf16>
    %c6 = arith.constant 6 : index
    %c0_46 = arith.constant 0 : index
    %c0_47 = arith.constant 0 : index
    %46 = vector.load %arg2[%c6, %c0_46, %c0_47] : memref<9x64x64xbf16, #tpu.memory_space<vmem>>, vector<1x64x64xbf16>
    %47 = vector.shape_cast %46 : vector<1x64x64xbf16> to vector<64x64xbf16>
    %cst_48 = arith.constant dense<0.000000e+00> : vector<256x64xf32>
    %48 = tpu.matmul %45, %47, %cst_48 {dimension_numbers = #tpu.dot_dimension_numbers<[1], [0], [0], [1], [0, 0, 1, 1], [], []>} : vector<256x64xbf16>, vector<64x64xbf16>, vector<256x64xf32> -> vector<256x64xf32>
    %49 = arith.addf %42, %48 : vector<256x64xf32>
    %c0_49 = arith.constant 0 : index
    %c2_50 = arith.constant 2 : index
    %c1_51 = arith.constant 1 : index
    %c0_52 = arith.constant 0 : index
    %50 = vector.load %arg1[%c0_49, %c2_50, %c1_51, %c0_52] : memref<1x18x18x64xbf16, #tpu.memory_space<vmem>>, vector<1x16x16x64xbf16>
    %51 = vector.shape_cast %50 : vector<1x16x16x64xbf16> to vector<16x16x64xbf16>
    %52 = vector.shape_cast %51 : vector<16x16x64xbf16> to vector<256x64xbf16>
    %c7 = arith.constant 7 : index
    %c0_53 = arith.constant 0 : index
    %c0_54 = arith.constant 0 : index
    %53 = vector.load %arg2[%c7, %c0_53, %c0_54] : memref<9x64x64xbf16, #tpu.memory_space<vmem>>, vector<1x64x64xbf16>
    %54 = vector.shape_cast %53 : vector<1x64x64xbf16> to vector<64x64xbf16>
    %cst_55 = arith.constant dense<0.000000e+00> : vector<256x64xf32>
    %55 = tpu.matmul %52, %54, %cst_55 {dimension_numbers = #tpu.dot_dimension_numbers<[1], [0], [0], [1], [0, 0, 1, 1], [], []>} : vector<256x64xbf16>, vector<64x64xbf16>, vector<256x64xf32> -> vector<256x64xf32>
    %56 = arith.addf %49, %55 : vector<256x64xf32>
    %c0_56 = arith.constant 0 : index
    %c2_57 = arith.constant 2 : index
    %c2_58 = arith.constant 2 : index
    %c0_59 = arith.constant 0 : index
    %57 = vector.load %arg1[%c0_56, %c2_57, %c2_58, %c0_59] : memref<1x18x18x64xbf16, #tpu.memory_space<vmem>>, vector<1x16x16x64xbf16>
    %58 = vector.shape_cast %57 : vector<1x16x16x64xbf16> to vector<16x16x64xbf16>
    %59 = vector.shape_cast %58 : vector<16x16x64xbf16> to vector<256x64xbf16>
    %c8 = arith.constant 8 : index
    %c0_60 = arith.constant 0 : index
    %c0_61 = arith.constant 0 : index
    %60 = vector.load %arg2[%c8, %c0_60, %c0_61] : memref<9x64x64xbf16, #tpu.memory_space<vmem>>, vector<1x64x64xbf16>
    %61 = vector.shape_cast %60 : vector<1x64x64xbf16> to vector<64x64xbf16>
    %cst_62 = arith.constant dense<0.000000e+00> : vector<256x64xf32>
    %62 = tpu.matmul %59, %61, %cst_62 {dimension_numbers = #tpu.dot_dimension_numbers<[1], [0], [0], [1], [0, 0, 1, 1], [], []>} : vector<256x64xbf16>, vector<64x64xbf16>, vector<256x64xf32> -> vector<256x64xf32>
    %63 = arith.addf %56, %62 : vector<256x64xf32>
    %c0_63 = arith.constant 0 : index
    %c0_64 = arith.constant 0 : index
    %64 = vector.load %arg3[%c0_63, %c0_64] : memref<1x64xf32, #tpu.memory_space<vmem>>, vector<1x64xf32>
    %65 = vector.broadcast %64 : vector<1x64xf32> to vector<256x64xf32>
    %66 = arith.mulf %63, %65 : vector<256x64xf32>
    %c0_65 = arith.constant 0 : index
    %c0_66 = arith.constant 0 : index
    %67 = vector.load %arg4[%c0_65, %c0_66] : memref<1x64xf32, #tpu.memory_space<vmem>>, vector<1x64xf32>
    %68 = vector.broadcast %67 : vector<1x64xf32> to vector<256x64xf32>
    %69 = arith.addf %66, %68 : vector<256x64xf32>
    %cst_67 = arith.constant 0.000000e+00 : f32
    %70 = vector.broadcast %cst_67 : f32 to vector<256x64xf32>
    %71 = arith.maximumf %69, %70 : vector<256x64xf32>
    %72 = arith.truncf %71 : vector<256x64xf32> to vector<256x64xbf16>
    %c0_68 = arith.constant 0 : index
    %c0_69 = arith.constant 0 : index
    %c0_70 = arith.constant 0 : index
    %73 = vector.load %arg5[%c0_68, %c0_69, %c0_70] : memref<1x256x64xbf16, #tpu.memory_space<vmem>>, vector<1x256x64xbf16>
    %74 = vector.shape_cast %73 : vector<1x256x64xbf16> to vector<256x64xbf16>
    %75 = vector.shape_cast %72 : vector<256x64xbf16> to vector<1x256x64xbf16>
    tpu.vector_store %arg5[%c0_68, %c0_69, %c0_70], %75 {strides = array<i32>} : memref<1x256x64xbf16, #tpu.memory_space<vmem>>, vector<1x256x64xbf16>,
    return
  }
  func.func @transform_0(%arg0: i32) -> (i32, i32, i32, i32) {
    %c0_i32 = arith.constant 0 : i32
    %c0_i32_0 = arith.constant 0 : i32
    %c0_i32_1 = arith.constant 0 : i32
    %c0_i32_2 = arith.constant 0 : i32
    return %arg0, %c0_i32, %c0_i32_0, %c0_i32_1 : i32, i32, i32, i32
  }
  func.func @transform_1(%arg0: i32) -> (i32, i32, i32) {
    %c0_i32 = arith.constant 0 : i32
    %c0_i32_0 = arith.constant 0 : i32
    %c0_i32_1 = arith.constant 0 : i32
    %c0_i32_2 = arith.constant 0 : i32
    return %c0_i32, %c0_i32_0, %c0_i32_1 : i32, i32, i32
  }
  func.func @transform_2(%arg0: i32) -> (i32, i32) {
    %c0_i32 = arith.constant 0 : i32
    %c0_i32_0 = arith.constant 0 : i32
    %c0_i32_1 = arith.constant 0 : i32
    return %c0_i32, %c0_i32_0 : i32, i32
  }
  func.func @transform_3(%arg0: i32) -> (i32, i32) {
    %c0_i32 = arith.constant 0 : i32
    %c0_i32_0 = arith.constant 0 : i32
    %c0_i32_1 = arith.constant 0 : i32
    return %c0_i32, %c0_i32_0 : i32, i32
  }
  func.func @transform_4(%arg0: i32) -> (i32, i32, i32) {
    %c0_i32 = arith.constant 0 : i32
    %c0_i32_0 = arith.constant 0 : i32
    %c0_i32_1 = arith.constant 0 : i32
    return %arg0, %c0_i32, %c0_i32_0 : i32, i32, i32
  }
}

module attributes {stable_mosaic.version = 11 : i64} {
  func.func @_conv3x3_kernel(%arg0: i32, %arg1: memref<1x18x18x1xbf16, #tpu.memory_space<vmem>>, %arg2: memref<9x1x64xbf16, #tpu.memory_space<vmem>>, %arg3: memref<1x64xf32, #tpu.memory_space<vmem>>, %arg4: memref<1x64xf32, #tpu.memory_space<vmem>>, %arg5: memref<1x256x64xbf16, #tpu.memory_space<vmem>>) attributes {dimension_semantics = [#tpu.dimension_semantics<parallel>], iteration_bounds = array<i64: 2>, scalar_prefetch = 0 : i64, scratch_operands = 0 : i64, tpu.core_type = #tpu.core_type<tc>, window_params = [{transform_indices = @transform_0, window_bounds = array<i64: 1, 18, 18, 1>}, {pipeline_mode = #tpu.pipeline_mode<synchronous>, transform_indices = @transform_1, window_bounds = array<i64: 9, 1, 64>}, {pipeline_mode = #tpu.pipeline_mode<synchronous>, transform_indices = @transform_2, window_bounds = array<i64: 1, 64>}, {pipeline_mode = #tpu.pipeline_mode<synchronous>, transform_indices = @transform_3, window_bounds = array<i64: 1, 64>}, {transform_indices = @transform_4, window_bounds = array<i64: 1, 256, 64>}]} {
    %cst = arith.constant 0.000000e+00 : f32
    %0 = vector.broadcast %cst : f32 to vector<256x64xf32>
    %c0 = arith.constant 0 : index
    %c0_0 = arith.constant 0 : index
    %c0_1 = arith.constant 0 : index
    %c0_2 = arith.constant 0 : index
    %1 = vector.load %arg1[%c0, %c0_0, %c0_1, %c0_2] : memref<1x18x18x1xbf16, #tpu.memory_space<vmem>>, vector<1x16x16x1xbf16>
    %2 = vector.shape_cast %1 : vector<1x16x16x1xbf16> to vector<16x16x1xbf16>
    %3 = vector.shape_cast %2 : vector<16x16x1xbf16> to vector<256x1xbf16>
    %c0_3 = arith.constant 0 : index
    %c0_4 = arith.constant 0 : index
    %c0_5 = arith.constant 0 : index
    %4 = vector.load %arg2[%c0_3, %c0_4, %c0_5] : memref<9x1x64xbf16, #tpu.memory_space<vmem>>, vector<1x1x64xbf16>
    %5 = vector.shape_cast %4 : vector<1x1x64xbf16> to vector<1x64xbf16>
    %cst_6 = arith.constant dense<0.000000e+00> : vector<256x64xf32>
    %6 = tpu.matmul %3, %5, %cst_6 {dimension_numbers = #tpu.dot_dimension_numbers<[1], [0], [0], [1], [0, 0, 1, 1], [], []>} : vector<256x1xbf16>, vector<1x64xbf16>, vector<256x64xf32> -> vector<256x64xf32>
    %7 = arith.addf %0, %6 : vector<256x64xf32>
    %c0_7 = arith.constant 0 : index
    %c0_8 = arith.constant 0 : index
    %c1 = arith.constant 1 : index
    %c0_9 = arith.constant 0 : index
    %8 = vector.load %arg1[%c0_7, %c0_8, %c1, %c0_9] : memref<1x18x18x1xbf16, #tpu.memory_space<vmem>>, vector<1x16x16x1xbf16>
    %9 = vector.shape_cast %8 : vector<1x16x16x1xbf16> to vector<16x16x1xbf16>
    %10 = vector.shape_cast %9 : vector<16x16x1xbf16> to vector<256x1xbf16>
    %c1_10 = arith.constant 1 : index
    %c0_11 = arith.constant 0 : index
    %c0_12 = arith.constant 0 : index
    %11 = vector.load %arg2[%c1_10, %c0_11, %c0_12] : memref<9x1x64xbf16, #tpu.memory_space<vmem>>, vector<1x1x64xbf16>
    %12 = vector.shape_cast %11 : vector<1x1x64xbf16> to vector<1x64xbf16>
    %cst_13 = arith.constant dense<0.000000e+00> : vector<256x64xf32>
    %13 = tpu.matmul %10, %12, %cst_13 {dimension_numbers = #tpu.dot_dimension_numbers<[1], [0], [0], [1], [0, 0, 1, 1], [], []>} : vector<256x1xbf16>, vector<1x64xbf16>, vector<256x64xf32> -> vector<256x64xf32>
    %14 = arith.addf %7, %13 : vector<256x64xf32>
    %c0_14 = arith.constant 0 : index
    %c0_15 = arith.constant 0 : index
    %c2 = arith.constant 2 : index
    %c0_16 = arith.constant 0 : index
    %15 = vector.load %arg1[%c0_14, %c0_15, %c2, %c0_16] : memref<1x18x18x1xbf16, #tpu.memory_space<vmem>>, vector<1x16x16x1xbf16>
    %16 = vector.shape_cast %15 : vector<1x16x16x1xbf16> to vector<16x16x1xbf16>
    %17 = vector.shape_cast %16 : vector<16x16x1xbf16> to vector<256x1xbf16>
    %c2_17 = arith.constant 2 : index
    %c0_18 = arith.constant 0 : index
    %c0_19 = arith.constant 0 : index
    %18 = vector.load %arg2[%c2_17, %c0_18, %c0_19] : memref<9x1x64xbf16, #tpu.memory_space<vmem>>, vector<1x1x64xbf16>
    %19 = vector.shape_cast %18 : vector<1x1x64xbf16> to vector<1x64xbf16>
    %cst_20 = arith.constant dense<0.000000e+00> : vector<256x64xf32>
    %20 = tpu.matmul %17, %19, %cst_20 {dimension_numbers = #tpu.dot_dimension_numbers<[1], [0], [0], [1], [0, 0, 1, 1], [], []>} : vector<256x1xbf16>, vector<1x64xbf16>, vector<256x64xf32> -> vector<256x64xf32>
    %21 = arith.addf %14, %20 : vector<256x64xf32>
    %c0_21 = arith.constant 0 : index
    %c1_22 = arith.constant 1 : index
    %c0_23 = arith.constant 0 : index
    %c0_24 = arith.constant 0 : index
    %22 = vector.load %arg1[%c0_21, %c1_22, %c0_23, %c0_24] : memref<1x18x18x1xbf16, #tpu.memory_space<vmem>>, vector<1x16x16x1xbf16>
    %23 = vector.shape_cast %22 : vector<1x16x16x1xbf16> to vector<16x16x1xbf16>
    %24 = vector.shape_cast %23 : vector<16x16x1xbf16> to vector<256x1xbf16>
    %c3 = arith.constant 3 : index
    %c0_25 = arith.constant 0 : index
    %c0_26 = arith.constant 0 : index
    %25 = vector.load %arg2[%c3, %c0_25, %c0_26] : memref<9x1x64xbf16, #tpu.memory_space<vmem>>, vector<1x1x64xbf16>
    %26 = vector.shape_cast %25 : vector<1x1x64xbf16> to vector<1x64xbf16>
    %cst_27 = arith.constant dense<0.000000e+00> : vector<256x64xf32>
    %27 = tpu.matmul %24, %26, %cst_27 {dimension_numbers = #tpu.dot_dimension_numbers<[1], [0], [0], [1], [0, 0, 1, 1], [], []>} : vector<256x1xbf16>, vector<1x64xbf16>, vector<256x64xf32> -> vector<256x64xf32>
    %28 = arith.addf %21, %27 : vector<256x64xf32>
    %c0_28 = arith.constant 0 : index
    %c1_29 = arith.constant 1 : index
    %c1_30 = arith.constant 1 : index
    %c0_31 = arith.constant 0 : index
    %29 = vector.load %arg1[%c0_28, %c1_29, %c1_30, %c0_31] : memref<1x18x18x1xbf16, #tpu.memory_space<vmem>>, vector<1x16x16x1xbf16>
    %30 = vector.shape_cast %29 : vector<1x16x16x1xbf16> to vector<16x16x1xbf16>
    %31 = vector.shape_cast %30 : vector<16x16x1xbf16> to vector<256x1xbf16>
    %c4 = arith.constant 4 : index
    %c0_32 = arith.constant 0 : index
    %c0_33 = arith.constant 0 : index
    %32 = vector.load %arg2[%c4, %c0_32, %c0_33] : memref<9x1x64xbf16, #tpu.memory_space<vmem>>, vector<1x1x64xbf16>
    %33 = vector.shape_cast %32 : vector<1x1x64xbf16> to vector<1x64xbf16>
    %cst_34 = arith.constant dense<0.000000e+00> : vector<256x64xf32>
    %34 = tpu.matmul %31, %33, %cst_34 {dimension_numbers = #tpu.dot_dimension_numbers<[1], [0], [0], [1], [0, 0, 1, 1], [], []>} : vector<256x1xbf16>, vector<1x64xbf16>, vector<256x64xf32> -> vector<256x64xf32>
    %35 = arith.addf %28, %34 : vector<256x64xf32>
    %c0_35 = arith.constant 0 : index
    %c1_36 = arith.constant 1 : index
    %c2_37 = arith.constant 2 : index
    %c0_38 = arith.constant 0 : index
    %36 = vector.load %arg1[%c0_35, %c1_36, %c2_37, %c0_38] : memref<1x18x18x1xbf16, #tpu.memory_space<vmem>>, vector<1x16x16x1xbf16>
    %37 = vector.shape_cast %36 : vector<1x16x16x1xbf16> to vector<16x16x1xbf16>
    %38 = vector.shape_cast %37 : vector<16x16x1xbf16> to vector<256x1xbf16>
    %c5 = arith.constant 5 : index
    %c0_39 = arith.constant 0 : index
    %c0_40 = arith.constant 0 : index
    %39 = vector.load %arg2[%c5, %c0_39, %c0_40] : memref<9x1x64xbf16, #tpu.memory_space<vmem>>, vector<1x1x64xbf16>
    %40 = vector.shape_cast %39 : vector<1x1x64xbf16> to vector<1x64xbf16>
    %cst_41 = arith.constant dense<0.000000e+00> : vector<256x64xf32>
    %41 = tpu.matmul %38, %40, %cst_41 {dimension_numbers = #tpu.dot_dimension_numbers<[1], [0], [0], [1], [0, 0, 1, 1], [], []>} : vector<256x1xbf16>, vector<1x64xbf16>, vector<256x64xf32> -> vector<256x64xf32>
    %42 = arith.addf %35, %41 : vector<256x64xf32>
    %c0_42 = arith.constant 0 : index
    %c2_43 = arith.constant 2 : index
    %c0_44 = arith.constant 0 : index
    %c0_45 = arith.constant 0 : index
    %43 = vector.load %arg1[%c0_42, %c2_43, %c0_44, %c0_45] : memref<1x18x18x1xbf16, #tpu.memory_space<vmem>>, vector<1x16x16x1xbf16>
    %44 = vector.shape_cast %43 : vector<1x16x16x1xbf16> to vector<16x16x1xbf16>
    %45 = vector.shape_cast %44 : vector<16x16x1xbf16> to vector<256x1xbf16>
    %c6 = arith.constant 6 : index
    %c0_46 = arith.constant 0 : index
    %c0_47 = arith.constant 0 : index
    %46 = vector.load %arg2[%c6, %c0_46, %c0_47] : memref<9x1x64xbf16, #tpu.memory_space<vmem>>, vector<1x1x64xbf16>
    %47 = vector.shape_cast %46 : vector<1x1x64xbf16> to vector<1x64xbf16>
    %cst_48 = arith.constant dense<0.000000e+00> : vector<256x64xf32>
    %48 = tpu.matmul %45, %47, %cst_48 {dimension_numbers = #tpu.dot_dimension_numbers<[1], [0], [0], [1], [0, 0, 1, 1], [], []>} : vector<256x1xbf16>, vector<1x64xbf16>, vector<256x64xf32> -> vector<256x64xf32>
    %49 = arith.addf %42, %48 : vector<256x64xf32>
    %c0_49 = arith.constant 0 : index
    %c2_50 = arith.constant 2 : index
    %c1_51 = arith.constant 1 : index
    %c0_52 = arith.constant 0 : index
    %50 = vector.load %arg1[%c0_49, %c2_50, %c1_51, %c0_52] : memref<1x18x18x1xbf16, #tpu.memory_space<vmem>>, vector<1x16x16x1xbf16>
    %51 = vector.shape_cast %50 : vector<1x16x16x1xbf16> to vector<16x16x1xbf16>
    %52 = vector.shape_cast %51 : vector<16x16x1xbf16> to vector<256x1xbf16>
    %c7 = arith.constant 7 : index
    %c0_53 = arith.constant 0 : index
    %c0_54 = arith.constant 0 : index
    %53 = vector.load %arg2[%c7, %c0_53, %c0_54] : memref<9x1x64xbf16, #tpu.memory_space<vmem>>, vector<1x1x64xbf16>
    %54 = vector.shape_cast %53 : vector<1x1x64xbf16> to vector<1x64xbf16>
    %cst_55 = arith.constant dense<0.000000e+00> : vector<256x64xf32>
    %55 = tpu.matmul %52, %54, %cst_55 {dimension_numbers = #tpu.dot_dimension_numbers<[1], [0], [0], [1], [0, 0, 1, 1], [], []>} : vector<256x1xbf16>, vector<1x64xbf16>, vector<256x64xf32> -> vector<256x64xf32>
    %56 = arith.addf %49, %55 : vector<256x64xf32>
    %c0_56 = arith.constant 0 : index
    %c2_57 = arith.constant 2 : index
    %c2_58 = arith.constant 2 : index
    %c0_59 = arith.constant 0 : index
    %57 = vector.load %arg1[%c0_56, %c2_57, %c2_58, %c0_59] : memref<1x18x18x1xbf16, #tpu.memory_space<vmem>>, vector<1x16x16x1xbf16>
    %58 = vector.shape_cast %57 : vector<1x16x16x1xbf16> to vector<16x16x1xbf16>
    %59 = vector.shape_cast %58 : vector<16x16x1xbf16> to vector<256x1xbf16>
    %c8 = arith.constant 8 : index
    %c0_60 = arith.constant 0 : index
    %c0_61 = arith.constant 0 : index
    %60 = vector.load %arg2[%c8, %c0_60, %c0_61] : memref<9x1x64xbf16, #tpu.memory_space<vmem>>, vector<1x1x64xbf16>
    %61 = vector.shape_cast %60 : vector<1x1x64xbf16> to vector<1x64xbf16>
    %cst_62 = arith.constant dense<0.000000e+00> : vector<256x64xf32>
    %62 = tpu.matmul %59, %61, %cst_62 {dimension_numbers = #tpu.dot_dimension_numbers<[1], [0], [0], [1], [0, 0, 1, 1], [], []>} : vector<256x1xbf16>, vector<1x64xbf16>, vector<256x64xf32> -> vector<256x64xf32>
    %63 = arith.addf %56, %62 : vector<256x64xf32>
    %c0_63 = arith.constant 0 : index
    %c0_64 = arith.constant 0 : index
    %64 = vector.load %arg3[%c0_63, %c0_64] : memref<1x64xf32, #tpu.memory_space<vmem>>, vector<1x64xf32>
    %65 = vector.broadcast %64 : vector<1x64xf32> to vector<256x64xf32>
    %66 = arith.mulf %63, %65 : vector<256x64xf32>
    %c0_65 = arith.constant 0 : index
    %c0_66 = arith.constant 0 : index
    %67 = vector.load %arg4[%c0_65, %c0_66] : memref<1x64xf32, #tpu.memory_space<vmem>>, vector<1x64xf32>
    %68 = vector.broadcast %67 : vector<1x64xf32> to vector<256x64xf32>
    %69 = arith.addf %66, %68 : vector<256x64xf32>
    %cst_67 = arith.constant 0.000000e+00 : f32
    %70 = vector.broadcast %cst_67 : f32 to vector<256x64xf32>
    %71 = arith.maximumf %69, %70 : vector<256x64xf32>
    %72 = arith.truncf %71 : vector<256x64xf32> to vector<256x64xbf16>
    %c0_68 = arith.constant 0 : index
    %c0_69 = arith.constant 0 : index
    %c0_70 = arith.constant 0 : index
    %73 = vector.load %arg5[%c0_68, %c0_69, %c0_70] : memref<1x256x64xbf16, #tpu.memory_space<vmem>>, vector<1x256x64xbf16>
    %74 = vector.shape_cast %73 : vector<1x256x64xbf16> to vector<256x64xbf16>
    %75 = vector.shape_cast %72 : vector<256x64xbf16> to vector<1x256x64xbf16>
    tpu.vector_store %arg5[%c0_68, %c0_69, %c0_70], %75 {strides = array<i32>} : memref<1x256x64xbf16, #tpu.memory_space<vmem>>, vector<1x256x64xbf16>,
    return
  }
  func.func @transform_0(%arg0: i32) -> (i32, i32, i32, i32) {
    %c0_i32 = arith.constant 0 : i32
    %c0_i32_0 = arith.constant 0 : i32
    %c0_i32_1 = arith.constant 0 : i32
    %c0_i32_2 = arith.constant 0 : i32
    return %arg0, %c0_i32, %c0_i32_0, %c0_i32_1 : i32, i32, i32, i32
  }
  func.func @transform_1(%arg0: i32) -> (i32, i32, i32) {
    %c0_i32 = arith.constant 0 : i32
    %c0_i32_0 = arith.constant 0 : i32
    %c0_i32_1 = arith.constant 0 : i32
    %c0_i32_2 = arith.constant 0 : i32
    return %c0_i32, %c0_i32_0, %c0_i32_1 : i32, i32, i32
  }
  func.func @transform_2(%arg0: i32) -> (i32, i32) {
    %c0_i32 = arith.constant 0 : i32
    %c0_i32_0 = arith.constant 0 : i32
    %c0_i32_1 = arith.constant 0 : i32
    return %c0_i32, %c0_i32_0 : i32, i32
  }
  func.func @transform_3(%arg0: i32) -> (i32, i32) {
    %c0_i32 = arith.constant 0 : i32
    %c0_i32_0 = arith.constant 0 : i32
    %c0_i32_1 = arith.constant 0 : i32
    return %c0_i32, %c0_i32_0 : i32, i32
  }
  func.func @transform_4(%arg0: i32) -> (i32, i32, i32) {
    %c0_i32 = arith.constant 0 : i32
    %c0_i32_0 = arith.constant 0 : i32
    %c0_i32_1 = arith.constant 0 : i32
    return %arg0, %c0_i32, %c0_i32_0 : i32, i32, i32
  }
}

module attributes {stable_mosaic.version = 11 : i64} {
  func.func @_conv3x3_kernel(%arg0: i32, %arg1: memref<1x18x18x64xbf16, #tpu.memory_space<vmem>>, %arg2: memref<9x64x128xbf16, #tpu.memory_space<vmem>>, %arg3: memref<1x128xf32, #tpu.memory_space<vmem>>, %arg4: memref<1x128xf32, #tpu.memory_space<vmem>>, %arg5: memref<1x256x128xf32, #tpu.memory_space<vmem>>) attributes {dimension_semantics = [#tpu.dimension_semantics<parallel>], iteration_bounds = array<i64: 2>, scalar_prefetch = 0 : i64, scratch_operands = 0 : i64, tpu.core_type = #tpu.core_type<tc>, window_params = [{transform_indices = @transform_0, window_bounds = array<i64: 1, 18, 18, 64>}, {pipeline_mode = #tpu.pipeline_mode<synchronous>, transform_indices = @transform_1, window_bounds = array<i64: 9, 64, 128>}, {pipeline_mode = #tpu.pipeline_mode<synchronous>, transform_indices = @transform_2, window_bounds = array<i64: 1, 128>}, {pipeline_mode = #tpu.pipeline_mode<synchronous>, transform_indices = @transform_3, window_bounds = array<i64: 1, 128>}, {transform_indices = @transform_4, window_bounds = array<i64: 1, 256, 128>}]} {
    %cst = arith.constant 0.000000e+00 : f32
    %0 = vector.broadcast %cst : f32 to vector<256x128xf32>
    %c0 = arith.constant 0 : index
    %c0_0 = arith.constant 0 : index
    %c0_1 = arith.constant 0 : index
    %c0_2 = arith.constant 0 : index
    %1 = vector.load %arg1[%c0, %c0_0, %c0_1, %c0_2] : memref<1x18x18x64xbf16, #tpu.memory_space<vmem>>, vector<1x16x16x64xbf16>
    %2 = vector.shape_cast %1 : vector<1x16x16x64xbf16> to vector<16x16x64xbf16>
    %3 = vector.shape_cast %2 : vector<16x16x64xbf16> to vector<256x64xbf16>
    %c0_3 = arith.constant 0 : index
    %c0_4 = arith.constant 0 : index
    %c0_5 = arith.constant 0 : index
    %4 = vector.load %arg2[%c0_3, %c0_4, %c0_5] : memref<9x64x128xbf16, #tpu.memory_space<vmem>>, vector<1x64x128xbf16>
    %5 = vector.shape_cast %4 : vector<1x64x128xbf16> to vector<64x128xbf16>
    %cst_6 = arith.constant dense<0.000000e+00> : vector<256x128xf32>
    %6 = tpu.matmul %3, %5, %cst_6 {dimension_numbers = #tpu.dot_dimension_numbers<[1], [0], [0], [1], [0, 0, 1, 1], [], []>} : vector<256x64xbf16>, vector<64x128xbf16>, vector<256x128xf32> -> vector<256x128xf32>
    %7 = arith.addf %0, %6 : vector<256x128xf32>
    %c0_7 = arith.constant 0 : index
    %c0_8 = arith.constant 0 : index
    %c1 = arith.constant 1 : index
    %c0_9 = arith.constant 0 : index
    %8 = vector.load %arg1[%c0_7, %c0_8, %c1, %c0_9] : memref<1x18x18x64xbf16, #tpu.memory_space<vmem>>, vector<1x16x16x64xbf16>
    %9 = vector.shape_cast %8 : vector<1x16x16x64xbf16> to vector<16x16x64xbf16>
    %10 = vector.shape_cast %9 : vector<16x16x64xbf16> to vector<256x64xbf16>
    %c1_10 = arith.constant 1 : index
    %c0_11 = arith.constant 0 : index
    %c0_12 = arith.constant 0 : index
    %11 = vector.load %arg2[%c1_10, %c0_11, %c0_12] : memref<9x64x128xbf16, #tpu.memory_space<vmem>>, vector<1x64x128xbf16>
    %12 = vector.shape_cast %11 : vector<1x64x128xbf16> to vector<64x128xbf16>
    %cst_13 = arith.constant dense<0.000000e+00> : vector<256x128xf32>
    %13 = tpu.matmul %10, %12, %cst_13 {dimension_numbers = #tpu.dot_dimension_numbers<[1], [0], [0], [1], [0, 0, 1, 1], [], []>} : vector<256x64xbf16>, vector<64x128xbf16>, vector<256x128xf32> -> vector<256x128xf32>
    %14 = arith.addf %7, %13 : vector<256x128xf32>
    %c0_14 = arith.constant 0 : index
    %c0_15 = arith.constant 0 : index
    %c2 = arith.constant 2 : index
    %c0_16 = arith.constant 0 : index
    %15 = vector.load %arg1[%c0_14, %c0_15, %c2, %c0_16] : memref<1x18x18x64xbf16, #tpu.memory_space<vmem>>, vector<1x16x16x64xbf16>
    %16 = vector.shape_cast %15 : vector<1x16x16x64xbf16> to vector<16x16x64xbf16>
    %17 = vector.shape_cast %16 : vector<16x16x64xbf16> to vector<256x64xbf16>
    %c2_17 = arith.constant 2 : index
    %c0_18 = arith.constant 0 : index
    %c0_19 = arith.constant 0 : index
    %18 = vector.load %arg2[%c2_17, %c0_18, %c0_19] : memref<9x64x128xbf16, #tpu.memory_space<vmem>>, vector<1x64x128xbf16>
    %19 = vector.shape_cast %18 : vector<1x64x128xbf16> to vector<64x128xbf16>
    %cst_20 = arith.constant dense<0.000000e+00> : vector<256x128xf32>
    %20 = tpu.matmul %17, %19, %cst_20 {dimension_numbers = #tpu.dot_dimension_numbers<[1], [0], [0], [1], [0, 0, 1, 1], [], []>} : vector<256x64xbf16>, vector<64x128xbf16>, vector<256x128xf32> -> vector<256x128xf32>
    %21 = arith.addf %14, %20 : vector<256x128xf32>
    %c0_21 = arith.constant 0 : index
    %c1_22 = arith.constant 1 : index
    %c0_23 = arith.constant 0 : index
    %c0_24 = arith.constant 0 : index
    %22 = vector.load %arg1[%c0_21, %c1_22, %c0_23, %c0_24] : memref<1x18x18x64xbf16, #tpu.memory_space<vmem>>, vector<1x16x16x64xbf16>
    %23 = vector.shape_cast %22 : vector<1x16x16x64xbf16> to vector<16x16x64xbf16>
    %24 = vector.shape_cast %23 : vector<16x16x64xbf16> to vector<256x64xbf16>
    %c3 = arith.constant 3 : index
    %c0_25 = arith.constant 0 : index
    %c0_26 = arith.constant 0 : index
    %25 = vector.load %arg2[%c3, %c0_25, %c0_26] : memref<9x64x128xbf16, #tpu.memory_space<vmem>>, vector<1x64x128xbf16>
    %26 = vector.shape_cast %25 : vector<1x64x128xbf16> to vector<64x128xbf16>
    %cst_27 = arith.constant dense<0.000000e+00> : vector<256x128xf32>
    %27 = tpu.matmul %24, %26, %cst_27 {dimension_numbers = #tpu.dot_dimension_numbers<[1], [0], [0], [1], [0, 0, 1, 1], [], []>} : vector<256x64xbf16>, vector<64x128xbf16>, vector<256x128xf32> -> vector<256x128xf32>
    %28 = arith.addf %21, %27 : vector<256x128xf32>
    %c0_28 = arith.constant 0 : index
    %c1_29 = arith.constant 1 : index
    %c1_30 = arith.constant 1 : index
    %c0_31 = arith.constant 0 : index
    %29 = vector.load %arg1[%c0_28, %c1_29, %c1_30, %c0_31] : memref<1x18x18x64xbf16, #tpu.memory_space<vmem>>, vector<1x16x16x64xbf16>
    %30 = vector.shape_cast %29 : vector<1x16x16x64xbf16> to vector<16x16x64xbf16>
    %31 = vector.shape_cast %30 : vector<16x16x64xbf16> to vector<256x64xbf16>
    %c4 = arith.constant 4 : index
    %c0_32 = arith.constant 0 : index
    %c0_33 = arith.constant 0 : index
    %32 = vector.load %arg2[%c4, %c0_32, %c0_33] : memref<9x64x128xbf16, #tpu.memory_space<vmem>>, vector<1x64x128xbf16>
    %33 = vector.shape_cast %32 : vector<1x64x128xbf16> to vector<64x128xbf16>
    %cst_34 = arith.constant dense<0.000000e+00> : vector<256x128xf32>
    %34 = tpu.matmul %31, %33, %cst_34 {dimension_numbers = #tpu.dot_dimension_numbers<[1], [0], [0], [1], [0, 0, 1, 1], [], []>} : vector<256x64xbf16>, vector<64x128xbf16>, vector<256x128xf32> -> vector<256x128xf32>
    %35 = arith.addf %28, %34 : vector<256x128xf32>
    %c0_35 = arith.constant 0 : index
    %c1_36 = arith.constant 1 : index
    %c2_37 = arith.constant 2 : index
    %c0_38 = arith.constant 0 : index
    %36 = vector.load %arg1[%c0_35, %c1_36, %c2_37, %c0_38] : memref<1x18x18x64xbf16, #tpu.memory_space<vmem>>, vector<1x16x16x64xbf16>
    %37 = vector.shape_cast %36 : vector<1x16x16x64xbf16> to vector<16x16x64xbf16>
    %38 = vector.shape_cast %37 : vector<16x16x64xbf16> to vector<256x64xbf16>
    %c5 = arith.constant 5 : index
    %c0_39 = arith.constant 0 : index
    %c0_40 = arith.constant 0 : index
    %39 = vector.load %arg2[%c5, %c0_39, %c0_40] : memref<9x64x128xbf16, #tpu.memory_space<vmem>>, vector<1x64x128xbf16>
    %40 = vector.shape_cast %39 : vector<1x64x128xbf16> to vector<64x128xbf16>
    %cst_41 = arith.constant dense<0.000000e+00> : vector<256x128xf32>
    %41 = tpu.matmul %38, %40, %cst_41 {dimension_numbers = #tpu.dot_dimension_numbers<[1], [0], [0], [1], [0, 0, 1, 1], [], []>} : vector<256x64xbf16>, vector<64x128xbf16>, vector<256x128xf32> -> vector<256x128xf32>
    %42 = arith.addf %35, %41 : vector<256x128xf32>
    %c0_42 = arith.constant 0 : index
    %c2_43 = arith.constant 2 : index
    %c0_44 = arith.constant 0 : index
    %c0_45 = arith.constant 0 : index
    %43 = vector.load %arg1[%c0_42, %c2_43, %c0_44, %c0_45] : memref<1x18x18x64xbf16, #tpu.memory_space<vmem>>, vector<1x16x16x64xbf16>
    %44 = vector.shape_cast %43 : vector<1x16x16x64xbf16> to vector<16x16x64xbf16>
    %45 = vector.shape_cast %44 : vector<16x16x64xbf16> to vector<256x64xbf16>
    %c6 = arith.constant 6 : index
    %c0_46 = arith.constant 0 : index
    %c0_47 = arith.constant 0 : index
    %46 = vector.load %arg2[%c6, %c0_46, %c0_47] : memref<9x64x128xbf16, #tpu.memory_space<vmem>>, vector<1x64x128xbf16>
    %47 = vector.shape_cast %46 : vector<1x64x128xbf16> to vector<64x128xbf16>
    %cst_48 = arith.constant dense<0.000000e+00> : vector<256x128xf32>
    %48 = tpu.matmul %45, %47, %cst_48 {dimension_numbers = #tpu.dot_dimension_numbers<[1], [0], [0], [1], [0, 0, 1, 1], [], []>} : vector<256x64xbf16>, vector<64x128xbf16>, vector<256x128xf32> -> vector<256x128xf32>
    %49 = arith.addf %42, %48 : vector<256x128xf32>
    %c0_49 = arith.constant 0 : index
    %c2_50 = arith.constant 2 : index
    %c1_51 = arith.constant 1 : index
    %c0_52 = arith.constant 0 : index
    %50 = vector.load %arg1[%c0_49, %c2_50, %c1_51, %c0_52] : memref<1x18x18x64xbf16, #tpu.memory_space<vmem>>, vector<1x16x16x64xbf16>
    %51 = vector.shape_cast %50 : vector<1x16x16x64xbf16> to vector<16x16x64xbf16>
    %52 = vector.shape_cast %51 : vector<16x16x64xbf16> to vector<256x64xbf16>
    %c7 = arith.constant 7 : index
    %c0_53 = arith.constant 0 : index
    %c0_54 = arith.constant 0 : index
    %53 = vector.load %arg2[%c7, %c0_53, %c0_54] : memref<9x64x128xbf16, #tpu.memory_space<vmem>>, vector<1x64x128xbf16>
    %54 = vector.shape_cast %53 : vector<1x64x128xbf16> to vector<64x128xbf16>
    %cst_55 = arith.constant dense<0.000000e+00> : vector<256x128xf32>
    %55 = tpu.matmul %52, %54, %cst_55 {dimension_numbers = #tpu.dot_dimension_numbers<[1], [0], [0], [1], [0, 0, 1, 1], [], []>} : vector<256x64xbf16>, vector<64x128xbf16>, vector<256x128xf32> -> vector<256x128xf32>
    %56 = arith.addf %49, %55 : vector<256x128xf32>
    %c0_56 = arith.constant 0 : index
    %c2_57 = arith.constant 2 : index
    %c2_58 = arith.constant 2 : index
    %c0_59 = arith.constant 0 : index
    %57 = vector.load %arg1[%c0_56, %c2_57, %c2_58, %c0_59] : memref<1x18x18x64xbf16, #tpu.memory_space<vmem>>, vector<1x16x16x64xbf16>
    %58 = vector.shape_cast %57 : vector<1x16x16x64xbf16> to vector<16x16x64xbf16>
    %59 = vector.shape_cast %58 : vector<16x16x64xbf16> to vector<256x64xbf16>
    %c8 = arith.constant 8 : index
    %c0_60 = arith.constant 0 : index
    %c0_61 = arith.constant 0 : index
    %60 = vector.load %arg2[%c8, %c0_60, %c0_61] : memref<9x64x128xbf16, #tpu.memory_space<vmem>>, vector<1x64x128xbf16>
    %61 = vector.shape_cast %60 : vector<1x64x128xbf16> to vector<64x128xbf16>
    %cst_62 = arith.constant dense<0.000000e+00> : vector<256x128xf32>
    %62 = tpu.matmul %59, %61, %cst_62 {dimension_numbers = #tpu.dot_dimension_numbers<[1], [0], [0], [1], [0, 0, 1, 1], [], []>} : vector<256x64xbf16>, vector<64x128xbf16>, vector<256x128xf32> -> vector<256x128xf32>
    %63 = arith.addf %56, %62 : vector<256x128xf32>
    %c0_63 = arith.constant 0 : index
    %c0_64 = arith.constant 0 : index
    %64 = vector.load %arg3[%c0_63, %c0_64] : memref<1x128xf32, #tpu.memory_space<vmem>>, vector<1x128xf32>
    %65 = vector.broadcast %64 : vector<1x128xf32> to vector<256x128xf32>
    %66 = arith.mulf %63, %65 : vector<256x128xf32>
    %c0_65 = arith.constant 0 : index
    %c0_66 = arith.constant 0 : index
    %67 = vector.load %arg4[%c0_65, %c0_66] : memref<1x128xf32, #tpu.memory_space<vmem>>, vector<1x128xf32>
    %68 = vector.broadcast %67 : vector<1x128xf32> to vector<256x128xf32>
    %69 = arith.addf %66, %68 : vector<256x128xf32>
    %c0_67 = arith.constant 0 : index
    %c0_68 = arith.constant 0 : index
    %c0_69 = arith.constant 0 : index
    %70 = vector.load %arg5[%c0_67, %c0_68, %c0_69] : memref<1x256x128xf32, #tpu.memory_space<vmem>>, vector<1x256x128xf32>
    %71 = vector.shape_cast %70 : vector<1x256x128xf32> to vector<256x128xf32>
    %72 = vector.shape_cast %69 : vector<256x128xf32> to vector<1x256x128xf32>
    tpu.vector_store %arg5[%c0_67, %c0_68, %c0_69], %72 {strides = array<i32>} : memref<1x256x128xf32, #tpu.memory_space<vmem>>, vector<1x256x128xf32>,
    return
  }
  func.func @transform_0(%arg0: i32) -> (i32, i32, i32, i32) {
    %c0_i32 = arith.constant 0 : i32
    %c0_i32_0 = arith.constant 0 : i32
    %c0_i32_1 = arith.constant 0 : i32
    %c0_i32_2 = arith.constant 0 : i32
    return %arg0, %c0_i32, %c0_i32_0, %c0_i32_1 : i32, i32, i32, i32
  }
  func.func @transform_1(%arg0: i32) -> (i32, i32, i32) {
    %c0_i32 = arith.constant 0 : i32
    %c0_i32_0 = arith.constant 0 : i32
    %c0_i32_1 = arith.constant 0 : i32
    %c0_i32_2 = arith.constant 0 : i32
    return %c0_i32, %c0_i32_0, %c0_i32_1 : i32, i32, i32
  }
  func.func @transform_2(%arg0: i32) -> (i32, i32) {
    %c0_i32 = arith.constant 0 : i32
    %c0_i32_0 = arith.constant 0 : i32
    %c0_i32_1 = arith.constant 0 : i32
    return %c0_i32, %c0_i32_0 : i32, i32
  }
  func.func @transform_3(%arg0: i32) -> (i32, i32) {
    %c0_i32 = arith.constant 0 : i32
    %c0_i32_0 = arith.constant 0 : i32
    %c0_i32_1 = arith.constant 0 : i32
    return %c0_i32, %c0_i32_0 : i32, i32
  }
  func.func @transform_4(%arg0: i32) -> (i32, i32, i32) {
    %c0_i32 = arith.constant 0 : i32
    %c0_i32_0 = arith.constant 0 : i32
    %c0_i32_1 = arith.constant 0 : i32
    return %arg0, %c0_i32, %c0_i32_0 : i32, i32, i32
  }
}

</mosaic_0001>

<bundles_post_ra>
// kernel: _lambda_.17
= control target key start
LH: loop header
LB: loop body
LE: loop exit
PB: predicated region body
PF: predicated region fallthrough
CT: control target
= control target key end

     0   :  { %s6562_s15 = smov 0   ;;  %s8459_s0 = inlined_call_operand.vmem [shape: bf16[2,18,18,1], index: 0, kind: input, shape index: {}]   ;;  %s8460_s1 = inlined_call_operand.vmem [shape: bf16[9,1,64], index: 1, kind: input, shape index: {}]   ;;  %s8461_s2 = inlined_call_operand.vmem [shape: f32[1,64], index: 2, kind: input, shape index: {}]   ;;  %s8462_s3 = inlined_call_operand.vmem [shape: f32[1,64], index: 3, kind: input, shape index: {}]   ;;  %s8463_s4 = inlined_call_operand.vmem [shape: bf16[2,256,64], index: 4, kind: output, shape index: {}]  }
   0x1 LB: > { %s5086_s16 = sadd.s32 4294967295, %s6534_s15   ;;  %p5090_p0 = scmp.ge.s32.totalorder %s6534_s15, 1  ;;  %s6534_s15 = sphi %s6562_s15, %s14_s15  }
   0x2   : > { %p162_p1 = scmp.lt.s32.totalorder %s6534_s15, 3 }
   0x4   : > { %p163_p2 = pnand %p5090_p0, %p162_p1 }
   0x6   : > { %166 = sbr.rel (%p163_p2) target bundleno = 592 (0x250), region = 36 }
   0xd   : > { %v5094_v0 = vld [vmem:[%s8460_s1 + $0x1] sm:$0x1]  ;;  %vm734_vm0 = vcmask 1040384   ;;  %v5321_v1 = vld [vmem:[%s8460_s1 + $0x4] sm:$0x1]  ;;  %v6536_v2 = vmov 0  }
   0xe   : > { %v6576_v3 = vsel %vm734_vm0, 65535, %v6536_v2  ;;  %p188_p3 = scmp.lt.s32.totalorder %s5086_s16, 1  ;;  %v231_v6 = vld [vmem:[%s8460_s1] sm:$0x1]  ;;  %v5386_v7 = vld [vmem:[%s8460_s1 + $0x5] sm:$0x1] }
   0xf   : > { %v738_v4 = vand.u32 %v5094_v0, %v6576_v3  ;;  %v6580_v5 = vand.u32 %v5321_v1, %v6576_v3  ;;  %v6591_v8 = vand.u32 %v6576_v3, %v231_v6  ;;  %v6594_v9 = vand.u32 %v5386_v7, %v6576_v3  ;;  %v5451_v25 = vld [vmem:[%s8460_s1 + $0x6] sm:$0x1]  ;;  %v5175_v30 = vld [vmem:[%s8460_s1 + $0x2] sm:$0x1] }
  0x10   : > { %s8542_s16 = smov (!%p188_p3, %s5086_s16), 1  ;;  %vm248_vm1 = vsmask.f32 3328  ;;  %vm249_vm2 = vsmask.f32 7440  ;;  %vm685_vm3 = vcmask 7168   ;;  %v6634_v41 = vand.u32 %v5451_v25, %v6576_v3 }
  0x11   : > { %8480 = vst [vmem:[#allocation2_spill] sm:$0xff] %v6580_v5  ;;  %5852 = vmatprep.subr.bf16.mxu1 %v738_v4  ;;  %5988 = vmatprep.subr.bf16.mxu0 %v6580_v5  ;;  %s6416_s25 = smul.u32 216, %s8542_s16  ;;  %vm6628_vm4 = vmor %vm248_vm1, %vm249_vm2  ;;  %v6637_v45 = vand.u32 %v5175_v30, %v6576_v3  ;;  %vm1241_vm5 = vcmask 1042432   ;;  %vm1242_vm6 = vcmask 1046532   ;;  %s5666_s19 = sshll.u32 %s8542_s16, 7  ;;  %vm4998_vm8 = vcmask 519168  }
  0x12   : > { %5853 = vmatpush3.bf16.msra.mxu1 %v738_v4  ;;  %5989 = vmatpush3.bf16.msra.mxu0 %v6580_v5  ;;  %vm6849_vm7 = vmor %vm1241_vm5, %vm1242_vm6  ;;  %s8326_s22 = scalar_lea.vmem %s8463_s4, %s5666_s19 }
  0x13   : > { %5886 = vmatprep.subr.bf16.mxu1 %v6591_v8  ;;  %6022 = vmatprep.subr.bf16.mxu0 %v6594_v9  ;;  %s6604_s28 = scalar_lea.vmem %s8459_s0, %s6416_s25 }
  0x14   : > { %v199_v10 = vld [vmem:[%s6604_s28] sm:$0xf]  ;;  %v200_v11 = vld [vmem:[%s6604_s28 + $0x4] sm:$0xf]  ;;  %v232_v12 = vld [vmem:[%s6604_s28 + $0x8] sm:$0x1] }
  0x15   : > { %v252_v13 = vshrl.u32 %v199_v10, 16  ;;  %v255_v14 = vshll.u32 %v199_v10, 16  ;;  %v261_v15 = vshll.u32 %v200_v11, 16  ;;  %v265_v16 = vshrl.u32 %v200_v11, 16  ;;  %v5273_v17 = vld [vmem:[%s6604_s28 + $0xc] sm:$0xf] }
  0x16   : > { %v271_v18 = vshll.u32 %v232_v12, 16  ;;  %v6611_v19 = vld [vmem:[%s6604_s28 + $0x10] sm:$0xf]  ;;  %v6614_v20 = vld [vmem:[%s6604_s28 + $0x14] sm:$0x1]  ;;  %v2058_v27 = vshrl.u32 %v5273_v17, 16 }
  0x17   : > { %v254_v21 = vrot.slane %v252_v13, 4  ;;  %v257_v22 = vrot.slane %v255_v14, 5  ;;  %v263_v23 = vrot.slane %v261_v15, 5  ;;  %v267_v24 = vrot.slane %v265_v16, 4  ;;  %v201_v35 = vld [vmem:[%s6604_s28 + $0xc] sm:$0xf] }
  0x18   : > { %v273_v26 = vrot.slane %v271_v18, 5  ;;  %v2061_v28 = vshll.u32 %v5273_v17, 16  ;;  %v2067_v29 = vshll.u32 %v6611_v19, 16  ;;  %v2071_v33 = vshrl.u32 %v6611_v19, 16  ;;  %v202_v40 = vld [vmem:[%s6604_s28 + $0x10] sm:$0xf] }
  0x19   : > { %v258_v31 = vor.u32 %v257_v22, %v254_v21  ;;  %v268_v32 = vor.u32 %v267_v24, %v263_v23  ;;  %v2077_v34 = vshll.u32 %v6614_v20, 16  ;;  %v2060_v37 = vrot.slane %v2058_v27, 4  ;;  %v233_v48 = vld [vmem:[%s6604_s28 + $0x14] sm:$0x1]  ;;  %v5276_v59 = vld [vmem:[%s6604_s28 + $0x18] sm:$0xf] }
  0x1a   : > { %v2063_v38 = vrot.slane %v2061_v28, 5  ;;  %v2069_v39 = vrot.slane %v2067_v29, 5  ;;  %v2073_v44 = vrot.slane %v2071_v33, 4  ;;  %v276_v49 = vshrl.u32 %v201_v35, 16  ;;  %v6646_v0 = vld [vmem:[%s6604_s28 + $0x1c] sm:$0xf] }
  0x1b   : > { %v259_v42 = vrot.slane %v258_v31, 4  ;;  %v269_v43 = vrot.slane %v268_v32, 4  ;;  %v2079_v47 = vrot.slane %v2077_v34, 5  ;;  %v279_v50 = vshll.u32 %v201_v35, 16  ;;  %v6654_v7 = vld [vmem:[%s6604_s28 + $0x20] sm:$0x1] }
  0x1c   : > { %v2064_v46 = vor.u32 %v2063_v38, %v2060_v37  ;;  %v2074_v53 = vor.u32 %v2073_v44, %v2069_v39  ;;  %v285_v54 = vshll.u32 %v202_v40, 16  ;;  %v278_v57 = vrot.slane %v276_v49, 4  ;;  %v203_v24 = vld [vmem:[%s6604_s28 + $0x18] sm:$0xf]  ;;  %v204_v29 = vld [vmem:[%s6604_s28 + $0x1c] sm:$0xf] }
  0x1d   : > { %v264_v51 = vsel %vm6628_vm4, %v259_v42, %v263_v23  ;;  %v274_v52 = vsel %vm6628_vm4, %v269_v43, %v273_v26  ;;  %v281_v58 = vrot.slane %v279_v50, 5  ;;  %v289_v62 = vshrl.u32 %v202_v40, 16  ;;  %v234_v37 = vld [vmem:[%s6604_s28 + $0x20] sm:$0x1] }
  0x1e   : > { %v5095_v55 = vcombine.low %v264_v51, %v274_v52  ;;  %v2065_v56 = vrot.slane %v2064_v46, 4  ;;  %v2075_v60 = vrot.slane %v2074_v53, 4  ;;  %v287_v61 = vrot.slane %v285_v54, 5  ;;  %v5279_v46 = vld [vmem:[%s6604_s28 + $0x24] sm:$0xf] }
  0x1f   : > { %v295_v63 = vshll.u32 %v233_v48, 16  ;;  %v2801_v2 = vrot.slane %v6611_v19, 5  ;;  %v2804_v4 = vrot.slane %v6614_v20, 5  ;;  %v282_v6 = vor.u32 %v281_v58, %v278_v57  ;;  %v6677_v51 = vld [vmem:[%s6604_s28 + $0x28] sm:$0xf] }
  0x20   : > { %5854 = vmatprep.mubr.msk.bf16.mxu1 %vm685_vm3, %v5095_v55  ;;  %v2070_v1 = vsel %vm6628_vm4, %v2065_v56, %v2069_v39  ;;  %v2080_v10 = vsel %vm6628_vm4, %v2075_v60, %v2079_v47  ;;  %v291_v11 = vrot.slane %v289_v62, 4  ;;  %v2082_v13 = vshrl.u32 %v5276_v59, 16  ;;  %v6683_v58 = vld [vmem:[%s6604_s28 + $0x2c] sm:$0x1]  ;;  %v6882_v20 = vld [vmem:[%s6604_s28 + $0x7c] sm:$0xf] }
  0x21   : > { %v297_v12 = vrot.slane %v295_v63, 5  ;;  %v5322_v14 = vcombine.low %v2070_v1, %v2080_v10  ;;  %v283_v15 = vrot.slane %v282_v6, 4  ;;  %v2085_v16 = vshll.u32 %v5276_v59, 16  ;;  %v205_v6 = vld [vmem:[%s6604_s28 + $0x24] sm:$0xf] }
  0x22   : > { %v2091_v17 = vshll.u32 %v6646_v0, 16  ;;  %v292_v18 = vor.u32 %v291_v11, %v287_v61  ;;  %v2084_v21 = vrot.slane %v2082_v13, 4  ;;  %v2095_v22 = vshrl.u32 %v6646_v0, 16 }
  0x23   : > { %v2101_v23 = vshll.u32 %v6654_v7, 16  ;;  %5990 = vmatprep.mubr.msk.bf16.mxu0 %vm685_vm3, %v5322_v14  ;;  %v288_v25 = vsel %vm6628_vm4, %v283_v15, %v287_v61  ;;  %v2087_v26 = vrot.slane %v2085_v16, 5  ;;  %v2808_v28 = vrot.slane %v6646_v0, 5  ;;  %v206_v14 = vld [vmem:[%s6604_s28 + $0x28] sm:$0xf] }
  0x24   : > { %v2093_v27 = vrot.slane %v2091_v17, 5  ;;  %v293_v30 = vrot.slane %v292_v18, 4  ;;  %v2097_v31 = vrot.slane %v2095_v22, 4  ;;  %v2811_v33 = vrot.slane %v6654_v7, 5  ;;  %v235_v22 = vld [vmem:[%s6604_s28 + $0x2c] sm:$0x1] }
  0x25   : > { %v2103_v32 = vrot.slane %v2101_v23, 5  ;;  %v2088_v34 = vor.u32 %v2087_v26, %v2084_v21  ;;  %v6670_v35 = vrot.slane %v2808_v28, 4  ;;  %v300_v38 = vshrl.u32 %v203_v24, 16 }
  0x26   : > { %v303_v39 = vshll.u32 %v203_v24, 16  ;;  %v298_v40 = vsel %vm6628_vm4, %v293_v30, %v297_v12  ;;  %v2098_v42 = vor.u32 %v2097_v31, %v2093_v27  ;;  %v309_v43 = vshll.u32 %v204_v29, 16  ;;  %v5282_v30 = vld [vmem:[%s6604_s28 + $0x30] sm:$0xf] }
  0x27   : > { %v313_v44 = vshrl.u32 %v204_v29, 16  ;;  %v5096_v47 = vcombine.low %v288_v25, %v298_v40  ;;  %v2089_v48 = vrot.slane %v2088_v34, 4  ;;  %v302_v49 = vrot.slane %v300_v38, 4  ;;  %v6703_v38 = vld [vmem:[%s6604_s28 + $0x34] sm:$0xf] }
  0x28   : > { %v305_v50 = vrot.slane %v303_v39, 5  ;;  %v2099_v52 = vrot.slane %v2098_v42, 4  ;;  %v311_v53 = vrot.slane %v309_v43, 5  ;;  %v319_v55 = vshll.u32 %v234_v37, 16 }
  0x29   : > { %v315_v54 = vrot.slane %v313_v44, 4  ;;  %5855 = vmatmul.mubr.msk.bf16.vlgmr.msra.gmra.mrb[0].mxu1 %vm685_vm3, %v5096_v47  ;;  %v2094_v56 = vsel %vm6628_vm4, %v2089_v48, %v2093_v27  ;;  %v2106_v59 = vshrl.u32 %v5279_v46, 16  ;;  %v2109_v60 = vshll.u32 %v5279_v46, 16  ;;  %v6710_v46 = vld [vmem:[%s6604_s28 + $0x38] sm:$0x1] }
  0x2a   : > { %v306_v57 = vor.u32 %v305_v50, %v302_v49  ;;  %5887 = vmatpush3.bf16.msra.mxu1 %v6591_v8  ;;  %v2104_v61 = vsel %vm6628_vm4, %v2099_v52, %v2103_v32  ;;  %v321_v63 = vrot.slane %v319_v55, 5  ;;  %v2115_v1 = vshll.u32 %v6677_v51, 16 }
  0x2b   : > { %v316_v62 = vor.u32 %v315_v54, %v311_v53  ;;  %v5323_v10 = vcombine.low %v2094_v56, %v2104_v61  ;;  %v2108_v12 = vrot.slane %v2106_v59, 4  ;;  %v2111_v13 = vrot.slane %v2109_v60, 5  ;;  %5920 = vmatprep.subr.bf16.mxu1 %v6637_v45  ;;  %v207_v59 = vld [vmem:[%s6604_s28 + $0x30] sm:$0xf] }
  0x2c   : > { %v307_v11 = vrot.slane %v306_v57, 4  ;;  %v2117_v16 = vrot.slane %v2115_v1, 5  ;;  %v2119_v8 = vshrl.u32 %v6677_v51, 16  ;;  %v2125_v17 = vshll.u32 %v6683_v58, 16  ;;  %v208_v1 = vld [vmem:[%s6604_s28 + $0x34] sm:$0xf] }
  0x2d   : > { %v317_v15 = vrot.slane %v316_v62, 4  ;;  %5991 = vmatmul.mubr.msk.bf16.vlgmr.msra.gmra.mrb[0].mxu0 %vm685_vm3, %v5323_v10  ;;  %v2112_v21 = vor.u32 %v2111_v13, %v2108_v12  ;;  %v324_v23 = vshrl.u32 %v205_v6, 16  ;;  %v327_v24 = vshll.u32 %v205_v6, 16  ;;  %v236_v13 = vld [vmem:[%s6604_s28 + $0x38] sm:$0x1] }
  0x2e   : > { %v312_v18 = vsel %vm6628_vm4, %v307_v11, %v311_v53  ;;  %6023 = vmatpush3.bf16.msra.mxu0 %v6594_v9  ;;  %v2121_v26 = vrot.slane %v2119_v8, 4  ;;  %v2127_v27 = vrot.slane %v2125_v17, 5  ;;  %v333_v29 = vshll.u32 %v206_v14, 16 }
  0x2f   : > { %v322_v25 = vsel %vm6628_vm4, %v317_v15, %v321_v63  ;;  %v2113_v32 = vrot.slane %v2112_v21, 4  ;;  %v326_v34 = vrot.slane %v324_v23, 4  ;;  %v329_v37 = vrot.slane %v327_v24, 5  ;;  %6056 = vmatprep.subr.bf16.mxu0 %v6634_v41  ;;  %v5285_v23 = vld [vmem:[%s6604_s28 + $0x3c] sm:$0xf] }
  0x30   : > { %v5097_v31 = vcombine.low %v312_v18, %v322_v25  ;;  %v2122_v39 = vor.u32 %v2121_v26, %v2117_v16  ;;  %v335_v40 = vrot.slane %v333_v29, 5  ;;  %v337_v42 = vshrl.u32 %v206_v14, 16  ;;  %v6727_v29 = vld [vmem:[%s6604_s28 + $0x40] sm:$0xf] }
  0x31   : > { %v343_v9 = vshll.u32 %v235_v22, 16  ;;  %v2118_v43 = vsel %vm6628_vm4, %v2113_v32, %v2117_v16  ;;  %v330_v44 = vor.u32 %v329_v37, %v326_v34  ;;  %v2130_v47 = vshrl.u32 %v5282_v30, 16 }
  0x32   : > { %5858 = vmatprep.mubr.msk.bf16.mxu1 %vm685_vm3, %v5097_v31  ;;  %v2133_v48 = vshll.u32 %v5282_v30, 16  ;;  %v2123_v49 = vrot.slane %v2122_v39, 4  ;;  %v339_v50 = vrot.slane %v337_v42, 4  ;;  %v2139_v53 = vshll.u32 %v6703_v38, 16  ;;  %v6732_v42 = vld [vmem:[%s6604_s28 + $0x44] sm:$0x1] }
  0x33   : > { %v345_v52 = vrot.slane %v343_v9, 5  ;;  %v331_v54 = vrot.slane %v330_v44, 4  ;;  %v2132_v55 = vrot.slane %v2130_v47, 4  ;;  %v2143_v57 = vshrl.u32 %v6703_v38, 16 }
  0x34   : > { %v2135_v56 = vrot.slane %v2133_v48, 5  ;;  %v2128_v60 = vsel %vm6628_vm4, %v2123_v49, %v2127_v27  ;;  %v340_v61 = vor.u32 %v339_v50, %v335_v40  ;;  %v2141_v62 = vrot.slane %v2139_v53, 5  ;;  %v209_v49 = vld [vmem:[%s6604_s28 + $0x3c] sm:$0xf] }
  0x35   : > { %v2149_v63 = vshll.u32 %v6710_v46, 16  ;;  %v5324_v6 = vcombine.low %v2118_v43, %v2128_v60  ;;  %v336_v10 = vsel %vm6628_vm4, %v331_v54, %v335_v40  ;;  %v2145_v12 = vrot.slane %v2143_v57, 4 }
  0x36   : > { %v2136_v11 = vor.u32 %v2135_v56, %v2132_v55  ;;  %v341_v14 = vrot.slane %v340_v61, 4  ;;  %v348_v16 = vshrl.u32 %v207_v59, 16  ;;  %v351_v8 = vshll.u32 %v207_v59, 16  ;;  %v210_v55 = vld [vmem:[%s6604_s28 + $0x40] sm:$0xf] }
  0x37   : > { %v2151_v15 = vrot.slane %v2149_v63, 5  ;;  %5994 = vmatprep.mubr.msk.bf16.mxu0 %vm685_vm3, %v5324_v6  ;;  %v2146_v18 = vor.u32 %v2145_v12, %v2141_v62  ;;  %v357_v21 = vshll.u32 %v208_v1, 16  ;;  %v361_v22 = vshrl.u32 %v208_v1, 16  ;;  %v237_v12 = vld [vmem:[%s6604_s28 + $0x44] sm:$0x1] }
  0x38   : > { %v2137_v17 = vrot.slane %v2136_v11, 4  ;;  %v346_v24 = vsel %vm6628_vm4, %v341_v14, %v345_v52  ;;  %v350_v25 = vrot.slane %v348_v16, 4  ;;  %v353_v26 = vrot.slane %v351_v8, 5  ;;  %v5288_v14 = vld [vmem:[%s6604_s28 + $0x48] sm:$0xf] }
  0x39   : > { %v367_v27 = vshll.u32 %v236_v13, 16  ;;  %v5098_v30 = vcombine.low %v336_v10, %v346_v24  ;;  %v2147_v32 = vrot.slane %v2146_v18, 4  ;;  %v359_v34 = vrot.slane %v357_v21, 5  ;;  %v6750_v18 = vld [vmem:[%s6604_s28 + $0x4c] sm:$0xf] }
  0x3a   : > { %v2142_v31 = vsel %vm6628_vm4, %v2137_v17, %v2141_v62  ;;  %v354_v37 = vor.u32 %v353_v26, %v350_v25  ;;  %v363_v39 = vrot.slane %v361_v22, 4  ;;  %v2154_v9 = vshrl.u32 %v5285_v23, 16 }
  0x3b   : > { %v369_v40 = vrot.slane %v367_v27, 5  ;;  %5859 = vmatmul.mubr.msk.bf16.gmra.mrb[4].mxu1 %vm685_vm3, %v5098_v30  ;;  %v2152_v43 = vsel %vm6628_vm4, %v2147_v32, %v2151_v15  ;;  %v2157_v44 = vshll.u32 %v5285_v23, 16  ;;  %v2163_v47 = vshll.u32 %v6727_v29, 16 }
  0x3c   : > { %v2167_v48 = vshrl.u32 %v6727_v29, 16  ;;  %v5325_v50 = vcombine.low %v2142_v31, %v2152_v43  ;;  %v355_v52 = vrot.slane %v354_v37, 4  ;;  %v364_v53 = vor.u32 %v363_v39, %v359_v34 }
  0x3d   : > { %v2156_v54 = vrot.slane %v2154_v9, 4  ;;  %v2159_v56 = vrot.slane %v2157_v44, 5  ;;  %v2165_v57 = vrot.slane %v2163_v47, 5  ;;  %v2173_v60 = vshll.u32 %v6732_v42, 16 }
  0x3e   : > { %v2169_v59 = vrot.slane %v2167_v48, 4  ;;  %5995 = vmatmul.mubr.msk.bf16.gmra.mrb[4].mxu0 %vm685_vm3, %v5325_v50  ;;  %v360_v61 = vsel %vm6628_vm4, %v355_v52, %v359_v34  ;;  %v365_v62 = vrot.slane %v364_v53, 4  ;;  %v372_v63 = vshrl.u32 %v209_v49, 16  ;;  %v6758_v34 = vld [vmem:[%s6604_s28 + $0x50] sm:$0x1] }
  0x3f   : > { %v375_v1 = vshll.u32 %v209_v49, 16  ;;  %v2160_v6 = vor.u32 %v2159_v56, %v2156_v54  ;;  %v2175_v11 = vrot.slane %v2173_v60, 5  ;;  %v381_v13 = vshll.u32 %v210_v55, 16  ;;  %v6765_v48 = vld [vmem:[%s6604_s28 + $0x4c] sm:$0xf] }
  0x40   : > { %v2170_v10 = vor.u32 %v2169_v59, %v2165_v57  ;;  %v370_v15 = vsel %vm6628_vm4, %v365_v62, %v369_v40  ;;  %v374_v16 = vrot.slane %v372_v63, 4  ;;  %v385_v17 = vshrl.u32 %v210_v55, 16  ;;  %v6762_v40 = vld [vmem:[%s6604_s28 + $0x48] sm:$0xf] }
  0x41   : > { %v377_v8 = vrot.slane %v375_v1, 5  ;;  %v5099_v21 = vcombine.low %v360_v61, %v370_v15  ;;  %v2161_v22 = vrot.slane %v2160_v6, 4  ;;  %v383_v24 = vrot.slane %v381_v13, 5  ;;  %v5291_v1 = vld [vmem:[%s6604_s28 + $0x54] sm:$0xf] }
  0x42   : > { %v2171_v23 = vrot.slane %v2170_v10, 4  ;;  %v387_v26 = vrot.slane %v385_v17, 4  ;;  %v391_v27 = vshll.u32 %v237_v12, 16  ;;  %v2178_v30 = vshrl.u32 %v5288_v14, 16 }
  0x43   : > { %v378_v25 = vor.u32 %v377_v8, %v374_v16  ;;  %5862 = vmatprep.mubr.msk.bf16.mxu1 %vm685_vm3, %v5099_v21  ;;  %v2166_v31 = vsel %vm6628_vm4, %v2161_v22, %v2165_v57  ;;  %v2181_v37 = vshll.u32 %v5288_v14, 16  ;;  %v2187_v39 = vshll.u32 %v6750_v18, 16  ;;  %v238_v57 = vld [vmem:[%s6604_s28 + $0x50] sm:$0x1]  ;;  %v6781_v8 = vld [vmem:[%s6604_s28 + $0x58] sm:$0xf] }
  0x44   : > { %v2176_v32 = vsel %vm6628_vm4, %v2171_v23, %v2175_v11  ;;  %v388_v44 = vor.u32 %v387_v26, %v383_v24  ;;  %v393_v47 = vrot.slane %v391_v27, 5  ;;  %v2180_v49 = vrot.slane %v2178_v30, 4  ;;  %v6787_v27 = vld [vmem:[%s6604_s28 + $0x5c] sm:$0x1] }
  0x45   : > { %v5326_v9 = vcombine.low %v2166_v31, %v2176_v32  ;;  %v379_v43 = vrot.slane %v378_v25, 4  ;;  %v2183_v50 = vrot.slane %v2181_v37, 5  ;;  %v2189_v52 = vrot.slane %v2187_v39, 5 }
  0x46   : > { %v2191_v53 = vshrl.u32 %v6750_v18, 16  ;;  %v389_v55 = vrot.slane %v388_v44, 4  ;;  %v2197_v56 = vshll.u32 %v6758_v34, 16  ;;  %v396_v59 = vshrl.u32 %v6762_v40, 16 }
  0x47   : > { %5998 = vmatprep.mubr.msk.bf16.mxu0 %vm685_vm3, %v5326_v9  ;;  %v384_v54 = vsel %vm6628_vm4, %v379_v43, %v383_v24  ;;  %v2184_v60 = vor.u32 %v2183_v50, %v2180_v49  ;;  %v399_v62 = vshll.u32 %v6762_v40, 16  ;;  %v405_v63 = vshll.u32 %v6765_v48, 16  ;;  %v6791_v9 = vld [vmem:[%s6604_s28 + $0x54] sm:$0xf]  ;;  %v6797_v50 = vld [vmem:[%s6604_s28 + $0x58] sm:$0xf] }
  0x48   : > { %v2193_v61 = vrot.slane %v2191_v53, 4  ;;  %v394_v6 = vsel %vm6628_vm4, %v389_v55, %v393_v47  ;;  %v2199_v10 = vrot.slane %v2197_v56, 5  ;;  %v398_v11 = vrot.slane %v396_v59, 4 }
  0x49   : > { %v409_v12 = vshrl.u32 %v6765_v48, 16  ;;  %v5100_v13 = vcombine.low %v384_v54, %v394_v6  ;;  %v2185_v14 = vrot.slane %v2184_v60, 4  ;;  %v401_v16 = vrot.slane %v399_v62, 5  ;;  %v239_v60 = vld [vmem:[%s6604_s28 + $0x5c] sm:$0x1] }
  0x4a   : > { %v2194_v15 = vor.u32 %v2193_v61, %v2189_v52  ;;  %v407_v17 = vrot.slane %v405_v63, 5  ;;  %v415_v22 = vshll.u32 %v238_v57, 16  ;;  %v2202_v23 = vshrl.u32 %v5291_v1, 16 }
  0x4b   : > { %v411_v21 = vrot.slane %v409_v12, 4  ;;  %5863 = vmatmul.mubr.msk.bf16.gmra.mrb[8].mxu1 %vm685_vm3, %v5100_v13  ;;  %v2190_v24 = vsel %vm6628_vm4, %v2185_v14, %v2189_v52  ;;  %v402_v26 = vor.u32 %v401_v16, %v398_v11  ;;  %v2205_v30 = vshll.u32 %v5291_v1, 16 }
  0x4c   : > { %v2195_v25 = vrot.slane %v2194_v15, 4  ;;  %v417_v32 = vrot.slane %v415_v22, 5  ;;  %v2204_v37 = vrot.slane %v2202_v23, 4  ;;  %v2211_v39 = vshll.u32 %v6781_v8, 16  ;;  %v6811_v15 = vld [vmem:[%s6604_s28 + $0x64] sm:$0xf] }
  0x4d   : > { %v412_v31 = vor.u32 %v411_v21, %v407_v17  ;;  %v403_v44 = vrot.slane %v402_v26, 4  ;;  %v2207_v47 = vrot.slane %v2205_v30, 5  ;;  %v2215_v49 = vshrl.u32 %v6781_v8, 16 }
  0x4e   : > { %v2200_v43 = vsel %vm6628_vm4, %v2195_v25, %v2199_v10  ;;  %v2213_v54 = vrot.slane %v2211_v39, 5  ;;  %v2221_v55 = vshll.u32 %v6787_v27, 16  ;;  %v420_v61 = vshrl.u32 %v6791_v9, 16  ;;  %v5294_v10 = vld [vmem:[%s6604_s28 + $0x60] sm:$0xf] }
  0x4f   : > { %v5327_v52 = vcombine.low %v2190_v24, %v2200_v43  ;;  %v413_v53 = vrot.slane %v412_v31, 4  ;;  %v408_v56 = vsel %vm6628_vm4, %v403_v44, %v407_v17  ;;  %v2208_v57 = vor.u32 %v2207_v47, %v2204_v37  ;;  %v6818_v25 = vld [vmem:[%s6604_s28 + $0x68] sm:$0x1]  ;;  %v6822_v43 = vld [vmem:[%s6604_s28 + $0x60] sm:$0xf] }
  0x50   : > { %v2217_v59 = vrot.slane %v2215_v49, 4  ;;  %v2223_v63 = vrot.slane %v2221_v55, 5  ;;  %v423_v1 = vshll.u32 %v6791_v9, 16  ;;  %v429_v6 = vshll.u32 %v6797_v50, 16 }
  0x51   : > { %5999 = vmatmul.mubr.msk.bf16.gmra.mrb[8].mxu0 %vm685_vm3, %v5327_v52  ;;  %v418_v62 = vsel %vm6628_vm4, %v413_v53, %v417_v32  ;;  %v2209_v12 = vrot.slane %v2208_v57, 4  ;;  %v422_v14 = vrot.slane %v420_v61, 4  ;;  %v433_v21 = vshrl.u32 %v6797_v50, 16  ;;  %v6828_v53 = vld [vmem:[%s6604_s28 + $0x64] sm:$0xf] }
  0x52   : > { %v5101_v11 = vcombine.low %v408_v56, %v418_v62  ;;  %v2218_v13 = vor.u32 %v2217_v59, %v2213_v54  ;;  %v425_v16 = vrot.slane %v423_v1, 5  ;;  %v431_v17 = vrot.slane %v429_v6, 5  ;;  %v240_v6 = vld [vmem:[%s6604_s28 + $0x68] sm:$0x1] }
  0x53   : > { %v439_v22 = vshll.u32 %v239_v60, 16  ;;  %v2214_v23 = vsel %vm6628_vm4, %v2209_v12, %v2213_v54  ;;  %v2226_v26 = vshrl.u32 %v5294_v10, 16  ;;  %v2229_v30 = vshll.u32 %v5294_v10, 16 }
  0x54   : > { %5866 = vmatprep.mubr.msk.bf16.mxu1 %vm685_vm3, %v5101_v11  ;;  %v2219_v24 = vrot.slane %v2218_v13, 4  ;;  %v426_v31 = vor.u32 %v425_v16, %v422_v14  ;;  %v435_v32 = vrot.slane %v433_v21, 4  ;;  %v2235_v39 = vshll.u32 %v6811_v15, 16  ;;  %v5354_v21 = vld [vmem:[%s6604_s28 + $0xc] sm:$0xe] }
  0x55   : > { %v441_v37 = vrot.slane %v439_v22, 5  ;;  %v2228_v47 = vrot.slane %v2226_v26, 4  ;;  %v2231_v49 = vrot.slane %v2229_v30, 5  ;;  %v2239_v52 = vshrl.u32 %v6811_v15, 16 }
  0x56   : > { %v2224_v44 = vsel %vm6628_vm4, %v2219_v24, %v2223_v63  ;;  %v427_v55 = vrot.slane %v426_v31, 4  ;;  %v436_v56 = vor.u32 %v435_v32, %v431_v17  ;;  %v2237_v57 = vrot.slane %v2235_v39, 5 }
  0x57   : > { %v5328_v54 = vcombine.low %v2214_v23, %v2224_v44  ;;  %v2232_v59 = vor.u32 %v2231_v49, %v2228_v47  ;;  %v2241_v60 = vrot.slane %v2239_v52, 4  ;;  %v2245_v61 = vshll.u32 %v6818_v25, 16 }
  0x58   : > { %v444_v62 = vshrl.u32 %v6822_v43, 16  ;;  %v432_v63 = vsel %vm6628_vm4, %v427_v55, %v431_v17  ;;  %v437_v1 = vrot.slane %v436_v56, 4  ;;  %v447_v10 = vshll.u32 %v6822_v43, 16  ;;  %v6843_v17 = vld [vmem:[%s6604_s28 + $0x6c] sm:$0xf] }
  0x59   : > { %6002 = vmatprep.mubr.msk.bf16.mxu0 %vm685_vm3, %v5328_v54  ;;  %v453_v11 = vshll.u32 %v6828_v53, 16  ;;  %v2233_v12 = vrot.slane %v2232_v59, 4  ;;  %v2242_v13 = vor.u32 %v2241_v60, %v2237_v57  ;;  %v2247_v14 = vrot.slane %v2245_v61, 5  ;;  %v6856_v54 = vld [vmem:[%s6604_s28 + $0x70] sm:$0xf] }
  0x5a   : > { %v446_v16 = vrot.slane %v444_v62, 4  ;;  %v442_v22 = vsel %vm6628_vm4, %v437_v1, %v441_v37  ;;  %v449_v23 = vrot.slane %v447_v10, 5  ;;  %v457_v26 = vshrl.u32 %v6828_v53, 16  ;;  %v241_v1 = vld [vmem:[%s6604_s28 + $0x74] sm:$0x1] }
  0x5b   : > { %v455_v24 = vrot.slane %v453_v11, 5  ;;  %v5102_v30 = vcombine.low %v432_v63, %v442_v22  ;;  %v2238_v31 = vsel %vm6628_vm4, %v2233_v12, %v2237_v57  ;;  %v2243_v32 = vrot.slane %v2242_v13, 4  ;;  %v242_v22 = vld [vmem:[%s6604_s28 + $0x80] sm:$0x1] }
  0x5c   : > { %v463_v39 = vshll.u32 %v240_v6, 16  ;;  %v450_v37 = vor.u32 %v449_v23, %v446_v16  ;;  %v459_v47 = vrot.slane %v457_v26, 4  ;;  %v5370_v49 = vrot.slane %v5354_v21, 9  ;;  %v5355_v6 = vld [vmem:[%s6604_s28 + $0x18] sm:$0xe] }
  0x5d   : > { %v2803_v52 = vrot.slane %v2801_v2, 4  ;;  %5867 = vmatmul.mubr.msk.bf16.gmra.mrb[12].mxu1 %vm685_vm3, %v5102_v30  ;;  %v2248_v55 = vsel %vm6628_vm4, %v2243_v32, %v2247_v14  ;;  %v468_v57 = vshrl.u32 %v6843_v17, 16  ;;  %v471_v59 = vshll.u32 %v6843_v17, 16  ;;  %v6875_v14 = vld [vmem:[%s6604_s28 + $0x78] sm:$0xf] }
  0x5e   : > { %v465_v56 = vrot.slane %v463_v39, 5  ;;  %v5329_v60 = vcombine.low %v2238_v31, %v2248_v55  ;;  %v451_v61 = vrot.slane %v450_v37, 4  ;;  %v460_v62 = vor.u32 %v459_v47, %v455_v24  ;;  %v5356_v37 = vld [vmem:[%s6604_s28 + $0x24] sm:$0xe] }
  0x5f   : > { %v2802_v63 = vsel %vm6849_vm7, %v5370_v49, %v2801_v2  ;;  %v2805_v10 = vsel %vm6849_vm7, %v2803_v52, %v2804_v4  ;;  %v470_v11 = vrot.slane %v468_v57, 4  ;;  %v473_v12 = vrot.slane %v471_v59, 5 }
  0x60   : > { %v477_v13 = vshll.u32 %v6856_v54, 16  ;;  %6003 = vmatmul.mubr.msk.bf16.gmra.mrb[12].mxu0 %vm685_vm3, %v5329_v60  ;;  %v456_v19 = vsel %vm6628_vm4, %v451_v61, %v455_v24  ;;  %v461_v2 = vrot.slane %v460_v62, 4  ;;  %v5387_v16 = vcombine.low %v2802_v63, %v2805_v10  ;;  %v6901_v60 = vld [vmem:[%s6604_s28 + $0x84] sm:$0xf] }
  0x61   : > { %v481_v21 = vshrl.u32 %v6856_v54, 16  ;;  %v474_v4 = vor.u32 %v473_v12, %v470_v11  ;;  %v487_v26 = vshll.u32 %v241_v1, 16  ;;  %v5371_v30 = vrot.slane %v5355_v6, 9 }
  0x62   : > { %v479_v23 = vrot.slane %v477_v13, 5  ;;  %v466_v31 = vsel %vm6628_vm4, %v461_v2, %v465_v56  ;;  %6024 = vmatprep.mubr.msk.bf16.mxu0 %vm685_vm3, %v5387_v16  ;;  %v2812_v24 = vsel %vm6849_vm7, %v6670_v35, %v2811_v33  ;;  %v492_v39 = vshrl.u32 %v6875_v14, 16 }
  0x63   : > { %v483_v32 = vrot.slane %v481_v21, 4  ;;  %v5103_v47 = vcombine.low %v456_v19, %v466_v31  ;;  %v475_v49 = vrot.slane %v474_v4, 4  ;;  %v489_v52 = vrot.slane %v487_v26, 5  ;;  %v243_v19 = vld [vmem:[%s6604_s28 + $0x8c] sm:$0x1] }
  0x64   : > { %v2809_v55 = vsel %vm6849_vm7, %v5371_v30, %v2808_v28  ;;  %v494_v59 = vrot.slane %v492_v39, 4  ;;  %v495_v7 = vshll.u32 %v6875_v14, 16  ;;  %v501_v35 = vshll.u32 %v6882_v20, 16  ;;  %v6909_v28 = vld [vmem:[%s6604_s28 + $0x88] sm:$0xf] }
  0x65   : > { %v484_v56 = vor.u32 %v483_v32, %v479_v23  ;;  %v5388_v57 = vcombine.low %v2809_v55, %v2812_v24  ;;  %5870 = vmatprep.mubr.msk.bf16.mxu1 %vm685_vm3, %v5103_v47  ;;  %v480_v33 = vsel %vm6628_vm4, %v475_v49, %v479_v23  ;;  %v505_v0 = vshrl.u32 %v6882_v20, 16  ;;  %v5357_v4 = vld [vmem:[%s6604_s28 + $0x30] sm:$0xe] }
  0x66   : > { %v511_v61 = vshll.u32 %v242_v22, 16  ;;  %v497_v63 = vrot.slane %v495_v7, 5  ;;  %v5372_v1 = vrot.slane %v5356_v37, 9  ;;  %v2815_v6 = vrot.slane %v6677_v51, 5  ;;  %v6928_v39 = vld [vmem:[%s6604_s28 + $0x90] sm:$0xf] }
  0x67   : > { %v485_v62 = vrot.slane %v484_v56, 4  ;;  %v503_v10 = vrot.slane %v501_v35, 5  ;;  %v507_v11 = vrot.slane %v505_v0, 4  ;;  %v2818_v13 = vrot.slane %v6683_v58, 5  ;;  %v6938_v0 = vld [vmem:[%s6604_s28 + $0x94] sm:$0xf] }
  0x68   : > { %v513_v12 = vrot.slane %v511_v61, 5  ;;  %6025 = vmatmul.mubr.msk.bf16.vlgmr.msra.gmra.mrb[0].mxu0 %vm685_vm3, %v5388_v57  ;;  %v498_v16 = vor.u32 %v497_v63, %v494_v59  ;;  %v2816_v21 = vsel %vm6849_vm7, %v5372_v1, %v2815_v6  ;;  %v2817_v22 = vrot.slane %v2815_v6, 4  ;;  %v244_v61 = vld [vmem:[%s6604_s28 + $0x98] sm:$0x1] }
  0x69   : > { %v490_v2 = vsel %vm6628_vm4, %v485_v62, %v489_v52  ;;  %6057 = vmatpush3.bf16.msra.mxu0 %v6634_v41  ;;  %v508_v51 = vor.u32 %v507_v11, %v503_v10  ;;  %v516_v26 = vshrl.u32 %v6901_v60, 16  ;;  %v519_v58 = vshll.u32 %v6901_v60, 16 }
  0x6a   : > { %v5104_v23 = vcombine.low %v480_v33, %v490_v2  ;;  %v499_v30 = vrot.slane %v498_v16, 4  ;;  %v2819_v31 = vsel %vm6849_vm7, %v2817_v22, %v2818_v13  ;;  %v525_v32 = vshll.u32 %v6909_v28, 16  ;;  %v6947_v2 = vld [vmem:[%s6604_s28 + $0x9c] sm:$0xf] }
  0x6b   : > { %v529_v24 = vshrl.u32 %v6909_v28, 16  ;;  %v509_v41 = vrot.slane %v508_v51, 4  ;;  %v5389_v37 = vcombine.low %v2816_v21, %v2819_v31  ;;  %v518_v47 = vrot.slane %v516_v26, 4  ;;  %v6958_v26 = vld [vmem:[%s6604_s28 + $0xa0] sm:$0xf] }
  0x6c   : > { %5871 = vmatmul.mubr.msk.bf16.gmra.mrb[16].mxu1 %vm685_vm3, %v5104_v23  ;;  %v521_v49 = vrot.slane %v519_v58, 5  ;;  %v504_v52 = vsel %vm6628_vm4, %v499_v30, %v503_v10  ;;  %v527_v55 = vrot.slane %v525_v32, 5  ;;  %v535_v57 = vshll.u32 %v243_v19, 16  ;;  %v5358_v10 = vld [vmem:[%s6604_s28 + $0x3c] sm:$0xe] }
  0x6d   : > { %v531_v56 = vrot.slane %v529_v24, 4  ;;  %v514_v59 = vsel %vm6628_vm4, %v509_v41, %v513_v12  ;;  %6028 = vmatprep.mubr.msk.bf16.mxu0 %vm685_vm3, %v5389_v37  ;;  %v5373_v33 = vrot.slane %v5357_v4, 9  ;;  %v2822_v35 = vrot.slane %v6703_v38, 5 }
  0x6e   : > { %v522_v7 = vor.u32 %v521_v49, %v518_v47  ;;  %v5105_v62 = vcombine.low %v504_v52, %v514_v59  ;;  %v537_v1 = vrot.slane %v535_v57, 5  ;;  %v2825_v6 = vrot.slane %v6710_v46, 5  ;;  %v245_v49 = vld [vmem:[%s6604_s28 + $0xa4] sm:$0x1]  ;;  %v5359_v52 = vld [vmem:[%s6604_s28 + $0x48] sm:$0xe] }
  0x6f   : > { %v532_v63 = vor.u32 %v531_v56, %v527_v55  ;;  %v2823_v12 = vsel %vm6849_vm7, %v5373_v33, %v2822_v35  ;;  %v2824_v13 = vrot.slane %v2822_v35, 4  ;;  %v540_v19 = vshrl.u32 %v6928_v39, 16 }
  0x70   : > { %v523_v11 = vrot.slane %v522_v7, 4  ;;  %5874 = vmatprep.mubr.msk.bf16.mxu1 %vm685_vm3, %v5105_v62  ;;  %v543_v16 = vshll.u32 %v6928_v39, 16  ;;  %v549_v21 = vshll.u32 %v6938_v0, 16  ;;  %v553_v46 = vshrl.u32 %v6938_v0, 16 }
  0x71   : > { %v533_v38 = vrot.slane %v532_v63, 4  ;;  %v2826_v4 = vsel %vm6849_vm7, %v2824_v13, %v2825_v6  ;;  %v542_v23 = vrot.slane %v540_v19, 4  ;;  %v559_v51 = vshll.u32 %v244_v61, 16 }
  0x72   : > { %v528_v22 = vsel %vm6628_vm4, %v523_v11, %v527_v55  ;;  %v5390_v30 = vcombine.low %v2823_v12, %v2826_v4  ;;  %v545_v31 = vrot.slane %v543_v16, 5  ;;  %v551_v32 = vrot.slane %v549_v21, 5  ;;  %v6979_v16 = vld [vmem:[%s6604_s28 + $0xa8] sm:$0xf] }
  0x73   : > { %v538_v58 = vsel %vm6628_vm4, %v533_v38, %v537_v1  ;;  %v555_v41 = vrot.slane %v553_v46, 4  ;;  %v561_v37 = vrot.slane %v559_v51, 5  ;;  %v5374_v47 = vrot.slane %v5358_v10, 9 }
  0x74   : > { %v5106_v24 = vcombine.low %v528_v22, %v538_v58  ;;  %6029 = vmatmul.mubr.msk.bf16.gmra.mrb[4].mxu0 %vm685_vm3, %v5390_v30  ;;  %v546_v55 = vor.u32 %v545_v31, %v542_v23  ;;  %v2829_v56 = vrot.slane %v6727_v29, 5  ;;  %v2832_v57 = vrot.slane %v6732_v42, 5  ;;  %v6984_v23 = vld [vmem:[%s6604_s28 + $0xac] sm:$0xf] }
  0x75   : > { %v564_v59 = vshrl.u32 %v6947_v2, 16  ;;  %v556_v7 = vor.u32 %v555_v41, %v551_v32  ;;  %v567_v33 = vshll.u32 %v6947_v2, 16  ;;  %v573_v35 = vshll.u32 %v6958_v26, 16 }
  0x76   : > { %5875 = vmatmul.mubr.msk.bf16.gmra.mrb[20].mxu1 %vm685_vm3, %v5106_v24  ;;  %v577_v61 = vshrl.u32 %v6958_v26, 16  ;;  %v547_v62 = vrot.slane %v546_v55, 4  ;;  %v2830_v63 = vsel %vm6849_vm7, %v5374_v47, %v2829_v56  ;;  %v2831_v29 = vrot.slane %v2829_v56, 4  ;;  %v5360_v24 = vld [vmem:[%s6604_s28 + $0x54] sm:$0xe] }
  0x77   : > { %v566_v1 = vrot.slane %v564_v59, 4  ;;  %v557_v42 = vrot.slane %v556_v7, 4  ;;  %v569_v6 = vrot.slane %v567_v33, 5  ;;  %v575_v10 = vrot.slane %v573_v35, 5  ;;  %v6999_v56 = vld [vmem:[%s6604_s28 + $0xb4] sm:$0xf] }
  0x78   : > { %v579_v11 = vrot.slane %v577_v61, 4  ;;  %v552_v12 = vsel %vm6628_vm4, %v547_v62, %v551_v32  ;;  %v2833_v13 = vsel %vm6849_vm7, %v2831_v29, %v2832_v57  ;;  %v583_v19 = vshll.u32 %v245_v49, 16  ;;  %v246_v32 = vld [vmem:[%s6604_s28 + $0xb0] sm:$0x1]  ;;  %v7008_v29 = vld [vmem:[%s6604_s28 + $0xb8] sm:$0xf] }
  0x79   : > { %v5375_v38 = vrot.slane %v5359_v52, 9  ;;  %v562_v21 = vsel %vm6628_vm4, %v557_v42, %v561_v37  ;;  %v5391_v46 = vcombine.low %v2830_v63, %v2833_v13  ;;  %v570_v22 = vor.u32 %v569_v6, %v566_v1 }
  0x7a   : > { %v580_v4 = vor.u32 %v579_v11, %v575_v10  ;;  %v5107_v51 = vcombine.low %v552_v12, %v562_v21  ;;  %v585_v58 = vrot.slane %v583_v19, 5  ;;  %v2836_v30 = vrot.slane %v6750_v18, 5  ;;  %v7014_v19 = vld [vmem:[%s6604_s28 + $0xbc] sm:$0x1] }
  0x7b   : > { %v2839_v31 = vrot.slane %v6758_v34, 5  ;;  %6032 = vmatprep.mubr.msk.bf16.mxu0 %vm685_vm3, %v5391_v46  ;;  %v571_v41 = vrot.slane %v570_v22, 4  ;;  %v588_v37 = vshrl.u32 %v6979_v16, 16  ;;  %v591_v49 = vshll.u32 %v6979_v16, 16 }
  0x7c   : > { %v581_v47 = vrot.slane %v580_v4, 4  ;;  %5878 = vmatprep.mubr.msk.bf16.mxu1 %vm685_vm3, %v5107_v51  ;;  %v2837_v52 = vsel %vm6849_vm7, %v5375_v38, %v2836_v30  ;;  %v2838_v55 = vrot.slane %v2836_v30, 4  ;;  %v597_v18 = vshll.u32 %v6984_v23, 16  ;;  %v5361_v51 = vld [vmem:[%s6604_s28 + $0x60] sm:$0xe] }
  0x7d   : > { %v601_v34 = vshrl.u32 %v6984_v23, 16  ;;  %v576_v57 = vsel %vm6628_vm4, %v571_v41, %v575_v10  ;;  %v590_v7 = vrot.slane %v588_v37, 4  ;;  %v593_v33 = vrot.slane %v591_v49, 5 }
  0x7e   : > { %v586_v59 = vsel %vm6628_vm4, %v581_v47, %v585_v58  ;;  %v2840_v61 = vsel %vm6849_vm7, %v2838_v55, %v2839_v31  ;;  %v599_v62 = vrot.slane %v597_v18, 5  ;;  %v607_v6 = vshll.u32 %v246_v32, 16  ;;  %v5362_v47 = vld [vmem:[%s6604_s28 + $0x6c] sm:$0xe]  ;;  %v5298_v18 = vld [vmem:[%s6604_s28 + $0x70] sm:$0xf] }
  0x7f   : > { %v5108_v35 = vcombine.low %v576_v57, %v586_v59  ;;  %v603_v63 = vrot.slane %v601_v34, 4  ;;  %v5392_v1 = vcombine.low %v2837_v52, %v2840_v61  ;;  %v594_v42 = vor.u32 %v593_v33, %v590_v7  ;;  %v5299_v34 = vld [vmem:[%s6604_s28 + $0x74] sm:$0x1] }
  0x80   : > { %v5376_v11 = vrot.slane %v5360_v24, 9  ;;  %v2843_v12 = vrot.slane %v6781_v8, 5  ;;  %v2846_v13 = vrot.slane %v6787_v27, 5  ;;  %v612_v38 = vshrl.u32 %v6999_v56, 16 }
  0x81   : > { %5879 = vmatmul.mubr.msk.bf16.gmra.mrb[24].mxu1 %vm685_vm3, %v5108_v35  ;;  %v604_v10 = vor.u32 %v603_v63, %v599_v62  ;;  %6033 = vmatmul.mubr.msk.bf16.gmra.mrb[8].mxu0 %vm685_vm3, %v5392_v1  ;;  %v595_v21 = vrot.slane %v594_v42, 4  ;;  %v609_v46 = vrot.slane %v607_v6, 5  ;;  %v615_v22 = vshll.u32 %v6999_v56, 16 }
  0x82   : > { %v621_v4 = vshll.u32 %v7008_v29, 16  ;;  %v2844_v8 = vsel %vm6849_vm7, %v5376_v11, %v2843_v12  ;;  %v2845_v27 = vrot.slane %v2843_v12, 4  ;;  %v614_v30 = vrot.slane %v612_v38, 4  ;;  %v5363_v12 = vld [vmem:[%s6604_s28 + $0x78] sm:$0xe] }
  0x83   : > { %v605_v58 = vrot.slane %v604_v10, 4  ;;  %v600_v31 = vsel %vm6628_vm4, %v595_v21, %v599_v62  ;;  %v617_v32 = vrot.slane %v615_v22, 5  ;;  %v625_v41 = vshrl.u32 %v7008_v29, 16  ;;  %v6474_v22 = vld [vmem:[%s6604_s28] sm:$0xf] }
  0x84   : > { %v623_v24 = vrot.slane %v621_v4, 5  ;;  %v2847_v49 = vsel %vm6849_vm7, %v2845_v27, %v2846_v13  ;;  %v631_v52 = vshll.u32 %v7014_v19, 16  ;;  %v5377_v55 = vrot.slane %v5361_v51, 9  ;;  %v7049_v4 = vld [vmem:[%s6604_s28 + $0x4] sm:$0xf] }
  0x85   : > { %v610_v37 = vsel %vm6628_vm4, %v605_v58, %v609_v46  ;;  %v5393_v59 = vcombine.low %v2844_v8, %v2847_v49  ;;  %v618_v7 = vor.u32 %v617_v32, %v614_v30  ;;  %v627_v33 = vrot.slane %v625_v41, 4  ;;  %v7053_v58 = vld [vmem:[%s6604_s28 + $0x7c] sm:$0xf]  ;;  %v7056_v8 = vld [vmem:[%s6604_s28 + $0x80] sm:$0x1] }
  0x86   : > { %v5109_v57 = vcombine.low %v600_v31, %v610_v37  ;;  %v633_v35 = vrot.slane %v631_v52, 5  ;;  %v2850_v61 = vrot.slane %v6811_v15, 5  ;;  %v2853_v62 = vrot.slane %v6818_v25, 5  ;;  %v5364_v27 = vld [vmem:[%s6604_s28 + $0x84] sm:$0xe] }
  0x87   : > { %v5378_v63 = vrot.slane %v5362_v47, 9  ;;  %6036 = vmatprep.mubr.msk.bf16.mxu0 %vm685_vm3, %v5393_v59  ;;  %v619_v1 = vrot.slane %v618_v7, 4  ;;  %v628_v42 = vor.u32 %v627_v33, %v623_v24  ;;  %v2857_v6 = vrot.slane %v5298_v18, 5  ;;  %v5304_v41 = vld [vmem:[%s6604_s28 + $0x88] sm:$0xf] }
  0x88   : > { %5882 = vmatprep.mubr.msk.bf16.mxu1 %vm685_vm3, %v5109_v57  ;;  %v2860_v11 = vrot.slane %v5299_v34, 5  ;;  %v2851_v10 = vsel %vm6849_vm7, %v5377_v55, %v2850_v61  ;;  %v2852_v15 = vrot.slane %v2850_v61, 4  ;;  %v5127_v51 = vcombine.low %v6474_v22, %v7049_v4  ;;  %v5305_v47 = vld [vmem:[%s6604_s28 + $0x8c] sm:$0x1]  ;;  %v5307_v52 = vld [vmem:[%s6604_s28 + $0x94] sm:$0xf] }
  0x89   : > { %v624_v25 = vsel %vm6628_vm4, %v619_v1, %v623_v24  ;;  %v629_v13 = vrot.slane %v628_v42, 4  ;;  %v2858_v38 = vsel %vm6849_vm7, %v5378_v63, %v2857_v6  ;;  %v2859_v21 = vrot.slane %v2857_v6, 4  ;;  %v5308_v7 = vld [vmem:[%s6604_s28 + $0x98] sm:$0x1]  ;;  %v5365_v33 = vld [vmem:[%s6604_s28 + $0x90] sm:$0xe] }
  0x8a   : > { %v2854_v46 = vsel %vm6849_vm7, %v2852_v15, %v2853_v62  ;;  %v5379_v24 = vrot.slane %v5363_v12, 9  ;;  %v2864_v55 = vrot.slane %v7053_v58, 5  ;;  %v2867_v18 = vrot.slane %v7056_v8, 5  ;;  %v5310_v63 = vld [vmem:[%s6604_s28 + $0xa0] sm:$0xf] }
  0x8b   : > { %v634_v30 = vsel %vm6628_vm4, %v629_v13, %v633_v35  ;;  %v5394_v31 = vcombine.low %v2851_v10, %v2854_v46  ;;  %v2861_v32 = vsel %vm6849_vm7, %v2859_v21, %v2860_v11  ;;  %v5380_v34 = vrot.slane %v5364_v27, 9  ;;  %v5311_v6 = vld [vmem:[%s6604_s28 + $0xa4] sm:$0x1]  ;;  %v5366_v11 = vld [vmem:[%s6604_s28 + $0x9c] sm:$0xe] }
  0x8c   : > { %v5110_v37 = vcombine.low %v624_v25, %v634_v30  ;;  %v5395_v49 = vcombine.low %v2858_v38, %v2861_v32  ;;  %v2871_v57 = vrot.slane %v5304_v41, 5  ;;  %v2874_v59 = vrot.slane %v5305_v47, 5  ;;  %v6476_v10 = vld [vmem:[%s6604_s28 + $0xc] sm:$0xf]  ;;  %v7083_v15 = vld [vmem:[%s6604_s28 + $0x10] sm:$0xf] }
  0x8d   : > { %6037 = vmatmul.mubr.msk.bf16.gmra.mrb[12].mxu0 %vm685_vm3, %v5394_v31  ;;  %v2865_v35 = vsel %vm6849_vm7, %v5379_v24, %v2864_v55  ;;  %v2866_v61 = vrot.slane %v2864_v55, 4  ;;  %v2878_v62 = vrot.slane %v5307_v52, 5  ;;  %v5128_v12 = vcombine.low %v6476_v10, %v7083_v15  ;;  %v6478_v27 = vld [vmem:[%s6604_s28 + $0x18] sm:$0xf]  ;;  %v7092_v30 = vld [vmem:[%s6604_s28 + $0x1c] sm:$0xf] }
  0x8e   : > { %5883 = vmatmul.mubr.msk.bf16.gmra.mrb[28].mxu1 %vm685_vm3, %v5110_v37  ;;  %6040 = vmatprep.mubr.msk.bf16.mxu0 %vm685_vm3, %v5395_v49  ;;  %v2872_v1 = vsel %vm6849_vm7, %v5380_v34, %v2871_v57  ;;  %v2873_v42 = vrot.slane %v2871_v57, 4  ;;  %v5381_v13 = vrot.slane %v5365_v33, 9  ;;  %v2881_v38 = vrot.slane %v5308_v7, 5  ;;  %v5313_v47 = vld [vmem:[%s6604_s28 + $0xac] sm:$0xf] }
  0x8f   : > { %5888 = vmatprep.mubr.msk.bf16.mxu1 %vm685_vm3, %v5127_v51  ;;  %v2868_v25 = vsel %vm6849_vm7, %v2866_v61, %v2867_v18  ;;  %v2880_v22 = vrot.slane %v2878_v62, 4  ;;  %v2885_v51 = vrot.slane %v5310_v63, 5  ;;  %v5129_v31 = vcombine.low %v6478_v27, %v7092_v30  ;;  %v5316_v49 = vld [vmem:[%s6604_s28 + $0xb8] sm:$0xf]  ;;  %v5314_v52 = vld [vmem:[%s6604_s28 + $0xb0] sm:$0x1] }
  0x90   : > { %v5396_v21 = vcombine.low %v2865_v35, %v2868_v25  ;;  %v2875_v46 = vsel %vm6849_vm7, %v2873_v42, %v2874_v59  ;;  %v5382_v24 = vrot.slane %v5366_v11, 9  ;;  %v2888_v41 = vrot.slane %v5311_v6, 5  ;;  %v5367_v55 = vld [vmem:[%s6604_s28 + $0xa8] sm:$0xe]  ;;  %v5532_v59 = vld [vmem:[%s8460_s1 + $0x7] sm:$0x1] }
  0x91   : > { %v5397_v32 = vcombine.low %v2872_v1, %v2875_v46  ;;  %v2887_v37 = vrot.slane %v2885_v51, 4  ;;  %v2879_v18 = vsel %vm6849_vm7, %v5381_v13, %v2878_v62  ;;  %v2882_v34 = vsel %vm6849_vm7, %v2880_v22, %v2881_v38  ;;  %v5368_v35 = vld [vmem:[%s6604_s28 + $0xb4] sm:$0xe]  ;;  %v5317_v62 = vld [vmem:[%s6604_s28 + $0xbc] sm:$0x1] }
  0x92   : > { %v2892_v57 = vrot.slane %v5313_v47, 5  ;;  %v2886_v7 = vsel %vm6849_vm7, %v5382_v24, %v2885_v51  ;;  %v2899_v61 = vrot.slane %v5316_v49, 5  ;;  %v6480_v63 = vld [vmem:[%s6604_s28 + $0x24] sm:$0xf]  ;;  %v7119_v1 = vld [vmem:[%s6604_s28 + $0x28] sm:$0xf]  ;;  %v5398_v6 = vcombine.low %v2879_v18, %v2882_v34 }
  0x93   : > { %v2889_v33 = vsel %vm6849_vm7, %v2887_v37, %v2888_v41  ;;  %v5130_v42 = vcombine.low %v6480_v63, %v7119_v1  ;;  %v5319_v11 = vld [vmem:[%s6604_s28 + $0xc4] sm:$0xf]  ;;  %v7124_v10 = vand.u32 %v5532_v59, %v6576_v3  ;;  %v2895_v13 = vrot.slane %v5314_v52, 5  ;;  %v6482_v46 = vld [vmem:[%s6604_s28 + $0x30] sm:$0xf] }
  0x94   : > { %v2894_v25 = vrot.slane %v2892_v57, 4  ;;  %v5384_v38 = vrot.slane %v5368_v35, 9  ;;  %v7131_v22 = vld [vmem:[%s6604_s28 + $0x34] sm:$0xf]  ;;  %v2901_v27 = vrot.slane %v2899_v61, 4  ;;  %v2906_v47 = vrot.slane %v5319_v11, 5 }
  0x95   : > { %6041 = vmatmul.mubr.msk.bf16.gmra.mrb[16].mxu0 %vm685_vm3, %v5396_v21  ;;  %v5240_v21 = vld [vmem:[%s8460_s1 + $0x3] sm:$0x1]  ;;  %v5131_v51 = vcombine.low %v6482_v46, %v7131_v22  ;;  %6090 = vmatprep.subr.bf16.mxu0 %v7124_v10  ;;  %v5320_v52 = vld [vmem:[%s6604_s28 + $0xc8] sm:$0x1]  ;;  %v6484_v18 = vld [vmem:[%s6604_s28 + $0x3c] sm:$0xf] }
  0x96   : > { %5889 = vmatmul.mubr.msk.bf16.vlgmr.msra.gmra.mrb[0].mxu1 %vm685_vm3, %v5128_v12  ;;  %6044 = vmatprep.mubr.msk.bf16.mxu0 %vm685_vm3, %v5397_v32  ;;  %v5399_v12 = vcombine.low %v2886_v7, %v2889_v33  ;;  %v7137_v32 = vand.u32 %v5240_v21, %v6576_v3  ;;  %v2896_v41 = vsel %vm6849_vm7, %v2894_v25, %v2895_v13  ;;  %v7155_v34 = vld [vmem:[%s6604_s28 + $0x40] sm:$0xf]  ;;  %v2908_v35 = vrot.slane %v2906_v47, 4  ;;  %v6435_v11 = vld [vmem:[%s6604_s28 + $0x18] sm:$0xff]   ;;  %v6486_v46 = vld [vmem:[%s6604_s28 + $0x8] sm:$0x1] }
  0x97   : > { %5921 = vmatpush3.bf16.msra.mxu1 %v6637_v45  ;;  %5892 = vmatprep.mubr.msk.bf16.mxu1 %vm685_vm3, %v5129_v31  ;;  %v5383_v45 = vrot.slane %v5367_v55, 9  ;;  %v2902_v31 = vrot.slane %v5317_v62, 5  ;;  %v2900_v37 = vsel %vm6849_vm7, %v5384_v38, %v2899_v61  ;;  %v5369_v55 = vld [vmem:[%s6604_s28 + $0xc0] sm:$0xe]  ;;  %v2909_v62 = vrot.slane %v5320_v52, 5 }
  0x98   : > { %5954 = vmatprep.subr.bf16.mxu1 %v7137_v32  ;;  %v5385_v33 = vrot.slane %v5369_v55, 9  ;;  %v5133_v61 = vcombine.low %v6762_v40, %v6765_v48  ;;  %v2287_v40 = vshrl.u32 %v7053_v58, 16  ;;  %v5135_v25 = vcombine.low %v6822_v43, %v6828_v53  ;;  %v1193_v21 = vld [vmem:[%s6604_s28] sm:$0xe]  ;;  %v6487_v43 = vld [vmem:[%s6604_s28 + $0x14] sm:$0x1] }
  0x99   : > { %v2893_v24 = vsel %vm6849_vm7, %v5383_v45, %v2892_v57  ;;  %v2903_v49 = vsel %vm6849_vm7, %v2901_v27, %v2902_v31  ;;  %v5132_v57 = vcombine.low %v6484_v18, %v7155_v34  ;;  %v5134_v45 = vcombine.low %v6791_v9, %v6797_v50  ;;  %v1195_v50 = vld [vmem:[%s6604_s28 + $0x18] sm:$0xe]  ;;  %v1197_v52 = vld [vmem:[%s6604_s28 + $0x30] sm:$0xe] }
  0x9a   : > { %v5400_v59 = vcombine.low %v2893_v24, %v2896_v41  ;;  %v5401_v7 = vcombine.low %v2900_v37, %v2903_v49  ;;  %v2907_v63 = vsel %vm6849_vm7, %v5385_v33, %v2906_v47  ;;  %v2289_v38 = vrot.slane %v2287_v40, 4  ;;  %v1196_v24 = vld [vmem:[%s6604_s28 + $0x24] sm:$0xe]  ;;  %v6439_v55 = vld [vmem:[%s6604_s28 + $0x30] sm:$0xff]  }
  0x9b   : > { %v1246_v9 = vrot.slane %v7049_v4, 5  ;;  %v1256_v53 = vrot.slane %v6487_v43, 5  ;;  %v5159_v27 = vrot.slane %v1193_v21, 9  ;;  %v1260_v31 = vrot.slane %v7092_v30, 5  ;;  %v6437_v37 = vld [vmem:[%s6604_s28 + $0x24] sm:$0xff]  }
  0x9c   : > { %v5136_v47 = vcombine.low %v6843_v17, %v6856_v54  ;;  %v1267_v49 = vrot.slane %v7119_v1, 5  ;;  %v5138_v30 = vcombine.low %v6901_v60, %v6909_v28  ;;  %v5597_v17 = vld [vmem:[%s8460_s1 + $0x8] sm:$0x1]  ;;  %v5161_v1 = vrot.slane %v1195_v50, 9  ;;  %v6491_v21 = vld [vmem:[%s6604_s28 + $0x4c] sm:$0xf] }
  0x9d   : > { %6045 = vmatmul.mubr.msk.bf16.gmra.mrb[20].mxu0 %vm685_vm3, %v5398_v6  ;;  %v2283_v6 = vshll.u32 %v7053_v58, 16  ;;  %v1194_v58 = vld [vmem:[%s6604_s28 + $0xc] sm:$0xe]  ;;  %v1248_v54 = vrot.slane %v1246_v9, 4  ;;  %v5162_v33 = vrot.slane %v1196_v24, 9  ;;  %v6441_v24 = vld [vmem:[%s6604_s28 + $0x3c] sm:$0xff]  }
  0x9e   : > { %5893 = vmatmul.mubr.msk.bf16.gmra.mrb[4].mxu1 %vm685_vm3, %v5130_v42  ;;  %6048 = vmatprep.mubr.msk.bf16.mxu0 %vm685_vm3, %v5399_v12  ;;  %v2910_v42 = vsel %vm6849_vm7, %v2908_v35, %v2909_v62  ;;  %v1253_v12 = vrot.slane %v7083_v15, 5  ;;  %v2293_v15 = vshll.u32 %v7056_v8, 16  ;;  %v5160_v4 = vrot.slane %v1194_v58, 9  ;;  %v1198_v62 = vld [vmem:[%s6604_s28 + $0x3c] sm:$0xe] }
  0x9f   : > { %5896 = vmatprep.mubr.msk.bf16.mxu1 %vm685_vm3, %v5131_v51  ;;  %v5402_v48 = vcombine.low %v2907_v63, %v2910_v42  ;;  %v7176_v13 = vrot.slane %v2283_v6, 5  ;;  %v1249_v51 = vrot.slane %v6486_v46, 5  ;;  %v5137_v8 = vcombine.low %v6875_v14, %v6882_v20  ;;  %v6489_v6 = vld [vmem:[%s6604_s28 + $0x2c] sm:$0x1]  ;;  %v6497_v60 = vld [vmem:[%s6604_s28 + $0x68] sm:$0x1] }
  0xa0   : > { %v1255_v18 = vrot.slane %v1253_v12, 4  ;;  %v5139_v14 = vcombine.low %v6928_v39, %v6938_v0  ;;  %v7211_v20 = vsel %vm6849_vm7, %v5159_v27, %v1246_v9  ;;  %v1262_v35 = vrot.slane %v1260_v31, 4 }
  0xa1   : > { %8485 = vst [vmem:[#allocation3_spill] sm:$0xff] %v7176_v13  ;;  %v2290_v41 = vor.u32 %v2289_v38, %v7176_v13  ;;  %v7217_v63 = vsel %vm6849_vm7, %v5160_v4, %v1253_v12  ;;  %v1269_v42 = vrot.slane %v1267_v49, 4  ;;  %v1270_v40 = vrot.slane %v6489_v6, 5  ;;  %v6493_v4 = vld [vmem:[%s6604_s28 + $0x50] sm:$0x1] }
  0xa2   : > { %v1281_v38 = vrot.slane %v7155_v34, 5  ;;  %v1288_v58 = vrot.slane %v6491_v21, 5  ;;  %v7227_v46 = vrot.slane %v2293_v15, 5  ;;  %v7237_v12 = vsel %vm6849_vm7, %v1255_v18, %v1256_v53  ;;  %v6492_v15 = vld [vmem:[%s6604_s28 + $0x44] sm:$0x1] }
  0xa3   : > { %v7241_v34 = vsel %vm6849_vm7, %v5161_v1, %v1260_v31  ;;  %v7243_v9 = vrot.slane %v2290_v41, 4  ;;  %v7261_v43 = vsel %vm6849_vm7, %v1269_v42, %v1270_v40  ;;  %v5164_v53 = vrot.slane %v1198_v62, 9 }
  0xa4   : > { %8486 = vst [vmem:[#allocation4_spill] sm:$0xff] %v7227_v46  ;;  %v1284_v27 = vrot.slane %v6492_v15, 5  ;;  %v1305_v28 = vrot.slane %v6497_v60, 5  ;;  %v6447_v60 = vld [vmem:[%s6604_s28 + $0x60] sm:$0xff]  }
  0xa5   : > { %6049 = vmatmul.mubr.msk.bf16.gmra.mrb[24].mxu0 %vm685_vm3, %v5400_v59  ;;  %v6488_v59 = vld [vmem:[%s6604_s28 + $0x20] sm:$0x1]  ;;  %8487 = vst [vmem:[#allocation5_spill] sm:$0xff] %v7243_v9  ;;  %v7295_v6 = vsel %vm6849_vm7, %v5164_v53, %v1281_v38  ;;  %v5487_v53 = vld [vmem:[%s6604_s28 + $0x24] sm:$0xf] }
  0xa6   : > { %5897 = vmatmul.mubr.msk.bf16.gmra.mrb[8].mxu1 %vm685_vm3, %v5132_v57  ;;  %6052 = vmatprep.mubr.msk.bf16.mxu0 %vm685_vm3, %v5401_v7  ;;  %v1274_v57 = vrot.slane %v7131_v22, 5  ;;  %v1263_v7 = vrot.slane %v6488_v59, 5  ;;  %v5163_v22 = vrot.slane %v1197_v52, 9  ;;  %v6443_v52 = vld [vmem:[%s6604_s28 + $0x48] sm:$0xff]   ;;  %v3640_v39 = vshll.u32 %v5487_v53, 16 }
  0xa7   : > { %5900 = vmatprep.mubr.msk.bf16.mxu1 %vm685_vm3, %v5133_v61  ;;  %v1199_v61 = vld [vmem:[%s6604_s28 + $0x48] sm:$0xe]  ;;  %v1204_v9 = vld [vmem:[%s6604_s28 + $0x84] sm:$0xe] }
  0xa8   : > { %v7257_v50 = vsel %vm6849_vm7, %v5163_v22, %v1274_v57  ;;  %v5165_v31 = vrot.slane %v1199_v61, 9  ;;  %v6495_v22 = vld [vmem:[%s6604_s28 + $0x64] sm:$0xf]  ;;  %v6498_v61 = vld [vmem:[%s6604_s28 + $0x70] sm:$0xf] }
  0xa9   : > { %v1302_v62 = vrot.slane %v6495_v22, 5 }
  0xaa   : > { %v7299_v40 = vsel %vm6849_vm7, %v5165_v31, %v1288_v58 }
  0xad   : > { %6053 = vmatmul.mubr.msk.bf16.gmra.mrb[28].mxu0 %vm685_vm3, %v5402_v48  ;;  %v7221_v48 = vand.u32 %v5597_v17, %v6576_v3  ;;  %v7233_v3 = vsel %vm6849_vm7, %v1248_v54, %v1249_v51  ;;  %v7253_v51 = vsel %vm6849_vm7, %v5162_v33, %v1267_v49  ;;  %v1291_v49 = vrot.slane %v6493_v4, 5  ;;  %v5484_v54 = vld [vmem:[%s6604_s28 + $0x18] sm:$0xf]  ;;  %v1200_v33 = vld [vmem:[%s6604_s28 + $0x54] sm:$0xe] }
  0xae   : > { %5901 = vmatmul.mubr.msk.bf16.gmra.mrb[12].mxu1 %vm685_vm3, %v5134_v45  ;;  %6058 = vmatprep.mubr.msk.bf16.mxu0 %vm685_vm3, %v6435_v11  ;;  %v1276_v45 = vrot.slane %v1274_v57, 4  ;;  %v6490_v11 = vld [vmem:[%s6604_s28 + $0x38] sm:$0x1]  ;;  %v3616_v21 = vshll.u32 %v5484_v54, 16  ;;  %v5486_v4 = vld [vmem:[%s6604_s28 + $0x20] sm:$0x1] }
  0xaf   : > { %5904 = vmatprep.mubr.msk.bf16.mxu1 %vm685_vm3, %v5135_v25  ;;  %v1277_v25 = vrot.slane %v6490_v11, 5  ;;  %v6494_v57 = vld [vmem:[%s6604_s28 + $0x58] sm:$0xf] }
  0xb0   : > { %v1295_v17 = vrot.slane %v6494_v57, 5 }
  0xb1   : > { %v7268_v41 = vsel %vm6849_vm7, %v1276_v45, %v1277_v25  ;;  %v5485_v45 = vld [vmem:[%s6604_s28 + $0x1c] sm:$0xf] }
  0xb2   : > { %v1297_v15 = vrot.slane %v1295_v17, 4 }
  0xb5   : > { %6059 = vmatmul.mubr.msk.bf16.vlgmr.msra.gmra.mrb[0].mxu0 %vm685_vm3, %v6437_v37  ;;  %v1290_v37 = vrot.slane %v1288_v58, 4  ;;  %v5166_v58 = vrot.slane %v1200_v33, 9  ;;  %v3637_v33 = vshrl.u32 %v5487_v53, 16  ;;  %v1202_v53 = vld [vmem:[%s6604_s28 + $0x6c] sm:$0xe] }
  0xb6   : > { %5905 = vmatmul.mubr.msk.bf16.gmra.mrb[16].mxu1 %vm685_vm3, %v5136_v47  ;;  %6091 = vmatpush3.bf16.msra.mxu0 %v7124_v10  ;;  %v7249_v10 = vsel %vm6849_vm7, %v1262_v35, %v1263_v7  ;;  %v1283_v47 = vrot.slane %v1281_v38, 4  ;;  %v1201_v35 = vld [vmem:[%s6604_s28 + $0x60] sm:$0xe]  ;;  %v3613_v38 = vshrl.u32 %v5484_v54, 16  ;;  %v5489_v7 = vld [vmem:[%s6604_s28 + $0x2c] sm:$0x1] }
  0xb7   : > { %5908 = vmatprep.mubr.msk.bf16.mxu1 %vm685_vm3, %v5137_v8  ;;  %6062 = vmatprep.mubr.msk.bf16.mxu0 %vm685_vm3, %v6439_v55  ;;  %v5140_v8 = vcombine.low %v6947_v2, %v6958_v26  ;;  %v5141_v55 = vcombine.low %v6979_v16, %v6984_v23  ;;  %v7309_v25 = vsel %vm6849_vm7, %v1290_v37, %v1291_v49  ;;  %v1304_v37 = vrot.slane %v1302_v62, 4 }
  0xb8   : > { %6124 = vmatprep.subr.bf16.mxu0 %v7221_v48  ;;  %v7305_v11 = vsel %vm6849_vm7, %v1283_v47, %v1284_v27  ;;  %v6496_v27 = vld [vmem:[%s6604_s28 + $0x5c] sm:$0x1]  ;;  %v5488_v47 = vld [vmem:[%s6604_s28 + $0x28] sm:$0xf]  ;;  %v3626_v49 = vshrl.u32 %v5485_v45, 16  ;;  %v3615_v0 = vrot.slane %v3613_v38, 4 }
  0xb9   : > { %v1298_v31 = vrot.slane %v6496_v27, 5  ;;  %v3650_v22 = vshrl.u32 %v5488_v47, 16  ;;  %v5490_v27 = vld [vmem:[%s6604_s28 + $0x30] sm:$0xf]  ;;  %v3632_v38 = vshll.u32 %v5486_v4, 16  ;;  %v3639_v59 = vrot.slane %v3637_v33, 4 }
  0xba   : > { %v3628_v42 = vrot.slane %v3626_v49, 4  ;;  %v3664_v1 = vshll.u32 %v5490_v27, 16  ;;  %v3656_v33 = vshll.u32 %v5489_v7, 16  ;;  %v7383_v7 = vld [vmem:[%s6604_s28 + $0x38] sm:$0x1] }
  0xbb   : > { %v7338_v57 = vsel %vm6849_vm7, %v1297_v15, %v1298_v31  ;;  %v3642_v15 = vrot.slane %v3640_v39, 5  ;;  %v3661_v31 = vshrl.u32 %v5490_v27, 16  ;;  %v5493_v39 = vld [vmem:[%s6604_s28 + $0x3c] sm:$0xf]  ;;  %8488 = vst [vmem:[#allocation6_spill] sm:$0xff] %v7383_v7  ;;  %v3680_v13 = vshll.u32 %v7383_v7, 16 }
  0xbc   : > { %v6456_v7 = vld [vmem:[%s6604_s28 + $0xc0] sm:$0xff]  }
  0xbd   : > { %6063 = vmatmul.mubr.msk.bf16.gmra.mrb[4].mxu0 %vm685_vm3, %v6441_v24  ;;  %v5167_v24 = vrot.slane %v1201_v35, 9  ;;  %v3646_v35 = vshll.u32 %v5488_v47, 16  ;;  %v3663_v27 = vrot.slane %v3661_v31, 4  ;;  %v3688_v31 = vshll.u32 %v5493_v39, 16 }
  0xbe   : > { %5909 = vmatmul.mubr.msk.bf16.gmra.mrb[20].mxu1 %vm685_vm3, %v5138_v30  ;;  %6066 = vmatprep.mubr.msk.bf16.mxu0 %vm685_vm3, %v6443_v52  ;;  %v3622_v30 = vshll.u32 %v5485_v45, 16  ;;  %v6445_v52 = vld [vmem:[%s6604_s28 + $0x54] sm:$0xff]   ;;  %v7334_v45 = vsel %vm6849_vm7, %v5166_v58, %v1295_v17  ;;  %v1309_v17 = vrot.slane %v6498_v61, 5  ;;  %v6501_v61 = vld [vmem:[%s6604_s28 + $0x80] sm:$0x1] }
  0xbf   : > { %5912 = vmatprep.mubr.msk.bf16.mxu1 %vm685_vm3, %v5139_v14  ;;  %v3618_v14 = vrot.slane %v3616_v21, 5  ;;  %v7342_v54 = vsel %vm6849_vm7, %v5167_v24, %v1302_v62  ;;  %v7347_v21 = vsel %vm6849_vm7, %v1304_v37, %v1305_v28  ;;  %v5491_v58 = vld [vmem:[%s6604_s28 + $0x34] sm:$0xf]  ;;  %v5168_v24 = vrot.slane %v1202_v53, 9  ;;  %v6449_v53 = vld [vmem:[%s6604_s28 + $0x6c] sm:$0xff]  }
  0xc0   : > { %v7349_v47 = vrot.slane %v3622_v30, 5  ;;  %v7355_v4 = vrot.slane %v3646_v35, 5  ;;  %v3652_v37 = vrot.slane %v3650_v22, 4  ;;  %v3670_v30 = vshll.u32 %v5491_v58, 16  ;;  %v6500_v35 = vld [vmem:[%s6604_s28 + $0x7c] sm:$0xf] }
  0xc1   : > { %v3619_v62 = vor.u32 %v3618_v14, %v3615_v0  ;;  %v3674_v49 = vshrl.u32 %v5491_v58, 16  ;;  %v1311_v26 = vrot.slane %v1309_v17, 4  ;;  %v3643_v0 = vor.u32 %v3642_v15, %v3639_v59  ;;  %v1203_v14 = vld [vmem:[%s6604_s28 + $0x78] sm:$0xe]  ;;  %v7388_v15 = vld [vmem:[%s6604_s28 + $0x40] sm:$0xf] }
  0xc2   : > { %v3629_v2 = vor.u32 %v3628_v42, %v7349_v47  ;;  %v1316_v22 = vrot.slane %v6500_v35, 5  ;;  %v6450_v58 = vld [vmem:[%s6604_s28 + $0x78] sm:$0xff]   ;;  %v7379_v42 = vsel %vm6849_vm7, %v5168_v24, %v1309_v17  ;;  %v7385_v28 = vrot.slane %v3670_v30, 5  ;;  %8489 = vst [vmem:[#allocation7_spill] sm:$0xff] %v7388_v15 }
  0xc3   : > { %v3620_v16 = vrot.slane %v3619_v62, 4  ;;  %v3676_v59 = vrot.slane %v3674_v49, 4  ;;  %v3658_v62 = vrot.slane %v3656_v33, 5  ;;  %v5169_v17 = vrot.slane %v1203_v14, 9 }
  0xc4   : > { %v3630_v35 = vrot.slane %v3629_v2, 4  ;;  %v3644_v24 = vrot.slane %v3643_v0, 4  ;;  %v1319_v18 = vrot.slane %v6501_v61, 5  ;;  %v3694_v2 = vshll.u32 %v7388_v15, 16 }
  0xc5   : > { %6067 = vmatmul.mubr.msk.bf16.gmra.mrb[8].mxu0 %vm685_vm3, %v6445_v52  ;;  %v3677_v61 = vor.u32 %v3676_v59, %v7385_v28  ;;  %v3690_v14 = vrot.slane %v3688_v31, 5  ;;  %v6451_v59 = vld [vmem:[%s6604_s28 + $0x84] sm:$0xff]  }
  0xc6   : > { %5913 = vmatmul.mubr.msk.bf16.gmra.mrb[24].mxu1 %vm685_vm3, %v5140_v8  ;;  %6070 = vmatprep.mubr.msk.bf16.mxu0 %vm685_vm3, %v6447_v60  ;;  %v6499_v8 = vld [vmem:[%s6604_s28 + $0x74] sm:$0x1]  ;;  %v3666_v60 = vrot.slane %v3664_v1, 5  ;;  %v3685_v1 = vshrl.u32 %v5493_v39, 16  ;;  %v3698_v39 = vshrl.u32 %v7388_v15, 16  ;;  %v7436_v31 = vrot.slane %v3694_v2, 5 }
  0xc7   : > { %5916 = vmatprep.mubr.msk.bf16.mxu1 %vm685_vm3, %v5141_v55  ;;  %v1312_v52 = vrot.slane %v6499_v8, 5  ;;  %v3634_v55 = vrot.slane %v3632_v38, 5  ;;  %v3653_v8 = vor.u32 %v3652_v37, %v7355_v4  ;;  %v1318_v37 = vrot.slane %v1316_v22, 4 }
  0xc8   : > { %v3667_v30 = vor.u32 %v3666_v60, %v3663_v27  ;;  %v3687_v0 = vrot.slane %v3685_v1, 4  ;;  %v8491_v27 = vcombine.low %v7211_v20, %v7233_v3  ;;  %v3649_v20 = vsel %vm6628_vm4, %v3644_v24, %v7355_v4  ;;  %v6452_v4 = vld [vmem:[%s6604_s28 + $0x90] sm:$0xff]   ;;  %v6503_v24 = vld [vmem:[%s6604_s28 + $0x8c] sm:$0x1] }
  0xc9   : > { %v7392_v38 = vsel %vm6849_vm7, %v1311_v26, %v1312_v52  ;;  %v3654_v49 = vrot.slane %v3653_v8, 4  ;;  %v8490_v26 = vcombine.low %v6999_v56, %v7008_v29  ;;  %v6502_v52 = vld [vmem:[%s6604_s28 + $0x88] sm:$0xf]  ;;  %v3625_v56 = vsel %vm6628_vm4, %v3620_v16, %v7349_v47 }
  0xca   : > { %v1323_v33 = vrot.slane %v6502_v52, 5  ;;  %v3635_v60 = vsel %vm6628_vm4, %v3630_v35, %v3634_v55  ;;  %v7427_v3 = vsel %vm6849_vm7, %v1318_v37, %v1319_v18  ;;  %v3668_v47 = vrot.slane %v3667_v30, 4  ;;  %v7430_v55 = vld [vmem:[%s6604_s28 + $0x44] sm:$0x1]  ;;  %v5496_v8 = vld [vmem:[%s6604_s28 + $0x48] sm:$0xf] }
  0xcb   : > { %v5170_v16 = vrot.slane %v1204_v9, 9  ;;  %8492 = vst [vmem:[#allocation8_spill] sm:$0xff] %v7430_v55  ;;  %v3682_v1 = vrot.slane %v3680_v13, 5  ;;  %v3700_v35 = vrot.slane %v3698_v39, 4  ;;  %v1326_v37 = vrot.slane %v6503_v24, 5 }
  0xcc   : > { %v1325_v18 = vrot.slane %v1323_v33, 4  ;;  %v3691_v9 = vor.u32 %v3690_v14, %v3687_v0  ;;  %v7441_v30 = vld [vmem:[%s6604_s28 + $0x4c] sm:$0xf]  ;;  %v3704_v52 = vshll.u32 %v7430_v55, 16  ;;  %v3709_v13 = vshrl.u32 %v5496_v8, 16 }
  0xcd   : > { %6071 = vmatmul.mubr.msk.bf16.gmra.mrb[12].mxu0 %vm685_vm3, %v6449_v53  ;;  %v7456_v0 = vsel %vm6849_vm7, %v5170_v16, %v1323_v33  ;;  %v5499_v14 = vld [vmem:[%s6604_s28 + $0x54] sm:$0xf] }
  0xce   : > { %5917 = vmatmul.mubr.msk.bf16.gmra.mrb[28].mxu1 %vm685_vm3, %v8490_v26  ;;  %6074 = vmatprep.mubr.msk.bf16.mxu0 %vm685_vm3, %v6450_v58  ;;  %v7420_v58 = vsel %vm6849_vm7, %v5169_v17, %v1316_v22  ;;  %v3659_v22 = vsel %vm6628_vm4, %v3654_v49, %v3658_v62  ;;  %v3678_v17 = vrot.slane %v3677_v61, 4  ;;  %v7443_v26 = vcombine.low %v3625_v56, %v3635_v60  ;;  %v1205_v62 = vld [vmem:[%s6604_s28 + $0x90] sm:$0xe]  ;;  %v6504_v56 = vld [vmem:[%s6604_s28 + $0x94] sm:$0xf] }
  0xcf   : > { %5922 = vmatprep.mubr.msk.bf16.mxu1 %vm685_vm3, %v8491_v27  ;;  %v3712_v49 = vshll.u32 %v5496_v8, 16  ;;  %v7447_v2 = vcombine.low %v3649_v20, %v3659_v22  ;;  %v3673_v61 = vsel %vm6628_vm4, %v3668_v47, %v7385_v28  ;;  %v3701_v27 = vor.u32 %v3700_v35, %v7436_v31  ;;  %v7465_v22 = vld [vmem:[%s6604_s28 + $0x58] sm:$0xf] }
  0xd0   : > { %v1330_v60 = vrot.slane %v6504_v56, 5  ;;  %v3718_v20 = vshll.u32 %v7441_v30, 16  ;;  %v3722_v8 = vshrl.u32 %v7441_v30, 16  ;;  %v8493_v28 = vcombine.low %v7217_v63, %v7237_v12  ;;  %v6505_v35 = vld [vmem:[%s6604_s28 + $0x98] sm:$0x1] }
  0xd1   : > { %v3683_v33 = vsel %vm6628_vm4, %v3678_v17, %v3682_v1  ;;  %v7476_v47 = vsel %vm6849_vm7, %v1325_v18, %v1326_v37  ;;  %v7478_v16 = vrot.slane %v3691_v9, 4  ;;  %v8494_v63 = vcombine.low %v7241_v34, %v7249_v10  ;;  %v5502_v9 = vld [vmem:[%s6604_s28 + $0x60] sm:$0xf] }
  0xd2   : > { %v7485_v12 = vrot.slane %v3704_v52, 5  ;;  %v1333_v1 = vrot.slane %v6505_v35, 5  ;;  %v3714_v17 = vrot.slane %v3712_v49, 5  ;;  %v3733_v18 = vshrl.u32 %v5499_v14, 16  ;;  %v6453_v34 = vld [vmem:[%s6604_s28 + $0x9c] sm:$0xff]   ;;  %v6454_v49 = vld [vmem:[%s6604_s28 + $0xa8] sm:$0xff]  }
  0xd3   : > { %v3736_v24 = vshll.u32 %v5499_v14, 16  ;;  %v3742_v37 = vshll.u32 %v7465_v22, 16  ;;  %v7493_v10 = vrot.slane %v3701_v27, 4  ;;  %v1332_v52 = vrot.slane %v1330_v60, 4  ;;  %v7511_v27 = vld [vmem:[%s6604_s28 + $0x50] sm:$0x1] }
  0xd4   : > { %v7498_v56 = vcombine.low %v3673_v61, %v3683_v33  ;;  %v6506_v35 = vld [vmem:[%s6604_s28 + $0xa0] sm:$0xf]  ;;  %v7516_v33 = vld [vmem:[%s6604_s28 + $0x64] sm:$0xf]  ;;  %v3757_v14 = vshrl.u32 %v5502_v9, 16  ;;  %v3760_v39 = vshll.u32 %v5502_v9, 16 }
  0xd5   : > { %6075 = vmatmul.mubr.msk.bf16.gmra.mrb[16].mxu0 %vm685_vm3, %v6451_v59  ;;  %v5171_v59 = vrot.slane %v1205_v62, 9  ;;  %v7495_v62 = vrot.slane %v3718_v20, 5  ;;  %v1206_v20 = vld [vmem:[%s6604_s28 + $0x9c] sm:$0xe]  ;;  %v1337_v61 = vrot.slane %v6506_v35, 5  ;;  %8495 = vst [vmem:[#allocation9_spill] sm:$0xff] %v7516_v33 }
  0xd6   : > { %5923 = vmatmul.mubr.msk.bf16.vlgmr.msra.gmra.mrb[0].mxu1 %vm685_vm3, %v8493_v28  ;;  %6078 = vmatprep.mubr.msk.bf16.mxu0 %vm685_vm3, %v6452_v4  ;;  %v3711_v4 = vrot.slane %v3709_v13, 4  ;;  %v3724_v13 = vrot.slane %v3722_v8, 4  ;;  %v3735_v53 = vrot.slane %v3733_v18, 4  ;;  %v3738_v55 = vrot.slane %v3736_v24, 5  ;;  %v7532_v18 = vld [vmem:[%s6604_s28 + $0x5c] sm:$0x1] }
  0xd7   : > { %5955 = vmatpush3.bf16.msra.mxu1 %v7137_v32  ;;  %5926 = vmatprep.mubr.msk.bf16.mxu1 %vm685_vm3, %v8494_v63  ;;  %v3746_v32 = vshrl.u32 %v7465_v22, 16  ;;  %v7508_v63 = vsel %vm6849_vm7, %v5171_v59, %v1330_v60  ;;  %v7518_v15 = vrot.slane %v3742_v37, 5  ;;  %v3707_v60 = vsel %vm6628_vm4, %v7493_v10, %v7485_v12  ;;  %v1207_v12 = vld [vmem:[%s6604_s28 + $0xa8] sm:$0xe] }
  0xd8   : > { %6158 = vmatprep.subr.bf16.mxu1 %v6580_v5  ;;  %v3715_v8 = vor.u32 %v3714_v17, %v3711_v4  ;;  %v7527_v59 = vsel %vm6849_vm7, %v1332_v52, %v1333_v1  ;;  %v3725_v4 = vor.u32 %v3724_v13, %v7495_v62  ;;  %v3728_v17 = vshll.u32 %v7511_v27, 16  ;;  %v7555_v5 = vld [vmem:[%s6604_s28 + $0x68] sm:$0x1] }
  0xd9   : > { %v3748_v28 = vrot.slane %v3746_v32, 4  ;;  %v8496_v24 = vcombine.low %v7253_v51, %v7261_v43  ;;  %v5172_v37 = vrot.slane %v1206_v20, 9  ;;  %v1344_v1 = vrot.slane %v6984_v23, 5  ;;  %v6507_v43 = vld [vmem:[%s6604_s28 + $0xa4] sm:$0x1]  ;;  %8498 = vst [vmem:[#allocation10_spill] sm:$0xff] %v7555_v5 }
  0xda   : > { %v3766_v32 = vshll.u32 %v7516_v33, 16  ;;  %v3770_v9 = vshrl.u32 %v7516_v33, 16  ;;  %v3716_v51 = vrot.slane %v3715_v8, 4  ;;  %v1340_v10 = vrot.slane %v6507_v43, 5 }
  0xdb   : > { %v3759_v52 = vrot.slane %v3757_v14, 4  ;;  %v3762_v13 = vrot.slane %v3760_v39, 5  ;;  %v1339_v20 = vrot.slane %v1337_v61, 4  ;;  %v3739_v23 = vor.u32 %v3738_v55, %v3735_v53  ;;  %v6508_v39 = vld [vmem:[%s6604_s28 + $0xb0] sm:$0x1] }
  0xdc   : > { %v3749_v35 = vor.u32 %v3748_v28, %v7518_v15  ;;  %v3730_v8 = vrot.slane %v3728_v17, 5  ;;  %v1346_v14 = vrot.slane %v1344_v1, 4  ;;  %v1347_v43 = vrot.slane %v6508_v39, 5  ;;  %v1208_v55 = vld [vmem:[%s6604_s28 + $0xb4] sm:$0xe] }
  0xdd   : > { %6079 = vmatmul.mubr.msk.bf16.gmra.mrb[20].mxu0 %vm685_vm3, %v6453_v34  ;;  %v8497_v34 = vcombine.low %v7257_v50, %v7268_v41  ;;  %v3726_v41 = vrot.slane %v3725_v4, 4  ;;  %v7558_v46 = vrot.slane %v3766_v32, 5  ;;  %v3772_v53 = vrot.slane %v3770_v9, 4 }
  0xde   : > { %5927 = vmatmul.mubr.msk.bf16.gmra.mrb[4].mxu1 %vm685_vm3, %v8496_v24  ;;  %6082 = vmatprep.mubr.msk.bf16.mxu0 %vm685_vm3, %v6454_v49  ;;  %v6455_v49 = vld [vmem:[%s6604_s28 + $0xb4] sm:$0xff]   ;;  %v3752_v24 = vshll.u32 %v7532_v18, 16  ;;  %v3721_v28 = vsel %vm6628_vm4, %v3716_v51, %v7495_v62  ;;  %v7566_v33 = vsel %vm6849_vm7, %v5172_v37, %v1337_v61  ;;  %v3763_v4 = vor.u32 %v3762_v13, %v3759_v52 }
  0xdf   : > { %5930 = vmatprep.mubr.msk.bf16.mxu1 %vm685_vm3, %v8497_v34  ;;  %v5173_v34 = vrot.slane %v1207_v12, 9  ;;  %v1351_v17 = vrot.slane %v7008_v29, 5  ;;  %v5505_v12 = vld [vmem:[%s6604_s28 + $0x6c] sm:$0xf]  ;;  %v7572_v39 = vsel %vm6849_vm7, %v1339_v20, %v1340_v10  ;;  %v7574_v32 = vrot.slane %v3739_v23, 4 }
  0xe0   : > { %8499 = vst [vmem:[#allocation11_spill] sm:$0xff] %v7572_v39  ;;  %v7576_v9 = vrot.slane %v3749_v35, 4  ;;  %v7578_v50 = vrot.slane %v3752_v24, 5  ;;  %v3731_v62 = vsel %vm6628_vm4, %v3726_v41, %v3730_v8  ;;  %v3776_v61 = vshll.u32 %v7555_v5, 16  ;;  %v6457_v24 = vld [vmem:[%s6604_s28 + $0xcc] sm:$0xff]  }
  0xe1   : > { %v7585_v29 = vsel %vm6849_vm7, %v5173_v34, %v1344_v1  ;;  %v5174_v37 = vrot.slane %v1208_v55, 9  ;;  %v8501_v51 = vcombine.low %v7295_v6, %v7305_v11  ;;  %v7595_v10 = vsel %vm6849_vm7, %v1346_v14, %v1347_v43  ;;  %v7599_v1 = vld [vmem:[%s6604_s28 + $0x70] sm:$0xf]  ;;  %v7642_v43 = vld [vmem:[%s6604_s28 + $0x7c] sm:$0xf] }
  0xe2   : > { %8500 = vst [vmem:[#allocation12_spill] sm:$0xff] %v7585_v29  ;;  %8502 = vst [vmem:[#allocation13_spill] sm:$0xff] %v7595_v10  ;;  %v3773_v52 = vor.u32 %v3772_v53, %v7558_v46  ;;  %v3781_v13 = vshrl.u32 %v5505_v12, 16  ;;  %v8504_v20 = vcombine.low %v7299_v40, %v7309_v25  ;;  %v8505_v6 = vsel %vm6628_vm4, %v7478_v16, %v7436_v31  ;;  %v7629_v16 = vld [vmem:[%s6604_s28 + $0x74] sm:$0x1] }
  0xe3   : > { %8503 = vst [vmem:[#allocation14_spill] sm:$0xff] %v7599_v1  ;;  %v7610_v11 = vcombine.low %v8505_v6, %v3707_v60  ;;  %v1353_v23 = vrot.slane %v1351_v17, 4  ;;  %v1354_v35 = vrot.slane %v7014_v19, 5  ;;  %v7616_v41 = vcombine.low %v3721_v28, %v3731_v62  ;;  %8506 = vst [vmem:[#allocation15_spill] sm:$0xff] %v7629_v16  ;;  %v5508_v19 = vld [vmem:[%s6604_s28 + $0x78] sm:$0xf] }
  0xe4   : > { %v7634_v8 = vrot.slane %v3776_v61, 5  ;;  %v7638_v34 = vsel %vm6849_vm7, %v5174_v37, %v1351_v17  ;;  %v3790_v14 = vshll.u32 %v7599_v1, 16  ;;  %8507 = vst [vmem:[#allocation16_spill] sm:$0xff] %v7642_v43  ;;  %v5511_v53 = vld [vmem:[%s6604_s28 + $0x84] sm:$0xf]  ;;  %v7645_v55 = vrot.slane %v3773_v52, 4 }
  0xe5   : > { %6083 = vmatmul.mubr.msk.bf16.gmra.mrb[24].mxu0 %vm685_vm3, %v6455_v49  ;;  %v3784_v49 = vshll.u32 %v5505_v12, 16  ;;  %v7647_v28 = vrot.slane %v3781_v13, 4  ;;  %v3794_v12 = vshrl.u32 %v7599_v1, 16  ;;  %v7653_v62 = vld [vmem:[%s6604_s28 + $0x88] sm:$0xf]  ;;  %v7661_v61 = vsel %vm6849_vm7, %v1353_v23, %v1354_v35 }
  0xe6   : > { %5931 = vmatmul.mubr.msk.bf16.gmra.mrb[8].mxu1 %vm685_vm3, %v8501_v51  ;;  %6086 = vmatprep.mubr.msk.bf16.mxu0 %vm685_vm3, %v6456_v7  ;;  %v7612_v7 = vrot.slane %v3763_v4, 4  ;;  %8508 = vst [vmem:[#allocation17_spill] sm:$0xff] %v7653_v62  ;;  %v3805_v37 = vshrl.u32 %v5508_v19, 16  ;;  %v3808_v51 = vshll.u32 %v5508_v19, 16  ;;  %v5514_v52 = vld [vmem:[%s6604_s28 + $0x90] sm:$0xf]  ;;  %v8510_v17 = vcombine.low %v7334_v45, %v7338_v57 }
  0xe7   : > { %5934 = vmatprep.mubr.msk.bf16.mxu1 %vm685_vm3, %v8504_v20  ;;  %v7649_v4 = vrot.slane %v3784_v49, 5  ;;  %v7665_v13 = vld [vmem:[%s6604_s28 + $0x94] sm:$0xf]  ;;  %v3814_v49 = vshll.u32 %v7642_v43, 16  ;;  %v3818_v20 = vshrl.u32 %v7642_v43, 16  ;;  %v3829_v6 = vshrl.u32 %v5511_v53, 16 }
  0xe8   : > { %8509 = vst [vmem:[#allocation18_spill] sm:$0xff] %v7665_v13  ;;  %v3832_v60 = vshll.u32 %v5511_v53, 16  ;;  %v7670_v40 = vrot.slane %v3790_v14, 5  ;;  %v3800_v23 = vshll.u32 %v7629_v16, 16  ;;  %v3838_v35 = vshll.u32 %v7653_v62, 16 }
  0xe9   : > { %v3842_v19 = vshrl.u32 %v7653_v62, 16  ;;  %v3853_v53 = vshrl.u32 %v5514_v52, 16  ;;  %v3862_v14 = vshll.u32 %v7665_v13, 16  ;;  %v3866_v25 = vshrl.u32 %v7665_v13, 16  ;;  %v5517_v31 = vld [vmem:[%s6604_s28 + $0x9c] sm:$0xf] }
  0xea   : > { %v8511_v43 = vcombine.low %v7342_v54, %v7347_v21  ;;  %v3796_v45 = vrot.slane %v3794_v12, 4  ;;  %v7695_v62 = vrot.slane %v3814_v49, 5  ;;  %v3820_v13 = vrot.slane %v3818_v20, 4  ;;  %v7698_v54 = vld [vmem:[%s6604_s28 + $0x8c] sm:$0x1] }
  0xeb   : > { %v3831_v16 = vrot.slane %v3829_v6, 4  ;;  %v3834_v1 = vrot.slane %v3832_v60, 5  ;;  %v7700_v21 = vrot.slane %v3838_v35, 5  ;;  %v3877_v5 = vshrl.u32 %v5517_v31, 16  ;;  %v7703_v57 = vld [vmem:[%s6604_s28 + $0x98] sm:$0x1] }
  0xec   : > { %v3880_v10 = vshll.u32 %v5517_v31, 16  ;;  %v3855_v12 = vrot.slane %v3853_v53, 4  ;;  %v3868_v49 = vrot.slane %v3866_v25, 4  ;;  %v3787_v20 = vor.u32 %v7649_v4, %v7647_v28 }
  0xed   : > { %6087 = vmatmul.mubr.msk.bf16.gmra.mrb[28].mxu0 %vm685_vm3, %v6457_v24  ;;  %v3856_v24 = vshll.u32 %v5514_v52, 16  ;;  %v7693_v52 = vld [vmem:[%s6604_s28 + $0x80] sm:$0x1]  ;;  %v3797_v60 = vor.u32 %v3796_v45, %v7670_v40  ;;  %v7710_v6 = vrot.slane %v3800_v23, 5  ;;  %v3821_v31 = vor.u32 %v3820_v13, %v7695_v62 }
  0xee   : > { %5935 = vmatmul.mubr.msk.bf16.gmra.mrb[12].mxu1 %vm685_vm3, %v8510_v17  ;;  %6092 = vmatprep.mubr.msk.bf16.mxu0 %vm685_vm3, %v7443_v26  ;;  %v3807_v26 = vrot.slane %v3805_v37, 4  ;;  %v3810_v17 = vrot.slane %v3808_v51, 5  ;;  %v7705_v51 = vrot.slane %v3862_v14, 5  ;;  %v3824_v35 = vshll.u32 %v7693_v52, 16 }
  0xef   : > { %5938 = vmatprep.mubr.msk.bf16.mxu1 %vm685_vm3, %v8511_v43  ;;  %v3844_v43 = vrot.slane %v3842_v19, 4  ;;  %v3858_v37 = vrot.slane %v3856_v24, 5  ;;  %v7714_v19 = vld [vmem:[%s6604_s28 + $0xa0] sm:$0xf]  ;;  %v3835_v39 = vor.u32 %v3834_v1, %v3831_v16  ;;  %v3848_v53 = vshll.u32 %v7698_v54, 16 }
  0xf0   : > { %8512 = vst [vmem:[#allocation19_spill] sm:$0xff] %v7714_v19  ;;  %v3811_v29 = vor.u32 %v3810_v17, %v3807_v26  ;;  %v5520_v24 = vld [vmem:[%s6604_s28 + $0xa8] sm:$0xf]  ;;  %v3872_v28 = vshll.u32 %v7703_v57, 16  ;;  %v3879_v4 = vrot.slane %v3877_v5, 4  ;;  %v3882_v23 = vrot.slane %v3880_v10, 5 }
  0xf1   : > { %v3845_v25 = vor.u32 %v3844_v43, %v7700_v21  ;;  %v8513_v14 = vcombine.low %v7379_v42, %v7392_v38  ;;  %v3859_v1 = vor.u32 %v3858_v37, %v3855_v12  ;;  %v3869_v16 = vor.u32 %v3868_v49, %v7705_v51 }
  0xf2   : > { %v3886_v13 = vshll.u32 %v7714_v19, 16  ;;  %v8514_v45 = vcombine.low %v7420_v58, %v7427_v3  ;;  %v3788_v5 = vrot.slane %v3787_v20, 4  ;;  %v3798_v42 = vrot.slane %v3797_v60, 4  ;;  %v7743_v20 = vld [vmem:[%s6604_s28 + $0xac] sm:$0xf] }
  0xf3   : > { %v3904_v38 = vshll.u32 %v5520_v24, 16  ;;  %v3812_v10 = vrot.slane %v3811_v29, 4  ;;  %v3822_v26 = vrot.slane %v3821_v31, 4  ;;  %v3826_v17 = vrot.slane %v3824_v35, 5  ;;  %v7752_v60 = vld [vmem:[%s6604_s28 + $0xb0] sm:$0x1] }
  0xf4   : > { %v3836_v43 = vrot.slane %v3835_v39, 4  ;;  %v3846_v12 = vrot.slane %v3845_v25, 4  ;;  %v3850_v37 = vrot.slane %v3848_v53, 5  ;;  %v3874_v49 = vrot.slane %v3872_v28, 5 }
  0xf5   : > { %6093 = vmatmul.mubr.msk.bf16.vlgmr.msra.gmra.mrb[0].mxu0 %vm685_vm3, %v7447_v2  ;;  %v3890_v2 = vshrl.u32 %v7714_v19, 16  ;;  %v3883_v58 = vor.u32 %v3882_v23, %v3879_v4  ;;  %v3860_v3 = vrot.slane %v3859_v1, 4  ;;  %v7740_v19 = vrot.slane %v3886_v13, 5 }
  0xf6   : > { %5939 = vmatmul.mubr.msk.bf16.gmra.mrb[16].mxu1 %vm685_vm3, %v8513_v14  ;;  %6125 = vmatpush3.bf16.msra.mxu0 %v7221_v48  ;;  %v3901_v48 = vshrl.u32 %v5520_v24, 16  ;;  %v7738_v14 = vld [vmem:[%s6604_s28 + $0xa4] sm:$0x1]  ;;  %v3793_v29 = vsel %vm6628_vm4, %v3788_v5, %v7670_v40  ;;  %v3803_v39 = vsel %vm6628_vm4, %v3798_v42, %v7710_v6  ;;  %v3906_v31 = vrot.slane %v3904_v38, 5 }
  0xf7   : > { %5942 = vmatprep.mubr.msk.bf16.mxu1 %vm685_vm3, %v8514_v45  ;;  %6096 = vmatprep.mubr.msk.bf16.mxu0 %vm685_vm3, %v7498_v56  ;;  %v3870_v45 = vrot.slane %v3869_v16, 4  ;;  %v3892_v56 = vrot.slane %v3890_v2, 4  ;;  %v3817_v53 = vsel %vm6628_vm4, %v3812_v10, %v7695_v62  ;;  %v3827_v24 = vsel %vm6628_vm4, %v3822_v26, %v3826_v17  ;;  %v5523_v2 = vld [vmem:[%s6604_s28 + $0xb4] sm:$0xf] }
  0xf8   : > { %v3903_v35 = vrot.slane %v3901_v48, 4  ;;  %v3841_v25 = vsel %vm6628_vm4, %v3836_v43, %v7700_v21  ;;  %v3896_v40 = vshll.u32 %v7738_v14, 16  ;;  %v3851_v6 = vsel %vm6628_vm4, %v3846_v12, %v3850_v37  ;;  %v5570_v10 = vld [vmem:[%s6604_s28 + $0x54] sm:$0xe]  ;;  %v5571_v37 = vld [vmem:[%s6604_s28 + $0x60] sm:$0xe] }
  0xf9   : > { %v7767_v28 = vrot.slane %v3883_v58, 4  ;;  %v3910_v62 = vshll.u32 %v7743_v20, 16  ;;  %v3914_v4 = vshrl.u32 %v7743_v20, 16  ;;  %v8515_v23 = vcombine.low %v7456_v0, %v7476_v47 }
  0xfa   : > { %v3875_v21 = vsel %vm6628_vm4, %v3870_v45, %v3874_v49  ;;  %v3893_v1 = vor.u32 %v3892_v56, %v7740_v19  ;;  %v3920_v16 = vshll.u32 %v7752_v60, 16  ;;  %v8516_v0 = vcombine.low %v7508_v63, %v7527_v59 }
  0xfb   : > { %v8517_v47 = vsel %vm6628_vm4, %v7576_v9, %v7578_v50  ;;  %v8519_v13 = vsel %vm6628_vm4, %v7645_v55, %v7634_v8  ;;  %v8520_v63 = vsel %vm6628_vm4, %v7612_v7, %v7558_v46  ;;  %v5191_v50 = vcombine.low %v7638_v34, %v7661_v61  ;;  %v7821_v55 = vld [vmem:[%s6604_s28 + $0xb8] sm:$0xf] }
  0xfc   : > { %v5539_v59 = vcombine.low %v8520_v63, %v8519_v13  ;;  %v3907_v9 = vor.u32 %v3906_v31, %v3903_v35  ;;  %v7814_v5 = vcombine.low %v3817_v53, %v3827_v24  ;;  %v7816_v42 = vcombine.low %v3841_v25, %v3851_v6  ;;  %v5572_v31 = vld [vmem:[%s6604_s28 + $0x6c] sm:$0xe] }
  0xfd   : > { %6097 = vmatmul.mubr.msk.bf16.gmra.mrb[4].mxu0 %vm685_vm3, %v7610_v11  ;;  %v3865_v11 = vsel %vm6628_vm4, %v3860_v3, %v7705_v51  ;;  %v7818_v8 = vrot.slane %v3896_v40, 5  ;;  %v3889_v46 = vsel %vm6628_vm4, %v7767_v28, %v7740_v19  ;;  %v7829_v7 = vrot.slane %v3910_v62, 5  ;;  %v8523_v62 = vld [vmem:[#allocation9_spill] sm:$0xff]  ;;  %v5529_v28 = vld [vmem:[%s6604_s28 + $0xcc] sm:$0xf] }
  0xfe   : > { %5943 = vmatmul.mubr.msk.bf16.gmra.mrb[20].mxu1 %vm685_vm3, %v8515_v23  ;;  %6100 = vmatprep.mubr.msk.bf16.mxu0 %vm685_vm3, %v7616_v41  ;;  %v8518_v41 = vsel %vm6628_vm4, %v7574_v32, %v7518_v15  ;;  %v5569_v15 = vld [vmem:[%s6604_s28 + $0x48] sm:$0xe]  ;;  %v7812_v32 = vcombine.low %v3793_v29, %v3803_v39  ;;  %v7823_v48 = vcombine.low %v3865_v11, %v3875_v21  ;;  %v3916_v38 = vrot.slane %v3914_v4, 4  ;;  %v8524_v23 = vld [vmem:[#allocation12_spill] sm:$0xff]  ;;  %v8525_v11 = vld [vmem:[#allocation13_spill] sm:$0xff] }
  0xff   : > { %5946 = vmatprep.mubr.msk.bf16.mxu1 %vm685_vm3, %v8516_v0  ;;  %v5538_v51 = vcombine.low %v8518_v41, %v8517_v47  ;;  %v7832_v26 = vrot.slane %v3893_v1, 4  ;;  %v7834_v17 = vrot.slane %v3920_v16, 5  ;;  %v3925_v43 = vshrl.u32 %v5523_v2, 16  ;;  %v8527_v1 = vld [vmem:[#allocation10_spill] sm:$0xff] }
 0x100   : > { %v5585_v12 = vrot.slane %v5569_v15, 9  ;;  %v7837_v49 = vrot.slane %v3907_v9, 4  ;;  %v3928_v58 = vshll.u32 %v5523_v2, 16  ;;  %v3934_v3 = vshll.u32 %v7821_v55, 16  ;;  %v8528_v47 = vld [vmem:[#allocation14_spill] sm:$0xff] }
 0x101   : > { %v4384_v45 = vrot.slane %v7441_v30, 5  ;;  %v4387_v56 = vrot.slane %v7511_v27, 5  ;;  %v5586_v29 = vrot.slane %v5570_v10, 9  ;;  %v4391_v39 = vrot.slane %v7465_v22, 5  ;;  %v8521_v30 = vld [vmem:[#allocation11_spill] sm:$0xff] }
 0x102   : > { %v4394_v35 = vrot.slane %v7532_v18, 5  ;;  %v3917_v53 = vor.u32 %v3916_v38, %v7829_v7  ;;  %v5587_v40 = vrot.slane %v5571_v37, 9  ;;  %v8522_v27 = vcombine.low %v7566_v33, %v8521_v30  ;;  %v7884_v2 = vld [vmem:[%s6604_s28 + $0xbc] sm:$0x1] }
 0x103   : > { %v7849_v24 = vsel %vm6849_vm7, %v5585_v12, %v4384_v45  ;;  %v4386_v25 = vrot.slane %v4384_v45, 4  ;;  %v3938_v22 = vshrl.u32 %v7821_v55, 16  ;;  %v7859_v18 = vsel %vm6849_vm7, %v5586_v29, %v4391_v39  ;;  %v8529_v12 = vld [vmem:[#allocation15_spill] sm:$0xff] }
 0x104   : > { %v4393_v6 = vrot.slane %v4391_v39, 4  ;;  %v4398_v4 = vrot.slane %v8523_v62, 5  ;;  %v8526_v21 = vcombine.low %v8524_v23, %v8525_v11  ;;  %v4401_v16 = vrot.slane %v8527_v1, 5  ;;  %v7902_v39 = vld [vmem:[%s6604_s28 + $0xc4] sm:$0xf]  ;;  %v8530_v11 = vld [vmem:[#allocation16_spill] sm:$0xff] }
 0x105   : > { %6101 = vmatmul.mubr.msk.bf16.gmra.mrb[8].mxu0 %vm685_vm3, %v5538_v51  ;;  %v7868_v33 = vsel %vm6849_vm7, %v4386_v25, %v4387_v56  ;;  %v5588_v0 = vrot.slane %v5572_v31, 9  ;;  %v4405_v41 = vrot.slane %v8528_v47, 5  ;;  %v5526_v51 = vld [vmem:[%s6604_s28 + $0xc0] sm:$0xf]  ;;  %v4408_v37 = vrot.slane %v8529_v12, 5  ;;  %v6458_v25 = vld [vmem:[%s6604_s28 + $0xc] sm:$0xff]  }
 0x106   : > { %5947 = vmatmul.mubr.msk.bf16.gmra.mrb[24].mxu1 %vm685_vm3, %v8522_v27  ;;  %6104 = vmatprep.mubr.msk.bf16.mxu0 %vm685_vm3, %v5539_v59  ;;  %v5602_v13 = vcombine.low %v7849_v24, %v7868_v33  ;;  %v7877_v63 = vsel %vm6849_vm7, %v4393_v6, %v4394_v35  ;;  %v7881_v59 = vsel %vm6849_vm7, %v5587_v40, %v4398_v4  ;;  %v4400_v9 = vrot.slane %v4398_v4, 4  ;;  %v5573_v31 = vld [vmem:[%s6604_s28 + $0x78] sm:$0xe]  ;;  %v5574_v1 = vld [vmem:[%s6604_s28 + $0x84] sm:$0xe] }
 0x107   : > { %5950 = vmatprep.mubr.msk.bf16.mxu1 %vm685_vm3, %v8526_v21  ;;  %v5603_v15 = vcombine.low %v7859_v18, %v7877_v63  ;;  %v7890_v38 = vsel %vm6849_vm7, %v5588_v0, %v4405_v41  ;;  %v4407_v10 = vrot.slane %v4405_v41, 4  ;;  %v3899_v45 = vsel %vm6628_vm4, %v7832_v26, %v7818_v8  ;;  %v5300_v26 = vld [vmem:[%s6604_s28 + $0x78] sm:$0xf]  ;;  %v6519_v63 = vld [vmem:[%s6604_s28 + $0xa0] sm:$0xf] }
 0x108   : > { %v7897_v56 = vrot.slane %v3925_v43, 4  ;;  %v7899_v29 = vrot.slane %v3928_v58, 5  ;;  %v7906_v35 = vsel %vm6849_vm7, %v4400_v9, %v4401_v16  ;;  %v7910_v40 = vrot.slane %v3934_v3, 5  ;;  %v8532_v47 = vld [vmem:[#allocation5_spill] sm:$0xff] }
 0x109   : > { %v3949_v30 = vshrl.u32 %v5526_v51, 16  ;;  %v5604_v27 = vcombine.low %v7881_v59, %v7906_v35  ;;  %v7916_v8 = vsel %vm6849_vm7, %v4407_v10, %v4408_v37  ;;  %v7919_v43 = vrot.slane %v3917_v53, 4  ;;  %v8533_v37 = vld [vmem:[#allocation17_spill] sm:$0xff] }
 0x10a   : > { %v3944_v58 = vshll.u32 %v7884_v2, 16  ;;  %v3952_v6 = vshll.u32 %v5526_v51, 16  ;;  %v5605_v62 = vcombine.low %v7890_v38, %v7916_v8  ;;  %v7926_v3 = vrot.slane %v3938_v22, 4  ;;  %v6522_v8 = vld [vmem:[%s6604_s28 + $0xac] sm:$0xf] }
 0x10b   : > { %v3958_v4 = vshll.u32 %v7902_v39, 16  ;;  %v5589_v23 = vrot.slane %v5573_v31, 9  ;;  %v4412_v21 = vrot.slane %v8530_v11, 5  ;;  %v3962_v53 = vshrl.u32 %v7902_v39, 16 }
 0x10c   : > { %v2274_v22 = vshrl.u32 %v5300_v26, 16  ;;  %v2277_v16 = vshll.u32 %v5300_v26, 16  ;;  %v3951_v0 = vrot.slane %v3949_v30, 4  ;;  %v5590_v9 = vrot.slane %v5574_v1, 9  ;;  %v6459_v30 = vld [vmem:[%s6604_s28 + $0x18] sm:$0xff]  }
 0x10d   : > { %6105 = vmatmul.mubr.msk.bf16.gmra.mrb[12].mxu0 %vm685_vm3, %v7812_v32  ;;  %v4415_v32 = vrot.slane %v7693_v52, 5  ;;  %v7942_v34 = vsel %vm6849_vm7, %v5589_v23, %v4412_v21  ;;  %v4414_v61 = vrot.slane %v4412_v21, 4  ;;  %v3954_v52 = vrot.slane %v3952_v6, 5  ;;  %v6460_v23 = vld [vmem:[%s6604_s28 + $0x24] sm:$0xff]  }
 0x10e   : > { %5951 = vmatmul.mubr.msk.bf16.gmra.mrb[28].mxu1 %vm685_vm3, %v5191_v50  ;;  %6108 = vmatprep.mubr.msk.bf16.mxu0 %vm685_vm3, %v7814_v5  ;;  %v8531_v50 = vld [vmem:[#allocation4_spill] sm:$0xff]  ;;  %v2276_v41 = vrot.slane %v2274_v22, 4  ;;  %v2279_v51 = vrot.slane %v2277_v16, 5  ;;  %v5544_v10 = vcombine.low %v3889_v46, %v3899_v45  ;;  %v4419_v31 = vrot.slane %v8533_v37, 5  ;;  %v8536_v37 = vld [vmem:[#allocation18_spill] sm:$0xff] }
 0x10f   : > { %5956 = vmatprep.mubr.msk.bf16.mxu1 %vm685_vm3, %v6458_v25  ;;  %v2296_v5 = vsel %vm6628_vm4, %v8532_v47, %v8531_v50  ;;  %v7955_v12 = vsel %vm6849_vm7, %v4414_v61, %v4415_v32  ;;  %v4422_v25 = vrot.slane %v7698_v54, 5  ;;  %v3913_v26 = vsel %vm6628_vm4, %v7837_v49, %v7829_v7  ;;  %v7968_v46 = vld [vmem:[%s6604_s28 + $0xd0] sm:$0xf]  ;;  %v8535_v50 = vld [vmem:[#allocation2_spill] sm:$0xff] }
 0x110   : > { %v3931_v19 = vor.u32 %v7899_v29, %v7897_v56  ;;  %v5606_v45 = vcombine.low %v7942_v34, %v7955_v12  ;;  %v2280_v6 = vor.u32 %v2279_v51, %v2276_v41  ;;  %v7973_v11 = vrot.slane %v3958_v4, 5  ;;  %v5575_v7 = vld [vmem:[%s6604_s28 + $0x90] sm:$0xe]  ;;  %v7987_v29 = vld [vmem:[%s6604_s28 + $0xc8] sm:$0x1] }
 0x111   : > { %v3964_v54 = vrot.slane %v3962_v53, 4  ;;  %v7977_v21 = vsel %vm6849_vm7, %v5590_v9, %v4419_v31  ;;  %v4421_v1 = vrot.slane %v4419_v31, 4  ;;  %v3923_v49 = vsel %vm6628_vm4, %v7919_v43, %v7834_v17  ;;  %v8534_v43 = vld [vmem:[#allocation3_spill] sm:$0xff] }
 0x112   : > { %v3941_v56 = vor.u32 %v7926_v3, %v7910_v40  ;;  %v3955_v32 = vor.u32 %v3954_v52, %v3951_v0  ;;  %v2281_v4 = vrot.slane %v2280_v6, 4  ;;  %v3973_v53 = vshrl.u32 %v5529_v28, 16 }
 0x113   : > { %v3976_v22 = vshll.u32 %v5529_v28, 16  ;;  %v3982_v16 = vshll.u32 %v7968_v46, 16  ;;  %v7994_v61 = vsel %vm6849_vm7, %v4421_v1, %v4422_v25  ;;  %v3986_v17 = vshrl.u32 %v7968_v46, 16 }
 0x114   : > { %v2286_v3 = vsel %vm6628_vm4, %v2281_v4, %v8534_v43  ;;  %v5591_v0 = vrot.slane %v5575_v7, 9  ;;  %v3946_v47 = vrot.slane %v3944_v58, 5  ;;  %v3968_v52 = vshll.u32 %v7987_v29, 16  ;;  %v5576_v7 = vld [vmem:[%s6604_s28 + $0x9c] sm:$0xe]  ;;  %v8537_v43 = vld [vmem:[#allocation19_spill] sm:$0xff] }
 0x115   : > { %6109 = vmatmul.mubr.msk.bf16.gmra.mrb[16].mxu0 %vm685_vm3, %v7816_v42  ;;  %v5607_v42 = vcombine.low %v7977_v21, %v7994_v61  ;;  %v8009_v41 = vcombine.low %v2286_v3, %v2296_v5  ;;  %v5545_v51 = vcombine.low %v3913_v26, %v3923_v49  ;;  %v3932_v9 = vrot.slane %v3931_v19, 4  ;;  %v8016_v58 = vld [vmem:[%s6604_s28 + $0xd4] sm:$0x1]  ;;  %v6462_v19 = vld [vmem:[%s6604_s28 + $0x3c] sm:$0xff]  }
 0x116   : > { %5957 = vmatmul.mubr.msk.bf16.vlgmr.msra.gmra.mrb[0].mxu1 %vm685_vm3, %v6459_v30  ;;  %6112 = vmatprep.mubr.msk.bf16.mxu0 %vm685_vm3, %v7823_v48  ;;  %v3965_v48 = vor.u32 %v3964_v54, %v7973_v11  ;;  %v4426_v31 = vrot.slane %v8536_v37, 5  ;;  %v4429_v25 = vrot.slane %v7703_v57, 5  ;;  %v3942_v30 = vrot.slane %v3941_v56, 4  ;;  %v5577_v37 = vld [vmem:[%s6604_s28 + $0xa8] sm:$0xe] }
 0x117   : > { %6159 = vmatpush3.bf16.msra.mxu1 %v8535_v50  ;;  %5960 = vmatprep.mubr.msk.bf16.mxu1 %vm685_vm3, %v6460_v23  ;;  %v3956_v28 = vrot.slane %v3955_v32, 4  ;;  %v3975_v6 = vrot.slane %v3973_v53, 4  ;;  %v3978_v1 = vrot.slane %v3976_v22, 5  ;;  %v6461_v23 = vld [vmem:[%s6604_s28 + $0x30] sm:$0xff]   ;;  %v8018_v54 = vrot.slane %v3982_v16, 5 }
 0x118   : > { %v3988_v4 = vrot.slane %v3986_v17, 4  ;;  %v8022_v5 = vsel %vm6849_vm7, %v5591_v0, %v4426_v31  ;;  %v4428_v26 = vrot.slane %v4426_v31, 4  ;;  %v3966_v49 = vrot.slane %v3965_v48, 4  ;;  %v5565_v50 = vld [vmem:[%s6604_s28 + $0x18] sm:$0xe] }
 0x119   : > { %v3970_v57 = vrot.slane %v3968_v52, 5  ;;  %v3937_v56 = vsel %vm6628_vm4, %v3932_v9, %v7910_v40  ;;  %v5592_v53 = vrot.slane %v5576_v7, 9  ;;  %v3947_v22 = vsel %vm6628_vm4, %v3942_v30, %v3946_v47  ;;  %v6509_v52 = vld [vmem:[%s6604_s28 + $0x1c] sm:$0xf] }
 0x11a   : > { %v8030_v32 = vsel %vm6849_vm7, %v4428_v26, %v4429_v25  ;;  %v3992_v16 = vshll.u32 %v8016_v58, 16  ;;  %v4433_v3 = vrot.slane %v8537_v43, 5  ;;  %v3961_v40 = vsel %vm6628_vm4, %v3956_v28, %v7973_v11  ;;  %v6463_v28 = vld [vmem:[%s6604_s28 + $0x48] sm:$0xff]  }
 0x11b   : > { %v5608_v17 = vcombine.low %v8022_v5, %v8030_v32  ;;  %v3989_v0 = vor.u32 %v3988_v4, %v8018_v54  ;;  %v4436_v47 = vrot.slane %v7738_v14, 5  ;;  %v3971_v48 = vsel %vm6628_vm4, %v3966_v49, %v3970_v57  ;;  %v6464_v4 = vld [vmem:[%s6604_s28 + $0x54] sm:$0xff]  }
 0x11c   : > { %v8053_v9 = vsel %vm6849_vm7, %v5592_v53, %v4433_v3  ;;  %v4435_v11 = vrot.slane %v4433_v3, 4  ;;  %v5546_v31 = vcombine.low %v3937_v56, %v3947_v22  ;;  %v3994_v25 = vrot.slane %v3992_v16, 5  ;;  %v5566_v22 = vld [vmem:[%s6604_s28 + $0x24] sm:$0xe]  ;;  %v6511_v3 = vld [vmem:[%s6604_s28 + $0x28] sm:$0xf] }
 0x11d   : > { %6113 = vmatmul.mubr.msk.bf16.gmra.mrb[20].mxu0 %vm685_vm3, %v5544_v10  ;;  %v3979_v10 = vor.u32 %v3978_v1, %v3975_v6  ;;  %v5581_v30 = vrot.slane %v5565_v50, 9  ;;  %v5547_v6 = vcombine.low %v3961_v40, %v3971_v48  ;;  %v3990_v7 = vrot.slane %v3989_v0, 4  ;;  %v6512_v48 = vld [vmem:[%s6604_s28 + $0x34] sm:$0xf] }
 0x11e   : > { %5961 = vmatmul.mubr.msk.bf16.gmra.mrb[4].mxu1 %vm685_vm3, %v6461_v23  ;;  %6116 = vmatprep.mubr.msk.bf16.mxu0 %vm685_vm3, %v5545_v51  ;;  %v4356_v51 = vrot.slane %v6509_v52, 5  ;;  %v8058_v14 = vsel %vm6849_vm7, %v4435_v11, %v4436_v47  ;;  %v5593_v57 = vrot.slane %v5577_v37, 9  ;;  %v4440_v56 = vrot.slane %v7743_v20, 5  ;;  %v5567_v47 = vld [vmem:[%s6604_s28 + $0x30] sm:$0xe] }
 0x11f   : > { %5964 = vmatprep.mubr.msk.bf16.mxu1 %vm685_vm3, %v6462_v19  ;;  %v3980_v1 = vrot.slane %v3979_v10, 4  ;;  %v5609_v23 = vcombine.low %v8053_v9, %v8058_v14  ;;  %v6510_v19 = vld [vmem:[%s6604_s28 + $0x20] sm:$0x1]  ;;  %v4443_v53 = vrot.slane %v7752_v60, 5  ;;  %v3995_v60 = vsel %vm6628_vm4, %v3990_v7, %v3994_v25  ;;  %v5578_v10 = vld [vmem:[%s6604_s28 + $0xb4] sm:$0xe] }
 0x120   : > { %v4358_v26 = vrot.slane %v4356_v51, 4  ;;  %v4359_v49 = vrot.slane %v6510_v19, 5  ;;  %v8071_v16 = vsel %vm6849_vm7, %v5593_v57, %v4440_v56  ;;  %v4442_v43 = vrot.slane %v4440_v56, 4  ;;  %v6513_v25 = vld [vmem:[%s6604_s28 + $0x2c] sm:$0x1]  ;;  %v8538_v57 = vld [vmem:[#allocation6_spill] sm:$0xff] }
 0x121   : > { %v3985_v20 = vsel %vm6628_vm4, %v3980_v1, %v8018_v54  ;;  %v4363_v40 = vrot.slane %v6511_v3, 5  ;;  %v4357_v0 = vsel %vm6849_vm7, %v5581_v30, %v4356_v51  ;;  %v4370_v52 = vrot.slane %v6512_v48, 5  ;;  %v6466_v19 = vld [vmem:[%s6604_s28 + $0x6c] sm:$0xff]   ;;  %v6527_v9 = vld [vmem:[%s6604_s28 + $0xc8] sm:$0x1] }
 0x122   : > { %v4360_v50 = vsel %vm6849_vm7, %v4358_v26, %v4359_v49  ;;  %v8091_v54 = vsel %vm6849_vm7, %v4442_v43, %v4443_v53  ;;  %v5582_v11 = vrot.slane %v5566_v22, 9  ;;  %v5594_v51 = vrot.slane %v5578_v10, 9  ;;  %v5579_v43 = vld [vmem:[%s6604_s28 + $0xc0] sm:$0xe]  ;;  %v5568_v10 = vld [vmem:[%s6604_s28 + $0x3c] sm:$0xe] }
 0x123   : > { %v5610_v37 = vcombine.low %v8071_v16, %v8091_v54  ;;  %v4447_v30 = vrot.slane %v7821_v55, 5  ;;  %v5598_v1 = vcombine.low %v4357_v0, %v4360_v50  ;;  %v4365_v7 = vrot.slane %v4363_v40, 4  ;;  %v8539_v55 = vld [vmem:[#allocation7_spill] sm:$0xff] }
 0x124   : > { %v4450_v26 = vrot.slane %v7884_v2, 5  ;;  %v4372_v49 = vrot.slane %v4370_v52, 4  ;;  %v4373_v56 = vrot.slane %v8538_v57, 5  ;;  %v4364_v2 = vsel %vm6849_vm7, %v5582_v11, %v4363_v40 }
 0x125   : > { %6117 = vmatmul.mubr.msk.bf16.gmra.mrb[24].mxu0 %vm685_vm3, %v5546_v31  ;;  %v5548_v31 = vcombine.low %v3985_v20, %v3995_v60  ;;  %v8103_v53 = vsel %vm6849_vm7, %v5594_v51, %v4447_v30  ;;  %v4449_v22 = vrot.slane %v4447_v30, 4  ;;  %v4377_v20 = vrot.slane %v8539_v55, 5  ;;  %v8540_v30 = vld [vmem:[#allocation8_spill] sm:$0xff] }
 0x126   : > { %5965 = vmatmul.mubr.msk.bf16.gmra.mrb[8].mxu1 %vm685_vm3, %v6463_v28  ;;  %6120 = vmatprep.mubr.msk.bf16.mxu0 %vm685_vm3, %v5547_v6  ;;  %v4366_v28 = vrot.slane %v6513_v25, 5  ;;  %v6465_v6 = vld [vmem:[%s6604_s28 + $0x60] sm:$0xff]   ;;  %v5595_v48 = vrot.slane %v5579_v43, 9  ;;  %v4454_v40 = vrot.slane %v7902_v39, 5  ;;  %v4457_v11 = vrot.slane %v7987_v29, 5 }
 0x127   : > { %5968 = vmatprep.mubr.msk.bf16.mxu1 %vm685_vm3, %v6464_v4  ;;  %v5583_v4 = vrot.slane %v5567_v47, 9  ;;  %v8110_v60 = vsel %vm6849_vm7, %v4449_v22, %v4450_v26  ;;  %v4374_v47 = vsel %vm6849_vm7, %v4372_v49, %v4373_v56  ;;  %v4379_v51 = vrot.slane %v4377_v20, 4  ;;  %v6514_v55 = vld [vmem:[%s6604_s28 + $0x70] sm:$0xf] }
 0x128   : > { %v4367_v3 = vsel %vm6849_vm7, %v4365_v7, %v4366_v28  ;;  %v5611_v0 = vcombine.low %v8103_v53, %v8110_v60  ;;  %v5584_v28 = vrot.slane %v5568_v10, 9  ;;  %v6467_v7 = vld [vmem:[%s6604_s28 + $0x78] sm:$0xff]   ;;  %v4461_v10 = vrot.slane %v7968_v46, 5 }
 0x129   : > { %v4371_v50 = vsel %vm6849_vm7, %v5583_v4, %v4370_v52  ;;  %v5599_v25 = vcombine.low %v4364_v2, %v4367_v3  ;;  %v8134_v52 = vsel %vm6849_vm7, %v5595_v48, %v4454_v40  ;;  %v4456_v4 = vrot.slane %v4454_v40, 4 }
 0x12a   : > { %v5600_v26 = vcombine.low %v4371_v50, %v4374_v47  ;;  %v4378_v56 = vsel %vm6849_vm7, %v5584_v28, %v4377_v20  ;;  %v2259_v2 = vshll.u32 %v6514_v55, 16  ;;  %v2263_v3 = vshrl.u32 %v6514_v55, 16 }
 0x12b   : > { %v8139_v39 = vsel %vm6849_vm7, %v4456_v4, %v4457_v11  ;;  %v4464_v20 = vrot.slane %v8016_v58, 5  ;;  %v6469_v11 = vld [vmem:[%s6604_s28 + $0x90] sm:$0xff]   ;;  %v6470_v58 = vld [vmem:[%s6604_s28 + $0x9c] sm:$0xff]   ;;  %v2437_v14 = vshll.u32 %v6527_v9, 16 }
 0x12c   : > { %v5612_v43 = vcombine.low %v8134_v52, %v8139_v39  ;;  %v2265_v28 = vrot.slane %v2263_v3, 4  ;;  %v6472_v3 = vld [vmem:[%s6604_s28 + $0xb4] sm:$0xff]  }
 0x12d   : > { %6121 = vmatmul.mubr.msk.bf16.gmra.mrb[28].mxu0 %vm685_vm3, %v5548_v31  ;;  %v5297_v31 = vld [vmem:[%s6604_s28 + $0x6c] sm:$0xf] }
 0x12e   : > { %5969 = vmatmul.mubr.msk.bf16.gmra.mrb[12].mxu1 %vm685_vm3, %v6465_v6  ;;  %6126 = vmatprep.mubr.msk.bf16.mxu0 %vm685_vm3, %v5598_v1  ;;  %v4380_v6 = vrot.slane %v8540_v30, 5  ;;  %v5580_v1 = vld [vmem:[%s6604_s28 + $0xcc] sm:$0xe]  ;;  %v2250_v49 = vshrl.u32 %v5297_v31, 16  ;;  %v2253_v57 = vshll.u32 %v5297_v31, 16  ;;  %v4463_v31 = vrot.slane %v4461_v10, 4 }
 0x12f   : > { %5972 = vmatprep.mubr.msk.bf16.mxu1 %vm685_vm3, %v6466_v19  ;;  %v6468_v19 = vld [vmem:[%s6604_s28 + $0x84] sm:$0xff]   ;;  %v5596_v29 = vrot.slane %v5580_v1, 9  ;;  %v6515_v1 = vld [vmem:[%s6604_s28 + $0x74] sm:$0x1] }
 0x130   : > { %v4381_v22 = vsel %vm6849_vm7, %v4379_v51, %v4380_v6  ;;  %v2252_v50 = vrot.slane %v2250_v49, 4  ;;  %v2255_v47 = vrot.slane %v2253_v57, 5  ;;  %v8161_v46 = vsel %vm6849_vm7, %v4463_v31, %v4464_v20  ;;  %v5303_v51 = vld [vmem:[%s6604_s28 + $0x84] sm:$0xf] }
 0x131   : > { %v8156_v48 = vsel %vm6849_vm7, %v5596_v29, %v4461_v10  ;;  %v5601_v40 = vcombine.low %v4378_v56, %v4381_v22  ;;  %v2301_v4 = vshll.u32 %v5303_v51, 16  ;;  %v5306_v56 = vld [vmem:[%s6604_s28 + $0x90] sm:$0xf]  ;;  %v6471_v22 = vld [vmem:[%s6604_s28 + $0xa8] sm:$0xff]  }
 0x132   : > { %v5613_v30 = vcombine.low %v8156_v48, %v8161_v46  ;;  %v2256_v6 = vor.u32 %v2255_v47, %v2252_v50  ;;  %v2322_v50 = vshrl.u32 %v5306_v56, 16  ;;  %v2325_v47 = vshll.u32 %v5306_v56, 16 }
 0x134   : > { %v2257_v29 = vrot.slane %v2256_v6, 4  ;;  %v6518_v6 = vld [vmem:[%s6604_s28 + $0x8c] sm:$0x1]  ;;  %v2327_v59 = vrot.slane %v2325_v47, 5  ;;  %v6521_v47 = vld [vmem:[%s6604_s28 + $0xa4] sm:$0x1] }
 0x135   : > { %6127 = vmatmul.mubr.msk.bf16.vlgmr.msra.gmra.mrb[0].mxu0 %vm685_vm3, %v5599_v25  ;;  %v2261_v25 = vrot.slane %v2259_v2, 5  ;;  %v5309_v2 = vld [vmem:[%s6604_s28 + $0x9c] sm:$0xf]  ;;  %v2317_v18 = vshll.u32 %v6518_v6, 16 }
 0x136   : > { %5973 = vmatmul.mubr.msk.bf16.gmra.mrb[16].mxu1 %vm685_vm3, %v6467_v7  ;;  %6130 = vmatprep.mubr.msk.bf16.mxu0 %vm685_vm3, %v5600_v26  ;;  %v2269_v7 = vshll.u32 %v6515_v1, 16  ;;  %v2298_v26 = vshrl.u32 %v5303_v51, 16  ;;  %v2349_v51 = vshll.u32 %v5309_v2, 16 }
 0x137   : > { %5976 = vmatprep.mubr.msk.bf16.mxu1 %vm685_vm3, %v6468_v19  ;;  %v2266_v44 = vor.u32 %v2265_v28, %v2261_v25  ;;  %v6516_v19 = vld [vmem:[%s6604_s28 + $0x88] sm:$0xf]  ;;  %v2262_v31 = vsel %vm6628_vm4, %v2257_v29, %v2261_v25  ;;  %v2319_v29 = vrot.slane %v2317_v18, 5 }
 0x138   : > { %v2307_v49 = vshll.u32 %v6516_v19, 16  ;;  %v2311_v57 = vshrl.u32 %v6516_v19, 16  ;;  %v2271_v24 = vrot.slane %v2269_v7, 5  ;;  %v2300_v33 = vrot.slane %v2298_v26, 4 }
 0x139   : > { %v2267_v55 = vrot.slane %v2266_v44, 4  ;;  %v2359_v44 = vshrl.u32 %v6519_v63, 16  ;;  %v2324_v26 = vrot.slane %v2322_v50, 4  ;;  %v2351_v19 = vrot.slane %v2349_v51, 5 }
 0x13a   : > { %v8180_v10 = vrot.slane %v2307_v49, 5  ;;  %v2313_v20 = vrot.slane %v2311_v57, 4  ;;  %v6473_v49 = vld [vmem:[%s6604_s28 + $0xc0] sm:$0xff]  }
 0x13b   : > { %v2272_v25 = vsel %vm6628_vm4, %v2267_v55, %v2271_v24  ;;  %v5312_v55 = vld [vmem:[%s6604_s28 + $0xa8] sm:$0xf] }
 0x13c   : > { %v2314_v7 = vor.u32 %v2313_v20, %v8180_v10  ;;  %v5330_v57 = vcombine.low %v2262_v31, %v2272_v25  ;;  %v2365_v31 = vshll.u32 %v6521_v47, 16  ;;  %v2373_v38 = vshll.u32 %v5312_v55, 16 }
 0x13d   : > { %6131 = vmatmul.mubr.msk.bf16.gmra.mrb[4].mxu0 %vm685_vm3, %v5601_v40  ;;  %v6517_v40 = vld [vmem:[%s6604_s28 + $0x94] sm:$0xf] }
 0x13e   : > { %5977 = vmatmul.mubr.msk.bf16.gmra.mrb[20].mxu1 %vm685_vm3, %v6469_v11  ;;  %6134 = vmatprep.mubr.msk.bf16.mxu0 %vm685_vm3, %v5602_v13  ;;  %v2303_v13 = vrot.slane %v2301_v4, 5  ;;  %v2331_v11 = vshll.u32 %v6517_v40, 16  ;;  %v2335_v28 = vshrl.u32 %v6517_v40, 16  ;;  %v2370_v40 = vshrl.u32 %v5312_v55, 16  ;;  %v5318_v55 = vld [vmem:[%s6604_s28 + $0xc0] sm:$0xf] }
 0x13f   : > { %5980 = vmatprep.mubr.msk.bf16.mxu1 %vm685_vm3, %v6470_v58  ;;  %v2346_v58 = vshrl.u32 %v5309_v2, 16  ;;  %v6520_v2 = vld [vmem:[%s6604_s28 + $0x98] sm:$0x1] }
 0x140   : > { %v2304_v1 = vor.u32 %v2303_v13, %v2300_v33  ;;  %v8200_v35 = vrot.slane %v2331_v11, 5  ;;  %v2315_v33 = vrot.slane %v2314_v7, 4  ;;  %v2328_v13 = vor.u32 %v2327_v59, %v2324_v26  ;;  %v5315_v11 = vld [vmem:[%s6604_s28 + $0xb4] sm:$0xf] }
 0x141   : > { %v2348_v4 = vrot.slane %v2346_v58, 4  ;;  %v2383_v58 = vshrl.u32 %v6522_v8, 16  ;;  %v2394_v34 = vshrl.u32 %v5315_v11, 16  ;;  %v2397_v12 = vshll.u32 %v5315_v11, 16 }
 0x142   : > { %v2305_v24 = vrot.slane %v2304_v1, 4  ;;  %v2320_v25 = vsel %vm6628_vm4, %v2315_v33, %v2319_v29  ;;  %v2329_v6 = vrot.slane %v2328_v13, 4  ;;  %v2367_v7 = vrot.slane %v2365_v31, 5 }
 0x143   : > { %v2352_v50 = vor.u32 %v2351_v19, %v2348_v4  ;;  %v2372_v26 = vrot.slane %v2370_v40, 4  ;;  %v2385_v19 = vrot.slane %v2383_v58, 4  ;;  %v6526_v40 = vld [vmem:[%s6604_s28 + $0xbc] sm:$0x1] }
 0x144   : > { %v2310_v51 = vsel %vm6628_vm4, %v2305_v24, %v8180_v10  ;;  %v2334_v24 = vsel %vm6628_vm4, %v2329_v6, %v8200_v35  ;;  %v2413_v5 = vshll.u32 %v6526_v40, 16 }
 0x145   : > { %6135 = vmatmul.mubr.msk.bf16.gmra.mrb[8].mxu0 %vm685_vm3, %v5603_v15  ;;  %v2355_v15 = vshll.u32 %v6519_v63, 16  ;;  %v2353_v1 = vrot.slane %v2352_v50, 4  ;;  %v5332_v10 = vcombine.low %v2310_v51, %v2320_v25 }
 0x146   : > { %5981 = vmatmul.mubr.msk.bf16.gmra.mrb[24].mxu1 %vm685_vm3, %v6471_v22  ;;  %6138 = vmatprep.mubr.msk.bf16.mxu0 %vm685_vm3, %v5604_v27  ;;  %v2337_v27 = vrot.slane %v2335_v28, 4  ;;  %v2361_v22 = vrot.slane %v2359_v44, 4 }
 0x147   : > { %5984 = vmatprep.mubr.msk.bf16.mxu1 %vm685_vm3, %v6472_v3  ;;  %v8203_v56 = vrot.slane %v2355_v15, 5  ;;  %v2341_v3 = vshll.u32 %v6520_v2, 16 }
 0x148   : > { %v2338_v20 = vor.u32 %v2337_v27, %v8200_v35  ;;  %v2375_v27 = vrot.slane %v2373_v38, 5  ;;  %v6524_v35 = vld [vmem:[%s6604_s28 + $0xb0] sm:$0x1] }
 0x149   : > { %v2362_v28 = vor.u32 %v2361_v22, %v8203_v56  ;;  %v2343_v18 = vrot.slane %v2341_v3, 5  ;;  %v2358_v13 = vsel %vm6628_vm4, %v2353_v1, %v8203_v56  ;;  %v2389_v2 = vshll.u32 %v6524_v35, 16 }
 0x14a   : > { %v2339_v44 = vrot.slane %v2338_v20, 4  ;;  %v2376_v61 = vor.u32 %v2375_v27, %v2372_v26  ;;  %v2418_v3 = vshrl.u32 %v5318_v55, 16  ;;  %v2421_v56 = vshll.u32 %v5318_v55, 16  ;;  %v6525_v20 = vld [vmem:[%s6604_s28 + $0xc4] sm:$0xf] }
 0x14b   : > { %v2363_v59 = vrot.slane %v2362_v28, 4  ;;  %v2427_v50 = vshll.u32 %v6525_v20, 16  ;;  %v2431_v47 = vshrl.u32 %v6525_v20, 16  ;;  %v2391_v38 = vrot.slane %v2389_v2, 5 }
 0x14c   : > { %v2344_v33 = vsel %vm6628_vm4, %v2339_v44, %v2343_v18  ;;  %v2377_v11 = vrot.slane %v2376_v61, 4  ;;  %v2415_v18 = vrot.slane %v2413_v5, 5  ;;  %v2439_v1 = vrot.slane %v2437_v14, 5 }
 0x14d   : > { %6139 = vmatmul.mubr.msk.bf16.gmra.mrb[12].mxu0 %vm685_vm3, %v5605_v62  ;;  %v2379_v62 = vshll.u32 %v6522_v8, 16  ;;  %v2368_v21 = vsel %vm6628_vm4, %v2363_v59, %v2367_v7  ;;  %v5333_v32 = vcombine.low %v2334_v24, %v2344_v33  ;;  %v2420_v8 = vrot.slane %v2418_v3, 4  ;;  %v8313_v33 = vld [vmem:[%s8462_s3] ss:$0 sm:$0xff] }
 0x14e   : > { %5985 = vmatmul.mubr.msk.bf16.gmra.mrb[28].mxu1 %vm685_vm3, %v6473_v49  ;;  %6142 = vmatprep.mubr.msk.bf16.mxu0 %vm685_vm3, %v5606_v45  ;;  %v6523_v45 = vld [vmem:[%s6604_s28 + $0xb8] sm:$0xf]  ;;  %v2396_v49 = vrot.slane %v2394_v34, 4  ;;  %v2429_v58 = vrot.slane %v2427_v50, 5  ;;  %v2433_v51 = vrot.slane %v2431_v47, 4 }
 0x14f   : > { %6006 = vmatprep.mubr.msk.bf16.mxu1 %vm685_vm3, %v5330_v57  ;;  %v2403_v63 = vshll.u32 %v6523_v45, 16  ;;  %v2407_v15 = vshrl.u32 %v6523_v45, 16  ;;  %v2381_v4 = vrot.slane %v2379_v62, 5  ;;  %v2399_v57 = vrot.slane %v2397_v12, 5 }
 0x150   : > { %v2423_v62 = vrot.slane %v2421_v56, 5 }
 0x151   : > { %v2405_v29 = vrot.slane %v2403_v63, 5  ;;  %v2409_v22 = vrot.slane %v2407_v15, 4  ;;  %v2382_v34 = vsel %vm6628_vm4, %v2377_v11, %v2381_v4  ;;  %v2434_v63 = vor.u32 %v2433_v51, %v2429_v58 }
 0x152   : > { %v2424_v45 = vor.u32 %v2423_v62, %v2420_v8 }
 0x153   : > { %v2410_v31 = vor.u32 %v2409_v22, %v2405_v29  ;;  %v2435_v44 = vrot.slane %v2434_v63, 4  ;;  %v8308_v22 = vld [vmem:[%s8461_s2] ss:$0 sm:$0xff] }
 0x154   : > { %v2425_v15 = vrot.slane %v2424_v45, 4 }
 0x155   : > { %6143 = vmatmul.mubr.msk.bf16.gmra.mrb[16].mxu0 %vm685_vm3, %v5607_v42  ;;  %v2386_v42 = vor.u32 %v2385_v19, %v2381_v4  ;;  %v2411_v6 = vrot.slane %v2410_v31, 4  ;;  %v2440_v26 = vsel %vm6628_vm4, %v2435_v44, %v2439_v1 }
 0x156   : > { %6007 = vmatmul.mubr.msk.bf16.vlgmr.msra.gmra.mrb[16].mxu1 %vm685_vm3, %v8009_v41  ;;  %6146 = vmatprep.mubr.msk.bf16.mxu0 %vm685_vm3, %v5608_v17  ;;  %v2400_v41 = vor.u32 %v2399_v57, %v2396_v49  ;;  %v5334_v17 = vcombine.low %v2358_v13, %v2368_v21  ;;  %v2430_v7 = vsel %vm6628_vm4, %v2425_v15, %v2429_v58 }
 0x157   : > { %6010 = vmatprep.mubr.msk.bf16.mxu1 %vm685_vm3, %v5332_v10  ;;  %v2387_v28 = vrot.slane %v2386_v42, 4  ;;  %v2416_v16 = vsel %vm6628_vm4, %v2411_v6, %v2415_v18  ;;  %v5337_v59 = vcombine.low %v2430_v7, %v2440_v26 }
 0x158   : > { %v2401_v25 = vrot.slane %v2400_v41, 4 }
 0x159   : > { %v2392_v12 = vsel %vm6628_vm4, %v2387_v28, %v2391_v38 }
 0x15a   : > { %v5335_v54 = vcombine.low %v2382_v34, %v2392_v12 }
 0x15d   : > { %6147 = vmatmul.mubr.msk.bf16.gmra.mrb[20].mxu0 %vm685_vm3, %v5609_v23  ;;  %v2406_v23 = vsel %vm6628_vm4, %v2401_v25, %v2405_v29 }
 0x15e   : > { %6011 = vmatmul.mubr.msk.bf16.gmra.mrb[20].mxu1 %vm685_vm3, %v5333_v32  ;;  %6150 = vmatprep.mubr.msk.bf16.mxu0 %vm685_vm3, %v5610_v37  ;;  %v5336_v37 = vcombine.low %v2406_v23, %v2416_v16 }
 0x15f   : > { %6014 = vmatprep.mubr.msk.bf16.mxu1 %vm685_vm3, %v5334_v17 }
 0x165   : > { %6151 = vmatmul.mubr.msk.bf16.gmra.mrb[24].mxu0 %vm685_vm3, %v5611_v0 }
 0x166   : > { %6015 = vmatmul.mubr.msk.bf16.gmra.mrb[24].mxu1 %vm685_vm3, %v5335_v54  ;;  %6154 = vmatprep.mubr.msk.bf16.mxu0 %vm685_vm3, %v5612_v43 }
 0x167   : > { %6018 = vmatprep.mubr.msk.bf16.mxu1 %vm685_vm3, %v5336_v37 }
 0x16d   : > { %6155 = vmatmul.mubr.msk.bf16.gmra.mrb[28].mxu0 %vm685_vm3, %v5613_v30 }
 0x16e   : > { %6019 = vmatmul.mubr.msk.bf16.gmra.mrb[28].mxu1 %vm685_vm3, %v5337_v59 }
 0x1e9   : > { %v5958_v53 = vpop.f32.mrb[0].mxu1 }
 0x1ea   : > { %v1850_v60 = vpop.f32.mrb[1].mxu1 }
 0x1eb   : > { %v5959_v0 = vpop.f32.mrb[2].mxu1 }
 0x1ec   : > { %v1853_v52 = vpop.f32.mrb[3].mxu1 }
 0x1f1   : > { %v5962_v39 = vpop.f32.mrb[4].mxu1 }
 0x1f2   : > { %v1866_v43 = vpop.f32.mrb[5].mxu1 }
 0x1f3   : > { %v5963_v27 = vpop.f32.mrb[6].mxu1 }
 0x1f4   : > { %v1869_v4 = vpop.f32.mrb[7].mxu1 }
 0x1f9   : > { %v5966_v19 = vpop.f32.mrb[8].mxu1 }
 0x1fa   : > { %v8291_v10 = vpop.f32.mrb[9].mxu1 }
 0x1fb   : > { %v8293_v36 = vpop.f32.mrb[10].mxu1 }
 0x1fc   : > { %v8295_v49 = vpop.f32.mrb[11].mxu1 }
 0x201   : > { %v8297_v48 = vpop.f32.mrb[12].mxu1 }
 0x202   : > { %v8299_v46 = vpop.f32.mrb[13].mxu1 }
 0x203   : > { %v8301_v30 = vpop.f32.mrb[14].mxu1 }
 0x204   : > { %v8303_v57 = vpop.f32.mrb[15].mxu1 }
 0x208   : > { %v6128_v29 = vpop.f32.mrb[0].mxu0 }
 0x209   : > { %v6160_v55 = vadd.f32 %v6128_v29, %v5958_v53  ;;  %v4601_v24 = vpop.f32.mrb[1].mxu0 }
 0x20a   : > { %v6161_v13 = vadd.f32 %v4601_v24, %v1850_v60  ;;  %v6129_v21 = vpop.f32.mrb[2].mxu0 }
 0x20b   : > { %v4769_v61 = vmul.f32 %v6160_v55, %v8308_v22  ;;  %v6162_v42 = vadd.f32 %v6129_v21, %v5959_v0  ;;  %v4604_v35 = vpop.f32.mrb[3].mxu0 }
 0x20c   : > { %v4767_v2 = vmul.f32 %v6161_v13, %v8308_v22  ;;  %v6163_v3 = vadd.f32 %v4604_v35, %v1853_v52 }
 0x20d   : > { %v4808_v56 = vadd.f32 %v8313_v33, %v4769_v61  ;;  %v4770_v20 = vmul.f32 %v6162_v42, %v8308_v22 }
 0x20e   : > { %v4806_v50 = vadd.f32 %v8313_v33, %v4767_v2  ;;  %v4768_v47 = vmul.f32 %v6163_v3, %v8308_v22 }
 0x20f   : > { %v4840_v41 = vmax.f32 %v4808_v56, 0.0  ;;  %v4809_v31 = vadd.f32 %v8313_v33, %v4770_v20 }
 0x210   : > { %v4838_v40 = vmax.f32 %v4806_v50, 0.0  ;;  %v4807_v5 = vadd.f32 %v8313_v33, %v4768_v47  ;;  %v6132_v32 = vpop.f32.mrb[4].mxu0 }
 0x211   : > { %v5669_v17 = vpack.c.bf16 %v4840_v41, %v4840_v41  ;;  %v4841_v11 = vmax.f32 %v4809_v31, 0.0  ;;  %v6164_v28 = vadd.f32 %v6132_v32, %v5962_v39  ;;  %v4617_v38 = vpop.f32.mrb[5].mxu0 }
 0x212   : > { %v5667_v8 = vpack.c.bf16 %v4838_v40, %v4838_v40  ;;  %v4839_v62 = vmax.f32 %v4807_v5, 0.0  ;;  %v6165_v58 = vadd.f32 %v4617_v38, %v1866_v43  ;;  %v6133_v51 = vpop.f32.mrb[6].mxu0 }
 0x213   : > { %5001 = vst.msk [vmem:[%s8326_s22 + $0x8] sm:$0xf] %vm4998_vm8, %v5669_v17  ;;  %v5670_v25 = vpack.c.bf16 %v4841_v11, %v4841_v11  ;;  %v4773_v6 = vmul.f32 %v6164_v28, %v8308_v22  ;;  %v6166_v18 = vadd.f32 %v6133_v51, %v5963_v27  ;;  %v4620_v34 = vpop.f32.mrb[7].mxu0 }
 0x214   : > { %4999 = vst.msk [vmem:[%s8326_s22] sm:$0xf] %vm4998_vm8, %v5667_v8  ;;  %v5668_v12 = vpack.c.bf16 %v4839_v62, %v4839_v62  ;;  %v4771_v45 = vmul.f32 %v6165_v58, %v8308_v22  ;;  %v6167_v63 = vadd.f32 %v4620_v34, %v1869_v4 }
 0x215   : > { %5002 = vst.msk [vmem:[%s8326_s22 + $0xc] sm:$0xf] %vm4998_vm8, %v5670_v25  ;;  %v4812_v9 = vadd.f32 %v8313_v33, %v4773_v6  ;;  %v4774_v14 = vmul.f32 %v6166_v18, %v8308_v22 }
 0x216   : > { %5000 = vst.msk [vmem:[%s8326_s22 + $0x4] sm:$0xf] %vm4998_vm8, %v5668_v12  ;;  %v4810_v23 = vadd.f32 %v8313_v33, %v4771_v45  ;;  %v4772_v16 = vmul.f32 %v6167_v63, %v8308_v22 }
 0x217   : > { %v4844_v54 = vmax.f32 %v4812_v9, 0.0  ;;  %v4813_v37 = vadd.f32 %v8313_v33, %v4774_v14 }
 0x218   : > { %v4842_v15 = vmax.f32 %v4810_v23, 0.0  ;;  %v4811_v44 = vadd.f32 %v8313_v33, %v4772_v16  ;;  %v6136_v1 = vpop.f32.mrb[8].mxu0 }
 0x219   : > { %v5673_v7 = vpack.c.bf16 %v4844_v54, %v4844_v54  ;;  %v4845_v26 = vmax.f32 %v4813_v37, 0.0  ;;  %v6168_v59 = vadd.f32 %v6136_v1, %v5966_v19  ;;  %v4633_v53 = vpop.f32.mrb[9].mxu0 }
 0x21a   : > { %v5671_v60 = vpack.c.bf16 %v4842_v15, %v4842_v15  ;;  %v4843_v0 = vmax.f32 %v4811_v44, 0.0  ;;  %v6169_v52 = vadd.f32 %v4633_v53, %v8291_v10  ;;  %v6137_v39 = vpop.f32.mrb[10].mxu0 }
 0x21b   : > { %5005 = vst.msk [vmem:[%s8326_s22 + $0x18] sm:$0xf] %vm4998_vm8, %v5673_v7  ;;  %v5674_v43 = vpack.c.bf16 %v4845_v26, %v4845_v26  ;;  %v4777_v27 = vmul.f32 %v6168_v59, %v8308_v22  ;;  %v6170_v4 = vadd.f32 %v6137_v39, %v8293_v36  ;;  %v4636_v29 = vpop.f32.mrb[11].mxu0 }
 0x21c   : > { %5003 = vst.msk [vmem:[%s8326_s22 + $0x10] sm:$0xf] %vm4998_vm8, %v5671_v60  ;;  %v5672_v55 = vpack.c.bf16 %v4843_v0, %v4843_v0  ;;  %v4775_v19 = vmul.f32 %v6169_v52, %v8308_v22  ;;  %v6171_v24 = vadd.f32 %v4636_v29, %v8295_v49 }
 0x21d   : > { %5006 = vst.msk [vmem:[%s8326_s22 + $0x1c] sm:$0xf] %vm4998_vm8, %v5674_v43  ;;  %v4816_v10 = vadd.f32 %v8313_v33, %v4777_v27  ;;  %v4778_v13 = vmul.f32 %v6170_v4, %v8308_v22 }
 0x21e   : > { %5004 = vst.msk [vmem:[%s8326_s22 + $0x14] sm:$0xf] %vm4998_vm8, %v5672_v55  ;;  %v4814_v21 = vadd.f32 %v8313_v33, %v4775_v19  ;;  %v4776_v36 = vmul.f32 %v6171_v24, %v8308_v22 }
 0x21f   : > { %v4848_v61 = vmax.f32 %v4816_v10, 0.0  ;;  %v4817_v42 = vadd.f32 %v8313_v33, %v4778_v13 }
 0x220   : > { %v4846_v35 = vmax.f32 %v4814_v21, 0.0  ;;  %v4815_v49 = vadd.f32 %v8313_v33, %v4776_v36  ;;  %v6140_v2 = vpop.f32.mrb[12].mxu0 }
 0x221   : > { %v5677_v3 = vpack.c.bf16 %v4848_v61, %v4848_v61  ;;  %v4849_v56 = vmax.f32 %v4817_v42, 0.0  ;;  %v6172_v20 = vadd.f32 %v6140_v2, %v8297_v48  ;;  %v4649_v50 = vpop.f32.mrb[13].mxu0 }
 0x222   : > { %v5675_v47 = vpack.c.bf16 %v4846_v35, %v4846_v35  ;;  %v4847_v41 = vmax.f32 %v4815_v49, 0.0  ;;  %v6173_v31 = vadd.f32 %v4649_v50, %v8299_v46  ;;  %v6141_v40 = vpop.f32.mrb[14].mxu0 }
 0x223   : > { %5009 = vst.msk [vmem:[%s8326_s22 + $0x28] sm:$0xf] %vm4998_vm8, %v5677_v3  ;;  %v5678_v5 = vpack.c.bf16 %v4849_v56, %v4849_v56  ;;  %v4781_v32 = vmul.f32 %v6172_v20, %v8308_v22  ;;  %v6174_v17 = vadd.f32 %v6141_v40, %v8301_v30  ;;  %v4652_v11 = vpop.f32.mrb[15].mxu0 }
 0x224   : > { %5007 = vst.msk [vmem:[%s8326_s22 + $0x20] sm:$0xf] %vm4998_vm8, %v5675_v47  ;;  %v5676_v28 = vpack.c.bf16 %v4847_v41, %v4847_v41  ;;  %v4779_v48 = vmul.f32 %v6173_v31, %v8308_v22  ;;  %v6175_v38 = vadd.f32 %v4652_v11, %v8303_v57 }
 0x225   : > { %5010 = vst.msk [vmem:[%s8326_s22 + $0x2c] sm:$0xf] %vm4998_vm8, %v5678_v5  ;;  %v4820_v46 = vadd.f32 %v8313_v33, %v4781_v32  ;;  %v4782_v8 = vmul.f32 %v6174_v17, %v8308_v22 }
 0x226   : > { %5008 = vst.msk [vmem:[%s8326_s22 + $0x24] sm:$0xf] %vm4998_vm8, %v5676_v28  ;;  %v4818_v62 = vadd.f32 %v8313_v33, %v4779_v48  ;;  %v4780_v30 = vmul.f32 %v6175_v38, %v8308_v22 }
 0x227   : > { %v4852_v58 = vmax.f32 %v4820_v46, 0.0  ;;  %v4821_v51 = vadd.f32 %v8313_v33, %v4782_v8 }
 0x228   : > { %v4850_v25 = vmax.f32 %v4818_v62, 0.0  ;;  %v4819_v6 = vadd.f32 %v8313_v33, %v4780_v30  ;;  %v6144_v57 = vpop.f32.mrb[16].mxu0 }
 0x229   : > { %v5681_v18 = vpack.c.bf16 %v4852_v58, %v4852_v58  ;;  %v4853_v34 = vmax.f32 %v4821_v51, 0.0  ;;  %v6008_v12 = vpop.f32.mrb[16].mxu1  ;;  %v4665_v45 = vpop.f32.mrb[17].mxu0 }
 0x22a   : > { %v5679_v63 = vpack.c.bf16 %v4850_v25, %v4850_v25  ;;  %v4851_v9 = vmax.f32 %v4819_v6, 0.0  ;;  %v6176_v14 = vadd.f32 %v6144_v57, %v6008_v12  ;;  %v2640_v23 = vpop.f32.mrb[17].mxu1  ;;  %v6145_v16 = vpop.f32.mrb[18].mxu0 }
 0x22b   : > { %5013 = vst.msk [vmem:[%s8326_s22 + $0x38] sm:$0xf] %vm4998_vm8, %v5681_v18  ;;  %v5682_v54 = vpack.c.bf16 %v4853_v34, %v4853_v34  ;;  %v6177_v37 = vadd.f32 %v4665_v45, %v2640_v23  ;;  %v6009_v15 = vpop.f32.mrb[18].mxu1  ;;  %v4668_v44 = vpop.f32.mrb[19].mxu0 }
 0x22c   : > { %5011 = vst.msk [vmem:[%s8326_s22 + $0x30] sm:$0xf] %vm4998_vm8, %v5679_v63  ;;  %v5680_v1 = vpack.c.bf16 %v4851_v9, %v4851_v9  ;;  %v4785_v7 = vmul.f32 %v6176_v14, %v8308_v22  ;;  %v6178_v26 = vadd.f32 %v6145_v16, %v6009_v15  ;;  %v2643_v59 = vpop.f32.mrb[19].mxu1 }
 0x22d   : > { %5014 = vst.msk [vmem:[%s8326_s22 + $0x3c] sm:$0xf] %vm4998_vm8, %v5682_v54  ;;  %v4783_v53 = vmul.f32 %v6177_v37, %v8308_v22  ;;  %v6179_v60 = vadd.f32 %v4668_v44, %v2643_v59 }
 0x22e   : > { %5012 = vst.msk [vmem:[%s8326_s22 + $0x34] sm:$0xf] %vm4998_vm8, %v5680_v1  ;;  %v4824_v0 = vadd.f32 %v8313_v33, %v4785_v7  ;;  %v4786_v52 = vmul.f32 %v6178_v26, %v8308_v22 }
 0x22f   : > { %v4822_v39 = vadd.f32 %v8313_v33, %v4783_v53  ;;  %v4784_v43 = vmul.f32 %v6179_v60, %v8308_v22 }
 0x230   : > { %v4856_v27 = vmax.f32 %v4824_v0, 0.0  ;;  %v4825_v4 = vadd.f32 %v8313_v33, %v4786_v52  ;;  %v6148_v29 = vpop.f32.mrb[20].mxu0 }
 0x231   : > { %v4854_v55 = vmax.f32 %v4822_v39, 0.0  ;;  %v4823_v19 = vadd.f32 %v8313_v33, %v4784_v43  ;;  %v6012_v24 = vpop.f32.mrb[20].mxu1  ;;  %v4681_v10 = vpop.f32.mrb[21].mxu0 }
 0x232   : > { %v5685_v13 = vpack.c.bf16 %v4856_v27, %v4856_v27  ;;  %v4857_v21 = vmax.f32 %v4825_v4, 0.0  ;;  %v6180_v36 = vadd.f32 %v6148_v29, %v6012_v24  ;;  %v2656_v61 = vpop.f32.mrb[21].mxu1  ;;  %v6149_v42 = vpop.f32.mrb[22].mxu0 }
 0x233   : > { %v5683_v35 = vpack.c.bf16 %v4854_v55, %v4854_v55  ;;  %v4855_v49 = vmax.f32 %v4823_v19, 0.0  ;;  %v6181_v2 = vadd.f32 %v4681_v10, %v2656_v61  ;;  %v6013_v3 = vpop.f32.mrb[22].mxu1  ;;  %v4684_v56 = vpop.f32.mrb[23].mxu0 }
 0x234   : > { %5017 = vst.msk [vmem:[%s8326_s22 + $0x48] sm:$0xf] %vm4998_vm8, %v5685_v13  ;;  %v5686_v20 = vpack.c.bf16 %v4857_v21, %v4857_v21  ;;  %v4789_v50 = vmul.f32 %v6180_v36, %v8308_v22  ;;  %v6182_v47 = vadd.f32 %v6149_v42, %v6013_v3  ;;  %v2659_v41 = vpop.f32.mrb[23].mxu1 }
 0x235   : > { %5015 = vst.msk [vmem:[%s8326_s22 + $0x40] sm:$0xf] %vm4998_vm8, %v5683_v35  ;;  %v5684_v31 = vpack.c.bf16 %v4855_v49, %v4855_v49  ;;  %v4787_v40 = vmul.f32 %v6181_v2, %v8308_v22  ;;  %v6183_v5 = vadd.f32 %v4684_v56, %v2659_v41 }
 0x236   : > { %5018 = vst.msk [vmem:[%s8326_s22 + $0x4c] sm:$0xf] %vm4998_vm8, %v5686_v20  ;;  %v4828_v32 = vadd.f32 %v8313_v33, %v4789_v50  ;;  %v4790_v17 = vmul.f32 %v6182_v47, %v8308_v22 }
 0x237   : > { %5016 = vst.msk [vmem:[%s8326_s22 + $0x44] sm:$0xf] %vm4998_vm8, %v5684_v31  ;;  %v4826_v11 = vadd.f32 %v8313_v33, %v4787_v40  ;;  %v4788_v28 = vmul.f32 %v6183_v5, %v8308_v22 }
 0x238   : > { %v4860_v48 = vmax.f32 %v4828_v32, 0.0  ;;  %v4829_v38 = vadd.f32 %v8313_v33, %v4790_v17  ;;  %v6152_v46 = vpop.f32.mrb[24].mxu0 }
 0x239   : > { %v4858_v8 = vmax.f32 %v4826_v11, 0.0  ;;  %v4827_v62 = vadd.f32 %v8313_v33, %v4788_v28  ;;  %v6016_v30 = vpop.f32.mrb[24].mxu1  ;;  %v4697_v58 = vpop.f32.mrb[25].mxu0 }
 0x23a   : > { %v5689_v51 = vpack.c.bf16 %v4860_v48, %v4860_v48  ;;  %v4861_v25 = vmax.f32 %v4829_v38, 0.0  ;;  %v6184_v6 = vadd.f32 %v6152_v46, %v6016_v30  ;;  %v2672_v57 = vpop.f32.mrb[25].mxu1  ;;  %v6153_v18 = vpop.f32.mrb[26].mxu0 }
 0x23b   : > { %v5687_v34 = vpack.c.bf16 %v4858_v8, %v4858_v8  ;;  %v4859_v12 = vmax.f32 %v4827_v62, 0.0  ;;  %v6185_v45 = vadd.f32 %v4697_v58, %v2672_v57  ;;  %v6017_v63 = vpop.f32.mrb[26].mxu1  ;;  %v4700_v9 = vpop.f32.mrb[27].mxu0 }
 0x23c   : > { %5021 = vst.msk [vmem:[%s8326_s22 + $0x58] sm:$0xf] %vm4998_vm8, %v5689_v51  ;;  %v5690_v14 = vpack.c.bf16 %v4861_v25, %v4861_v25  ;;  %v4793_v23 = vmul.f32 %v6184_v6, %v8308_v22  ;;  %v6186_v16 = vadd.f32 %v6153_v18, %v6017_v63  ;;  %v2675_v54 = vpop.f32.mrb[27].mxu1 }
 0x23d   : > { %5019 = vst.msk [vmem:[%s8326_s22 + $0x50] sm:$0xf] %vm4998_vm8, %v5687_v34  ;;  %v5688_v37 = vpack.c.bf16 %v4859_v12, %v4859_v12  ;;  %v4791_v15 = vmul.f32 %v6185_v45, %v8308_v22  ;;  %v6187_v44 = vadd.f32 %v4700_v9, %v2675_v54 }
 0x23e   : > { %5022 = vst.msk [vmem:[%s8326_s22 + $0x5c] sm:$0xf] %vm4998_vm8, %v5690_v14  ;;  %v4832_v1 = vadd.f32 %v8313_v33, %v4793_v23  ;;  %v4794_v7 = vmul.f32 %v6186_v16, %v8308_v22 }
 0x23f   : > { %5020 = vst.msk [vmem:[%s8326_s22 + $0x54] sm:$0xf] %vm4998_vm8, %v5688_v37  ;;  %v4830_v26 = vadd.f32 %v8313_v33, %v4791_v15  ;;  %v4792_v59 = vmul.f32 %v6187_v44, %v8308_v22 }
 0x240   : > { %v4864_v53 = vmax.f32 %v4832_v1, 0.0  ;;  %v4833_v60 = vadd.f32 %v8313_v33, %v4794_v7  ;;  %v6156_v0 = vpop.f32.mrb[28].mxu0 }
 0x241   : > { %v4862_v52 = vmax.f32 %v4830_v26, 0.0  ;;  %v4831_v39 = vadd.f32 %v8313_v33, %v4792_v59  ;;  %v6020_v43 = vpop.f32.mrb[28].mxu1  ;;  %v4713_v27 = vpop.f32.mrb[29].mxu0 }
 0x242   : > { %v5693_v4 = vpack.c.bf16 %v4864_v53, %v4864_v53  ;;  %v4865_v29 = vmax.f32 %v4833_v60, 0.0  ;;  %v6188_v55 = vadd.f32 %v6156_v0, %v6020_v43  ;;  %v2688_v19 = vpop.f32.mrb[29].mxu1  ;;  %v6157_v24 = vpop.f32.mrb[30].mxu0 }
 0x243   : > { %v5691_v10 = vpack.c.bf16 %v4862_v52, %v4862_v52  ;;  %v4863_v13 = vmax.f32 %v4831_v39, 0.0  ;;  %v6189_v21 = vadd.f32 %v4713_v27, %v2688_v19  ;;  %v6021_v36 = vpop.f32.mrb[30].mxu1  ;;  %v4716_v61 = vpop.f32.mrb[31].mxu0 }
 0x244   : > { %5025 = vst.msk [vmem:[%s8326_s22 + $0x68] sm:$0xf] %vm4998_vm8, %v5693_v4  ;;  %v5694_v42 = vpack.c.bf16 %v4865_v29, %v4865_v29  ;;  %v4797_v35 = vmul.f32 %v6188_v55, %v8308_v22  ;;  %v6190_v49 = vadd.f32 %v6157_v24, %v6021_v36  ;;  %v2691_v2 = vpop.f32.mrb[31].mxu1 }
 0x245   : > { %5023 = vst.msk [vmem:[%s8326_s22 + $0x60] sm:$0xf] %vm4998_vm8, %v5691_v10  ;;  %v5692_v3 = vpack.c.bf16 %v4863_v13, %v4863_v13  ;;  %v4795_v56 = vmul.f32 %v6189_v21, %v8308_v22  ;;  %v6191_v20 = vadd.f32 %v4716_v61, %v2691_v2 }
 0x246   : > { %5026 = vst.msk [vmem:[%s8326_s22 + $0x6c] sm:$0xf] %vm4998_vm8, %v5694_v42  ;;  %v4836_v50 = vadd.f32 %v8313_v33, %v4797_v35  ;;  %v4798_v47 = vmul.f32 %v6190_v49, %v8308_v22 }
 0x247   : > { %5024 = vst.msk [vmem:[%s8326_s22 + $0x64] sm:$0xf] %vm4998_vm8, %v5692_v3  ;;  %v4834_v41 = vadd.f32 %v8313_v33, %v4795_v56  ;;  %v4796_v31 = vmul.f32 %v6191_v20, %v8308_v22 }
 0x248   : > { %v4868_v40 = vmax.f32 %v4836_v50, 0.0  ;;  %v4837_v5 = vadd.f32 %v8313_v33, %v4798_v47 }
 0x249   : > { %v4866_v32 = vmax.f32 %v4834_v41, 0.0  ;;  %v4835_v17 = vadd.f32 %v8313_v33, %v4796_v31 }
 0x24a   : > { %v5697_v11 = vpack.c.bf16 %v4868_v40, %v4868_v40  ;;  %v4869_v28 = vmax.f32 %v4837_v5, 0.0 }
 0x24b   : > { %v5695_v48 = vpack.c.bf16 %v4866_v32, %v4866_v32  ;;  %v4867_v38 = vmax.f32 %v4835_v17, 0.0 }
 0x24c   : > { %5029 = vst.msk [vmem:[%s8326_s22 + $0x78] sm:$0xf] %vm4998_vm8, %v5697_v11  ;;  %v5698_v46 = vpack.c.bf16 %v4869_v28, %v4869_v28 }
 0x24d   : > { %5027 = vst.msk [vmem:[%s8326_s22 + $0x70] sm:$0xf] %vm4998_vm8, %v5695_v48  ;;  %v5696_v8 = vpack.c.bf16 %v4867_v38, %v4867_v38 }
 0x24e   : > { %5030 = vst.msk [vmem:[%s8326_s22 + $0x7c] sm:$0xf] %vm4998_vm8, %v5698_v46 }
 0x24f   : > { %5028 = vst.msk [vmem:[%s8326_s22 + $0x74] sm:$0xf] %vm4998_vm8, %v5696_v8 }
 0x250 PF: > { %s14_s15 = sadd.s32 1, %s6534_s15  }
 0x251   : > { %p11_p4 = scmp.ge.s32.totalorder %s14_s15, 4  }
 0x253   :  { %13 = sbr.rel (!%p11_p4) target bundleno = 1 (0x1), region = 76 }

// kernel: _lambda_.33
= control target key start
LH: loop header
LB: loop body
LE: loop exit
PB: predicated region body
PF: predicated region fallthrough
CT: control target
= control target key end

     0   :  { %s6811_s15 = smov 0   ;;  %s8719_s0 = inlined_call_operand.vmem [shape: bf16[2,18,18,64], index: 0, kind: input, shape index: {}]   ;;  %s8720_s1 = inlined_call_operand.vmem [shape: bf16[9,64,128], index: 1, kind: input, shape index: {}]   ;;  %s8721_s2 = inlined_call_operand.vmem [shape: f32[1,128], index: 2, kind: input, shape index: {}]   ;;  %s8722_s3 = inlined_call_operand.vmem [shape: f32[1,128], index: 3, kind: input, shape index: {}]   ;;  %s8723_s4 = inlined_call_operand.vmem [shape: f32[2,256,128], index: 4, kind: output, shape index: {}]  }
   0x1 LB: > { %s5174_s16 = sadd.s32 4294967295, %s6784_s15   ;;  %p5178_p0 = scmp.ge.s32.totalorder %s6784_s15, 1  ;;  %s6784_s15 = sphi %s6811_s15, %s14_s15  }
   0x2   : > { %p162_p1 = scmp.lt.s32.totalorder %s6784_s15, 3 }
   0x4   : > { %p163_p2 = pnand %p5178_p0, %p162_p1 }
   0x6   : > { %166 = sbr.rel (%p163_p2) target bundleno = 587 (0x24b), region = 36 }
   0xd   : > { %v6628_v0 = vld [vmem:[%s8720_s1 + $0x20] sm:$0xff]   ;;  %p188_p3 = scmp.lt.s32.totalorder %s5174_s16, 1  ;;  %v6630_v2 = vld [vmem:[%s8720_s1 + $0x28] sm:$0xff]   ;;  %v6632_v4 = vld [vmem:[%s8720_s1 + $0x30] sm:$0xff]   ;;  %vm255_vm0 = vsmask.f32 3328 }
   0xe   : > { %v6629_v1 = vld [vmem:[%s8720_s1 + $0x80] sm:$0xff]   ;;  %5995 = vmatprep.subr.bf16.mxu1 %v6628_v0  ;;  %v6631_v3 = vld [vmem:[%s8720_s1 + $0x88] sm:$0xff]   ;;  %v6633_v5 = vld [vmem:[%s8720_s1 + $0x90] sm:$0xff]   ;;  %vm256_vm1 = vsmask.f32 7440  ;;  %vm723_vm3 = vcmask 523264  }
   0xf   : > { %s8787_s16 = smov (!%p188_p3, %s5174_s16), 1  ;;  %6155 = vmatprep.subr.bf16.mxu0 %v6629_v1  ;;  %5996 = vmatpush3.bf16.msra.mxu1 %v6628_v0  ;;  %v6634_v6 = vld [vmem:[%s8720_s1 + $0x38] sm:$0xff]   ;;  %v6857_v18 = vld [vmem:[%s8720_s1] sm:$0xff]   ;;  %vm6873_vm2 = vmor %vm255_vm0, %vm256_vm1  ;;  %vm1294_vm4 = vcmask 1042432   ;;  %vm1295_vm5 = vcmask 1046532  }
  0x10   : > { %6156 = vmatpush3.bf16.msra.mxu0 %v6629_v1  ;;  %5997 = vmatprep.subr.bf16.mxu1 %v6630_v2  ;;  %s6619_s27 = smul.u32 216, %s8787_s16  ;;  %v6635_v7 = vld [vmem:[%s8720_s1 + $0x98] sm:$0xff]   ;;  %v6863_v23 = vld [vmem:[%s8720_s1 + $0xa0] sm:$0xff]   ;;  %vm7106_vm6 = vmor %vm1294_vm4, %vm1295_vm5  ;;  %s5814_s9 = sshll.u32 %s8787_s16, 8 }
  0x11   : > { %6157 = vmatprep.subr.bf16.mxu0 %v6631_v3  ;;  %s8615_s14 = scalar_lea.vmem %s8723_s4, %s5814_s9 }
  0x12   : > { %s6846_s8 = scalar_lea.vmem %s8719_s0, %s6619_s27 }
  0x13   : > { %5998 = vmatpush3.bf16.msra.mxu1 %v6630_v2  ;;  %v199_v8 = vld [vmem:[%s6846_s8] sm:$0xf]  ;;  %v200_v9 = vld [vmem:[%s6846_s8 + $0x4] sm:$0xf]  ;;  %v239_v10 = vld [vmem:[%s6846_s8 + $0x8] sm:$0x1] }
  0x14   : > { %6158 = vmatpush3.bf16.msra.mxu0 %v6631_v3  ;;  %5999 = vmatprep.subr.bf16.mxu1 %v6632_v4  ;;  %v259_v11 = vshrl.u32 %v199_v8, 16  ;;  %v262_v12 = vshll.u32 %v199_v8, 16  ;;  %v268_v13 = vshll.u32 %v200_v9, 16  ;;  %v272_v14 = vshrl.u32 %v200_v9, 16  ;;  %v5398_v22 = vld [vmem:[%s6846_s8 + $0xc] sm:$0xf] }
  0x15   : > { %6159 = vmatprep.subr.bf16.mxu0 %v6633_v5  ;;  %v278_v15 = vshll.u32 %v239_v10, 16  ;;  %v6866_v25 = vld [vmem:[%s6846_s8 + $0x10] sm:$0xf]  ;;  %v6869_v26 = vld [vmem:[%s6846_s8 + $0x14] sm:$0x1]  ;;  %v2167_v27 = vshrl.u32 %v5398_v22, 16 }
  0x16   : > { %v261_v16 = vrot.slane %v259_v11, 4  ;;  %v264_v17 = vrot.slane %v262_v12, 5  ;;  %v270_v19 = vrot.slane %v268_v13, 5  ;;  %v274_v20 = vrot.slane %v272_v14, 4  ;;  %v201_v40 = vld [vmem:[%s6846_s8 + $0xc] sm:$0xf] }
  0x17   : > { %6000 = vmatpush3.bf16.msra.mxu1 %v6632_v4  ;;  %v280_v21 = vrot.slane %v278_v15, 5  ;;  %v2170_v28 = vshll.u32 %v5398_v22, 16  ;;  %v2176_v31 = vshll.u32 %v6866_v25, 16  ;;  %v2180_v32 = vshrl.u32 %v6866_v25, 16  ;;  %v202_v44 = vld [vmem:[%s6846_s8 + $0x10] sm:$0xf] }
  0x18   : > { %6160 = vmatpush3.bf16.msra.mxu0 %v6633_v5  ;;  %6001 = vmatprep.subr.bf16.mxu1 %v6634_v6  ;;  %v265_v24 = vor.u32 %v264_v17, %v261_v16  ;;  %v275_v30 = vor.u32 %v274_v20, %v270_v19  ;;  %v2186_v33 = vshll.u32 %v6869_v26, 16  ;;  %v2169_v35 = vrot.slane %v2167_v27, 4  ;;  %v240_v45 = vld [vmem:[%s6846_s8 + $0x14] sm:$0x1]  ;;  %v5401_v55 = vld [vmem:[%s6846_s8 + $0x18] sm:$0xf] }
  0x19   : > { %6161 = vmatprep.subr.bf16.mxu0 %v6635_v7  ;;  %v2172_v36 = vrot.slane %v2170_v28, 5  ;;  %v2178_v38 = vrot.slane %v2176_v31, 5  ;;  %v2182_v39 = vrot.slane %v2180_v32, 4  ;;  %v283_v46 = vshrl.u32 %v201_v40, 16  ;;  %v6891_v60 = vld [vmem:[%s6846_s8 + $0x1c] sm:$0xf] }
  0x1a   : > { %v266_v34 = vrot.slane %v265_v24, 4  ;;  %v276_v37 = vrot.slane %v275_v30, 4  ;;  %v2188_v43 = vrot.slane %v2186_v33, 5  ;;  %v286_v49 = vshll.u32 %v201_v40, 16  ;;  %v6899_v1 = vld [vmem:[%s6846_s8 + $0x20] sm:$0x1] }
  0x1b   : > { %6002 = vmatpush3.bf16.msra.mxu1 %v6634_v6  ;;  %v2173_v42 = vor.u32 %v2172_v36, %v2169_v35  ;;  %v2183_v48 = vor.u32 %v2182_v39, %v2178_v38  ;;  %v292_v50 = vshll.u32 %v202_v44, 16  ;;  %v285_v53 = vrot.slane %v283_v46, 4  ;;  %v203_v10 = vld [vmem:[%s6846_s8 + $0x18] sm:$0xf]  ;;  %v204_v11 = vld [vmem:[%s6846_s8 + $0x1c] sm:$0xf] }
  0x1c   : > { %6162 = vmatpush3.bf16.msra.mxu0 %v6635_v7  ;;  %6035 = vmatprep.subr.bf16.mxu1 %v6857_v18  ;;  %v271_v41 = vsel %vm6873_vm2, %v266_v34, %v270_v19  ;;  %v281_v47 = vsel %vm6873_vm2, %v276_v37, %v280_v21  ;;  %v296_v54 = vshrl.u32 %v202_v44, 16  ;;  %v288_v57 = vrot.slane %v286_v49, 5  ;;  %v241_v28 = vld [vmem:[%s6846_s8 + $0x20] sm:$0x1]  ;;  %v5404_v34 = vld [vmem:[%s6846_s8 + $0x24] sm:$0xf] }
  0x1d   : > { %6195 = vmatprep.subr.bf16.mxu0 %v6863_v23  ;;  %v5190_v51 = vcombine.low %v271_v41, %v281_v47  ;;  %v2174_v52 = vrot.slane %v2173_v42, 4  ;;  %v2184_v56 = vrot.slane %v2183_v48, 4  ;;  %v294_v58 = vrot.slane %v292_v50, 5  ;;  %v6639_v39 = vld [vmem:[%s8720_s1 + $0x8] sm:$0xff]  }
  0x1e   : > { %v302_v59 = vshll.u32 %v240_v45, 16  ;;  %v2938_v62 = vrot.slane %v6866_v25, 5  ;;  %v2941_v63 = vrot.slane %v6869_v26, 5  ;;  %v298_v0 = vrot.slane %v296_v54, 4  ;;  %v6925_v44 = vld [vmem:[%s6846_s8 + $0x28] sm:$0xf] }
  0x1f   : > { %6003 = vmatprep.mubr.msk.bf16.mxu1 %vm723_vm3, %v5190_v51  ;;  %v2179_v61 = vsel %vm6873_vm2, %v2174_v52, %v2178_v38  ;;  %v2189_v2 = vsel %vm6873_vm2, %v2184_v56, %v2188_v43  ;;  %v289_v3 = vor.u32 %v288_v57, %v285_v53  ;;  %v2191_v5 = vshrl.u32 %v5401_v55, 16  ;;  %v6929_v48 = vld [vmem:[%s6846_s8 + $0x2c] sm:$0x1]  ;;  %v6642_v56 = vld [vmem:[%s8720_s1 + $0x10] sm:$0xff]  }
  0x20   : > { %v304_v4 = vrot.slane %v302_v59, 5  ;;  %v5454_v6 = vcombine.low %v2179_v61, %v2189_v2  ;;  %v299_v7 = vor.u32 %v298_v0, %v294_v58  ;;  %v2194_v8 = vshll.u32 %v5401_v55, 16  ;;  %v6638_v54 = vld [vmem:[%s8720_s1 + $0xa8] sm:$0xff]   ;;  %v205_v55 = vld [vmem:[%s6846_s8 + $0x24] sm:$0xf] }
  0x21   : > { %v2200_v9 = vshll.u32 %v6891_v60, 16  ;;  %v290_v12 = vrot.slane %v289_v3, 4  ;;  %v2193_v13 = vrot.slane %v2191_v5, 4  ;;  %v2204_v14 = vshrl.u32 %v6891_v60, 16  ;;  %v206_v61 = vld [vmem:[%s6846_s8 + $0x28] sm:$0xf] }
  0x22   : > { %v2210_v15 = vshll.u32 %v6899_v1, 16  ;;  %6163 = vmatprep.mubr.msk.bf16.mxu0 %vm723_vm3, %v5454_v6  ;;  %v300_v16 = vrot.slane %v299_v7, 4  ;;  %v2196_v17 = vrot.slane %v2194_v8, 5  ;;  %v2945_v20 = vrot.slane %v6891_v60, 5  ;;  %v242_v5 = vld [vmem:[%s6846_s8 + $0x2c] sm:$0x1] }
  0x23   : > { %v2202_v19 = vrot.slane %v2200_v9, 5  ;;  %v295_v21 = vsel %vm6873_vm2, %v290_v12, %v294_v58  ;;  %v2206_v22 = vrot.slane %v2204_v14, 4  ;;  %v2948_v27 = vrot.slane %v6899_v1, 5 }
  0x24   : > { %v2212_v24 = vrot.slane %v2210_v15, 5  ;;  %v305_v30 = vsel %vm6873_vm2, %v300_v16, %v304_v4  ;;  %v2197_v31 = vor.u32 %v2196_v17, %v2193_v13  ;;  %v6918_v32 = vrot.slane %v2945_v20, 4  ;;  %v6951_v15 = vld [vmem:[%s6846_s8 + $0x34] sm:$0xf] }
  0x25   : > { %v307_v33 = vshrl.u32 %v203_v10, 16  ;;  %v5191_v35 = vcombine.low %v295_v21, %v305_v30  ;;  %v2207_v36 = vor.u32 %v2206_v22, %v2202_v19  ;;  %v310_v37 = vshll.u32 %v203_v10, 16  ;;  %v5407_v10 = vld [vmem:[%s6846_s8 + $0x30] sm:$0xf] }
  0x26   : > { %v316_v38 = vshll.u32 %v204_v11, 16  ;;  %v2198_v40 = vrot.slane %v2197_v31, 4  ;;  %v320_v42 = vshrl.u32 %v204_v11, 16  ;;  %v326_v43 = vshll.u32 %v241_v28, 16  ;;  %v6640_v31 = vld [vmem:[%s8720_s1 + $0xb0] sm:$0xff]  }
  0x27   : > { %v309_v41 = vrot.slane %v307_v33, 4  ;;  %6004 = vmatmul.mubr.msk.bf16.vlgmr.msra.gmra.mrb[0].mxu1 %vm723_vm3, %v5191_v35  ;;  %v2208_v45 = vrot.slane %v2207_v36, 4  ;;  %v312_v46 = vrot.slane %v310_v37, 5  ;;  %v2215_v49 = vshrl.u32 %v5404_v34, 16 }
  0x28   : > { %v318_v47 = vrot.slane %v316_v38, 5  ;;  %6036 = vmatpush3.bf16.msra.mxu1 %v6857_v18  ;;  %v2203_v50 = vsel %vm6873_vm2, %v2198_v40, %v2202_v19  ;;  %v322_v51 = vrot.slane %v320_v42, 4  ;;  %v328_v52 = vrot.slane %v326_v43, 5  ;;  %v6967_v40 = vld [vmem:[%s6846_s8 + $0x38] sm:$0x1] }
  0x29   : > { %v2218_v53 = vshll.u32 %v5404_v34, 16  ;;  %v2213_v18 = vsel %vm6873_vm2, %v2208_v45, %v2212_v24  ;;  %v313_v57 = vor.u32 %v312_v46, %v309_v41  ;;  %v2217_v58 = vrot.slane %v2215_v49, 4  ;;  %6037 = vmatprep.subr.bf16.mxu1 %v6639_v39  ;;  %v6641_v42 = vld [vmem:[%s8720_s1 + $0xb8] sm:$0xff]   ;;  %v207_v49 = vld [vmem:[%s6846_s8 + $0x30] sm:$0xf] }
  0x2a   : > { %v2224_v59 = vshll.u32 %v6925_v44, 16  ;;  %v5455_v0 = vcombine.low %v2203_v50, %v2213_v18  ;;  %v323_v2 = vor.u32 %v322_v51, %v318_v47  ;;  %v2228_v4 = vshrl.u32 %v6925_v44, 16 }
  0x2b   : > { %v2220_v3 = vrot.slane %v2218_v53, 5  ;;  %v314_v6 = vrot.slane %v313_v57, 4  ;;  %v2234_v8 = vshll.u32 %v6929_v48, 16  ;;  %v331_v9 = vshrl.u32 %v205_v55, 16 }
  0x2c   : > { %v2226_v7 = vrot.slane %v2224_v59, 5  ;;  %6164 = vmatmul.mubr.msk.bf16.vlgmr.msra.gmra.mrb[0].mxu0 %vm723_vm3, %v5455_v0  ;;  %v324_v11 = vrot.slane %v323_v2, 4  ;;  %v2230_v13 = vrot.slane %v2228_v4, 4  ;;  %v334_v14 = vshll.u32 %v205_v55, 16  ;;  %6038 = vmatpush3.bf16.msra.mxu1 %v6639_v39  ;;  %v208_v55 = vld [vmem:[%s6846_s8 + $0x34] sm:$0xf] }
  0x2d   : > { %v2221_v12 = vor.u32 %v2220_v3, %v2217_v58  ;;  %6196 = vmatpush3.bf16.msra.mxu0 %v6863_v23  ;;  %v319_v16 = vsel %vm6873_vm2, %v314_v6, %v318_v47  ;;  %v2236_v17 = vrot.slane %v2234_v8, 5  ;;  %v333_v19 = vrot.slane %v331_v9, 4  ;;  %6039 = vmatprep.subr.bf16.mxu1 %v6642_v56  ;;  %v6644_v23 = vld [vmem:[%s8720_s1 + $0x18] sm:$0xff]  }
  0x2e   : > { %v340_v21 = vshll.u32 %v206_v61, 16  ;;  %v329_v22 = vsel %vm6873_vm2, %v324_v11, %v328_v52  ;;  %v2231_v28 = vor.u32 %v2230_v13, %v2226_v7  ;;  %6197 = vmatprep.subr.bf16.mxu0 %v6638_v54  ;;  %v336_v30 = vrot.slane %v334_v14, 5  ;;  %v6991_v13 = vld [vmem:[%s8720_s1 + $0xc0] sm:$0xff]  }
  0x2f   : > { %v2222_v24 = vrot.slane %v2221_v12, 4  ;;  %v5192_v33 = vcombine.low %v319_v16, %v329_v22  ;;  %v344_v35 = vshrl.u32 %v206_v61, 16  ;;  %v350_v36 = vshll.u32 %v242_v5, 16  ;;  %v243_v5 = vld [vmem:[%s6846_s8 + $0x38] sm:$0x1] }
  0x30   : > { %v342_v34 = vrot.slane %v340_v21, 5  ;;  %v2232_v38 = vrot.slane %v2231_v28, 4  ;;  %v337_v39 = vor.u32 %v336_v30, %v333_v19  ;;  %v2239_v41 = vshrl.u32 %v5407_v10, 16  ;;  %6040 = vmatpush3.bf16.msra.mxu1 %v6642_v56  ;;  %v6647_v56 = vld [vmem:[%s8720_s1 + $0x40] sm:$0xff]   ;;  %v5410_v12 = vld [vmem:[%s6846_s8 + $0x3c] sm:$0xf] }
  0x31   : > { %v2227_v37 = vsel %vm6873_vm2, %v2222_v24, %v2226_v7  ;;  %6007 = vmatprep.mubr.msk.bf16.mxu1 %vm723_vm3, %v5192_v33  ;;  %v346_v43 = vrot.slane %v344_v35, 4  ;;  %v352_v45 = vrot.slane %v350_v36, 5  ;;  %v2242_v46 = vshll.u32 %v5407_v10, 16  ;;  %6198 = vmatpush3.bf16.msra.mxu0 %v6638_v54  ;;  %v6996_v21 = vld [vmem:[%s6846_s8 + $0x40] sm:$0xf] }
  0x32   : > { %v2248_v47 = vshll.u32 %v6951_v15, 16  ;;  %v2237_v50 = vsel %vm6873_vm2, %v2232_v38, %v2236_v17  ;;  %v338_v51 = vrot.slane %v337_v39, 4  ;;  %v2241_v52 = vrot.slane %v2239_v41, 4  ;;  %6199 = vmatprep.subr.bf16.mxu0 %v6640_v31  ;;  %6041 = vmatprep.subr.bf16.mxu1 %v6644_v23  ;;  %v7001_v33 = vld [vmem:[%s6846_s8 + $0x44] sm:$0x1] }
  0x33   : > { %v2252_v53 = vshrl.u32 %v6951_v15, 16  ;;  %v5456_v18 = vcombine.low %v2227_v37, %v2237_v50  ;;  %v347_v57 = vor.u32 %v346_v43, %v342_v34  ;;  %v2244_v58 = vrot.slane %v2242_v46, 5  ;;  %v209_v41 = vld [vmem:[%s6846_s8 + $0x3c] sm:$0xf] }
  0x34   : > { %v2250_v54 = vrot.slane %v2248_v47, 5  ;;  %v343_v59 = vsel %vm6873_vm2, %v338_v51, %v342_v34  ;;  %v2258_v0 = vshll.u32 %v6967_v40, 16  ;;  %v355_v2 = vshrl.u32 %v207_v49, 16  ;;  %6042 = vmatpush3.bf16.msra.mxu1 %v6644_v23 }
  0x35   : > { %v2254_v61 = vrot.slane %v2252_v53, 4  ;;  %6167 = vmatprep.mubr.msk.bf16.mxu0 %vm723_vm3, %v5456_v18  ;;  %v348_v3 = vrot.slane %v347_v57, 4  ;;  %v2245_v4 = vor.u32 %v2244_v58, %v2241_v52  ;;  %v358_v6 = vshll.u32 %v207_v49, 16  ;;  %6200 = vmatpush3.bf16.msra.mxu0 %v6640_v31  ;;  %v210_v49 = vld [vmem:[%s6846_s8 + $0x40] sm:$0xf] }
  0x36   : > { %v364_v7 = vshll.u32 %v208_v55, 16  ;;  %v2260_v9 = vrot.slane %v2258_v0, 5  ;;  %v357_v10 = vrot.slane %v355_v2, 4  ;;  %v368_v11 = vshrl.u32 %v208_v55, 16  ;;  %6201 = vmatprep.subr.bf16.mxu0 %v6641_v42  ;;  %6075 = vmatprep.subr.bf16.mxu1 %v6647_v56  ;;  %v244_v56 = vld [vmem:[%s6846_s8 + $0x44] sm:$0x1] }
  0x37   : > { %v2255_v8 = vor.u32 %v2254_v61, %v2250_v54  ;;  %v353_v14 = vsel %vm6873_vm2, %v348_v3, %v352_v45  ;;  %v2246_v16 = vrot.slane %v2245_v4, 4  ;;  %v360_v17 = vrot.slane %v358_v6, 5  ;;  %v5413_v58 = vld [vmem:[%s6846_s8 + $0x48] sm:$0xf]  ;;  %v7020_v2 = vld [vmem:[%s6846_s8 + $0x4c] sm:$0xf] }
  0x38   : > { %v366_v19 = vrot.slane %v364_v7, 5  ;;  %v5193_v22 = vcombine.low %v343_v59, %v353_v14  ;;  %v370_v28 = vrot.slane %v368_v11, 4  ;;  %v374_v30 = vshll.u32 %v243_v5, 16  ;;  %v7023_v7 = vld [vmem:[%s6846_s8 + $0x50] sm:$0x1] }
  0x39   : > { %v2256_v24 = vrot.slane %v2255_v8, 4  ;;  %v2251_v31 = vsel %vm6873_vm2, %v2246_v16, %v2250_v54  ;;  %v361_v23 = vor.u32 %v360_v17, %v357_v10  ;;  %v2263_v34 = vshrl.u32 %v5410_v12, 16  ;;  %6202 = vmatpush3.bf16.msra.mxu0 %v6641_v42 }
  0x3a   : > { %v2266_v35 = vshll.u32 %v5410_v12, 16  ;;  %6008 = vmatmul.mubr.msk.bf16.gmra.mrb[4].mxu1 %vm723_vm3, %v5193_v22  ;;  %v371_v37 = vor.u32 %v370_v28, %v366_v19  ;;  %v376_v38 = vrot.slane %v374_v30, 5  ;;  %v2272_v39 = vshll.u32 %v6996_v21, 16  ;;  %6235 = vmatprep.subr.bf16.mxu0 %v6991_v13 }
  0x3b   : > { %v2261_v36 = vsel %vm6873_vm2, %v2256_v24, %v2260_v9  ;;  %v362_v45 = vrot.slane %v361_v23, 4  ;;  %v2265_v46 = vrot.slane %v2263_v34, 4  ;;  %v2276_v51 = vshrl.u32 %v6996_v21, 16 }
  0x3c   : > { %v5457_v43 = vcombine.low %v2251_v31, %v2261_v36  ;;  %v2268_v47 = vrot.slane %v2266_v35, 5  ;;  %v372_v42 = vrot.slane %v371_v37, 4  ;;  %v2274_v50 = vrot.slane %v2272_v39, 5 }
  0x3d   : > { %v2282_v52 = vshll.u32 %v7001_v33, 16  ;;  %v367_v53 = vsel %vm6873_vm2, %v362_v45, %v366_v19  ;;  %v379_v18 = vshrl.u32 %v209_v41, 16  ;;  %v382_v57 = vshll.u32 %v209_v41, 16  ;;  %v211_v19 = vld [vmem:[%s6846_s8 + $0x48] sm:$0xf] }
  0x3e   : > { %6168 = vmatmul.mubr.msk.bf16.gmra.mrb[4].mxu0 %vm723_vm3, %v5457_v43  ;;  %v2269_v55 = vor.u32 %v2268_v47, %v2265_v46  ;;  %v377_v54 = vsel %vm6873_vm2, %v372_v42, %v376_v38  ;;  %v2278_v59 = vrot.slane %v2276_v51, 4  ;;  %v388_v0 = vshll.u32 %v210_v49, 16  ;;  %v212_v41 = vld [vmem:[%s6846_s8 + $0x4c] sm:$0xf] }
  0x3f   : > { %v2284_v61 = vrot.slane %v2282_v52, 5  ;;  %v5194_v3 = vcombine.low %v367_v53, %v377_v54  ;;  %v381_v5 = vrot.slane %v379_v18, 4  ;;  %v384_v6 = vrot.slane %v382_v57, 5  ;;  %v5416_v57 = vld [vmem:[%s6846_s8 + $0x54] sm:$0xf] }
  0x40   : > { %v2270_v4 = vrot.slane %v2269_v55, 4  ;;  %v2279_v8 = vor.u32 %v2278_v59, %v2274_v50  ;;  %v390_v9 = vrot.slane %v388_v0, 5  ;;  %v392_v10 = vshrl.u32 %v210_v49, 16  ;;  %v245_v49 = vld [vmem:[%s6846_s8 + $0x50] sm:$0x1] }
  0x41   : > { %v398_v11 = vshll.u32 %v244_v56, 16  ;;  %6011 = vmatprep.mubr.msk.bf16.mxu1 %vm723_vm3, %v5194_v3  ;;  %v385_v14 = vor.u32 %v384_v6, %v381_v5  ;;  %v2287_v16 = vshrl.u32 %v5413_v58, 16  ;;  %v2290_v17 = vshll.u32 %v5413_v58, 16  ;;  %v7043_v0 = vld [vmem:[%s6846_s8 + $0x58] sm:$0xf] }
  0x42   : > { %v2275_v12 = vsel %vm6873_vm2, %v2270_v4, %v2274_v50  ;;  %v2280_v22 = vrot.slane %v2279_v8, 4  ;;  %v394_v24 = vrot.slane %v392_v10, 4  ;;  %v2296_v30 = vshll.u32 %v7020_v2, 16 }
  0x43   : > { %v400_v28 = vrot.slane %v398_v11, 5  ;;  %v386_v31 = vrot.slane %v385_v14, 4  ;;  %v2289_v23 = vrot.slane %v2287_v16, 4  ;;  %v2292_v34 = vrot.slane %v2290_v17, 5  ;;  %v7048_v11 = vld [vmem:[%s6846_s8 + $0x5c] sm:$0x1] }
  0x44   : > { %v2300_v35 = vshrl.u32 %v7020_v2, 16  ;;  %v2285_v36 = vsel %vm6873_vm2, %v2280_v22, %v2284_v61  ;;  %v395_v37 = vor.u32 %v394_v24, %v390_v9  ;;  %v2298_v38 = vrot.slane %v2296_v30, 5  ;;  %v7056_v22 = vld [vmem:[%s6846_s8 + $0x54] sm:$0xf] }
  0x45   : > { %v2306_v39 = vshll.u32 %v7023_v7, 16  ;;  %v5458_v43 = vcombine.low %v2275_v12, %v2285_v36  ;;  %v391_v45 = vsel %vm6873_vm2, %v386_v31, %v390_v9  ;;  %v2293_v46 = vor.u32 %v2292_v34, %v2289_v23  ;;  %v7059_v23 = vld [vmem:[%s6846_s8 + $0x58] sm:$0xf] }
  0x46   : > { %v2302_v47 = vrot.slane %v2300_v35, 4  ;;  %v396_v42 = vrot.slane %v395_v37, 4  ;;  %v403_v51 = vshrl.u32 %v211_v19, 16  ;;  %v406_v52 = vshll.u32 %v211_v19, 16 }
  0x47   : > { %v2308_v50 = vrot.slane %v2306_v39, 5  ;;  %6171 = vmatprep.mubr.msk.bf16.mxu0 %vm723_vm3, %v5458_v43  ;;  %v2294_v53 = vrot.slane %v2293_v46, 4  ;;  %v412_v56 = vshll.u32 %v212_v41, 16  ;;  %v416_v18 = vshrl.u32 %v212_v41, 16  ;;  %v5419_v46 = vld [vmem:[%s6846_s8 + $0x60] sm:$0xf] }
  0x48   : > { %v2303_v55 = vor.u32 %v2302_v47, %v2298_v38  ;;  %v401_v58 = vsel %vm6873_vm2, %v396_v42, %v400_v28  ;;  %v405_v54 = vrot.slane %v403_v51, 4  ;;  %v408_v59 = vrot.slane %v406_v52, 5 }
  0x49   : > { %v422_v61 = vshll.u32 %v245_v49, 16  ;;  %v5195_v3 = vcombine.low %v391_v45, %v401_v58  ;;  %v2299_v4 = vsel %vm6873_vm2, %v2294_v53, %v2298_v38  ;;  %v414_v6 = vrot.slane %v412_v56, 5  ;;  %v246_v38 = vld [vmem:[%s6846_s8 + $0x5c] sm:$0x1]  ;;  %v7074_v56 = vld [vmem:[%s6846_s8 + $0x64] sm:$0xf] }
  0x4a   : > { %v2304_v5 = vrot.slane %v2303_v55, 4  ;;  %v409_v8 = vor.u32 %v408_v59, %v405_v54  ;;  %v418_v9 = vrot.slane %v416_v18, 4  ;;  %v2311_v12 = vshrl.u32 %v5416_v57, 16 }
  0x4b   : > { %v424_v10 = vrot.slane %v422_v61, 5  ;;  %6012 = vmatmul.mubr.msk.bf16.gmra.mrb[8].mxu1 %vm723_vm3, %v5195_v3  ;;  %v2314_v16 = vshll.u32 %v5416_v57, 16  ;;  %v2320_v17 = vshll.u32 %v7043_v0, 16  ;;  %v2324_v19 = vshrl.u32 %v7043_v0, 16 }
  0x4c   : > { %v2309_v14 = vsel %vm6873_vm2, %v2304_v5, %v2308_v50  ;;  %v410_v28 = vrot.slane %v409_v8, 4  ;;  %v419_v30 = vor.u32 %v418_v9, %v414_v6  ;;  %v2313_v31 = vrot.slane %v2311_v12, 4  ;;  %v7082_v8 = vld [vmem:[%s6846_s8 + $0x68] sm:$0x1]  ;;  %v7086_v12 = vld [vmem:[%s6846_s8 + $0x60] sm:$0xf] }
  0x4d   : > { %v5459_v24 = vcombine.low %v2299_v4, %v2309_v14  ;;  %v2316_v34 = vrot.slane %v2314_v16, 5  ;;  %v2322_v35 = vrot.slane %v2320_v17, 5  ;;  %v2326_v36 = vrot.slane %v2324_v19, 4 }
  0x4e   : > { %v2330_v37 = vshll.u32 %v7048_v11, 16  ;;  %v415_v39 = vsel %vm6873_vm2, %v410_v28, %v414_v6  ;;  %v420_v41 = vrot.slane %v419_v30, 4  ;;  %v427_v43 = vshrl.u32 %v7056_v22, 16 }
  0x4f   : > { %6172 = vmatmul.mubr.msk.bf16.gmra.mrb[8].mxu0 %vm723_vm3, %v5459_v24  ;;  %v430_v45 = vshll.u32 %v7056_v22, 16  ;;  %v2317_v47 = vor.u32 %v2316_v34, %v2313_v31  ;;  %v2327_v49 = vor.u32 %v2326_v36, %v2322_v35  ;;  %v436_v50 = vshll.u32 %v7059_v23, 16  ;;  %v7089_v24 = vld [vmem:[%s6846_s8 + $0x64] sm:$0xf] }
  0x50   : > { %v2332_v42 = vrot.slane %v2330_v37, 5  ;;  %v425_v51 = vsel %vm6873_vm2, %v420_v41, %v424_v10  ;;  %v429_v52 = vrot.slane %v427_v43, 4  ;;  %v440_v55 = vshrl.u32 %v7059_v23, 16 }
  0x51   : > { %v432_v53 = vrot.slane %v430_v45, 5  ;;  %v5196_v18 = vcombine.low %v415_v39, %v425_v51  ;;  %v2318_v57 = vrot.slane %v2317_v47, 4  ;;  %v2328_v58 = vrot.slane %v2327_v49, 4  ;;  %v5490_v47 = vld [vmem:[%s6846_s8 + $0xc] sm:$0xe] }
  0x52   : > { %v438_v54 = vrot.slane %v436_v50, 5  ;;  %v442_v61 = vrot.slane %v440_v55, 4  ;;  %v446_v3 = vshll.u32 %v246_v38, 16  ;;  %v2335_v4 = vshrl.u32 %v5419_v46, 16  ;;  %v247_v38 = vld [vmem:[%s6846_s8 + $0x68] sm:$0x1] }
  0x53   : > { %v433_v59 = vor.u32 %v432_v53, %v429_v52  ;;  %6015 = vmatprep.mubr.msk.bf16.mxu1 %vm723_vm3, %v5196_v18  ;;  %v2323_v5 = vsel %vm6873_vm2, %v2318_v57, %v2322_v35  ;;  %v2333_v6 = vsel %vm6873_vm2, %v2328_v58, %v2332_v42  ;;  %v2338_v9 = vshll.u32 %v5419_v46, 16  ;;  %v7111_v58 = vld [vmem:[%s6846_s8 + $0x6c] sm:$0xf] }
  0x54   : > { %v2344_v10 = vshll.u32 %v7074_v56, 16  ;;  %v5460_v14 = vcombine.low %v2323_v5, %v2333_v6  ;;  %v443_v17 = vor.u32 %v442_v61, %v438_v54  ;;  %v448_v19 = vrot.slane %v446_v3, 5 }
  0x55   : > { %v434_v16 = vrot.slane %v433_v59, 4  ;;  %v2337_v28 = vrot.slane %v2335_v4, 4  ;;  %v2340_v30 = vrot.slane %v2338_v9, 5  ;;  %v2348_v34 = vshrl.u32 %v7074_v56, 16 }
  0x56   : > { %v2346_v31 = vrot.slane %v2344_v10, 5  ;;  %6175 = vmatprep.mubr.msk.bf16.mxu0 %vm723_vm3, %v5460_v14  ;;  %v444_v36 = vrot.slane %v443_v17, 4  ;;  %v2354_v37 = vshll.u32 %v7082_v8, 16  ;;  %v451_v39 = vshrl.u32 %v7086_v12, 16  ;;  %v7123_v17 = vld [vmem:[%s6846_s8 + $0x70] sm:$0xf] }
  0x57   : > { %v439_v35 = vsel %vm6873_vm2, %v434_v16, %v438_v54  ;;  %v2341_v41 = vor.u32 %v2340_v30, %v2337_v28  ;;  %v2350_v43 = vrot.slane %v2348_v34, 4  ;;  %v454_v45 = vshll.u32 %v7086_v12, 16  ;;  %v248_v34 = vld [vmem:[%s6846_s8 + $0x74] sm:$0x1] }
  0x58   : > { %v460_v46 = vshll.u32 %v7089_v24, 16  ;;  %v449_v49 = vsel %vm6873_vm2, %v444_v36, %v448_v19  ;;  %v2356_v42 = vrot.slane %v2354_v37, 5  ;;  %v453_v50 = vrot.slane %v451_v39, 4 }
  0x59   : > { %v464_v51 = vshrl.u32 %v7089_v24, 16  ;;  %v5197_v52 = vcombine.low %v439_v35, %v449_v49  ;;  %v2342_v53 = vrot.slane %v2341_v41, 4  ;;  %v2351_v55 = vor.u32 %v2350_v43, %v2346_v31  ;;  %v5491_v35 = vld [vmem:[%s6846_s8 + $0x18] sm:$0xe] }
  0x5a   : > { %v456_v18 = vrot.slane %v454_v45, 5  ;;  %v462_v54 = vrot.slane %v460_v46, 5  ;;  %v470_v61 = vshll.u32 %v247_v38, 16  ;;  %v5506_v3 = vrot.slane %v5490_v47, 9  ;;  %v7140_v45 = vld [vmem:[%s6846_s8 + $0x78] sm:$0xf] }
  0x5b   : > { %v466_v59 = vrot.slane %v464_v51, 4  ;;  %6016 = vmatmul.mubr.msk.bf16.gmra.mrb[12].mxu1 %vm723_vm3, %v5197_v52  ;;  %v2347_v4 = vsel %vm6873_vm2, %v2342_v53, %v2346_v31  ;;  %v2352_v5 = vrot.slane %v2351_v55, 4  ;;  %v2940_v9 = vrot.slane %v2938_v62, 4  ;;  %v249_v55 = vld [vmem:[%s6846_s8 + $0x80] sm:$0x1] }
  0x5c   : > { %v457_v6 = vor.u32 %v456_v18, %v453_v50  ;;  %v472_v14 = vrot.slane %v470_v61, 5  ;;  %v2939_v16 = vsel %vm7106_vm6, %v5506_v3, %v2938_v62  ;;  %v475_v19 = vshrl.u32 %v7111_v58, 16 }
  0x5d   : > { %v467_v10 = vor.u32 %v466_v59, %v462_v54  ;;  %v2357_v28 = vsel %vm6873_vm2, %v2352_v5, %v2356_v42  ;;  %v2942_v31 = vsel %vm7106_vm6, %v2940_v9, %v2941_v63  ;;  %v478_v25 = vshll.u32 %v7111_v58, 16  ;;  %v7151_v42 = vld [vmem:[%s6846_s8 + $0x7c] sm:$0xf]  ;;  %v7165_v5 = vld [vmem:[%s6846_s8 + $0x84] sm:$0xf] }
  0x5e   : > { %v458_v30 = vrot.slane %v457_v6, 4  ;;  %v5461_v62 = vcombine.low %v2347_v4, %v2357_v28  ;;  %v5530_v37 = vcombine.low %v2939_v16, %v2942_v31  ;;  %v477_v38 = vrot.slane %v475_v19, 4 }
  0x5f   : > { %v468_v36 = vrot.slane %v467_v10, 4  ;;  %v480_v41 = vrot.slane %v478_v25, 5  ;;  %v484_v43 = vshll.u32 %v7123_v17, 16  ;;  %v488_v26 = vshrl.u32 %v7123_v17, 16  ;;  %v7169_v10 = vld [vmem:[%s6846_s8 + $0x88] sm:$0xf] }
  0x60   : > { %v463_v39 = vsel %vm6873_vm2, %v458_v30, %v462_v54  ;;  %6176 = vmatmul.mubr.msk.bf16.gmra.mrb[12].mxu0 %vm723_vm3, %v5461_v62  ;;  %v494_v46 = vshll.u32 %v248_v34, 16  ;;  %v5507_v47 = vrot.slane %v5491_v35, 9  ;;  %v2949_v49 = vsel %vm7106_vm6, %v6918_v32, %v2948_v27  ;;  %v5492_v32 = vld [vmem:[%s6846_s8 + $0x24] sm:$0xe]  ;;  %v6645_v35 = vld [vmem:[%s8720_s1 + $0xc8] sm:$0xff]  }
  0x61   : > { %v473_v63 = vsel %vm6873_vm2, %v468_v36, %v472_v14  ;;  %6203 = vmatprep.mubr.msk.bf16.mxu0 %vm723_vm3, %v5530_v37  ;;  %v481_v51 = vor.u32 %v480_v41, %v477_v38  ;;  %v486_v52 = vrot.slane %v484_v43, 5  ;;  %v490_v53 = vrot.slane %v488_v26, 4  ;;  %v250_v37 = vld [vmem:[%s6846_s8 + $0x8c] sm:$0x1] }
  0x62   : > { %v5198_v50 = vcombine.low %v463_v39, %v473_v63  ;;  %v496_v18 = vrot.slane %v494_v46, 5  ;;  %v2946_v1 = vsel %vm7106_vm6, %v5507_v47, %v2945_v20  ;;  %v499_v54 = vshrl.u32 %v7140_v45, 16  ;;  %v5493_v63 = vld [vmem:[%s6846_s8 + $0x30] sm:$0xe] }
  0x63   : > { %v502_v27 = vshll.u32 %v7140_v45, 16  ;;  %v482_v59 = vrot.slane %v481_v51, 4  ;;  %v491_v61 = vor.u32 %v490_v53, %v486_v52  ;;  %v5531_v3 = vcombine.low %v2946_v1, %v2949_v49 }
  0x64   : > { %6019 = vmatprep.mubr.msk.bf16.mxu1 %vm723_vm3, %v5198_v50  ;;  %v508_v4 = vshll.u32 %v7151_v42, 16  ;;  %v501_v6 = vrot.slane %v499_v54, 4  ;;  %v512_v9 = vshrl.u32 %v7151_v42, 16  ;;  %v518_v20 = vshll.u32 %v249_v55, 16 }
  0x65   : > { %v504_v60 = vrot.slane %v502_v27, 5  ;;  %v487_v14 = vsel %vm6873_vm2, %v482_v59, %v486_v52  ;;  %v492_v16 = vrot.slane %v491_v61, 4  ;;  %v5508_v28 = vrot.slane %v5492_v32, 9  ;;  %v7199_v27 = vld [vmem:[%s6846_s8 + $0x90] sm:$0xf] }
  0x66   : > { %v510_v19 = vrot.slane %v508_v4, 5  ;;  %v514_v31 = vrot.slane %v512_v9, 4  ;;  %v520_v34 = vrot.slane %v518_v20, 5  ;;  %v2952_v25 = vrot.slane %v6925_v44, 5  ;;  %v7202_v32 = vld [vmem:[%s6846_s8 + $0x94] sm:$0xf] }
  0x67   : > { %v505_v30 = vor.u32 %v504_v60, %v501_v6  ;;  %v497_v62 = vsel %vm6873_vm2, %v492_v16, %v496_v18  ;;  %v2955_v36 = vrot.slane %v6929_v48, 5  ;;  %v523_v38 = vshrl.u32 %v7165_v5, 16 }
  0x68   : > { %v526_v39 = vshll.u32 %v7165_v5, 16  ;;  %v5199_v41 = vcombine.low %v487_v14, %v497_v62  ;;  %6204 = vmatmul.mubr.msk.bf16.vlgmr.msra.gmra.mrb[0].mxu0 %vm723_vm3, %v5531_v3  ;;  %v515_v26 = vor.u32 %v514_v31, %v510_v19  ;;  %v2953_v44 = vsel %vm7106_vm6, %v5508_v28, %v2952_v25  ;;  %v251_v14 = vld [vmem:[%s6846_s8 + $0x98] sm:$0x1]  ;;  %v5494_v31 = vld [vmem:[%s6846_s8 + $0x3c] sm:$0xe] }
  0x69   : > { %v506_v43 = vrot.slane %v505_v30, 4  ;;  %6236 = vmatpush3.bf16.msra.mxu0 %v6991_v13  ;;  %v2954_v46 = vrot.slane %v2952_v25, 4  ;;  %v525_v48 = vrot.slane %v523_v38, 4  ;;  %v532_v49 = vshll.u32 %v7169_v10, 16  ;;  %v6648_v13 = vld [vmem:[%s8720_s1 + $0xd0] sm:$0xff]  }
  0x6a   : > { %v528_v47 = vrot.slane %v526_v39, 5  ;;  %6020 = vmatmul.mubr.msk.bf16.gmra.mrb[16].mxu1 %vm723_vm3, %v5199_v41  ;;  %v516_v51 = vrot.slane %v515_v26, 4  ;;  %v536_v52 = vshrl.u32 %v7169_v10, 16  ;;  %v542_v53 = vshll.u32 %v250_v37, 16  ;;  %6237 = vmatprep.subr.bf16.mxu0 %v6645_v35  ;;  %v7224_v62 = vld [vmem:[%s6846_s8 + $0x9c] sm:$0xf] }
  0x6b   : > { %v511_v50 = vsel %vm6873_vm2, %v506_v43, %v510_v19  ;;  %v2956_v55 = vsel %vm7106_vm6, %v2954_v46, %v2955_v36  ;;  %v534_v1 = vrot.slane %v532_v49, 5  ;;  %v5509_v54 = vrot.slane %v5493_v63, 9  ;;  %v7227_v41 = vld [vmem:[%s6846_s8 + $0xa0] sm:$0xf]  ;;  %v252_v46 = vld [vmem:[%s6846_s8 + $0xa4] sm:$0x1] }
  0x6c   : > { %v529_v18 = vor.u32 %v528_v47, %v525_v48  ;;  %v521_v59 = vsel %vm6873_vm2, %v516_v51, %v520_v34  ;;  %v5532_v61 = vcombine.low %v2953_v44, %v2956_v55  ;;  %v538_v3 = vrot.slane %v536_v52, 4  ;;  %v7238_v51 = vld [vmem:[%s8720_s1 + $0xe0] sm:$0xff]  }
  0x6d   : > { %v544_v4 = vrot.slane %v542_v53, 5  ;;  %v5200_v6 = vcombine.low %v511_v50, %v521_v59  ;;  %v2959_v9 = vrot.slane %v6951_v15, 5  ;;  %v2962_v20 = vrot.slane %v6967_v40, 5  ;;  %6238 = vmatpush3.bf16.msra.mxu0 %v6645_v35  ;;  %v6654_v15 = vld [vmem:[%s8720_s1 + $0xd8] sm:$0xff]  }
  0x6e   : > { %v530_v60 = vrot.slane %v529_v18, 4  ;;  %6207 = vmatprep.mubr.msk.bf16.mxu0 %vm723_vm3, %v5532_v61  ;;  %v539_v16 = vor.u32 %v538_v3, %v534_v1  ;;  %v547_v19 = vshrl.u32 %v7199_v27, 16  ;;  %v550_v28 = vshll.u32 %v7199_v27, 16  ;;  %6239 = vmatprep.subr.bf16.mxu0 %v6648_v13  ;;  %v5495_v18 = vld [vmem:[%s6846_s8 + $0x48] sm:$0xe] }
  0x6f   : > { %v556_v30 = vshll.u32 %v7202_v32, 16  ;;  %6023 = vmatprep.mubr.msk.bf16.mxu1 %vm723_vm3, %v5200_v6  ;;  %v2960_v34 = vsel %vm7106_vm6, %v5509_v54, %v2959_v9  ;;  %v2961_v25 = vrot.slane %v2959_v9, 4  ;;  %v560_v35 = vshrl.u32 %v7202_v32, 16  ;;  %v7247_v61 = vld [vmem:[%s6846_s8 + $0xa8] sm:$0xf] }
  0x70   : > { %v535_v40 = vsel %vm6873_vm2, %v530_v60, %v534_v1  ;;  %v540_v36 = vrot.slane %v539_v16, 4  ;;  %v549_v37 = vrot.slane %v547_v19, 4  ;;  %v552_v38 = vrot.slane %v550_v28, 5  ;;  %v7254_v60 = vld [vmem:[%s6846_s8 + $0xac] sm:$0xf] }
  0x71   : > { %v558_v39 = vrot.slane %v556_v30, 5  ;;  %v2963_v43 = vsel %vm7106_vm6, %v2961_v25, %v2962_v20  ;;  %v562_v26 = vrot.slane %v560_v35, 4  ;;  %v566_v44 = vshll.u32 %v251_v14, 16  ;;  %6240 = vmatpush3.bf16.msra.mxu0 %v6648_v13  ;;  %v253_v35 = vld [vmem:[%s6846_s8 + $0xb0] sm:$0x1] }
  0x72   : > { %v5510_v63 = vrot.slane %v5494_v31, 9  ;;  %v545_v48 = vsel %vm6873_vm2, %v540_v36, %v544_v4  ;;  %v5533_v47 = vcombine.low %v2960_v34, %v2963_v43  ;;  %v553_v49 = vor.u32 %v552_v38, %v549_v37  ;;  %6241 = vmatprep.subr.bf16.mxu0 %v6654_v15  ;;  %v5496_v36 = vld [vmem:[%s6846_s8 + $0x54] sm:$0xe] }
  0x73   : > { %v2966_v50 = vrot.slane %v6996_v21, 5  ;;  %v5201_v52 = vcombine.low %v535_v40, %v545_v48  ;;  %v563_v53 = vor.u32 %v562_v26, %v558_v39  ;;  %v568_v55 = vrot.slane %v566_v44, 5 }
  0x74   : > { %v2969_v13 = vrot.slane %v7001_v33, 5  ;;  %6208 = vmatmul.mubr.msk.bf16.gmra.mrb[4].mxu0 %vm723_vm3, %v5533_v47  ;;  %v554_v1 = vrot.slane %v553_v49, 4  ;;  %v571_v59 = vshrl.u32 %v7224_v62, 16  ;;  %v574_v4 = vshll.u32 %v7224_v62, 16 }
  0x75   : > { %v2967_v54 = vsel %vm7106_vm6, %v5510_v63, %v2966_v50  ;;  %v2968_v21 = vrot.slane %v2966_v50, 4  ;;  %6024 = vmatmul.mubr.msk.bf16.gmra.mrb[20].mxu1 %vm723_vm3, %v5201_v52  ;;  %v564_v3 = vrot.slane %v563_v53, 4  ;;  %v580_v6 = vshll.u32 %v7227_v41, 16  ;;  %6242 = vmatpush3.bf16.msra.mxu0 %v6654_v15  ;;  %v7276_v50 = vld [vmem:[%s6846_s8 + $0xb4] sm:$0xf] }
  0x76   : > { %v584_v33 = vshrl.u32 %v7227_v41, 16  ;;  %v559_v9 = vsel %vm6873_vm2, %v554_v1, %v558_v39  ;;  %v573_v14 = vrot.slane %v571_v59, 4  ;;  %v590_v16 = vshll.u32 %v252_v46, 16  ;;  %6275 = vmatprep.subr.bf16.mxu0 %v7238_v51 }
  0x77   : > { %v2970_v20 = vsel %vm7106_vm6, %v2968_v21, %v2969_v13  ;;  %v569_v19 = vsel %vm6873_vm2, %v564_v3, %v568_v55  ;;  %v576_v30 = vrot.slane %v574_v4, 5  ;;  %v582_v31 = vrot.slane %v580_v6, 5  ;;  %v7279_v13 = vld [vmem:[%s6846_s8 + $0xb8] sm:$0xf] }
  0x78   : > { %v5534_v28 = vcombine.low %v2967_v54, %v2970_v20  ;;  %v5202_v40 = vcombine.low %v559_v9, %v569_v19  ;;  %v586_v34 = vrot.slane %v584_v33, 4  ;;  %v592_v25 = vrot.slane %v590_v16, 5  ;;  %v254_v16 = vld [vmem:[%s6846_s8 + $0xbc] sm:$0x1]  ;;  %v5497_v19 = vld [vmem:[%s6846_s8 + $0x60] sm:$0xe] }
  0x79   : > { %v5511_v15 = vrot.slane %v5495_v18, 9  ;;  %v577_v37 = vor.u32 %v576_v30, %v573_v14  ;;  %v2973_v38 = vrot.slane %v7020_v2, 5  ;;  %v2976_v39 = vrot.slane %v7023_v7, 5 }
  0x7a   : > { %6211 = vmatprep.mubr.msk.bf16.mxu0 %vm723_vm3, %v5534_v28  ;;  %v595_v43 = vshrl.u32 %v7247_v61, 16  ;;  %6027 = vmatprep.mubr.msk.bf16.mxu1 %vm723_vm3, %v5202_v40  ;;  %v587_v26 = vor.u32 %v586_v34, %v582_v31  ;;  %v598_v44 = vshll.u32 %v7247_v61, 16  ;;  %v604_v63 = vshll.u32 %v7254_v60, 16 }
  0x7b   : > { %v608_v46 = vshrl.u32 %v7254_v60, 16  ;;  %v578_v48 = vrot.slane %v577_v37, 4  ;;  %v2974_v47 = vsel %vm7106_vm6, %v5511_v15, %v2973_v38  ;;  %v2975_v49 = vrot.slane %v2973_v38, 4  ;;  %v5423_v15 = vld [vmem:[%s6846_s8 + $0x70] sm:$0xf] }
  0x7c   : > { %v597_v2 = vrot.slane %v595_v43, 4  ;;  %v588_v7 = vrot.slane %v587_v26, 4  ;;  %v600_v52 = vrot.slane %v598_v44, 5  ;;  %v606_v53 = vrot.slane %v604_v63, 5  ;;  %v5498_v43 = vld [vmem:[%s6846_s8 + $0x6c] sm:$0xe] }
  0x7d   : > { %v610_v55 = vrot.slane %v608_v46, 4  ;;  %v583_v18 = vsel %vm6873_vm2, %v578_v48, %v582_v31  ;;  %v2977_v1 = vsel %vm7106_vm6, %v2975_v49, %v2976_v39  ;;  %v614_v54 = vshll.u32 %v253_v35, 16  ;;  %v5424_v35 = vld [vmem:[%s6846_s8 + $0x74] sm:$0x1] }
  0x7e   : > { %v5512_v21 = vrot.slane %v5496_v36, 9  ;;  %v593_v59 = vsel %vm6873_vm2, %v588_v7, %v592_v25  ;;  %v5535_v3 = vcombine.low %v2974_v47, %v2977_v1  ;;  %v601_v4 = vor.u32 %v600_v52, %v597_v2 }
  0x7f   : > { %v611_v6 = vor.u32 %v610_v55, %v606_v53  ;;  %v5203_v33 = vcombine.low %v583_v18, %v593_v59  ;;  %v616_v9 = vrot.slane %v614_v54, 5  ;;  %v2980_v20 = vrot.slane %v7043_v0, 5  ;;  %v5499_v59 = vld [vmem:[%s6846_s8 + $0x78] sm:$0xe] }
  0x80   : > { %v2983_v14 = vrot.slane %v7048_v11, 5  ;;  %6212 = vmatmul.mubr.msk.bf16.gmra.mrb[8].mxu0 %vm723_vm3, %v5535_v3  ;;  %v602_v28 = vrot.slane %v601_v4, 4  ;;  %v619_v31 = vshrl.u32 %v7276_v50, 16  ;;  %v622_v40 = vshll.u32 %v7276_v50, 16 }
  0x81   : > { %v612_v30 = vrot.slane %v611_v6, 4  ;;  %6028 = vmatmul.mubr.msk.bf16.gmra.mrb[24].mxu1 %vm723_vm3, %v5203_v33  ;;  %v2981_v34 = vsel %vm7106_vm6, %v5512_v21, %v2980_v20  ;;  %v2982_v25 = vrot.slane %v2980_v20, 4  ;;  %v628_v0 = vshll.u32 %v7279_v13, 16  ;;  %v7316_v6 = vld [vmem:[%s6846_s8 + $0x7c] sm:$0xf] }
  0x82   : > { %v632_v11 = vshrl.u32 %v7279_v13, 16  ;;  %v607_v36 = vsel %vm6873_vm2, %v602_v28, %v606_v53  ;;  %v621_v38 = vrot.slane %v619_v31, 4  ;;  %v624_v39 = vrot.slane %v622_v40, 5  ;;  %v6712_v28 = vld [vmem:[%s6846_s8] sm:$0xf] }
  0x83   : > { %v617_v37 = vsel %vm6873_vm2, %v612_v30, %v616_v9  ;;  %v2984_v44 = vsel %vm7106_vm6, %v2982_v25, %v2983_v14  ;;  %v630_v63 = vrot.slane %v628_v0, 5  ;;  %v638_v49 = vshll.u32 %v254_v16, 16  ;;  %v5429_v14 = vld [vmem:[%s6846_s8 + $0x88] sm:$0xf]  ;;  %v7332_v30 = vld [vmem:[%s6846_s8 + $0x4] sm:$0xf] }
  0x84   : > { %v5204_v26 = vcombine.low %v607_v36, %v617_v37  ;;  %v634_v46 = vrot.slane %v632_v11, 4  ;;  %v5536_v48 = vcombine.low %v2981_v34, %v2984_v44  ;;  %v625_v47 = vor.u32 %v624_v39, %v621_v38  ;;  %v5430_v40 = vld [vmem:[%s6846_s8 + $0x8c] sm:$0x1]  ;;  %v5500_v34 = vld [vmem:[%s6846_s8 + $0x84] sm:$0xe] }
  0x85   : > { %v5513_v2 = vrot.slane %v5497_v19, 9  ;;  %v2987_v52 = vrot.slane %v7074_v56, 5  ;;  %v2990_v53 = vrot.slane %v7082_v8, 5  ;;  %v5514_v55 = vrot.slane %v5498_v43, 9  ;;  %v7319_v8 = vld [vmem:[%s6846_s8 + $0x80] sm:$0x1] }
  0x86   : > { %6031 = vmatprep.mubr.msk.bf16.mxu1 %vm723_vm3, %v5204_v26  ;;  %v635_v7 = vor.u32 %v634_v46, %v630_v63  ;;  %6215 = vmatprep.mubr.msk.bf16.mxu0 %vm723_vm3, %v5536_v48  ;;  %v626_v18 = vrot.slane %v625_v47, 4  ;;  %v640_v1 = vrot.slane %v638_v49, 5  ;;  %v2994_v54 = vrot.slane %v5423_v15, 5  ;;  %v5432_v15 = vld [vmem:[%s6846_s8 + $0x94] sm:$0xf] }
  0x87   : > { %v2997_v21 = vrot.slane %v5424_v35, 5  ;;  %v2988_v4 = vsel %vm7106_vm6, %v5513_v2, %v2987_v52  ;;  %v2989_v56 = vrot.slane %v2987_v52, 4  ;;  %v5226_v31 = vcombine.low %v6712_v28, %v7332_v30  ;;  %v5433_v37 = vld [vmem:[%s6846_s8 + $0x98] sm:$0x1]  ;;  %v5501_v38 = vld [vmem:[%s6846_s8 + $0x90] sm:$0xe] }
  0x88   : > { %v636_v3 = vrot.slane %v635_v7, 4  ;;  %v631_v33 = vsel %vm6873_vm2, %v626_v18, %v630_v63  ;;  %v2995_v9 = vsel %vm7106_vm6, %v5514_v55, %v2994_v54  ;;  %v2996_v20 = vrot.slane %v2994_v54, 4  ;;  %v5435_v44 = vld [vmem:[%s6846_s8 + $0xa0] sm:$0xf]  ;;  %v5436_v2 = vld [vmem:[%s6846_s8 + $0xa4] sm:$0x1] }
  0x89   : > { %v2991_v19 = vsel %vm7106_vm6, %v2989_v56, %v2990_v53  ;;  %v5515_v36 = vrot.slane %v5499_v59, 9  ;;  %v3001_v39 = vrot.slane %v7316_v6, 5  ;;  %v3004_v43 = vrot.slane %v7319_v8, 5  ;;  %v6714_v7 = vld [vmem:[%s6846_s8 + $0xc] sm:$0xf] }
  0x8a   : > { %v641_v16 = vsel %vm6873_vm2, %v636_v3, %v640_v1  ;;  %v5537_v0 = vcombine.low %v2988_v4, %v2991_v19  ;;  %v2998_v11 = vsel %vm7106_vm6, %v2996_v20, %v2997_v21  ;;  %v5516_v26 = vrot.slane %v5500_v34, 9  ;;  %v7354_v52 = vld [vmem:[%s6846_s8 + $0x10] sm:$0xf]  ;;  %v5502_v1 = vld [vmem:[%s6846_s8 + $0x9c] sm:$0xe] }
  0x8b   : > { %v5205_v25 = vcombine.low %v631_v33, %v641_v16  ;;  %v5538_v35 = vcombine.low %v2995_v9, %v2998_v11  ;;  %v3008_v63 = vrot.slane %v5429_v14, 5  ;;  %v3011_v46 = vrot.slane %v5430_v40, 5  ;;  %v6716_v21 = vld [vmem:[%s6846_s8 + $0x18] sm:$0xf]  ;;  %v7364_v59 = vld [vmem:[%s6846_s8 + $0x1c] sm:$0xf] }
  0x8c   : > { %6216 = vmatmul.mubr.msk.bf16.gmra.mrb[12].mxu0 %vm723_vm3, %v5537_v0  ;;  %v3002_v48 = vsel %vm7106_vm6, %v5515_v36, %v3001_v39  ;;  %v3003_v47 = vrot.slane %v3001_v39, 4  ;;  %v3015_v49 = vrot.slane %v5432_v15, 5  ;;  %v5227_v53 = vcombine.low %v6714_v7, %v7354_v52  ;;  %v6653_v33 = vld [vmem:[%s8720_s1 + $0x48] sm:$0xff]   ;;  %v5439_v0 = vld [vmem:[%s6846_s8 + $0xb0] sm:$0x1]  ;;  %v6718_v11 = vld [vmem:[%s8720_s1 + $0x40] sm:$0xff]  }
  0x8d   : > { %6032 = vmatmul.mubr.msk.bf16.gmra.mrb[28].mxu1 %vm723_vm3, %v5205_v25  ;;  %6219 = vmatprep.mubr.msk.bf16.mxu0 %vm723_vm3, %v5538_v35  ;;  %v3009_v55 = vsel %vm7106_vm6, %v5516_v26, %v3008_v63  ;;  %v3010_v18 = vrot.slane %v3008_v63, 4  ;;  %v5228_v3 = vcombine.low %v6716_v21, %v7364_v59  ;;  %v5517_v4 = vrot.slane %v5501_v38, 9  ;;  %v5438_v40 = vld [vmem:[%s6846_s8 + $0xac] sm:$0xf]  ;;  %v5441_v25 = vld [vmem:[%s6846_s8 + $0xb8] sm:$0xf] }
  0x8e   : > { %6043 = vmatprep.mubr.msk.bf16.mxu1 %vm723_vm3, %v5226_v31  ;;  %v3005_v54 = vsel %vm7106_vm6, %v3003_v47, %v3004_v43  ;;  %v3018_v56 = vrot.slane %v5433_v37, 5  ;;  %v3017_v14 = vrot.slane %v3015_v49, 4  ;;  %v3022_v16 = vrot.slane %v5435_v44, 5  ;;  %v5503_v36 = vld [vmem:[%s6846_s8 + $0xa8] sm:$0xe]  ;;  %v6659_v26 = vld [vmem:[%s8720_s1 + $0x50] sm:$0xff]  }
  0x8f   : > { %v5539_v9 = vcombine.low %v3002_v48, %v3005_v54  ;;  %v3012_v20 = vsel %vm7106_vm6, %v3010_v18, %v3011_v46  ;;  %v5518_v28 = vrot.slane %v5502_v1, 9  ;;  %v3025_v31 = vrot.slane %v5436_v2, 5  ;;  %v5442_v44 = vld [vmem:[%s6846_s8 + $0xbc] sm:$0x1]  ;;  %v5504_v63 = vld [vmem:[%s6846_s8 + $0xb4] sm:$0xe] }
  0x90   : > { %v5540_v19 = vcombine.low %v3009_v55, %v3012_v20  ;;  %v3024_v34 = vrot.slane %v3022_v16, 4  ;;  %v3016_v15 = vsel %vm7106_vm6, %v5517_v4, %v3015_v49  ;;  %v3019_v35 = vsel %vm7106_vm6, %v3017_v14, %v3018_v56  ;;  %v6719_v46 = vld [vmem:[%s6846_s8 + $0x24] sm:$0xf]  ;;  %v7398_v48 = vld [vmem:[%s6846_s8 + $0x28] sm:$0xf] }
  0x91   : > { %v3029_v37 = vrot.slane %v5438_v40, 5  ;;  %v3023_v38 = vsel %vm7106_vm6, %v5518_v28, %v3022_v16  ;;  %v3036_v43 = vrot.slane %v5441_v25, 5  ;;  %v5229_v47 = vcombine.low %v6719_v46, %v7398_v48  ;;  %v6721_v2 = vld [vmem:[%s6846_s8 + $0x30] sm:$0xf]  ;;  %v7403_v7 = vld [vmem:[%s6846_s8 + $0x34] sm:$0xf] }
  0x92   : > { %v3026_v39 = vsel %vm7106_vm6, %v3024_v34, %v3025_v31  ;;  %v5541_v49 = vcombine.low %v3016_v15, %v3019_v35  ;;  %v5519_v18 = vrot.slane %v5503_v36, 9  ;;  %v3032_v54 = vrot.slane %v5439_v0, 5  ;;  %v5444_v56 = vld [vmem:[%s6846_s8 + $0xc4] sm:$0xf]  ;;  %v5505_v14 = vld [vmem:[%s6846_s8 + $0xc0] sm:$0xe] }
  0x93   : > { %v5542_v55 = vcombine.low %v3023_v38, %v3026_v39  ;;  %v3031_v1 = vrot.slane %v3029_v37, 4  ;;  %v5520_v21 = vrot.slane %v5504_v63, 9  ;;  %v3039_v4 = vrot.slane %v5442_v44, 5  ;;  %v5445_v31 = vld [vmem:[%s6846_s8 + $0xc8] sm:$0x1]  ;;  %v7427_v40 = vld [vmem:[%s8720_s1 + $0x60] sm:$0xff]  }
  0x94   : > { %6220 = vmatmul.mubr.msk.bf16.gmra.mrb[16].mxu0 %vm723_vm3, %v5539_v9  ;;  %v6669_v9 = vld [vmem:[%s8720_s1 + $0x58] sm:$0xff]   ;;  %v3043_v16 = vrot.slane %v5444_v56, 5  ;;  %v7431_v25 = vld [vmem:[%s6846_s8 + $0x40] sm:$0xf]  ;;  %v5521_v15 = vrot.slane %v5505_v14, 9  ;;  %v2392_v63 = vshll.u32 %v7316_v6, 16 }
  0x95   : > { %6044 = vmatmul.mubr.msk.bf16.vlgmr.msra.gmra.mrb[0].mxu1 %vm723_vm3, %v5227_v53  ;;  %6223 = vmatprep.mubr.msk.bf16.mxu0 %vm723_vm3, %v5540_v19  ;;  %v5230_v53 = vcombine.low %v6721_v2, %v7403_v7  ;;  %v3033_v20 = vsel %vm7106_vm6, %v3031_v1, %v3032_v54  ;;  %v3037_v19 = vsel %vm7106_vm6, %v5520_v21, %v3036_v43  ;;  %v6723_v34 = vld [vmem:[%s6846_s8 + $0x3c] sm:$0xf]  ;;  %v6725_v35 = vld [vmem:[%s6846_s8 + $0x48] sm:$0xf]  ;;  %v7436_v36 = vld [vmem:[%s6846_s8 + $0x4c] sm:$0xf] }
  0x96   : > { %6076 = vmatpush3.bf16.msra.mxu1 %v6718_v11  ;;  %6047 = vmatprep.mubr.msk.bf16.mxu1 %vm723_vm3, %v5228_v3  ;;  %v3038_v3 = vrot.slane %v3036_v43, 4  ;;  %v5231_v0 = vcombine.low %v6723_v34, %v7431_v25  ;;  %v3045_v39 = vrot.slane %v3043_v16, 4  ;;  %v3046_v43 = vrot.slane %v5445_v31, 5  ;;  %v1249_v56 = vld [vmem:[%s6846_s8 + $0x24] sm:$0xe] }
  0x97   : > { %6077 = vmatprep.subr.bf16.mxu1 %v6653_v33  ;;  %v2396_v46 = vshrl.u32 %v7316_v6, 16  ;;  %v5234_v2 = vcombine.low %v7086_v12, %v7089_v24  ;;  %v7456_v1 = vrot.slane %v2392_v63, 5  ;;  %v1306_v21 = vrot.slane %v7354_v52, 5  ;;  %v1247_v12 = vld [vmem:[%s6846_s8 + $0xc] sm:$0xe] }
  0x98   : > { %v3040_v28 = vsel %vm7106_vm6, %v3038_v3, %v3039_v4  ;;  %v3047_v44 = vsel %vm7106_vm6, %v3045_v39, %v3046_v43  ;;  %v6728_v24 = vld [vmem:[%s6846_s8 + $0x14] sm:$0x1]  ;;  %v1248_v3 = vld [vmem:[%s6846_s8 + $0x18] sm:$0xe]  ;;  %v1313_v52 = vrot.slane %v7364_v59, 5  ;;  %v2402_v4 = vshll.u32 %v7319_v8, 16 }
  0x99   : > { %v5544_v38 = vcombine.low %v3037_v19, %v3040_v28  ;;  %8739 = vst [vmem:[#allocation2_spill] sm:$0xff] %v7456_v1  ;;  %v7458_v54 = vrot.slane %v2396_v46, 4  ;;  %v1309_v6 = vrot.slane %v6728_v24, 5  ;;  %v5236_v19 = vcombine.low %v7140_v45, %v7151_v42  ;;  %v6665_v59 = vld [vmem:[%s6846_s8 + $0x30] sm:$0xff]   ;;  %v6671_v8 = vld [vmem:[%s8720_s1 + $0xe8] sm:$0xff]  }
  0x9a   : > { %6078 = vmatpush3.bf16.msra.mxu1 %v6653_v33  ;;  %v3030_v33 = vsel %vm7106_vm6, %v5519_v18, %v3029_v37  ;;  %v5232_v37 = vcombine.low %v6725_v35, %v7436_v36  ;;  %v5264_v31 = vrot.slane %v1248_v3, 9  ;;  %v1250_v34 = vld [vmem:[%s6846_s8 + $0x30] sm:$0xe]  ;;  %v5237_v35 = vcombine.low %v7165_v5, %v7169_v10  ;;  %v5642_v24 = vld [vmem:[%s6846_s8 + $0x18] sm:$0xf] }
  0x9b   : > { %6079 = vmatprep.subr.bf16.mxu1 %v6659_v26  ;;  %v5543_v11 = vcombine.low %v3030_v33, %v3033_v20  ;;  %v5235_v33 = vcombine.low %v7111_v58, %v7123_v17  ;;  %v6663_v20 = vld [vmem:[%s6846_s8 + $0x24] sm:$0xff]   ;;  %v5265_v58 = vrot.slane %v1249_v56, 9  ;;  %v1327_v17 = vrot.slane %v7403_v7, 5 }
  0x9c   : > { %6224 = vmatmul.mubr.msk.bf16.gmra.mrb[20].mxu0 %vm723_vm3, %v5541_v49  ;;  %v5238_v45 = vcombine.low %v7199_v27, %v7202_v32  ;;  %v5239_v39 = vcombine.low %v7224_v62, %v7227_v41  ;;  %v6736_v10 = vld [vmem:[%s6846_s8 + $0x64] sm:$0xf] }
  0x9d   : > { %6048 = vmatmul.mubr.msk.bf16.gmra.mrb[4].mxu1 %vm723_vm3, %v5229_v47  ;;  %6227 = vmatprep.mubr.msk.bf16.mxu0 %vm723_vm3, %v5542_v55  ;;  %v5233_v47 = vcombine.low %v7056_v22, %v7059_v23  ;;  %v6727_v55 = vld [vmem:[%s6846_s8 + $0x8] sm:$0x1]  ;;  %v1246_v22 = vld [vmem:[%s6846_s8] sm:$0xe]  ;;  %v1299_v23 = vrot.slane %v7332_v30, 5 }
  0x9e   : > { %6051 = vmatprep.mubr.msk.bf16.mxu1 %vm723_vm3, %v5230_v53  ;;  %6080 = vmatpush3.bf16.msra.mxu1 %v6659_v26  ;;  %v3044_v26 = vsel %vm7106_vm6, %v5521_v15, %v3043_v16  ;;  %v6660_v53 = vld [vmem:[%s6846_s8 + $0x18] sm:$0xff]   ;;  %v1302_v18 = vrot.slane %v6727_v55, 5  ;;  %v5262_v14 = vrot.slane %v1246_v22, 9  ;;  %v5263_v16 = vrot.slane %v1247_v12, 9  ;;  %v1252_v22 = vld [vmem:[%s6846_s8 + $0x48] sm:$0xe] }
  0x9f   : > { %6081 = vmatprep.subr.bf16.mxu1 %v6669_v9  ;;  %v5545_v49 = vcombine.low %v3044_v26, %v3047_v44  ;;  %v1301_v28 = vrot.slane %v1299_v23, 4  ;;  %v1334_v26 = vrot.slane %v7431_v25, 5  ;;  %v7504_v44 = vrot.slane %v2402_v4, 5  ;;  %v1251_v25 = vld [vmem:[%s6846_s8 + $0x3c] sm:$0xe] }
  0xa0   : > { %v7497_v43 = vsel %vm7106_vm6, %v5262_v14, %v1299_v23  ;;  %v7501_v7 = vsel %vm7106_vm6, %v5263_v16, %v1306_v21  ;;  %v1329_v55 = vrot.slane %v1327_v17, 4  ;;  %v5267_v3 = vrot.slane %v1251_v25, 9  ;;  %v6732_v4 = vld [vmem:[%s6846_s8 + $0x44] sm:$0x1]  ;;  %v6670_v14 = vld [vmem:[%s6846_s8 + $0x48] sm:$0xff]  }
  0xa1   : > { %8740 = vst [vmem:[#allocation3_spill] sm:$0xff] %v7504_v44  ;;  %v7510_v63 = vsel %vm7106_vm6, %v1301_v28, %v1302_v18  ;;  %v6731_v18 = vld [vmem:[%s6846_s8 + $0x38] sm:$0x1]  ;;  %v1337_v56 = vrot.slane %v6732_v4, 5  ;;  %v7558_v28 = vld [vmem:[%s6846_s8 + $0x54] sm:$0xe] }
  0xa2   : > { %6082 = vmatpush3.bf16.msra.mxu1 %v6669_v9  ;;  %v1320_v9 = vrot.slane %v7398_v48, 5  ;;  %v1308_v48 = vrot.slane %v1306_v21, 4  ;;  %v1330_v21 = vrot.slane %v6731_v18, 5  ;;  %v6733_v25 = vld [vmem:[%s6846_s8 + $0x50] sm:$0x1] }
  0xa3   : > { %6115 = vmatprep.subr.bf16.mxu1 %v7427_v40  ;;  %v5645_v18 = vld [vmem:[%s6846_s8 + $0x24] sm:$0xf] }
  0xa4   : > { %6228 = vmatmul.mubr.msk.bf16.gmra.mrb[24].mxu0 %vm723_vm3, %v5543_v11  ;;  %v6729_v11 = vld [vmem:[%s6846_s8 + $0x20] sm:$0x1]  ;;  %v1322_v42 = vrot.slane %v1320_v9, 4  ;;  %v7514_v46 = vsel %vm7106_vm6, %v1308_v48, %v1309_v6  ;;  %v7537_v23 = vsel %vm7106_vm6, %v5265_v58, %v1320_v9  ;;  %v5643_v6 = vld [vmem:[%s6846_s8 + $0x1c] sm:$0xf]  ;;  %v7566_v48 = vsel %vm7106_vm6, %v1329_v55, %v1330_v21 }
  0xa5   : > { %6052 = vmatmul.mubr.msk.bf16.gmra.mrb[8].mxu1 %vm723_vm3, %v5231_v0  ;;  %6231 = vmatprep.mubr.msk.bf16.mxu0 %vm723_vm3, %v5544_v38  ;;  %v1315_v0 = vrot.slane %v1313_v52, 4  ;;  %v1316_v15 = vrot.slane %v6729_v11, 5  ;;  %v3815_v58 = vshll.u32 %v5643_v6, 16  ;;  %v5644_v55 = vld [vmem:[%s6846_s8 + $0x20] sm:$0x1]  ;;  %v5269_v21 = vrot.slane %v7558_v28, 9 }
  0xa6   : > { %6055 = vmatprep.mubr.msk.bf16.mxu1 %vm723_vm3, %v5232_v37  ;;  %v6730_v37 = vld [vmem:[%s6846_s8 + $0x2c] sm:$0x1]  ;;  %v6673_v28 = vld [vmem:[%s6846_s8 + $0x54] sm:$0xff]  }
  0xa7   : > { %v1323_v38 = vrot.slane %v6730_v37, 5  ;;  %v7613_v32 = vrot.slane %v3815_v58, 5  ;;  %v5649_v58 = vld [vmem:[%s6846_s8 + $0x34] sm:$0xf] }
  0xa8   : > { %v3863_v9 = vshll.u32 %v5649_v58, 16 }
  0xa9   : > { %v7541_v12 = vsel %vm7106_vm6, %v1322_v42, %v1323_v38  ;;  %v7578_v42 = vsel %vm7106_vm6, %v5267_v3, %v1334_v26 }
  0xac   : > { %6232 = vmatmul.mubr.msk.bf16.gmra.mrb[28].mxu0 %vm723_vm3, %v5545_v49  ;;  %v6680_v49 = vld [vmem:[%s8720_s1 + $0xf0] sm:$0xff]  }
  0xad   : > { %6056 = vmatmul.mubr.msk.bf16.gmra.mrb[12].mxu1 %vm723_vm3, %v5233_v47  ;;  %6243 = vmatprep.mubr.msk.bf16.mxu0 %vm723_vm3, %v6660_v53  ;;  %v7518_v47 = vsel %vm7106_vm6, %v5264_v31, %v1313_v52  ;;  %v5266_v53 = vrot.slane %v1250_v34, 9  ;;  %v1336_v52 = vrot.slane %v1334_v26, 4  ;;  %v7569_v31 = vld [vmem:[%s6846_s8 + $0x60] sm:$0xe]  ;;  %v3806_v34 = vshrl.u32 %v5642_v24, 16 }
  0xae   : > { %6059 = vmatprep.mubr.msk.bf16.mxu1 %vm723_vm3, %v5234_v2  ;;  %v7528_v2 = vsel %vm7106_vm6, %v1315_v0, %v1316_v15  ;;  %v3809_v0 = vshll.u32 %v5642_v24, 16  ;;  %v5268_v15 = vrot.slane %v1252_v22, 9  ;;  %v6734_v22 = vld [vmem:[%s6846_s8 + $0x58] sm:$0xf]  ;;  %v5270_v5 = vrot.slane %v7569_v31, 9  ;;  %v6675_v31 = vld [vmem:[%s6846_s8 + $0x60] sm:$0xff]  }
  0xaf   : > { %v7582_v37 = vsel %vm7106_vm6, %v1336_v52, %v1337_v56  ;;  %v1348_v24 = vrot.slane %v6734_v22, 5  ;;  %v5646_v52 = vld [vmem:[%s6846_s8 + $0x28] sm:$0xf]  ;;  %v3808_v4 = vrot.slane %v3806_v34, 4  ;;  %v6737_v22 = vld [vmem:[%s6846_s8 + $0x70] sm:$0xf] }
  0xb0   : > { %v3811_v56 = vrot.slane %v3809_v0, 5  ;;  %v7626_v0 = vld [vmem:[%s8720_s1 + $0x100] sm:$0xff]   ;;  %v6738_v26 = vld [vmem:[%s6846_s8 + $0x68] sm:$0x1] }
  0xb1   : > { %v1358_v11 = vrot.slane %v6738_v26, 5  ;;  %v6739_v26 = vld [vmem:[%s6846_s8 + $0x74] sm:$0x1]  ;;  %v7653_v62 = vsel %vm7106_vm6, %v5269_v21, %v1348_v24 }
  0xb4   : > { %6244 = vmatmul.mubr.msk.bf16.vlgmr.msra.gmra.mrb[0].mxu0 %vm723_vm3, %v6663_v20  ;;  %v6667_v20 = vld [vmem:[%s6846_s8 + $0x3c] sm:$0xff]  }
  0xb5   : > { %6060 = vmatmul.mubr.msk.bf16.gmra.mrb[16].mxu1 %vm723_vm3, %v5235_v33  ;;  %6276 = vmatpush3.bf16.msra.mxu0 %v7238_v51  ;;  %v1341_v33 = vrot.slane %v7436_v36, 5  ;;  %v7562_v36 = vsel %vm7106_vm6, %v5266_v53, %v1327_v17  ;;  %v3819_v17 = vshrl.u32 %v5643_v6, 16  ;;  %v1344_v53 = vrot.slane %v6733_v25, 5  ;;  %v6735_v6 = vld [vmem:[%s6846_s8 + $0x5c] sm:$0x1] }
  0xb6   : > { %6063 = vmatprep.mubr.msk.bf16.mxu1 %vm723_vm3, %v5236_v19  ;;  %6247 = vmatprep.mubr.msk.bf16.mxu0 %vm723_vm3, %v6665_v59  ;;  %v1351_v3 = vrot.slane %v6735_v6, 5  ;;  %v1362_v6 = vrot.slane %v6737_v22, 5  ;;  %v3843_v25 = vshrl.u32 %v5646_v52, 16  ;;  %v5647_v19 = vld [vmem:[%s6846_s8 + $0x2c] sm:$0x1] }
  0xb7   : > { %6277 = vmatprep.subr.bf16.mxu0 %v6671_v8  ;;  %v1343_v38 = vrot.slane %v1341_v33, 4  ;;  %v7611_v27 = vsel %vm7106_vm6, %v5268_v15, %v1341_v33  ;;  %v3830_v33 = vshrl.u32 %v5645_v18, 16  ;;  %v3833_v15 = vshll.u32 %v5645_v18, 16 }
  0xb8   : > { %v3867_v18 = vshrl.u32 %v5649_v58, 16  ;;  %v1256_v58 = vld [vmem:[%s6846_s8 + $0x78] sm:$0xe] }
  0xb9   : > { %6278 = vmatpush3.bf16.msra.mxu0 %v6671_v8  ;;  %v6686_v8 = vld [vmem:[%s8720_s1 + $0xf8] sm:$0xff]   ;;  %v7621_v34 = vsel %vm7106_vm6, %v1343_v38, %v1344_v53  ;;  %v3832_v22 = vrot.slane %v3830_v33, 4  ;;  %v3835_v51 = vrot.slane %v3833_v15, 5  ;;  %v3849_v33 = vshll.u32 %v5647_v19, 16 }
  0xba   : > { %6279 = vmatprep.subr.bf16.mxu0 %v6680_v49  ;;  %v6679_v15 = vld [vmem:[%s6846_s8 + $0x78] sm:$0xff]  }
  0xbc   : > { %6248 = vmatmul.mubr.msk.bf16.gmra.mrb[4].mxu0 %vm723_vm3, %v6667_v20  ;;  %v5648_v20 = vld [vmem:[%s6846_s8 + $0x30] sm:$0xf] }
  0xbd   : > { %6064 = vmatmul.mubr.msk.bf16.gmra.mrb[20].mxu1 %vm723_vm3, %v5237_v35  ;;  %6251 = vmatprep.mubr.msk.bf16.mxu0 %vm723_vm3, %v6670_v14  ;;  %v1355_v35 = vrot.slane %v6736_v10, 5  ;;  %v7616_v14 = vld [vmem:[%s6846_s8 + $0x6c] sm:$0xe]  ;;  %v3839_v10 = vshll.u32 %v5646_v52, 16  ;;  %v3854_v38 = vshrl.u32 %v5648_v20, 16  ;;  %v3857_v53 = vshll.u32 %v5648_v20, 16 }
  0xbe   : > { %6067 = vmatprep.mubr.msk.bf16.mxu1 %vm723_vm3, %v5238_v45  ;;  %6280 = vmatpush3.bf16.msra.mxu0 %v6680_v49  ;;  %v3821_v45 = vrot.slane %v3819_v17, 4  ;;  %v3825_v49 = vshll.u32 %v5644_v55, 16  ;;  %v1350_v17 = vrot.slane %v1348_v24, 4  ;;  %v3812_v55 = vor.u32 %v3811_v56, %v3808_v4 }
  0xbf   : > { %6281 = vmatprep.subr.bf16.mxu0 %v6686_v8  ;;  %v1357_v30 = vrot.slane %v1355_v35, 4  ;;  %v5271_v52 = vrot.slane %v7616_v14, 9  ;;  %v1365_v4 = vrot.slane %v6739_v26, 5  ;;  %v7643_v56 = vrot.slane %v3839_v10, 5 }
  0xc0   : > { %v3822_v59 = vor.u32 %v3821_v45, %v7613_v32  ;;  %v7633_v16 = vrot.slane %v3825_v49, 5  ;;  %v3845_v20 = vrot.slane %v3843_v25, 4  ;;  %v5650_v45 = vld [vmem:[%s6846_s8 + $0x38] sm:$0x1]  ;;  %v8741_v14 = vcombine.low %v7247_v61, %v7254_v60 }
  0xc1   : > { %v7657_v41 = vsel %vm7106_vm6, %v1350_v17, %v1351_v3  ;;  %v3813_v25 = vrot.slane %v3812_v55, 4  ;;  %v7659_v61 = vrot.slane %v3863_v9, 5  ;;  %v3869_v60 = vrot.slane %v3867_v18, 4  ;;  %v6677_v3 = vld [vmem:[%s6846_s8 + $0x6c] sm:$0xff]   ;;  %v6740_v17 = vld [vmem:[%s6846_s8 + $0x7c] sm:$0xf] }
  0xc2   : > { %6282 = vmatpush3.bf16.msra.mxu0 %v6686_v8  ;;  %v1364_v8 = vrot.slane %v1362_v6, 4  ;;  %v3823_v49 = vrot.slane %v3822_v59, 4  ;;  %v7665_v21 = vsel %vm7106_vm6, %v5270_v5, %v1355_v35  ;;  %v3836_v24 = vor.u32 %v3835_v51, %v3832_v22  ;;  %v6741_v22 = vld [vmem:[%s6846_s8 + $0x88] sm:$0xf] }
  0xc3   : > { %6315 = vmatprep.subr.bf16.mxu0 %v7626_v0  ;;  %v3846_v9 = vor.u32 %v3845_v20, %v7643_v56  ;;  %v1369_v10 = vrot.slane %v6740_v17, 5  ;;  %v7676_v5 = vsel %vm7106_vm6, %v1357_v30, %v1358_v11  ;;  %v7680_v51 = vsel %vm7106_vm6, %v5271_v52, %v1362_v6  ;;  %v1257_v11 = vld [vmem:[%s6846_s8 + $0x84] sm:$0xe]  ;;  %v5652_v52 = vld [vmem:[%s6846_s8 + $0x40] sm:$0xf] }
  0xc4   : > { %6252 = vmatmul.mubr.msk.bf16.gmra.mrb[8].mxu0 %vm723_vm3, %v6673_v28  ;;  %v3859_v28 = vrot.slane %v3857_v53, 5  ;;  %v7684_v19 = vsel %vm7106_vm6, %v1364_v8, %v1365_v4  ;;  %v5651_v53 = vld [vmem:[%s6846_s8 + $0x3c] sm:$0xf]  ;;  %v3818_v55 = vsel %vm6873_vm2, %v3813_v25, %v7613_v32  ;;  %v3828_v18 = vsel %vm6873_vm2, %v3823_v49, %v7633_v16  ;;  %v6742_v20 = vld [vmem:[%s6846_s8 + $0x80] sm:$0x1] }
  0xc5   : > { %6068 = vmatmul.mubr.msk.bf16.gmra.mrb[24].mxu1 %vm723_vm3, %v5239_v39  ;;  %6255 = vmatprep.mubr.msk.bf16.mxu0 %vm723_vm3, %v6675_v31  ;;  %v3856_v39 = vrot.slane %v3854_v38, 4  ;;  %v3873_v38 = vshll.u32 %v5650_v45, 16  ;;  %v3870_v30 = vor.u32 %v3869_v60, %v7659_v61  ;;  %v1376_v6 = vrot.slane %v6741_v22, 5  ;;  %v6682_v22 = vld [vmem:[%s6846_s8 + $0x90] sm:$0xff]  }
  0xc6   : > { %6071 = vmatprep.mubr.msk.bf16.mxu1 %vm723_vm3, %v8741_v14  ;;  %v3837_v26 = vrot.slane %v3836_v24, 4  ;;  %v3851_v8 = vrot.slane %v3849_v33, 5  ;;  %v5272_v4 = vrot.slane %v1256_v58, 9  ;;  %v1372_v45 = vrot.slane %v6742_v20, 5  ;;  %v6681_v33 = vld [vmem:[%s6846_s8 + $0x84] sm:$0xff]  }
  0xc7   : > { %v3860_v35 = vor.u32 %v3859_v28, %v3856_v39  ;;  %v8742_v32 = vcombine.low %v7276_v50, %v7279_v13  ;;  %v3847_v16 = vrot.slane %v3846_v9, 4  ;;  %v1371_v14 = vrot.slane %v1369_v10, 4  ;;  %v5653_v13 = vld [vmem:[%s6846_s8 + $0x44] sm:$0x1]  ;;  %v6743_v58 = vld [vmem:[%s6846_s8 + $0x8c] sm:$0x1] }
  0xc8   : > { %v3875_v39 = vrot.slane %v3873_v38, 5  ;;  %v3878_v28 = vshrl.u32 %v5651_v53, 16  ;;  %v8743_v25 = vcombine.low %v7497_v43, %v7510_v63  ;;  %v5273_v50 = vrot.slane %v1257_v11, 9  ;;  %v5654_v43 = vld [vmem:[%s6846_s8 + $0x48] sm:$0xf] }
  0xc9   : > { %v3861_v49 = vrot.slane %v3860_v35, 4  ;;  %v3881_v60 = vshll.u32 %v5651_v53, 16  ;;  %v3887_v24 = vshll.u32 %v5652_v52, 16  ;;  %v1378_v9 = vrot.slane %v1376_v6, 4  ;;  %v7723_v11 = vld [vmem:[%s6846_s8 + $0x4c] sm:$0xf] }
  0xca   : > { %v1379_v17 = vrot.slane %v6743_v58, 5  ;;  %v3891_v38 = vshrl.u32 %v5652_v52, 16  ;;  %v7720_v53 = vsel %vm7106_vm6, %v5272_v4, %v1369_v10  ;;  %v6684_v52 = vld [vmem:[%s8720_s1 + $0x68] sm:$0xff]   ;;  %v7737_v10 = vsel %vm7106_vm6, %v1371_v14, %v1372_v45  ;;  %v7740_v20 = vld [vmem:[%s6846_s8 + $0x58] sm:$0xf] }
  0xcb   : > { %v3880_v4 = vrot.slane %v3878_v28, 4  ;;  %v3897_v14 = vshll.u32 %v5653_v13, 16  ;;  %v1258_v28 = vld [vmem:[%s6846_s8 + $0x90] sm:$0xe]  ;;  %v3902_v58 = vshrl.u32 %v5654_v43, 16  ;;  %v3905_v35 = vshll.u32 %v5654_v43, 16 }
  0xcc   : > { %6256 = vmatmul.mubr.msk.bf16.gmra.mrb[12].mxu0 %vm723_vm3, %v6677_v3  ;;  %v3871_v3 = vrot.slane %v3870_v30, 4  ;;  %v5657_v30 = vld [vmem:[%s6846_s8 + $0x54] sm:$0xf]  ;;  %v7755_v45 = vsel %vm7106_vm6, %v1378_v9, %v1379_v17  ;;  %v5274_v9 = vrot.slane %v1258_v28, 9  ;;  %v5660_v17 = vld [vmem:[%s6846_s8 + $0x60] sm:$0xf] }
  0xcd   : > { %6072 = vmatmul.mubr.msk.bf16.gmra.mrb[28].mxu1 %vm723_vm3, %v8742_v32  ;;  %6259 = vmatprep.mubr.msk.bf16.mxu0 %vm723_vm3, %v6679_v15  ;;  %v7714_v15 = vcombine.low %v3818_v55, %v3828_v18  ;;  %v3842_v55 = vsel %vm6873_vm2, %v3837_v26, %v7643_v56  ;;  %v3852_v18 = vsel %vm6873_vm2, %v3847_v16, %v3851_v8  ;;  %v3883_v56 = vrot.slane %v3881_v60, 5  ;;  %v6745_v63 = vld [vmem:[%s6846_s8 + $0x98] sm:$0x1] }
  0xce   : > { %6083 = vmatprep.mubr.msk.bf16.mxu1 %vm723_vm3, %v8743_v25  ;;  %v3866_v32 = vsel %vm6873_vm2, %v3861_v49, %v7659_v61  ;;  %v7747_v25 = vsel %vm7106_vm6, %v5273_v50, %v1376_v6  ;;  %v7749_v26 = vrot.slane %v3887_v24, 5  ;;  %v3876_v8 = vsel %vm6873_vm2, %v3871_v3, %v3875_v39  ;;  %v7766_v39 = vld [vmem:[%s6846_s8 + $0x50] sm:$0x1] }
  0xcf   : > { %v3893_v16 = vrot.slane %v3891_v38, 4  ;;  %v3911_v61 = vshll.u32 %v7723_v11, 16  ;;  %v3915_v6 = vshrl.u32 %v7723_v11, 16  ;;  %v8744_v49 = vcombine.low %v7501_v7, %v7514_v46  ;;  %v7781_v38 = vld [vmem:[%s6846_s8 + $0x64] sm:$0xf] }
  0xd0   : > { %v3926_v50 = vshrl.u32 %v5657_v30, 16  ;;  %v3929_v13 = vshll.u32 %v5657_v30, 16  ;;  %v3935_v60 = vshll.u32 %v7740_v20, 16  ;;  %v3939_v24 = vshrl.u32 %v7740_v20, 16  ;;  %8746 = vst [vmem:[#allocation4_spill] sm:$0xff] %v7781_v38 }
  0xd1   : > { %v8745_v3 = vcombine.low %v7518_v47, %v7528_v2  ;;  %v7775_v7 = vcombine.low %v3842_v55, %v3852_v18  ;;  %v6690_v47 = vld [vmem:[%s8720_s1 + $0x70] sm:$0xff]   ;;  %v7788_v2 = vcombine.low %v3866_v32, %v3876_v8  ;;  %v3894_v30 = vor.u32 %v3893_v16, %v7749_v26  ;;  %v6685_v18 = vld [vmem:[%s6846_s8 + $0xa8] sm:$0xff]  }
  0xd2   : > { %v7793_v55 = vrot.slane %v3897_v14, 5  ;;  %v3917_v28 = vrot.slane %v3915_v6, 4  ;;  %v3928_v32 = vrot.slane %v3926_v50, 4  ;;  %v3931_v8 = vrot.slane %v3929_v13, 5  ;;  %v6744_v16 = vld [vmem:[%s6846_s8 + $0x94] sm:$0xf] }
  0xd3   : > { %v3941_v46 = vrot.slane %v3939_v24, 4  ;;  %v1383_v14 = vrot.slane %v6744_v16, 5  ;;  %v3950_v6 = vshrl.u32 %v5660_v17, 16  ;;  %v3953_v59 = vshll.u32 %v5660_v17, 16 }
  0xd4   : > { %6260 = vmatmul.mubr.msk.bf16.gmra.mrb[16].mxu0 %vm723_vm3, %v6681_v33  ;;  %v3884_v33 = vor.u32 %v3883_v56, %v3880_v4  ;;  %v3904_v4 = vrot.slane %v3902_v58, 4  ;;  %v7796_v56 = vrot.slane %v3911_v61, 5  ;;  %v1386_v58 = vrot.slane %v6745_v63, 5  ;;  %v7809_v61 = vld [vmem:[%s6846_s8 + $0x5c] sm:$0x1] }
  0xd5   : > { %6084 = vmatmul.mubr.msk.bf16.vlgmr.msra.gmra.mrb[0].mxu1 %vm723_vm3, %v8744_v49  ;;  %6263 = vmatprep.mubr.msk.bf16.mxu0 %vm723_vm3, %v6682_v22  ;;  %v3907_v22 = vrot.slane %v3905_v35, 5  ;;  %v7799_v49 = vld [vmem:[%s6846_s8 + $0x9c] sm:$0xe]  ;;  %v3921_v35 = vshll.u32 %v7766_v39, 16  ;;  %8747 = vst [vmem:[#allocation5_spill] sm:$0xff] %v7809_v61  ;;  %v3959_v50 = vshll.u32 %v7781_v38, 16  ;;  %v8748_v17 = vcombine.low %v7537_v23, %v7541_v12 }
  0xd6   : > { %6116 = vmatpush3.bf16.msra.mxu1 %v7427_v40  ;;  %6087 = vmatprep.mubr.msk.bf16.mxu1 %vm723_vm3, %v8745_v3  ;;  %v6683_v40 = vld [vmem:[%s6846_s8 + $0x9c] sm:$0xff]   ;;  %v7801_v3 = vrot.slane %v3935_v60, 5  ;;  %v7803_v43 = vrot.slane %v3884_v33, 4  ;;  %v3963_v13 = vshrl.u32 %v7781_v38, 16  ;;  %v7813_v60 = vrot.slane %v3894_v30, 4 }
  0xd7   : > { %6117 = vmatprep.subr.bf16.mxu1 %v6684_v52  ;;  %v3908_v24 = vor.u32 %v3907_v22, %v3904_v4  ;;  %v3918_v63 = vor.u32 %v3917_v28, %v7796_v56  ;;  %v6746_v33 = vld [vmem:[%s6846_s8 + $0xa0] sm:$0xf]  ;;  %v7827_v30 = vsel %vm7106_vm6, %v5274_v9, %v1383_v14  ;;  %v3932_v31 = vor.u32 %v3931_v8, %v3928_v32  ;;  %v1260_v9 = vld [vmem:[%s6846_s8 + $0xa8] sm:$0xe]  ;;  %v6747_v28 = vld [vmem:[%s6846_s8 + $0xac] sm:$0xf] }
  0xd8   : > { %v1390_v16 = vrot.slane %v6746_v33, 5  ;;  %v3942_v44 = vor.u32 %v3941_v46, %v7801_v3  ;;  %v3945_v4 = vshll.u32 %v7809_v61, 16  ;;  %v8749_v22 = vcombine.low %v7562_v36, %v7566_v48  ;;  %v1261_v61 = vld [vmem:[%s6846_s8 + $0xb4] sm:$0xe] }
  0xd9   : > { %v1385_v23 = vrot.slane %v1383_v14, 4  ;;  %v3923_v12 = vrot.slane %v3921_v35, 5  ;;  %v1397_v32 = vrot.slane %v6747_v28, 5  ;;  %v3952_v46 = vrot.slane %v3950_v6, 4  ;;  %v6748_v35 = vld [vmem:[%s6846_s8 + $0xa4] sm:$0x1] }
  0xda   : > { %6118 = vmatpush3.bf16.msra.mxu1 %v6684_v52  ;;  %v6692_v52 = vld [vmem:[%s8720_s1 + $0x78] sm:$0xff]   ;;  %v3955_v8 = vrot.slane %v3953_v59, 5  ;;  %v7839_v33 = vrot.slane %v3959_v50, 5  ;;  %v3965_v36 = vrot.slane %v3963_v13, 4  ;;  %v3909_v48 = vrot.slane %v3908_v24, 4  ;;  %v6688_v59 = vld [vmem:[%s6846_s8 + $0xc0] sm:$0xff]  }
  0xdb   : > { %6119 = vmatprep.subr.bf16.mxu1 %v6690_v47  ;;  %v1392_v14 = vrot.slane %v1390_v16, 4  ;;  %v3933_v38 = vrot.slane %v3932_v31, 4  ;;  %v3947_v6 = vrot.slane %v3945_v4, 5  ;;  %v5276_v28 = vrot.slane %v1260_v9, 9 }
  0xdc   : > { %6264 = vmatmul.mubr.msk.bf16.gmra.mrb[20].mxu0 %vm723_vm3, %v6683_v40  ;;  %v5275_v40 = vrot.slane %v7799_v49, 9  ;;  %v6687_v49 = vld [vmem:[%s6846_s8 + $0xb4] sm:$0xff]   ;;  %v3890_v50 = vsel %vm6873_vm2, %v7803_v43, %v7749_v26  ;;  %v3900_v13 = vsel %vm6873_vm2, %v7813_v60, %v7793_v55  ;;  %v1399_v24 = vrot.slane %v1397_v32, 4  ;;  %v5663_v26 = vld [vmem:[%s6846_s8 + $0x6c] sm:$0xf] }
  0xdd   : > { %6088 = vmatmul.mubr.msk.bf16.gmra.mrb[4].mxu1 %vm723_vm3, %v8748_v17  ;;  %6267 = vmatprep.mubr.msk.bf16.mxu0 %vm723_vm3, %v6685_v18  ;;  %v3919_v18 = vrot.slane %v3918_v63, 4  ;;  %v1393_v17 = vrot.slane %v6748_v35, 5  ;;  %v6749_v63 = vld [vmem:[%s6846_s8 + $0xb0] sm:$0x1]  ;;  %v7858_v31 = vsel %vm7106_vm6, %v1385_v23, %v1386_v58  ;;  %v3966_v4 = vor.u32 %v3965_v36, %v7839_v33 }
  0xde   : > { %6091 = vmatprep.mubr.msk.bf16.mxu1 %vm723_vm3, %v8749_v22  ;;  %6120 = vmatpush3.bf16.msra.mxu1 %v6690_v47  ;;  %v7843_v22 = vld [vmem:[%s6846_s8 + $0x68] sm:$0x1]  ;;  %v3943_v47 = vrot.slane %v3942_v44, 4  ;;  %v1400_v35 = vrot.slane %v6749_v63, 5  ;;  %v3956_v44 = vor.u32 %v3955_v8, %v3952_v46  ;;  %v3914_v43 = vsel %vm6873_vm2, %v3909_v48, %v7796_v56 }
  0xdf   : > { %6121 = vmatprep.subr.bf16.mxu1 %v6692_v52  ;;  %v3969_v9 = vshll.u32 %v7843_v22, 16  ;;  %v3924_v55 = vsel %vm6873_vm2, %v3919_v18, %v3923_v12  ;;  %v7871_v58 = vsel %vm7106_vm6, %v5275_v40, %v1390_v16  ;;  %v7875_v60 = vsel %vm7106_vm6, %v1392_v14, %v1393_v17 }
  0xe0   : > { %v8751_v56 = vor.u32 %v7458_v54, %v7456_v1  ;;  %v8753_v16 = vcombine.low %v7578_v42, %v7582_v37  ;;  %v3938_v12 = vsel %vm6873_vm2, %v3933_v38, %v7801_v3  ;;  %v3948_v40 = vsel %vm6873_vm2, %v3943_v47, %v3947_v6  ;;  %v6751_v38 = vld [vmem:[%s6846_s8 + $0xb8] sm:$0xf]  ;;  %v7933_v47 = vld [vmem:[%s6846_s8 + $0x7c] sm:$0xf]  ;;  %v5669_v6 = vld [vmem:[%s6846_s8 + $0x84] sm:$0xf] }
  0xe1   : > { %v7900_v46 = vsel %vm7106_vm6, %v5276_v28, %v1397_v32  ;;  %v8754_v54 = vcombine.low %v7611_v27, %v7621_v34  ;;  %v7909_v42 = vsel %vm7106_vm6, %v1399_v24, %v1400_v35  ;;  %v5277_v37 = vrot.slane %v1261_v61, 9  ;;  %v7913_v32 = vld [vmem:[%s6846_s8 + $0x70] sm:$0xf]  ;;  %8756 = vst [vmem:[#allocation9_spill] sm:$0xff] %v7933_v47  ;;  %v7945_v35 = vld [vmem:[%s6846_s8 + $0x88] sm:$0xf] }
  0xe2   : > { %6122 = vmatpush3.bf16.msra.mxu1 %v6692_v52  ;;  %v7880_v52 = vld [vmem:[%s8720_s1 + $0x80] sm:$0xff]   ;;  %v7886_v23 = vrot.slane %v8751_v56, 4  ;;  %v1404_v3 = vrot.slane %v6751_v38, 5  ;;  %8755 = vst [vmem:[#allocation8_spill] sm:$0xff] %v7913_v32  ;;  %v3974_v8 = vshrl.u32 %v5663_v26, 16  ;;  %v7915_v27 = vcombine.low %v3890_v50, %v3900_v13  ;;  %v6689_v28 = vld [vmem:[%s6846_s8 + $0xcc] sm:$0xff]  }
  0xe3   : > { %8750 = vst [vmem:[#allocation6_spill] sm:$0xff] %v7880_v52  ;;  %6355 = vmatprep.subr.bf16.mxu1 %v7880_v52  ;;  %v7917_v34 = vrot.slane %v3956_v44, 4  ;;  %v7919_v36 = vrot.slane %v3966_v4, 4  ;;  %v7921_v48 = vrot.slane %v3969_v9, 5  ;;  %v7925_v61 = vcombine.low %v3914_v43, %v3924_v55  ;;  %v7940_v50 = vld [vmem:[%s6846_s8 + $0xbc] sm:$0x1] }
  0xe4   : > { %8752 = vst [vmem:[#allocation7_spill] sm:$0xff] %v7886_v23  ;;  %6268 = vmatmul.mubr.msk.bf16.gmra.mrb[24].mxu0 %vm723_vm3, %v6687_v49  ;;  %v7929_v17 = vcombine.low %v3938_v12, %v3948_v40  ;;  %v5666_v49 = vld [vmem:[%s6846_s8 + $0x78] sm:$0xf]  ;;  %v3977_v24 = vshll.u32 %v5663_v26, 16  ;;  %v3983_v63 = vshll.u32 %v7913_v32, 16  ;;  %8757 = vst [vmem:[#allocation10_spill] sm:$0xff] %v7945_v35  ;;  %v7949_v44 = vsel %vm7106_vm6, %v5277_v37, %v1404_v3 }
  0xe5   : > { %6092 = vmatmul.mubr.msk.bf16.gmra.mrb[8].mxu1 %vm723_vm3, %v8753_v16  ;;  %6271 = vmatprep.mubr.msk.bf16.mxu0 %vm723_vm3, %v6688_v59  ;;  %v7951_v4 = vrot.slane %v1404_v3, 4  ;;  %v7953_v9 = vrot.slane %v3974_v8, 4  ;;  %v3987_v43 = vshrl.u32 %v7913_v32, 16  ;;  %v5672_v55 = vld [vmem:[%s6846_s8 + $0x90] sm:$0xf]  ;;  %v3998_v16 = vshrl.u32 %v5666_v49, 16 }
  0xe6   : > { %6095 = vmatprep.mubr.msk.bf16.mxu1 %vm723_vm3, %v8754_v54  ;;  %v4001_v12 = vshll.u32 %v5666_v49, 16  ;;  %v7966_v40 = vld [vmem:[%s6846_s8 + $0x94] sm:$0xf]  ;;  %v4007_v37 = vshll.u32 %v7933_v47, 16  ;;  %v4011_v38 = vshrl.u32 %v7933_v47, 16  ;;  %v4022_v3 = vshrl.u32 %v5669_v6, 16 }
  0xe7   : > { %8758 = vst [vmem:[#allocation11_spill] sm:$0xff] %v7966_v40  ;;  %v7969_v54 = vld [vmem:[%s6846_s8 + $0x74] sm:$0x1]  ;;  %v4025_v8 = vshll.u32 %v5669_v6, 16  ;;  %v8760_v59 = vcombine.low %v7653_v62, %v7657_v41  ;;  %v4031_v49 = vshll.u32 %v7945_v35, 16  ;;  %v4035_v14 = vshrl.u32 %v7945_v35, 16 }
  0xe8   : > { %8759 = vst [vmem:[#allocation12_spill] sm:$0xff] %v7969_v54  ;;  %v4046_v26 = vshrl.u32 %v5672_v55, 16  ;;  %v4049_v56 = vshll.u32 %v5672_v55, 16  ;;  %v8761_v18 = vcombine.low %v7665_v21, %v7676_v5  ;;  %v3979_v62 = vrot.slane %v3977_v24, 5  ;;  %v7989_v6 = vld [vmem:[%s6846_s8 + $0x80] sm:$0x1] }
  0xe9   : > { %v7986_v41 = vrot.slane %v3983_v63, 5  ;;  %v3989_v55 = vrot.slane %v3987_v43, 4  ;;  %v3993_v13 = vshll.u32 %v7969_v54, 16  ;;  %v4000_v21 = vrot.slane %v3998_v16, 4  ;;  %v7998_v24 = vld [vmem:[%s6846_s8 + $0x8c] sm:$0x1] }
  0xea   : > { %v4003_v5 = vrot.slane %v4001_v12, 5  ;;  %v7995_v1 = vrot.slane %v4007_v37, 5  ;;  %v4024_v63 = vrot.slane %v4022_v3, 4  ;;  %v4027_v52 = vrot.slane %v4025_v8, 5  ;;  %v8006_v43 = vld [vmem:[%s6846_s8 + $0x98] sm:$0x1] }
  0xeb   : > { %v8000_v35 = vrot.slane %v4031_v49, 5  ;;  %v4037_v23 = vrot.slane %v4035_v14, 4  ;;  %v4048_v47 = vrot.slane %v4046_v26, 4  ;;  %v4051_v32 = vrot.slane %v4049_v56, 5  ;;  %8763 = vst [vmem:[#allocation14_spill] sm:$0xff] %v8006_v43 }
  0xec   : > { %6272 = vmatmul.mubr.msk.bf16.gmra.mrb[28].mxu0 %vm723_vm3, %v6689_v28  ;;  %v4055_v28 = vshll.u32 %v7966_v40, 16  ;;  %v3980_v3 = vor.u32 %v3979_v62, %v7953_v9  ;;  %v3990_v8 = vor.u32 %v3989_v55, %v7986_v41  ;;  %v4004_v14 = vor.u32 %v4003_v5, %v4000_v21 }
  0xed   : > { %6096 = vmatmul.mubr.msk.bf16.gmra.mrb[12].mxu1 %vm723_vm3, %v8760_v59  ;;  %6283 = vmatprep.mubr.msk.bf16.mxu0 %vm723_vm3, %v7714_v15  ;;  %v4059_v59 = vshrl.u32 %v7966_v40, 16  ;;  %v4013_v15 = vrot.slane %v4011_v38, 4  ;;  %v8003_v40 = vld [vmem:[%s6846_s8 + $0xa0] sm:$0xf]  ;;  %v6693_v38 = vld [vmem:[%s8720_s1 + $0x108] sm:$0xff]   ;;  %v4017_v26 = vshll.u32 %v7989_v6, 16  ;;  %v4028_v49 = vor.u32 %v4027_v52, %v4024_v63 }
  0xee   : > { %6099 = vmatprep.mubr.msk.bf16.mxu1 %vm723_vm3, %v8761_v18  ;;  %v5675_v18 = vld [vmem:[%s6846_s8 + $0x9c] sm:$0xf]  ;;  %8762 = vst [vmem:[#allocation13_spill] sm:$0xff] %v8003_v40  ;;  %v8008_v54 = vrot.slane %v4055_v28, 5  ;;  %v4079_v28 = vshll.u32 %v8003_v40, 16  ;;  %v4038_v9 = vor.u32 %v4037_v23, %v8000_v35  ;;  %v4041_v62 = vshll.u32 %v7998_v24, 16 }
  0xef   : > { %v4061_v16 = vrot.slane %v4059_v59, 4  ;;  %v4070_v12 = vshrl.u32 %v5675_v18, 16  ;;  %v4073_v37 = vshll.u32 %v5675_v18, 16  ;;  %v4014_v56 = vor.u32 %v4013_v15, %v7995_v1 }
  0xf0   : > { %v4083_v59 = vshrl.u32 %v8003_v40, 16  ;;  %v8764_v18 = vcombine.low %v7680_v51, %v7684_v19  ;;  %v4052_v55 = vor.u32 %v4051_v32, %v4048_v47  ;;  %v4065_v52 = vshll.u32 %v8006_v43, 16  ;;  %v6695_v19 = vld [vmem:[%s8720_s1 + $0x110] sm:$0xff]   ;;  %v5678_v47 = vld [vmem:[%s6846_s8 + $0xa8] sm:$0xf] }
  0xf1   : > { %v8765_v21 = vcombine.low %v7720_v53, %v7737_v10  ;;  %v3995_v51 = vrot.slane %v3993_v13, 5  ;;  %v4072_v23 = vrot.slane %v4070_v12, 4  ;;  %v4075_v5 = vrot.slane %v4073_v37, 5  ;;  %v8043_v40 = vld [vmem:[%s6846_s8 + $0xa4] sm:$0x1] }
  0xf2   : > { %v3991_v32 = vrot.slane %v3990_v8, 4  ;;  %v4005_v53 = vrot.slane %v4004_v14, 4  ;;  %v4019_v10 = vrot.slane %v4017_v26, 5  ;;  %v4015_v13 = vrot.slane %v4014_v56, 4 }
  0xf3   : > { %v4029_v15 = vrot.slane %v4028_v49, 4  ;;  %v8040_v63 = vrot.slane %v4079_v28, 5  ;;  %v4053_v12 = vrot.slane %v4052_v55, 4  ;;  %v4067_v37 = vrot.slane %v4065_v52, 5 }
  0xf4   : > { %6284 = vmatmul.mubr.msk.bf16.vlgmr.msra.gmra.mrb[0].mxu0 %vm723_vm3, %v7775_v7  ;;  %v4062_v7 = vor.u32 %v4061_v16, %v8008_v54  ;;  %v4043_v16 = vrot.slane %v4041_v62, 5  ;;  %v4076_v43 = vor.u32 %v4075_v5, %v4072_v23  ;;  %v4094_v8 = vshrl.u32 %v5678_v47, 16 }
  0xf5   : > { %6100 = vmatmul.mubr.msk.bf16.gmra.mrb[16].mxu1 %vm723_vm3, %v8764_v18  ;;  %6316 = vmatpush3.bf16.msra.mxu0 %v7626_v0  ;;  %v3981_v0 = vrot.slane %v3980_v3, 4  ;;  %v4085_v18 = vrot.slane %v4083_v59, 4  ;;  %v8046_v3 = vld [vmem:[%s6846_s8 + $0xac] sm:$0xf]  ;;  %v4097_v14 = vshll.u32 %v5678_v47, 16  ;;  %v8766_v26 = vrot.slane %v7940_v50, 5 }
  0xf6   : > { %6103 = vmatprep.mubr.msk.bf16.mxu1 %vm723_vm3, %v8765_v21  ;;  %6287 = vmatprep.mubr.msk.bf16.mxu0 %vm723_vm3, %v7788_v2  ;;  %v4039_v21 = vrot.slane %v4038_v9, 4  ;;  %v4063_v2 = vrot.slane %v4062_v7, 4  ;;  %v4010_v28 = vsel %vm6873_vm2, %v4005_v53, %v7995_v1  ;;  %v4020_v50 = vsel %vm6873_vm2, %v4015_v13, %v4019_v10  ;;  %v6700_v9 = vld [vmem:[%s8720_s1 + $0x118] sm:$0xff]   ;;  %v5739_v47 = vld [vmem:[%s6846_s8 + $0x54] sm:$0xe] }
  0xf7   : > { %6317 = vmatprep.subr.bf16.mxu0 %v6693_v38  ;;  %v8053_v56 = vsel %vm7106_vm6, %v7951_v4, %v8766_v26  ;;  %v3986_v49 = vsel %vm6873_vm2, %v3981_v0, %v7986_v41  ;;  %v4034_v4 = vsel %vm6873_vm2, %v4029_v15, %v8000_v35  ;;  %v4086_v59 = vor.u32 %v4085_v18, %v8040_v63 }
  0xf8   : > { %v4089_v41 = vshll.u32 %v8043_v40, 16  ;;  %v8767_v1 = vcombine.low %v7747_v25, %v7755_v45  ;;  %v4044_v62 = vsel %vm6873_vm2, %v4039_v21, %v4043_v16  ;;  %v4058_v35 = vsel %vm6873_vm2, %v4053_v12, %v8008_v54  ;;  %v8098_v54 = vld [vmem:[%s6846_s8 + $0xb0] sm:$0x1]  ;;  %v5740_v12 = vld [vmem:[%s6846_s8 + $0x60] sm:$0xe] }
  0xf9   : > { %6318 = vmatpush3.bf16.msra.mxu0 %v6693_v38  ;;  %v3996_v38 = vsel %vm6873_vm2, %v3991_v32, %v3995_v51  ;;  %v4103_v55 = vshll.u32 %v8046_v3, 16  ;;  %v4107_v52 = vshrl.u32 %v8046_v3, 16  ;;  %v5738_v51 = vld [vmem:[%s6846_s8 + $0x48] sm:$0xe]  ;;  %v8768_v25 = vcombine.low %v7827_v30, %v7858_v31  ;;  %v5681_v32 = vld [vmem:[%s6846_s8 + $0xb4] sm:$0xf] }
  0xfa   : > { %6319 = vmatprep.subr.bf16.mxu0 %v6695_v19  ;;  %v4068_v45 = vsel %vm6873_vm2, %v4063_v2, %v4067_v37  ;;  %v4096_v7 = vrot.slane %v4094_v8, 4  ;;  %v4099_v23 = vrot.slane %v4097_v14, 5  ;;  %v8769_v30 = vsel %vm6873_vm2, %v7919_v36, %v7921_v48  ;;  %v8771_v14 = vld [vmem:[#allocation5_spill] sm:$0xff] }
  0xfb   : > { %v8770_v31 = vsel %vm6873_vm2, %v7917_v34, %v7839_v33  ;;  %v5301_v5 = vcombine.low %v7949_v44, %v8053_v56  ;;  %v8114_v0 = vcombine.low %v4010_v28, %v4020_v50  ;;  %v8117_v53 = vcombine.low %v4034_v4, %v4044_v62  ;;  %v8149_v50 = vld [vmem:[%s6846_s8 + $0xb8] sm:$0xf] }
  0xfc   : > { %6288 = vmatmul.mubr.msk.bf16.gmra.mrb[4].mxu0 %vm723_vm3, %v7915_v27  ;;  %v8095_v27 = vrot.slane %v4076_v43, 4  ;;  %v8112_v43 = vcombine.low %v3986_v49, %v3996_v38  ;;  %v4087_v10 = vrot.slane %v4086_v59, 4  ;;  %v4091_v36 = vrot.slane %v4089_v41, 5  ;;  %v5741_v49 = vld [vmem:[%s6846_s8 + $0x6c] sm:$0xe] }
  0xfd   : > { %6104 = vmatmul.mubr.msk.bf16.gmra.mrb[20].mxu1 %vm723_vm3, %v8767_v1  ;;  %6291 = vmatprep.mubr.msk.bf16.mxu0 %vm723_vm3, %v7925_v61  ;;  %v5704_v61 = vcombine.low %v8770_v31, %v8769_v30  ;;  %v5754_v48 = vrot.slane %v5738_v51, 9  ;;  %v8120_v33 = vcombine.low %v4058_v35, %v4068_v45  ;;  %v8122_v34 = vrot.slane %v4103_v55, 5  ;;  %v5684_v45 = vld [vmem:[%s6846_s8 + $0xc0] sm:$0xf] }
  0xfe   : > { %6107 = vmatprep.mubr.msk.bf16.mxu1 %vm723_vm3, %v8768_v25  ;;  %6320 = vmatpush3.bf16.msra.mxu0 %v6695_v19  ;;  %v4109_v13 = vrot.slane %v4107_v52, 4  ;;  %v4113_v15 = vshll.u32 %v8098_v54, 16  ;;  %v4082_v19 = vsel %vm6873_vm2, %v8095_v27, %v8040_v63  ;;  %v4100_v18 = vor.u32 %v4099_v23, %v4096_v7  ;;  %v8776_v52 = vld [vmem:[#allocation12_spill] sm:$0xff] }
  0xff   : > { %6321 = vmatprep.subr.bf16.mxu0 %v6700_v9  ;;  %v4605_v21 = vrot.slane %v7723_v11, 5  ;;  %v4608_v16 = vrot.slane %v7766_v39, 5  ;;  %v4118_v37 = vshrl.u32 %v5681_v32, 16  ;;  %v5755_v2 = vrot.slane %v5739_v47, 9 }
 0x100   : > { %v4612_v8 = vrot.slane %v7740_v20, 5  ;;  %v4615_v26 = vrot.slane %v8771_v14, 5  ;;  %v4092_v38 = vsel %vm6873_vm2, %v4087_v10, %v4091_v36  ;;  %v4121_v28 = vshll.u32 %v5681_v32, 16  ;;  %v5742_v32 = vld [vmem:[%s6846_s8 + $0x78] sm:$0xe]  ;;  %v6694_v10 = vld [vmem:[%s6846_s8 + $0xc] sm:$0xff]  }
 0x101   : > { %v8139_v63 = vsel %vm7106_vm6, %v5754_v48, %v4605_v21  ;;  %v4607_v11 = vrot.slane %v4605_v21, 4  ;;  %v8772_v39 = vcombine.low %v7871_v58, %v7875_v60  ;;  %v4110_v20 = vor.u32 %v4109_v13, %v8122_v34  ;;  %v8774_v60 = vld [vmem:[#allocation4_spill] sm:$0xff] }
 0x102   : > { %6322 = vmatpush3.bf16.msra.mxu0 %v6700_v9  ;;  %v8153_v4 = vsel %vm7106_vm6, %v5755_v2, %v4612_v8  ;;  %v4614_v59 = vrot.slane %v4612_v8, 4  ;;  %v5756_v41 = vrot.slane %v5740_v12, 9  ;;  %v8773_v9 = vcombine.low %v7900_v46, %v7909_v42  ;;  %v8775_v42 = vld [vmem:[#allocation8_spill] sm:$0xff]  ;;  %v8207_v12 = vld [vmem:[%s6846_s8 + $0xc4] sm:$0xf] }
 0x103   : > { %v8162_v58 = vsel %vm7106_vm6, %v4607_v11, %v4608_v16  ;;  %v4622_v1 = vrot.slane %v7843_v22, 5  ;;  %v5757_v62 = vrot.slane %v5741_v49, 9  ;;  %v4626_v55 = vrot.slane %v8775_v42, 5  ;;  %v8227_v49 = vld [vmem:[%s6846_s8 + $0xbc] sm:$0x1]  ;;  %v8780_v42 = vld [vmem:[#allocation10_spill] sm:$0xff] }
 0x104   : > { %6292 = vmatmul.mubr.msk.bf16.gmra.mrb[8].mxu0 %vm723_vm3, %v7929_v17  ;;  %v4619_v17 = vrot.slane %v8774_v60, 5  ;;  %v5778_v35 = vcombine.low %v8139_v63, %v8162_v58  ;;  %v8170_v46 = vsel %vm7106_vm6, %v4614_v59, %v4615_v26  ;;  %v4629_v51 = vrot.slane %v8776_v52, 5  ;;  %v5743_v26 = vld [vmem:[%s6846_s8 + $0x84] sm:$0xe]  ;;  %v8779_v59 = vld [vmem:[#allocation7_spill] sm:$0xff]  ;;  %v6696_v52 = vld [vmem:[%s6846_s8 + $0x18] sm:$0xff]  }
 0x105   : > { %6108 = vmatmul.mubr.msk.bf16.gmra.mrb[24].mxu1 %vm723_vm3, %v8772_v39  ;;  %6295 = vmatprep.mubr.msk.bf16.mxu0 %vm723_vm3, %v5704_v61  ;;  %v4127_v25 = vshll.u32 %v8149_v50, 16  ;;  %v5779_v22 = vcombine.low %v8153_v4, %v8170_v46  ;;  %v8182_v23 = vrot.slane %v4113_v15, 5  ;;  %v4131_v30 = vshrl.u32 %v8149_v50, 16  ;;  %v5425_v15 = vld [vmem:[%s6846_s8 + $0x78] sm:$0xf] }
 0x106   : > { %6111 = vmatprep.mubr.msk.bf16.mxu1 %vm723_vm3, %v8773_v9  ;;  %v8180_v27 = vsel %vm7106_vm6, %v5756_v41, %v4619_v17  ;;  %v4621_v7 = vrot.slane %v4619_v17, 4  ;;  %v8187_v31 = vsel %vm7106_vm6, %v5757_v62, %v4626_v55  ;;  %v4628_v61 = vrot.slane %v4626_v55, 4  ;;  %v6769_v46 = vld [vmem:[%s6846_s8 + $0x8c] sm:$0x1] }
 0x107   : > { %v8191_v36 = vcombine.low %v4082_v19, %v4092_v38  ;;  %v8193_v48 = vrot.slane %v4100_v18, 4  ;;  %v8195_v47 = vrot.slane %v4118_v37, 4  ;;  %v8202_v21 = vrot.slane %v4110_v20, 4 }
 0x108   : > { %v8199_v13 = vsel %vm7106_vm6, %v4621_v7, %v4622_v1  ;;  %v8204_v16 = vrot.slane %v4121_v28, 5  ;;  %v8213_v18 = vsel %vm7106_vm6, %v4628_v61, %v4629_v51  ;;  %v8215_v37 = vrot.slane %v4127_v25, 5  ;;  %v8777_v28 = vld [vmem:[#allocation9_spill] sm:$0xff]  ;;  %v6697_v61 = vld [vmem:[%s6846_s8 + $0x24] sm:$0xff]  }
 0x109   : > { %v5780_v19 = vcombine.low %v8180_v27, %v8199_v13  ;;  %v4142_v2 = vshrl.u32 %v5684_v45, 16  ;;  %v5781_v8 = vcombine.low %v8187_v31, %v8213_v18  ;;  %v5758_v14 = vrot.slane %v5742_v32, 9 }
 0x10a   : > { %v4145_v38 = vshll.u32 %v5684_v45, 16  ;;  %v4633_v11 = vrot.slane %v8777_v28, 5  ;;  %v4636_v39 = vrot.slane %v7989_v6, 5  ;;  %v2383_v20 = vshrl.u32 %v5425_v15, 16  ;;  %v5687_v45 = vld [vmem:[%s6846_s8 + $0xcc] sm:$0xf] }
 0x10b   : > { %v4151_v44 = vshll.u32 %v8207_v12, 16  ;;  %v4155_v56 = vshrl.u32 %v8207_v12, 16  ;;  %v5759_v17 = vrot.slane %v5743_v26, 9  ;;  %v4137_v1 = vshll.u32 %v8227_v49, 16  ;;  %v5744_v26 = vld [vmem:[%s6846_s8 + $0x90] sm:$0xe] }
 0x10c   : > { %6296 = vmatmul.mubr.msk.bf16.gmra.mrb[12].mxu0 %vm723_vm3, %v8112_v43  ;;  %v8778_v43 = vld [vmem:[#allocation3_spill] sm:$0xff]  ;;  %v8242_v6 = vsel %vm7106_vm6, %v5758_v14, %v4633_v11  ;;  %v4635_v9 = vrot.slane %v4633_v11, 4  ;;  %v2385_v60 = vrot.slane %v2383_v20, 4  ;;  %v4640_v55 = vrot.slane %v8780_v42, 5 }
 0x10d   : > { %6112 = vmatmul.mubr.msk.bf16.gmra.mrb[28].mxu1 %vm723_vm3, %v5301_v5  ;;  %6299 = vmatprep.mubr.msk.bf16.mxu0 %vm723_vm3, %v8114_v0  ;;  %v2386_v5 = vshll.u32 %v5425_v15, 16  ;;  %v2405_v41 = vsel %vm6873_vm2, %v8779_v59, %v8778_v43  ;;  %v4133_v0 = vrot.slane %v4131_v30, 4  ;;  %v4106_v51 = vsel %vm6873_vm2, %v8193_v48, %v8122_v34 }
 0x10e   : > { %6123 = vmatprep.mubr.msk.bf16.mxu1 %vm723_vm3, %v6694_v10  ;;  %v4124_v25 = vor.u32 %v8204_v16, %v8195_v47  ;;  %v8256_v7 = vsel %vm7106_vm6, %v4635_v9, %v4636_v39  ;;  %v4643_v30 = vrot.slane %v7998_v24, 5  ;;  %v4144_v32 = vrot.slane %v4142_v2, 4  ;;  %v8266_v47 = vld [vmem:[%s6846_s8 + $0xd0] sm:$0xf]  ;;  %v8783_v9 = vld [vmem:[#allocation2_spill] sm:$0xff] }
 0x10f   : > { %v2388_v62 = vrot.slane %v2386_v5, 5  ;;  %v4147_v10 = vrot.slane %v4145_v38, 5  ;;  %v5782_v15 = vcombine.low %v8242_v6, %v8256_v7  ;;  %v8263_v34 = vrot.slane %v4151_v44, 5  ;;  %v8278_v38 = vld [vmem:[%s6846_s8 + $0xc8] sm:$0x1] }
 0x110   : > { %v4157_v48 = vrot.slane %v4155_v56, 4  ;;  %v8270_v16 = vsel %vm7106_vm6, %v5759_v17, %v4640_v55  ;;  %v4642_v28 = vrot.slane %v4640_v55, 4  ;;  %v4116_v24 = vsel %vm6873_vm2, %v8202_v21, %v8182_v23  ;;  %v8781_v5 = vld [vmem:[#allocation11_spill] sm:$0xff]  ;;  %v8782_v23 = vld [vmem:[#allocation6_spill] sm:$0xff] }
 0x111   : > { %v2389_v14 = vor.u32 %v2388_v62, %v2385_v60  ;;  %v4134_v2 = vor.u32 %v4133_v0, %v8215_v37  ;;  %v4166_v11 = vshrl.u32 %v5687_v45, 16  ;;  %v4169_v20 = vshll.u32 %v5687_v45, 16  ;;  %v6753_v17 = vld [vmem:[%s8720_s1 + $0x88] sm:$0xff]  }
 0x112   : > { %v8285_v44 = vsel %vm7106_vm6, %v4642_v28, %v4643_v30  ;;  %v5760_v56 = vrot.slane %v5744_v26, 9  ;;  %v4647_v43 = vrot.slane %v8781_v5, 5  ;;  %v4175_v21 = vshll.u32 %v8266_v47, 16  ;;  %v8784_v30 = vld [vmem:[#allocation14_spill] sm:$0xff] }
 0x113   : > { %v2390_v39 = vrot.slane %v2389_v14, 4  ;;  %v4179_v59 = vshrl.u32 %v8266_v47, 16  ;;  %v5783_v60 = vcombine.low %v8270_v16, %v8285_v44  ;;  %v4148_v0 = vor.u32 %v4147_v10, %v4144_v32  ;;  %v6698_v14 = vld [vmem:[%s6846_s8 + $0x30] sm:$0xff]   ;;  %v5745_v10 = vld [vmem:[%s6846_s8 + $0x9c] sm:$0xe] }
 0x114   : > { %6300 = vmatmul.mubr.msk.bf16.gmra.mrb[16].mxu0 %vm723_vm3, %v8117_v53  ;;  %v4158_v62 = vor.u32 %v4157_v48, %v8263_v34  ;;  %v4161_v42 = vshll.u32 %v8278_v38, 16  ;;  %v8308_v45 = vsel %vm7106_vm6, %v5760_v56, %v4647_v43  ;;  %v5710_v26 = vcombine.low %v4106_v51, %v4116_v24  ;;  %v6699_v5 = vld [vmem:[%s6846_s8 + $0x3c] sm:$0xff]   ;;  %v8315_v48 = vld [vmem:[%s6846_s8 + $0xd4] sm:$0x1]  ;;  %v6775_v16 = vld [vmem:[%s6846_s8 + $0xc4] sm:$0xf] }
 0x115   : > { %6124 = vmatmul.mubr.msk.bf16.vlgmr.msra.gmra.mrb[0].mxu1 %vm723_vm3, %v6696_v52  ;;  %v2395_v53 = vsel %vm6873_vm2, %v2390_v39, %v8783_v9  ;;  %6303 = vmatprep.mubr.msk.bf16.mxu0 %vm723_vm3, %v8120_v33  ;;  %v4139_v52 = vrot.slane %v4137_v1, 5  ;;  %v4649_v33 = vrot.slane %v4647_v43, 4  ;;  %v4125_v28 = vrot.slane %v4124_v25, 4  ;;  %v6754_v51 = vld [vmem:[%s8720_s1 + $0x90] sm:$0xff]  }
 0x116   : > { %6359 = vmatpush3.bf16.msra.mxu1 %v8782_v23  ;;  %6127 = vmatprep.mubr.msk.bf16.mxu1 %vm723_vm3, %v6697_v61  ;;  %v8304_v55 = vcombine.low %v2395_v53, %v2405_v41  ;;  %v4650_v61 = vrot.slane %v8784_v30, 5  ;;  %v4135_v39 = vrot.slane %v4134_v2, 4  ;;  %v4168_v32 = vrot.slane %v4166_v11, 4  ;;  %v8785_v2 = vld [vmem:[#allocation13_spill] sm:$0xff] }
 0x117   : > { %6356 = vmatprep.subr.bf16.mxu1 %v6753_v17  ;;  %v4171_v41 = vrot.slane %v4169_v20, 5  ;;  %v8317_v23 = vrot.slane %v4175_v21, 5  ;;  %v4181_v1 = vrot.slane %v4179_v59, 4  ;;  %v4149_v43 = vrot.slane %v4148_v0, 4 }
 0x118   : > { %v8321_v56 = vsel %vm7106_vm6, %v4649_v33, %v4650_v61  ;;  %v4159_v9 = vrot.slane %v4158_v62, 4  ;;  %v4163_v53 = vrot.slane %v4161_v42, 5  ;;  %v5761_v24 = vrot.slane %v5745_v10, 9  ;;  %v5734_v62 = vld [vmem:[%s6846_s8 + $0x18] sm:$0xe] }
 0x119   : > { %v5784_v25 = vcombine.low %v8308_v45, %v8321_v56  ;;  %v4654_v11 = vrot.slane %v8785_v2, 5  ;;  %v4130_v20 = vsel %vm6873_vm2, %v4125_v28, %v8215_v37  ;;  %v4140_v21 = vsel %vm6873_vm2, %v4135_v39, %v4139_v52  ;;  %v6755_v33 = vld [vmem:[%s6846_s8 + $0x1c] sm:$0xf]  ;;  %v6701_v28 = vld [vmem:[%s6846_s8 + $0x48] sm:$0xff]  }
 0x11a   : > { %6360 = vmatpush3.bf16.msra.mxu1 %v6753_v17  ;;  %v4185_v59 = vshll.u32 %v8315_v48, 16  ;;  %v4657_v17 = vrot.slane %v8043_v40, 5  ;;  %v4172_v0 = vor.u32 %v4171_v41, %v4168_v32  ;;  %v4154_v40 = vsel %vm6873_vm2, %v4149_v43, %v8263_v34  ;;  %v6756_v61 = vld [vmem:[%s8720_s1 + $0x98] sm:$0xff]  }
 0x11b   : > { %6357 = vmatprep.subr.bf16.mxu1 %v6754_v51  ;;  %v8345_v37 = vsel %vm7106_vm6, %v5761_v24, %v4654_v11  ;;  %v4656_v42 = vrot.slane %v4654_v11, 4  ;;  %v4164_v52 = vsel %vm6873_vm2, %v4159_v9, %v4163_v53  ;;  %v4577_v30 = vrot.slane %v6755_v33, 5  ;;  %v6757_v9 = vld [vmem:[%s6846_s8 + $0x20] sm:$0x1] }
 0x11c   : > { %6304 = vmatmul.mubr.msk.bf16.gmra.mrb[20].mxu0 %vm723_vm3, %v8191_v36  ;;  %v4182_v36 = vor.u32 %v4181_v1, %v8317_v23  ;;  %v5711_v34 = vcombine.low %v4130_v20, %v4140_v21  ;;  %v4187_v39 = vrot.slane %v4185_v59, 5  ;;  %v5750_v32 = vrot.slane %v5734_v62, 9  ;;  %v5747_v20 = vld [vmem:[%s6846_s8 + $0xb4] sm:$0xe] }
 0x11d   : > { %6128 = vmatmul.mubr.msk.bf16.gmra.mrb[4].mxu1 %vm723_vm3, %v6698_v14  ;;  %6307 = vmatprep.mubr.msk.bf16.mxu0 %vm723_vm3, %v5710_v26  ;;  %v8358_v14 = vsel %vm7106_vm6, %v4656_v42, %v4657_v17  ;;  %v5746_v26 = vld [vmem:[%s6846_s8 + $0xa8] sm:$0xe]  ;;  %v5712_v41 = vcombine.low %v4154_v40, %v4164_v52  ;;  %v4173_v1 = vrot.slane %v4172_v0, 4  ;;  %v4580_v53 = vrot.slane %v6757_v9, 5  ;;  %v5735_v0 = vld [vmem:[%s6846_s8 + $0x24] sm:$0xe] }
 0x11e   : > { %6131 = vmatprep.mubr.msk.bf16.mxu1 %vm723_vm3, %v6699_v5  ;;  %6361 = vmatpush3.bf16.msra.mxu1 %v6754_v51  ;;  %v5785_v10 = vcombine.low %v8345_v37, %v8358_v14  ;;  %v6702_v5 = vld [vmem:[%s6846_s8 + $0x54] sm:$0xff]   ;;  %v4183_v43 = vrot.slane %v4182_v36, 4  ;;  %v4579_v51 = vrot.slane %v4577_v30, 4  ;;  %v5762_v24 = vrot.slane %v5746_v26, 9  ;;  %v6758_v36 = vld [vmem:[%s6846_s8 + $0x28] sm:$0xf] }
 0x11f   : > { %6358 = vmatprep.subr.bf16.mxu1 %v6756_v61  ;;  %v4661_v2 = vrot.slane %v8046_v3, 5  ;;  %v4664_v11 = vrot.slane %v8098_v54, 5  ;;  %v4178_v3 = vsel %vm6873_vm2, %v4173_v1, %v8317_v23  ;;  %v4578_v17 = vsel %vm7106_vm6, %v5750_v32, %v4577_v30  ;;  %v6759_v40 = vld [vmem:[%s6846_s8 + $0x34] sm:$0xf]  ;;  %v6760_v32 = vld [vmem:[%s6846_s8 + $0x2c] sm:$0x1] }
 0x120   : > { %v4188_v54 = vsel %vm6873_vm2, %v4183_v43, %v4187_v39  ;;  %v4584_v62 = vrot.slane %v6758_v36, 5  ;;  %v4581_v42 = vsel %vm7106_vm6, %v4579_v51, %v4580_v53  ;;  %v4591_v52 = vrot.slane %v6759_v40, 5  ;;  %v6704_v1 = vld [vmem:[%s6846_s8 + $0x6c] sm:$0xff]  }
 0x121   : > { %v8373_v21 = vsel %vm7106_vm6, %v5762_v24, %v4661_v2  ;;  %v4663_v59 = vrot.slane %v4661_v2, 4  ;;  %v5763_v23 = vrot.slane %v5747_v20, 9  ;;  %v4668_v30 = vrot.slane %v8149_v50, 5  ;;  %v6761_v50 = vld [vmem:[%s6846_s8 + $0x38] sm:$0x1] }
 0x122   : > { %6362 = vmatpush3.bf16.msra.mxu1 %v6756_v61  ;;  %v5736_v61 = vld [vmem:[%s6846_s8 + $0x30] sm:$0xe]  ;;  %v5751_v39 = vrot.slane %v5735_v0, 9  ;;  %v5774_v43 = vcombine.low %v4578_v17, %v4581_v42  ;;  %v4586_v9 = vrot.slane %v4584_v62, 4  ;;  %v4593_v2 = vrot.slane %v4591_v52, 4 }
 0x123   : > { %v8391_v33 = vsel %vm7106_vm6, %v4663_v59, %v4664_v11  ;;  %v8403_v53 = vsel %vm7106_vm6, %v5763_v23, %v4668_v30  ;;  %v4670_v51 = vrot.slane %v4668_v30, 4  ;;  %v5752_v24 = vrot.slane %v5736_v61, 9  ;;  %v5748_v20 = vld [vmem:[%s6846_s8 + $0xc0] sm:$0xe]  ;;  %v5737_v23 = vld [vmem:[%s6846_s8 + $0x3c] sm:$0xe] }
 0x124   : > { %6308 = vmatmul.mubr.msk.bf16.gmra.mrb[24].mxu0 %vm723_vm3, %v5711_v34  ;;  %v5786_v26 = vcombine.low %v8373_v21, %v8391_v33  ;;  %v5713_v34 = vcombine.low %v4178_v3, %v4188_v54  ;;  %v4594_v11 = vrot.slane %v6761_v50, 5  ;;  %v4585_v3 = vsel %vm7106_vm6, %v5751_v39, %v4584_v62  ;;  %v6762_v17 = vld [vmem:[%s6846_s8 + $0x40] sm:$0xf]  ;;  %v5422_v62 = vld [vmem:[%s6846_s8 + $0x6c] sm:$0xf] }
 0x125   : > { %6132 = vmatmul.mubr.msk.bf16.gmra.mrb[8].mxu1 %vm723_vm3, %v6701_v28  ;;  %6311 = vmatprep.mubr.msk.bf16.mxu0 %vm723_vm3, %v5712_v41  ;;  %v6703_v28 = vld [vmem:[%s6846_s8 + $0x60] sm:$0xff]   ;;  %v4671_v41 = vrot.slane %v8227_v49, 5  ;;  %v4598_v0 = vrot.slane %v6762_v17, 5  ;;  %v5764_v36 = vrot.slane %v5748_v20, 9  ;;  %v4592_v42 = vsel %vm7106_vm6, %v5752_v24, %v4591_v52 }
 0x126   : > { %6135 = vmatprep.mubr.msk.bf16.mxu1 %vm723_vm3, %v6702_v5  ;;  %v4587_v5 = vrot.slane %v6760_v32, 5  ;;  %v4595_v40 = vsel %vm7106_vm6, %v4593_v2, %v4594_v11  ;;  %v4675_v61 = vrot.slane %v8207_v12, 5  ;;  %v4678_v30 = vrot.slane %v8278_v38, 5  ;;  %v6764_v11 = vld [vmem:[%s6846_s8 + $0x70] sm:$0xf] }
 0x127   : > { %v8409_v59 = vsel %vm7106_vm6, %v4670_v51, %v4671_v41  ;;  %v6706_v41 = vld [vmem:[%s6846_s8 + $0x84] sm:$0xff]   ;;  %v5776_v52 = vcombine.low %v4592_v42, %v4595_v40  ;;  %v2359_v24 = vshrl.u32 %v5422_v62, 16  ;;  %v2362_v12 = vshll.u32 %v5422_v62, 16 }
 0x128   : > { %v5787_v49 = vcombine.low %v8403_v53, %v8409_v59  ;;  %v4588_v54 = vsel %vm7106_vm6, %v4586_v9, %v4587_v5  ;;  %v8434_v32 = vsel %vm7106_vm6, %v5764_v36, %v4675_v61  ;;  %v4677_v5 = vrot.slane %v4675_v61, 4  ;;  %v6763_v9 = vld [vmem:[%s6846_s8 + $0x44] sm:$0x1] }
 0x129   : > { %v5775_v39 = vcombine.low %v4585_v3, %v4588_v54  ;;  %v4601_v51 = vrot.slane %v6763_v9, 5  ;;  %v2368_v20 = vshll.u32 %v6764_v11, 16  ;;  %v2372_v3 = vshrl.u32 %v6764_v11, 16  ;;  %v5431_v11 = vld [vmem:[%s6846_s8 + $0x90] sm:$0xf] }
 0x12a   : > { %v8440_v38 = vsel %vm7106_vm6, %v4677_v5, %v4678_v30  ;;  %v4682_v54 = vrot.slane %v8266_v47, 5  ;;  %v4685_v17 = vrot.slane %v8315_v48, 5  ;;  %v2361_v40 = vrot.slane %v2359_v24, 4  ;;  %v6707_v30 = vld [vmem:[%s6846_s8 + $0x90] sm:$0xff]  }
 0x12b   : > { %v5788_v50 = vcombine.low %v8434_v32, %v8440_v38  ;;  %v2370_v62 = vrot.slane %v2368_v20, 5  ;;  %v6709_v20 = vld [vmem:[%s6846_s8 + $0xa8] sm:$0xff]   ;;  %v2431_v63 = vshrl.u32 %v5431_v11, 16  ;;  %v2434_v58 = vshll.u32 %v5431_v11, 16  ;;  %v6711_v11 = vld [vmem:[%s6846_s8 + $0xc0] sm:$0xff]  }
 0x12c   : > { %6312 = vmatmul.mubr.msk.bf16.gmra.mrb[28].mxu0 %vm723_vm3, %v5713_v34  ;;  %v6705_v34 = vld [vmem:[%s6846_s8 + $0x78] sm:$0xff]   ;;  %v4684_v47 = vrot.slane %v4682_v54, 4  ;;  %v2536_v44 = vshll.u32 %v6775_v16, 16 }
 0x12d   : > { %6136 = vmatmul.mubr.msk.bf16.gmra.mrb[12].mxu1 %vm723_vm3, %v6703_v28  ;;  %6323 = vmatprep.mubr.msk.bf16.mxu0 %vm723_vm3, %v5774_v43  ;;  %v5749_v28 = vld [vmem:[%s6846_s8 + $0xcc] sm:$0xe]  ;;  %v4600_v43 = vrot.slane %v4598_v0, 4 }
 0x12e   : > { %6139 = vmatprep.mubr.msk.bf16.mxu1 %vm723_vm3, %v6704_v1  ;;  %v5753_v1 = vrot.slane %v5737_v23, 9  ;;  %v5765_v2 = vrot.slane %v5749_v28, 9  ;;  %v2364_v23 = vrot.slane %v2362_v12, 5  ;;  %v2374_v28 = vrot.slane %v2372_v3, 4 }
 0x12f   : > { %v4602_v42 = vsel %vm7106_vm6, %v4600_v43, %v4601_v51  ;;  %v6766_v51 = vld [vmem:[%s6846_s8 + $0x88] sm:$0xf]  ;;  %v2538_v45 = vrot.slane %v2536_v44, 5 }
 0x130   : > { %v4599_v36 = vsel %vm7106_vm6, %v5753_v1, %v4598_v0  ;;  %v8457_v61 = vsel %vm7106_vm6, %v5765_v2, %v4682_v54  ;;  %v6708_v0 = vld [vmem:[%s6846_s8 + $0x9c] sm:$0xff]   ;;  %v6765_v1 = vld [vmem:[%s6846_s8 + $0x74] sm:$0x1]  ;;  %v2416_v24 = vshll.u32 %v6766_v51, 16  ;;  %v2420_v12 = vshrl.u32 %v6766_v51, 16 }
 0x131   : > { %v5777_v48 = vcombine.low %v4599_v36, %v4602_v42  ;;  %v2378_v43 = vshll.u32 %v6765_v1, 16  ;;  %v5434_v42 = vld [vmem:[%s6846_s8 + $0x9c] sm:$0xf]  ;;  %v6768_v1 = vld [vmem:[%s6846_s8 + $0xa0] sm:$0xf] }
 0x133   : > { %v2380_v54 = vrot.slane %v2378_v43, 5  ;;  %v2468_v43 = vshrl.u32 %v6768_v1, 16 }
 0x134   : > { %6324 = vmatmul.mubr.msk.bf16.vlgmr.msra.gmra.mrb[0].mxu0 %vm723_vm3, %v5775_v39  ;;  %v5428_v39 = vld [vmem:[%s6846_s8 + $0x84] sm:$0xf] }
 0x135   : > { %6140 = vmatmul.mubr.msk.bf16.gmra.mrb[16].mxu1 %vm723_vm3, %v6705_v34  ;;  %6327 = vmatprep.mubr.msk.bf16.mxu0 %vm723_vm3, %v5776_v52  ;;  %v8462_v34 = vsel %vm7106_vm6, %v4684_v47, %v4685_v17  ;;  %v2375_v52 = vor.u32 %v2374_v28, %v2370_v62  ;;  %v2407_v57 = vshrl.u32 %v5428_v39, 16  ;;  %v2410_v9 = vshll.u32 %v5428_v39, 16 }
 0x136   : > { %6143 = vmatprep.mubr.msk.bf16.mxu1 %vm723_vm3, %v6706_v41  ;;  %v5789_v5 = vcombine.low %v8457_v61, %v8462_v34  ;;  %v2365_v41 = vor.u32 %v2364_v23, %v2361_v40  ;;  %v6710_v40 = vld [vmem:[%s6846_s8 + $0xb4] sm:$0xff]   ;;  %v8481_v23 = vrot.slane %v2416_v24, 5  ;;  %v2422_v47 = vrot.slane %v2420_v12, 4 }
 0x137   : > { %v2376_v3 = vrot.slane %v2375_v52, 4  ;;  %v2409_v17 = vrot.slane %v2407_v57, 4  ;;  %v2412_v36 = vrot.slane %v2410_v9, 5  ;;  %v2458_v39 = vshll.u32 %v5434_v42, 16 }
 0x138   : > { %v2366_v2 = vrot.slane %v2365_v41, 4  ;;  %v2423_v4 = vor.u32 %v2422_v47, %v8481_v23  ;;  %v2433_v57 = vrot.slane %v2431_v63, 4  ;;  %v2436_v9 = vrot.slane %v2434_v58, 5  ;;  %v6771_v58 = vld [vmem:[%s6846_s8 + $0xa4] sm:$0x1] }
 0x139   : > { %v2381_v41 = vsel %vm6873_vm2, %v2376_v3, %v2380_v54  ;;  %v2413_v52 = vor.u32 %v2412_v36, %v2409_v17  ;;  %v5437_v3 = vld [vmem:[%s6846_s8 + $0xa8] sm:$0xf] }
 0x13a   : > { %v2424_v54 = vrot.slane %v2423_v4, 4  ;;  %v2437_v36 = vor.u32 %v2436_v9, %v2433_v57  ;;  %v6773_v4 = vld [vmem:[%s6846_s8 + $0xb8] sm:$0xf] }
 0x13b   : > { %v2414_v27 = vrot.slane %v2413_v52, 4 }
 0x13c   : > { %6328 = vmatmul.mubr.msk.bf16.gmra.mrb[4].mxu0 %vm723_vm3, %v5777_v48  ;;  %v2438_v18 = vrot.slane %v2437_v36, 4 }
 0x13d   : > { %6144 = vmatmul.mubr.msk.bf16.gmra.mrb[20].mxu1 %vm723_vm3, %v6707_v30  ;;  %6331 = vmatprep.mubr.msk.bf16.mxu0 %vm723_vm3, %v5778_v35  ;;  %v2371_v35 = vsel %vm6873_vm2, %v2366_v2, %v2370_v62  ;;  %v6767_v30 = vld [vmem:[%s6846_s8 + $0x94] sm:$0xf]  ;;  %v2464_v62 = vshll.u32 %v6768_v1, 16  ;;  %v2460_v2 = vrot.slane %v2458_v39, 5  ;;  %v6772_v39 = vld [vmem:[%s6846_s8 + $0xac] sm:$0xf]  ;;  %v2419_v1 = vsel %vm6873_vm2, %v2414_v27, %v8481_v23 }
 0x13e   : > { %6147 = vmatprep.mubr.msk.bf16.mxu1 %vm723_vm3, %v6708_v0  ;;  %v2440_v48 = vshll.u32 %v6767_v30, 16  ;;  %v2444_v28 = vshrl.u32 %v6767_v30, 16  ;;  %v2455_v0 = vshrl.u32 %v5434_v42, 16  ;;  %v6770_v42 = vld [vmem:[%s6846_s8 + $0x98] sm:$0x1]  ;;  %v2474_v30 = vshll.u32 %v6771_v58, 16 }
 0x13f   : > { %v8504_v13 = vrot.slane %v2464_v62, 5  ;;  %v2492_v52 = vshrl.u32 %v6772_v39, 16  ;;  %v2540_v58 = vshrl.u32 %v6775_v16, 16 }
 0x140   : > { %v8501_v51 = vrot.slane %v2440_v48, 5  ;;  %v2446_v24 = vrot.slane %v2444_v28, 4  ;;  %v2457_v12 = vrot.slane %v2455_v0, 4  ;;  %v2479_v48 = vshrl.u32 %v5437_v3, 16  ;;  %v5440_v28 = vld [vmem:[%s6846_s8 + $0xb4] sm:$0xf] }
 0x141   : > { %v2482_v0 = vshll.u32 %v5437_v3, 16  ;;  %v2503_v62 = vshrl.u32 %v5440_v28, 16  ;;  %v2476_v6 = vrot.slane %v2474_v30, 5  ;;  %v2494_v23 = vrot.slane %v2492_v52, 4  ;;  %v5443_v3 = vld [vmem:[%s6846_s8 + $0xc0] sm:$0xf] }
 0x142   : > { %v2447_v47 = vor.u32 %v2446_v24, %v8501_v51  ;;  %v2461_v63 = vor.u32 %v2460_v2, %v2457_v12  ;;  %v2481_v7 = vrot.slane %v2479_v48, 4  ;;  %v6776_v48 = vld [vmem:[%s6846_s8 + $0xbc] sm:$0x1]  ;;  %v2542_v56 = vrot.slane %v2540_v58, 4 }
 0x143   : > { %v2484_v24 = vrot.slane %v2482_v0, 5 }
 0x144   : > { %6332 = vmatmul.mubr.msk.bf16.gmra.mrb[8].mxu0 %vm723_vm3, %v5779_v22  ;;  %v2426_v22 = vshll.u32 %v6769_v46, 16  ;;  %v2512_v46 = vshll.u32 %v6773_v4, 16  ;;  %v2448_v57 = vrot.slane %v2447_v47, 4  ;;  %v2462_v9 = vrot.slane %v2461_v63, 4  ;;  %v6774_v47 = vld [vmem:[%s6846_s8 + $0xb0] sm:$0x1] }
 0x145   : > { %6148 = vmatmul.mubr.msk.bf16.gmra.mrb[24].mxu1 %vm723_vm3, %v6709_v20  ;;  %6335 = vmatprep.mubr.msk.bf16.mxu0 %vm723_vm3, %v5780_v19  ;;  %v5462_v20 = vcombine.low %v2371_v35, %v2381_v41  ;;  %v2470_v19 = vrot.slane %v2468_v43, 4  ;;  %v2488_v41 = vshll.u32 %v6772_v39, 16  ;;  %v2506_v43 = vshll.u32 %v5440_v28, 16 }
 0x146   : > { %6151 = vmatprep.mubr.msk.bf16.mxu1 %vm723_vm3, %v6710_v40  ;;  %v2428_v17 = vrot.slane %v2426_v22, 5  ;;  %v2450_v40 = vshll.u32 %v6770_v42, 16  ;;  %v2516_v22 = vshrl.u32 %v6773_v4, 16  ;;  %v2514_v27 = vrot.slane %v2512_v46, 5 }
 0x147   : > { %v2471_v35 = vor.u32 %v2470_v19, %v8504_v13  ;;  %v2490_v12 = vrot.slane %v2488_v41, 5  ;;  %v2467_v36 = vsel %vm6873_vm2, %v2462_v9, %v8504_v13  ;;  %v2498_v63 = vshll.u32 %v6774_v47, 16 }
 0x148   : > { %v2429_v31 = vsel %vm6873_vm2, %v2424_v54, %v2428_v17  ;;  %v2518_v19 = vrot.slane %v2516_v22, 4  ;;  %v2443_v54 = vsel %vm6873_vm2, %v2438_v18, %v8501_v51  ;;  %v2485_v51 = vor.u32 %v2484_v24, %v2481_v7  ;;  %v6777_v22 = vld [vmem:[%s6846_s8 + $0xc8] sm:$0x1] }
 0x149   : > { %v5464_v2 = vcombine.low %v2419_v1, %v2429_v31  ;;  %v2530_v13 = vshll.u32 %v5443_v3, 16  ;;  %v2522_v28 = vshll.u32 %v6776_v48, 16  ;;  %v2500_v52 = vrot.slane %v2498_v63, 5 }
 0x14a   : > { %v2519_v30 = vor.u32 %v2518_v19, %v2514_v27  ;;  %v2486_v39 = vrot.slane %v2485_v51, 4  ;;  %v2543_v46 = vor.u32 %v2542_v56, %v2538_v45  ;;  %v8603_v19 = vld [vmem:[%s8721_s2] ss:$0 sm:$0xff] }
 0x14b   : > { %v2532_v31 = vrot.slane %v2530_v13, 5 }
 0x14c   : > { %6336 = vmatmul.mubr.msk.bf16.gmra.mrb[12].mxu0 %vm723_vm3, %v5781_v8  ;;  %v2452_v8 = vrot.slane %v2450_v40, 5  ;;  %v2495_v40 = vor.u32 %v2494_v23, %v2490_v12  ;;  %v2520_v18 = vrot.slane %v2519_v30, 4  ;;  %v2544_v7 = vrot.slane %v2543_v46, 4 }
 0x14d   : > { %6152 = vmatmul.mubr.msk.bf16.gmra.mrb[28].mxu1 %vm723_vm3, %v6711_v11  ;;  %6339 = vmatprep.mubr.msk.bf16.mxu0 %vm723_vm3, %v5782_v15  ;;  %v2472_v15 = vrot.slane %v2471_v35, 4  ;;  %v2505_v11 = vrot.slane %v2503_v62, 4  ;;  %v2491_v62 = vsel %vm6873_vm2, %v2486_v39, %v2490_v12 }
 0x14e   : > { %6179 = vmatprep.mubr.msk.bf16.mxu1 %vm723_vm3, %v5462_v20  ;;  %v2508_v20 = vrot.slane %v2506_v43, 5  ;;  %v2453_v17 = vsel %vm6873_vm2, %v2448_v57, %v2452_v8  ;;  %v2496_v41 = vrot.slane %v2495_v40, 4  ;;  %v2524_v8 = vrot.slane %v2522_v28, 5 }
 0x14f   : > { %v2477_v42 = vsel %vm6873_vm2, %v2472_v15, %v2476_v6  ;;  %v5465_v35 = vcombine.low %v2443_v54, %v2453_v17  ;;  %v2546_v57 = vshll.u32 %v6777_v22, 16  ;;  %v8609_v17 = vld [vmem:[%s8722_s3] ss:$0 sm:$0xff] }
 0x150   : > { %v5466_v0 = vcombine.low %v2467_v36, %v2477_v42  ;;  %v2501_v43 = vsel %vm6873_vm2, %v2496_v41, %v2500_v52  ;;  %v2525_v14 = vsel %vm6873_vm2, %v2520_v18, %v2524_v8 }
 0x151   : > { %v2548_v21 = vrot.slane %v2546_v57, 5 }
 0x154   : > { %6340 = vmatmul.mubr.msk.bf16.gmra.mrb[16].mxu0 %vm723_vm3, %v5783_v60  ;;  %v2509_v60 = vor.u32 %v2508_v20, %v2505_v11 }
 0x155   : > { %6180 = vmatmul.mubr.msk.bf16.vlgmr.msra.gmra.mrb[16].mxu1 %vm723_vm3, %v8304_v55  ;;  %6343 = vmatprep.mubr.msk.bf16.mxu0 %vm723_vm3, %v5784_v25  ;;  %v2527_v55 = vshrl.u32 %v5443_v3, 16 }
 0x156   : > { %6183 = vmatprep.mubr.msk.bf16.mxu1 %vm723_vm3, %v5464_v2  ;;  %v2510_v25 = vrot.slane %v2509_v60, 4 }
 0x157   : > { %v2529_v1 = vrot.slane %v2527_v55, 4 }
 0x158   : > { %v2515_v37 = vsel %vm6873_vm2, %v2510_v25, %v2514_v27 }
 0x159   : > { %v2533_v4 = vor.u32 %v2532_v31, %v2529_v1  ;;  %v5468_v9 = vcombine.low %v2515_v37, %v2525_v14 }
 0x15b   : > { %v2534_v6 = vrot.slane %v2533_v4, 4 }
 0x15c   : > { %6344 = vmatmul.mubr.msk.bf16.gmra.mrb[20].mxu0 %vm723_vm3, %v5785_v10  ;;  %v5467_v10 = vcombine.low %v2491_v62, %v2501_v43 }
 0x15d   : > { %6184 = vmatmul.mubr.msk.bf16.gmra.mrb[20].mxu1 %vm723_vm3, %v5465_v35  ;;  %6347 = vmatprep.mubr.msk.bf16.mxu0 %vm723_vm3, %v5786_v26  ;;  %v2539_v33 = vsel %vm6873_vm2, %v2534_v6, %v2538_v45  ;;  %v2549_v26 = vsel %vm6873_vm2, %v2544_v7, %v2548_v21 }
 0x15e   : > { %6187 = vmatprep.mubr.msk.bf16.mxu1 %vm723_vm3, %v5466_v0  ;;  %v5469_v15 = vcombine.low %v2539_v33, %v2549_v26 }
 0x164   : > { %6348 = vmatmul.mubr.msk.bf16.gmra.mrb[24].mxu0 %vm723_vm3, %v5787_v49 }
 0x165   : > { %6188 = vmatmul.mubr.msk.bf16.gmra.mrb[24].mxu1 %vm723_vm3, %v5467_v10  ;;  %6351 = vmatprep.mubr.msk.bf16.mxu0 %vm723_vm3, %v5788_v50 }
 0x166   : > { %6191 = vmatprep.mubr.msk.bf16.mxu1 %vm723_vm3, %v5468_v9 }
 0x16c   : > { %6352 = vmatmul.mubr.msk.bf16.gmra.mrb[28].mxu0 %vm723_vm3, %v5789_v5 }
 0x16d   : > { %6192 = vmatmul.mubr.msk.bf16.gmra.mrb[28].mxu1 %vm723_vm3, %v5469_v15 }
 0x1e8   : > { %v6125_v53 = vpop.f32.mrb[0].mxu1 }
 0x1e9   : > { %v1959_v59 = vpop.f32.mrb[1].mxu1 }
 0x1ea   : > { %v6126_v49 = vpop.f32.mrb[2].mxu1 }
 0x1eb   : > { %v1962_v32 = vpop.f32.mrb[3].mxu1 }
 0x1f0   : > { %v6129_v38 = vpop.f32.mrb[4].mxu1 }
 0x1f1   : > { %v1975_v50 = vpop.f32.mrb[5].mxu1 }
 0x1f2   : > { %v6130_v24 = vpop.f32.mrb[6].mxu1 }
 0x1f3   : > { %v1978_v12 = vpop.f32.mrb[7].mxu1 }
 0x1f8   : > { %v6133_v23 = vpop.f32.mrb[8].mxu1 }
 0x1f9   : > { %v1991_v29 = vpop.f32.mrb[9].mxu1 }
 0x1fa   : > { %v6134_v2 = vpop.f32.mrb[10].mxu1 }
 0x1fb   : > { %v1994_v11 = vpop.f32.mrb[11].mxu1 }
 0x200   : > { %v8592_v20 = vpop.f32.mrb[12].mxu1 }
 0x201   : > { %v8594_v27 = vpop.f32.mrb[13].mxu1 }
 0x202   : > { %v8596_v61 = vpop.f32.mrb[14].mxu1 }
 0x203   : > { %v8598_v34 = vpop.f32.mrb[15].mxu1 }
 0x207   : > { %v6325_v5 = vpop.f32.mrb[0].mxu0 }
 0x208   : > { %v6363_v3 = vadd.f32 %v6325_v5, %v6125_v53  ;;  %v4850_v54 = vpop.f32.mrb[1].mxu0 }
 0x209   : > { %v6364_v36 = vadd.f32 %v4850_v54, %v1959_v59  ;;  %v6326_v42 = vpop.f32.mrb[2].mxu0 }
 0x20a   : > { %v5018_v51 = vmul.f32 %v6363_v3, %v8603_v19  ;;  %v6365_v40 = vadd.f32 %v6326_v42, %v6126_v49  ;;  %v4853_v47 = vpop.f32.mrb[3].mxu0 }
 0x20b   : > { %v5016_v63 = vmul.f32 %v6364_v36, %v8603_v19  ;;  %v6366_v55 = vadd.f32 %v4853_v47, %v1962_v32 }
 0x20c   : > { %v5057_v13 = vadd.f32 %v8609_v17, %v5018_v51  ;;  %v5019_v16 = vmul.f32 %v6365_v40, %v8603_v19 }
 0x20d   : > { %v5055_v44 = vadd.f32 %v8609_v17, %v5016_v63  ;;  %v5017_v58 = vmul.f32 %v6366_v55, %v8603_v19 }
 0x20e   : > { %5089 = vst [vmem:[%s8615_s14 + $0x10] sm:$0xff] %v5057_v13  ;;  %v5058_v60 = vadd.f32 %v8609_v17, %v5019_v16 }
 0x20f   : > { %5087 = vst [vmem:[%s8615_s14] sm:$0xff] %v5055_v44  ;;  %v5056_v30 = vadd.f32 %v8609_v17, %v5017_v58  ;;  %v6329_v48 = vpop.f32.mrb[4].mxu0 }
 0x210   : > { %5090 = vst [vmem:[%s8615_s14 + $0x18] sm:$0xff] %v5058_v60  ;;  %v6367_v28 = vadd.f32 %v6329_v48, %v6129_v38  ;;  %v4866_v35 = vpop.f32.mrb[5].mxu0 }
 0x211   : > { %5088 = vst [vmem:[%s8615_s14 + $0x8] sm:$0xff] %v5056_v30  ;;  %v6368_v0 = vadd.f32 %v4866_v35, %v1975_v50  ;;  %v6330_v39 = vpop.f32.mrb[6].mxu0 }
 0x212   : > { %v5022_v41 = vmul.f32 %v6367_v28, %v8603_v19  ;;  %v6369_v52 = vadd.f32 %v6330_v39, %v6130_v24  ;;  %v4869_v1 = vpop.f32.mrb[7].mxu0 }
 0x213   : > { %v5020_v31 = vmul.f32 %v6368_v0, %v8603_v19  ;;  %v6370_v45 = vadd.f32 %v4869_v1, %v1978_v12 }
 0x214   : > { %v5061_v56 = vadd.f32 %v8609_v17, %v5022_v41  ;;  %v5023_v25 = vmul.f32 %v6369_v52, %v8603_v19 }
 0x215   : > { %v5059_v18 = vadd.f32 %v8609_v17, %v5020_v31  ;;  %v5021_v8 = vmul.f32 %v6370_v45, %v8603_v19 }
 0x216   : > { %5093 = vst [vmem:[%s8615_s14 + $0x30] sm:$0xff] %v5061_v56  ;;  %v5062_v62 = vadd.f32 %v8609_v17, %v5023_v25 }
 0x217   : > { %5091 = vst [vmem:[%s8615_s14 + $0x20] sm:$0xff] %v5059_v18  ;;  %v5060_v43 = vadd.f32 %v8609_v17, %v5021_v8  ;;  %v6333_v4 = vpop.f32.mrb[8].mxu0 }
 0x218   : > { %5094 = vst [vmem:[%s8615_s14 + $0x38] sm:$0xff] %v5062_v62  ;;  %v6371_v46 = vadd.f32 %v6333_v4, %v6133_v23  ;;  %v4882_v22 = vpop.f32.mrb[9].mxu0 }
 0x219   : > { %5092 = vst [vmem:[%s8615_s14 + $0x28] sm:$0xff] %v5060_v43  ;;  %v6372_v57 = vadd.f32 %v4882_v22, %v1991_v29  ;;  %v6334_v37 = vpop.f32.mrb[10].mxu0 }
 0x21a   : > { %v5026_v14 = vmul.f32 %v6371_v46, %v8603_v19  ;;  %v6373_v10 = vadd.f32 %v6334_v37, %v6134_v2  ;;  %v4885_v9 = vpop.f32.mrb[11].mxu0 }
 0x21b   : > { %v5024_v6 = vmul.f32 %v6372_v57, %v8603_v19  ;;  %v6374_v7 = vadd.f32 %v4885_v9, %v1994_v11 }
 0x21c   : > { %v5065_v21 = vadd.f32 %v8609_v17, %v5026_v14  ;;  %v5027_v33 = vmul.f32 %v6373_v10, %v8603_v19 }
 0x21d   : > { %v5063_v26 = vadd.f32 %v8609_v17, %v5024_v6  ;;  %v5025_v15 = vmul.f32 %v6374_v7, %v8603_v19 }
 0x21e   : > { %5097 = vst [vmem:[%s8615_s14 + $0x50] sm:$0xff] %v5065_v21  ;;  %v5066_v53 = vadd.f32 %v8609_v17, %v5027_v33 }
 0x21f   : > { %5095 = vst [vmem:[%s8615_s14 + $0x40] sm:$0xff] %v5063_v26  ;;  %v5064_v59 = vadd.f32 %v8609_v17, %v5025_v15  ;;  %v6337_v49 = vpop.f32.mrb[12].mxu0 }
 0x220   : > { %5098 = vst [vmem:[%s8615_s14 + $0x58] sm:$0xff] %v5066_v53  ;;  %v6375_v32 = vadd.f32 %v6337_v49, %v8592_v20  ;;  %v4898_v38 = vpop.f32.mrb[13].mxu0 }
 0x221   : > { %5096 = vst [vmem:[%s8615_s14 + $0x48] sm:$0xff] %v5064_v59  ;;  %v6376_v50 = vadd.f32 %v4898_v38, %v8594_v27  ;;  %v6338_v24 = vpop.f32.mrb[14].mxu0 }
 0x222   : > { %v5030_v12 = vmul.f32 %v6375_v32, %v8603_v19  ;;  %v6377_v23 = vadd.f32 %v6338_v24, %v8596_v61  ;;  %v4901_v29 = vpop.f32.mrb[15].mxu0 }
 0x223   : > { %v5028_v2 = vmul.f32 %v6376_v50, %v8603_v19  ;;  %v6378_v11 = vadd.f32 %v4901_v29, %v8598_v34 }
 0x224   : > { %v5069_v5 = vadd.f32 %v8609_v17, %v5030_v12  ;;  %v5031_v20 = vmul.f32 %v6377_v23, %v8603_v19 }
 0x225   : > { %v5067_v3 = vadd.f32 %v8609_v17, %v5028_v2  ;;  %v5029_v27 = vmul.f32 %v6378_v11, %v8603_v19 }
 0x226   : > { %5101 = vst [vmem:[%s8615_s14 + $0x70] sm:$0xff] %v5069_v5  ;;  %v5070_v54 = vadd.f32 %v8609_v17, %v5031_v20 }
 0x227   : > { %5099 = vst [vmem:[%s8615_s14 + $0x60] sm:$0xff] %v5067_v3  ;;  %v5068_v61 = vadd.f32 %v8609_v17, %v5029_v27  ;;  %v6341_v42 = vpop.f32.mrb[16].mxu0 }
 0x228   : > { %v6181_v36 = vpop.f32.mrb[16].mxu1  ;;  %5102 = vst [vmem:[%s8615_s14 + $0x78] sm:$0xff] %v5070_v54  ;;  %v4914_v34 = vpop.f32.mrb[17].mxu0 }
 0x229   : > { %v6379_v51 = vadd.f32 %v6341_v42, %v6181_v36  ;;  %v2777_v40 = vpop.f32.mrb[17].mxu1  ;;  %5100 = vst [vmem:[%s8615_s14 + $0x68] sm:$0xff] %v5068_v61  ;;  %v6342_v55 = vpop.f32.mrb[18].mxu0 }
 0x22a   : > { %v6380_v47 = vadd.f32 %v4914_v34, %v2777_v40  ;;  %v6182_v63 = vpop.f32.mrb[18].mxu1  ;;  %v4917_v58 = vpop.f32.mrb[19].mxu0 }
 0x22b   : > { %v5034_v13 = vmul.f32 %v6379_v51, %v8603_v19  ;;  %v6381_v16 = vadd.f32 %v6342_v55, %v6182_v63  ;;  %v2780_v44 = vpop.f32.mrb[19].mxu1 }
 0x22c   : > { %v5032_v60 = vmul.f32 %v6380_v47, %v8603_v19  ;;  %v6382_v30 = vadd.f32 %v4917_v58, %v2780_v44 }
 0x22d   : > { %v5073_v48 = vadd.f32 %v8609_v17, %v5034_v13  ;;  %v5035_v28 = vmul.f32 %v6381_v16, %v8603_v19 }
 0x22e   : > { %v5071_v35 = vadd.f32 %v8609_v17, %v5032_v60  ;;  %v5033_v0 = vmul.f32 %v6382_v30, %v8603_v19 }
 0x22f   : > { %5105 = vst [vmem:[%s8615_s14 + $0x90] sm:$0xff] %v5073_v48  ;;  %v5074_v39 = vadd.f32 %v8609_v17, %v5035_v28  ;;  %v6345_v1 = vpop.f32.mrb[20].mxu0 }
 0x230   : > { %5103 = vst [vmem:[%s8615_s14 + $0x80] sm:$0xff] %v5071_v35  ;;  %v5072_v41 = vadd.f32 %v8609_v17, %v5033_v0  ;;  %v6185_v52 = vpop.f32.mrb[20].mxu1  ;;  %v4930_v56 = vpop.f32.mrb[21].mxu0 }
 0x231   : > { %5106 = vst [vmem:[%s8615_s14 + $0x98] sm:$0xff] %v5074_v39  ;;  %v6383_v31 = vadd.f32 %v6345_v1, %v6185_v52  ;;  %v2793_v45 = vpop.f32.mrb[21].mxu1  ;;  %v6346_v8 = vpop.f32.mrb[22].mxu0 }
 0x232   : > { %5104 = vst [vmem:[%s8615_s14 + $0x88] sm:$0xff] %v5072_v41  ;;  %v6384_v25 = vadd.f32 %v4930_v56, %v2793_v45  ;;  %v6186_v18 = vpop.f32.mrb[22].mxu1  ;;  %v4933_v46 = vpop.f32.mrb[23].mxu0 }
 0x233   : > { %v5038_v62 = vmul.f32 %v6383_v31, %v8603_v19  ;;  %v6385_v43 = vadd.f32 %v6346_v8, %v6186_v18  ;;  %v2796_v4 = vpop.f32.mrb[23].mxu1 }
 0x234   : > { %v5036_v22 = vmul.f32 %v6384_v25, %v8603_v19  ;;  %v6386_v57 = vadd.f32 %v4933_v46, %v2796_v4 }
 0x235   : > { %v5077_v37 = vadd.f32 %v8609_v17, %v5038_v62  ;;  %v5039_v14 = vmul.f32 %v6385_v43, %v8603_v19 }
 0x236   : > { %v5075_v10 = vadd.f32 %v8609_v17, %v5036_v22  ;;  %v5037_v9 = vmul.f32 %v6386_v57, %v8603_v19 }
 0x237   : > { %5109 = vst [vmem:[%s8615_s14 + $0xb0] sm:$0xff] %v5077_v37  ;;  %v5078_v6 = vadd.f32 %v8609_v17, %v5039_v14  ;;  %v6349_v33 = vpop.f32.mrb[24].mxu0 }
 0x238   : > { %5107 = vst [vmem:[%s8615_s14 + $0xa0] sm:$0xff] %v5075_v10  ;;  %v5076_v7 = vadd.f32 %v8609_v17, %v5037_v9  ;;  %v6189_v21 = vpop.f32.mrb[24].mxu1  ;;  %v4946_v53 = vpop.f32.mrb[25].mxu0 }
 0x239   : > { %5110 = vst [vmem:[%s8615_s14 + $0xb8] sm:$0xff] %v5078_v6  ;;  %v6387_v26 = vadd.f32 %v6349_v33, %v6189_v21  ;;  %v2809_v15 = vpop.f32.mrb[25].mxu1  ;;  %v6350_v32 = vpop.f32.mrb[26].mxu0 }
 0x23a   : > { %5108 = vst [vmem:[%s8615_s14 + $0xa8] sm:$0xff] %v5076_v7  ;;  %v6388_v59 = vadd.f32 %v4946_v53, %v2809_v15  ;;  %v6190_v49 = vpop.f32.mrb[26].mxu1  ;;  %v4949_v12 = vpop.f32.mrb[27].mxu0 }
 0x23b   : > { %v5042_v38 = vmul.f32 %v6387_v26, %v8603_v19  ;;  %v6389_v50 = vadd.f32 %v6350_v32, %v6190_v49  ;;  %v2812_v24 = vpop.f32.mrb[27].mxu1 }
 0x23c   : > { %v5040_v23 = vmul.f32 %v6388_v59, %v8603_v19  ;;  %v6390_v29 = vadd.f32 %v4949_v12, %v2812_v24 }
 0x23d   : > { %v5081_v2 = vadd.f32 %v8609_v17, %v5042_v38  ;;  %v5043_v11 = vmul.f32 %v6389_v50, %v8603_v19 }
 0x23e   : > { %v5079_v5 = vadd.f32 %v8609_v17, %v5040_v23  ;;  %v5041_v20 = vmul.f32 %v6390_v29, %v8603_v19 }
 0x23f   : > { %5113 = vst [vmem:[%s8615_s14 + $0xd0] sm:$0xff] %v5081_v2  ;;  %v5082_v3 = vadd.f32 %v8609_v17, %v5043_v11  ;;  %v6353_v61 = vpop.f32.mrb[28].mxu0 }
 0x240   : > { %5111 = vst [vmem:[%s8615_s14 + $0xc0] sm:$0xff] %v5079_v5  ;;  %v5080_v27 = vadd.f32 %v8609_v17, %v5041_v20  ;;  %v6193_v54 = vpop.f32.mrb[28].mxu1  ;;  %v4962_v51 = vpop.f32.mrb[29].mxu0 }
 0x241   : > { %5114 = vst [vmem:[%s8615_s14 + $0xd8] sm:$0xff] %v5082_v3  ;;  %v6391_v36 = vadd.f32 %v6353_v61, %v6193_v54  ;;  %v2825_v42 = vpop.f32.mrb[29].mxu1  ;;  %v6354_v47 = vpop.f32.mrb[30].mxu0 }
 0x242   : > { %5112 = vst [vmem:[%s8615_s14 + $0xc8] sm:$0xff] %v5080_v27  ;;  %v6392_v40 = vadd.f32 %v4962_v51, %v2825_v42  ;;  %v6194_v34 = vpop.f32.mrb[30].mxu1  ;;  %v4965_v16 = vpop.f32.mrb[31].mxu0 }
 0x243   : > { %v5046_v63 = vmul.f32 %v6391_v36, %v8603_v19  ;;  %v6393_v55 = vadd.f32 %v6354_v47, %v6194_v34  ;;  %v2828_v13 = vpop.f32.mrb[31].mxu1 }
 0x244   : > { %v5044_v44 = vmul.f32 %v6392_v40, %v8603_v19  ;;  %v6394_v58 = vadd.f32 %v4965_v16, %v2828_v13 }
 0x245   : > { %v5085_v60 = vadd.f32 %v8609_v17, %v5046_v63  ;;  %v5047_v30 = vmul.f32 %v6393_v55, %v8603_v19 }
 0x246   : > { %v5083_v48 = vadd.f32 %v8609_v17, %v5044_v44  ;;  %v5045_v28 = vmul.f32 %v6394_v58, %v8603_v19 }
 0x247   : > { %5117 = vst [vmem:[%s8615_s14 + $0xf0] sm:$0xff] %v5085_v60  ;;  %v5086_v35 = vadd.f32 %v8609_v17, %v5047_v30 }
 0x248   : > { %5115 = vst [vmem:[%s8615_s14 + $0xe0] sm:$0xff] %v5083_v48  ;;  %v5084_v0 = vadd.f32 %v8609_v17, %v5045_v28 }
 0x249   : > { %5118 = vst [vmem:[%s8615_s14 + $0xf8] sm:$0xff] %v5086_v35 }
 0x24a   : > { %5116 = vst [vmem:[%s8615_s14 + $0xe8] sm:$0xff] %v5084_v0 }
 0x24b PF: > { %s14_s15 = sadd.s32 1, %s6784_s15  }
 0x24c   : > { %p11_p4 = scmp.ge.s32.totalorder %s14_s15, 4  }
 0x24e   :  { %13 = sbr.rel (!%p11_p4) target bundleno = 1 (0x1), region = 76 }

// kernel: _lambda_.18
= control target key start
LH: loop header
LB: loop body
LE: loop exit
PB: predicated region body
PF: predicated region fallthrough
CT: control target
= control target key end

     0   :  { %s7036_s15 = smov 0   ;;  %s8985_s0 = inlined_call_operand.vmem [shape: bf16[2,18,18,64], index: 0, kind: input, shape index: {}]   ;;  %s8986_s1 = inlined_call_operand.vmem [shape: bf16[9,64,64], index: 1, kind: input, shape index: {}]   ;;  %s8987_s2 = inlined_call_operand.vmem [shape: f32[1,64], index: 2, kind: input, shape index: {}]   ;;  %s8988_s3 = inlined_call_operand.vmem [shape: f32[1,64], index: 3, kind: input, shape index: {}]   ;;  %s8989_s4 = inlined_call_operand.vmem [shape: bf16[2,256,64], index: 4, kind: output, shape index: {}]  }
   0x1 LB: > { %s5335_s16 = sadd.s32 4294967295, %s7009_s15   ;;  %p5339_p0 = scmp.ge.s32.totalorder %s7009_s15, 1  ;;  %s7009_s15 = sphi %s7036_s15, %s14_s15  }
   0x2   : > { %p162_p1 = scmp.lt.s32.totalorder %s7009_s15, 3 }
   0x4   : > { %p163_p2 = pnand %p5339_p0, %p162_p1 }
   0x6   : > { %166 = sbr.rel (%p163_p2) target bundleno = 591 (0x24f), region = 36 }
   0xd   : > { %v6853_v0 = vld [vmem:[%s8986_s1 + $0x20] sm:$0xff]   ;;  %p188_p3 = scmp.lt.s32.totalorder %s5335_s16, 1  ;;  %v6855_v2 = vld [vmem:[%s8986_s1 + $0x28] sm:$0xff]   ;;  %v6857_v4 = vld [vmem:[%s8986_s1 + $0x30] sm:$0xff]   ;;  %vm255_vm0 = vsmask.f32 3328 }
   0xe   : > { %v6854_v1 = vld [vmem:[%s8986_s1 + $0x80] sm:$0xff]   ;;  %6220 = vmatprep.subr.bf16.mxu1 %v6853_v0  ;;  %v6856_v3 = vld [vmem:[%s8986_s1 + $0x88] sm:$0xff]   ;;  %v6858_v5 = vld [vmem:[%s8986_s1 + $0x90] sm:$0xff]   ;;  %vm256_vm1 = vsmask.f32 7440  ;;  %vm723_vm3 = vcmask 523264  }
   0xf   : > { %s9053_s16 = smov (!%p188_p3, %s5335_s16), 1  ;;  %6380 = vmatprep.subr.bf16.mxu0 %v6854_v1  ;;  %6221 = vmatpush3.bf16.msra.mxu1 %v6853_v0  ;;  %v6859_v6 = vld [vmem:[%s8986_s1 + $0x38] sm:$0xff]   ;;  %v7082_v18 = vld [vmem:[%s8986_s1] sm:$0xff]   ;;  %vm7098_vm2 = vmor %vm255_vm0, %vm256_vm1  ;;  %vm1294_vm4 = vcmask 1042432   ;;  %vm1295_vm5 = vcmask 1046532   ;;  %vm5247_vm7 = vcmask 519168  }
  0x10   : > { %6381 = vmatpush3.bf16.msra.mxu0 %v6854_v1  ;;  %6222 = vmatprep.subr.bf16.mxu1 %v6855_v2  ;;  %s6844_s27 = smul.u32 216, %s9053_s16  ;;  %v6860_v7 = vld [vmem:[%s8986_s1 + $0x98] sm:$0xff]   ;;  %v7088_v23 = vld [vmem:[%s8986_s1 + $0xa0] sm:$0xff]   ;;  %vm7331_vm6 = vmor %vm1294_vm4, %vm1295_vm5  ;;  %s6007_s11 = sshll.u32 %s9053_s16, 7 }
  0x11   : > { %6382 = vmatprep.subr.bf16.mxu0 %v6856_v3  ;;  %s8852_s14 = scalar_lea.vmem %s8989_s4, %s6007_s11 }
  0x12   : > { %s7071_s8 = scalar_lea.vmem %s8985_s0, %s6844_s27 }
  0x13   : > { %6223 = vmatpush3.bf16.msra.mxu1 %v6855_v2  ;;  %v199_v8 = vld [vmem:[%s7071_s8] sm:$0xf]  ;;  %v200_v9 = vld [vmem:[%s7071_s8 + $0x4] sm:$0xf]  ;;  %v239_v10 = vld [vmem:[%s7071_s8 + $0x8] sm:$0x1] }
  0x14   : > { %6383 = vmatpush3.bf16.msra.mxu0 %v6856_v3  ;;  %6224 = vmatprep.subr.bf16.mxu1 %v6857_v4  ;;  %v259_v11 = vshrl.u32 %v199_v8, 16  ;;  %v262_v12 = vshll.u32 %v199_v8, 16  ;;  %v268_v13 = vshll.u32 %v200_v9, 16  ;;  %v272_v14 = vshrl.u32 %v200_v9, 16  ;;  %v5559_v22 = vld [vmem:[%s7071_s8 + $0xc] sm:$0xf] }
  0x15   : > { %6384 = vmatprep.subr.bf16.mxu0 %v6858_v5  ;;  %v278_v15 = vshll.u32 %v239_v10, 16  ;;  %v7091_v25 = vld [vmem:[%s7071_s8 + $0x10] sm:$0xf]  ;;  %v7094_v26 = vld [vmem:[%s7071_s8 + $0x14] sm:$0x1]  ;;  %v2167_v27 = vshrl.u32 %v5559_v22, 16 }
  0x16   : > { %v261_v16 = vrot.slane %v259_v11, 4  ;;  %v264_v17 = vrot.slane %v262_v12, 5  ;;  %v270_v19 = vrot.slane %v268_v13, 5  ;;  %v274_v20 = vrot.slane %v272_v14, 4  ;;  %v201_v40 = vld [vmem:[%s7071_s8 + $0xc] sm:$0xf] }
  0x17   : > { %6225 = vmatpush3.bf16.msra.mxu1 %v6857_v4  ;;  %v280_v21 = vrot.slane %v278_v15, 5  ;;  %v2170_v28 = vshll.u32 %v5559_v22, 16  ;;  %v2176_v31 = vshll.u32 %v7091_v25, 16  ;;  %v2180_v32 = vshrl.u32 %v7091_v25, 16  ;;  %v202_v44 = vld [vmem:[%s7071_s8 + $0x10] sm:$0xf] }
  0x18   : > { %6385 = vmatpush3.bf16.msra.mxu0 %v6858_v5  ;;  %6226 = vmatprep.subr.bf16.mxu1 %v6859_v6  ;;  %v265_v24 = vor.u32 %v264_v17, %v261_v16  ;;  %v275_v30 = vor.u32 %v274_v20, %v270_v19  ;;  %v2186_v33 = vshll.u32 %v7094_v26, 16  ;;  %v2169_v35 = vrot.slane %v2167_v27, 4  ;;  %v240_v45 = vld [vmem:[%s7071_s8 + $0x14] sm:$0x1]  ;;  %v5562_v55 = vld [vmem:[%s7071_s8 + $0x18] sm:$0xf] }
  0x19   : > { %6386 = vmatprep.subr.bf16.mxu0 %v6860_v7  ;;  %v2172_v36 = vrot.slane %v2170_v28, 5  ;;  %v2178_v38 = vrot.slane %v2176_v31, 5  ;;  %v2182_v39 = vrot.slane %v2180_v32, 4  ;;  %v283_v46 = vshrl.u32 %v201_v40, 16  ;;  %v7116_v60 = vld [vmem:[%s7071_s8 + $0x1c] sm:$0xf] }
  0x1a   : > { %v266_v34 = vrot.slane %v265_v24, 4  ;;  %v276_v37 = vrot.slane %v275_v30, 4  ;;  %v2188_v43 = vrot.slane %v2186_v33, 5  ;;  %v286_v49 = vshll.u32 %v201_v40, 16  ;;  %v7124_v1 = vld [vmem:[%s7071_s8 + $0x20] sm:$0x1] }
  0x1b   : > { %6227 = vmatpush3.bf16.msra.mxu1 %v6859_v6  ;;  %v2173_v42 = vor.u32 %v2172_v36, %v2169_v35  ;;  %v2183_v48 = vor.u32 %v2182_v39, %v2178_v38  ;;  %v292_v50 = vshll.u32 %v202_v44, 16  ;;  %v285_v53 = vrot.slane %v283_v46, 4  ;;  %v203_v10 = vld [vmem:[%s7071_s8 + $0x18] sm:$0xf]  ;;  %v204_v11 = vld [vmem:[%s7071_s8 + $0x1c] sm:$0xf] }
  0x1c   : > { %6387 = vmatpush3.bf16.msra.mxu0 %v6860_v7  ;;  %6260 = vmatprep.subr.bf16.mxu1 %v7082_v18  ;;  %v271_v41 = vsel %vm7098_vm2, %v266_v34, %v270_v19  ;;  %v281_v47 = vsel %vm7098_vm2, %v276_v37, %v280_v21  ;;  %v296_v54 = vshrl.u32 %v202_v44, 16  ;;  %v288_v57 = vrot.slane %v286_v49, 5  ;;  %v241_v28 = vld [vmem:[%s7071_s8 + $0x20] sm:$0x1]  ;;  %v5565_v34 = vld [vmem:[%s7071_s8 + $0x24] sm:$0xf] }
  0x1d   : > { %6420 = vmatprep.subr.bf16.mxu0 %v7088_v23  ;;  %v5351_v51 = vcombine.low %v271_v41, %v281_v47  ;;  %v2174_v52 = vrot.slane %v2173_v42, 4  ;;  %v2184_v56 = vrot.slane %v2183_v48, 4  ;;  %v294_v58 = vrot.slane %v292_v50, 5  ;;  %v6864_v39 = vld [vmem:[%s8986_s1 + $0x8] sm:$0xff]  }
  0x1e   : > { %v302_v59 = vshll.u32 %v240_v45, 16  ;;  %v2938_v62 = vrot.slane %v7091_v25, 5  ;;  %v2941_v63 = vrot.slane %v7094_v26, 5  ;;  %v298_v0 = vrot.slane %v296_v54, 4  ;;  %v7150_v44 = vld [vmem:[%s7071_s8 + $0x28] sm:$0xf] }
  0x1f   : > { %6228 = vmatprep.mubr.msk.bf16.mxu1 %vm723_vm3, %v5351_v51  ;;  %v2179_v61 = vsel %vm7098_vm2, %v2174_v52, %v2178_v38  ;;  %v2189_v2 = vsel %vm7098_vm2, %v2184_v56, %v2188_v43  ;;  %v289_v3 = vor.u32 %v288_v57, %v285_v53  ;;  %v2191_v5 = vshrl.u32 %v5562_v55, 16  ;;  %v7154_v48 = vld [vmem:[%s7071_s8 + $0x2c] sm:$0x1]  ;;  %v6867_v56 = vld [vmem:[%s8986_s1 + $0x10] sm:$0xff]  }
  0x20   : > { %v304_v4 = vrot.slane %v302_v59, 5  ;;  %v5615_v6 = vcombine.low %v2179_v61, %v2189_v2  ;;  %v299_v7 = vor.u32 %v298_v0, %v294_v58  ;;  %v2194_v8 = vshll.u32 %v5562_v55, 16  ;;  %v6863_v54 = vld [vmem:[%s8986_s1 + $0xa8] sm:$0xff]   ;;  %v205_v55 = vld [vmem:[%s7071_s8 + $0x24] sm:$0xf] }
  0x21   : > { %v2200_v9 = vshll.u32 %v7116_v60, 16  ;;  %v290_v12 = vrot.slane %v289_v3, 4  ;;  %v2193_v13 = vrot.slane %v2191_v5, 4  ;;  %v2204_v14 = vshrl.u32 %v7116_v60, 16  ;;  %v206_v61 = vld [vmem:[%s7071_s8 + $0x28] sm:$0xf] }
  0x22   : > { %v2210_v15 = vshll.u32 %v7124_v1, 16  ;;  %6388 = vmatprep.mubr.msk.bf16.mxu0 %vm723_vm3, %v5615_v6  ;;  %v300_v16 = vrot.slane %v299_v7, 4  ;;  %v2196_v17 = vrot.slane %v2194_v8, 5  ;;  %v2945_v20 = vrot.slane %v7116_v60, 5  ;;  %v242_v5 = vld [vmem:[%s7071_s8 + $0x2c] sm:$0x1] }
  0x23   : > { %v2202_v19 = vrot.slane %v2200_v9, 5  ;;  %v295_v21 = vsel %vm7098_vm2, %v290_v12, %v294_v58  ;;  %v2206_v22 = vrot.slane %v2204_v14, 4  ;;  %v2948_v27 = vrot.slane %v7124_v1, 5 }
  0x24   : > { %v2212_v24 = vrot.slane %v2210_v15, 5  ;;  %v305_v30 = vsel %vm7098_vm2, %v300_v16, %v304_v4  ;;  %v2197_v31 = vor.u32 %v2196_v17, %v2193_v13  ;;  %v7143_v32 = vrot.slane %v2945_v20, 4  ;;  %v7176_v15 = vld [vmem:[%s7071_s8 + $0x34] sm:$0xf] }
  0x25   : > { %v307_v33 = vshrl.u32 %v203_v10, 16  ;;  %v5352_v35 = vcombine.low %v295_v21, %v305_v30  ;;  %v2207_v36 = vor.u32 %v2206_v22, %v2202_v19  ;;  %v310_v37 = vshll.u32 %v203_v10, 16  ;;  %v5568_v10 = vld [vmem:[%s7071_s8 + $0x30] sm:$0xf] }
  0x26   : > { %v316_v38 = vshll.u32 %v204_v11, 16  ;;  %v2198_v40 = vrot.slane %v2197_v31, 4  ;;  %v320_v42 = vshrl.u32 %v204_v11, 16  ;;  %v326_v43 = vshll.u32 %v241_v28, 16  ;;  %v6865_v31 = vld [vmem:[%s8986_s1 + $0xb0] sm:$0xff]  }
  0x27   : > { %v309_v41 = vrot.slane %v307_v33, 4  ;;  %6229 = vmatmul.mubr.msk.bf16.vlgmr.msra.gmra.mrb[0].mxu1 %vm723_vm3, %v5352_v35  ;;  %v2208_v45 = vrot.slane %v2207_v36, 4  ;;  %v312_v46 = vrot.slane %v310_v37, 5  ;;  %v2215_v49 = vshrl.u32 %v5565_v34, 16 }
  0x28   : > { %v318_v47 = vrot.slane %v316_v38, 5  ;;  %6261 = vmatpush3.bf16.msra.mxu1 %v7082_v18  ;;  %v2203_v50 = vsel %vm7098_vm2, %v2198_v40, %v2202_v19  ;;  %v322_v51 = vrot.slane %v320_v42, 4  ;;  %v328_v52 = vrot.slane %v326_v43, 5  ;;  %v7192_v40 = vld [vmem:[%s7071_s8 + $0x38] sm:$0x1] }
  0x29   : > { %v2218_v53 = vshll.u32 %v5565_v34, 16  ;;  %v2213_v18 = vsel %vm7098_vm2, %v2208_v45, %v2212_v24  ;;  %v313_v57 = vor.u32 %v312_v46, %v309_v41  ;;  %v2217_v58 = vrot.slane %v2215_v49, 4  ;;  %6262 = vmatprep.subr.bf16.mxu1 %v6864_v39  ;;  %v6866_v42 = vld [vmem:[%s8986_s1 + $0xb8] sm:$0xff]   ;;  %v207_v49 = vld [vmem:[%s7071_s8 + $0x30] sm:$0xf] }
  0x2a   : > { %v2224_v59 = vshll.u32 %v7150_v44, 16  ;;  %v5616_v0 = vcombine.low %v2203_v50, %v2213_v18  ;;  %v323_v2 = vor.u32 %v322_v51, %v318_v47  ;;  %v2228_v4 = vshrl.u32 %v7150_v44, 16 }
  0x2b   : > { %v2220_v3 = vrot.slane %v2218_v53, 5  ;;  %v314_v6 = vrot.slane %v313_v57, 4  ;;  %v2234_v8 = vshll.u32 %v7154_v48, 16  ;;  %v331_v9 = vshrl.u32 %v205_v55, 16 }
  0x2c   : > { %v2226_v7 = vrot.slane %v2224_v59, 5  ;;  %6389 = vmatmul.mubr.msk.bf16.vlgmr.msra.gmra.mrb[0].mxu0 %vm723_vm3, %v5616_v0  ;;  %v324_v11 = vrot.slane %v323_v2, 4  ;;  %v2230_v13 = vrot.slane %v2228_v4, 4  ;;  %v334_v14 = vshll.u32 %v205_v55, 16  ;;  %6263 = vmatpush3.bf16.msra.mxu1 %v6864_v39  ;;  %v208_v55 = vld [vmem:[%s7071_s8 + $0x34] sm:$0xf] }
  0x2d   : > { %v2221_v12 = vor.u32 %v2220_v3, %v2217_v58  ;;  %6421 = vmatpush3.bf16.msra.mxu0 %v7088_v23  ;;  %v319_v16 = vsel %vm7098_vm2, %v314_v6, %v318_v47  ;;  %v2236_v17 = vrot.slane %v2234_v8, 5  ;;  %v333_v19 = vrot.slane %v331_v9, 4  ;;  %6264 = vmatprep.subr.bf16.mxu1 %v6867_v56  ;;  %v6869_v23 = vld [vmem:[%s8986_s1 + $0x18] sm:$0xff]  }
  0x2e   : > { %v340_v21 = vshll.u32 %v206_v61, 16  ;;  %v329_v22 = vsel %vm7098_vm2, %v324_v11, %v328_v52  ;;  %v2231_v28 = vor.u32 %v2230_v13, %v2226_v7  ;;  %6422 = vmatprep.subr.bf16.mxu0 %v6863_v54  ;;  %v336_v30 = vrot.slane %v334_v14, 5  ;;  %v7216_v13 = vld [vmem:[%s8986_s1 + $0xc0] sm:$0xff]  }
  0x2f   : > { %v2222_v24 = vrot.slane %v2221_v12, 4  ;;  %v5353_v33 = vcombine.low %v319_v16, %v329_v22  ;;  %v344_v35 = vshrl.u32 %v206_v61, 16  ;;  %v350_v36 = vshll.u32 %v242_v5, 16  ;;  %v243_v5 = vld [vmem:[%s7071_s8 + $0x38] sm:$0x1] }
  0x30   : > { %v342_v34 = vrot.slane %v340_v21, 5  ;;  %v2232_v38 = vrot.slane %v2231_v28, 4  ;;  %v337_v39 = vor.u32 %v336_v30, %v333_v19  ;;  %v2239_v41 = vshrl.u32 %v5568_v10, 16  ;;  %6265 = vmatpush3.bf16.msra.mxu1 %v6867_v56  ;;  %v6872_v56 = vld [vmem:[%s8986_s1 + $0x40] sm:$0xff]   ;;  %v5571_v12 = vld [vmem:[%s7071_s8 + $0x3c] sm:$0xf] }
  0x31   : > { %v2227_v37 = vsel %vm7098_vm2, %v2222_v24, %v2226_v7  ;;  %6232 = vmatprep.mubr.msk.bf16.mxu1 %vm723_vm3, %v5353_v33  ;;  %v346_v43 = vrot.slane %v344_v35, 4  ;;  %v352_v45 = vrot.slane %v350_v36, 5  ;;  %v2242_v46 = vshll.u32 %v5568_v10, 16  ;;  %6423 = vmatpush3.bf16.msra.mxu0 %v6863_v54  ;;  %v7221_v21 = vld [vmem:[%s7071_s8 + $0x40] sm:$0xf] }
  0x32   : > { %v2248_v47 = vshll.u32 %v7176_v15, 16  ;;  %v2237_v50 = vsel %vm7098_vm2, %v2232_v38, %v2236_v17  ;;  %v338_v51 = vrot.slane %v337_v39, 4  ;;  %v2241_v52 = vrot.slane %v2239_v41, 4  ;;  %6424 = vmatprep.subr.bf16.mxu0 %v6865_v31  ;;  %6266 = vmatprep.subr.bf16.mxu1 %v6869_v23  ;;  %v7226_v33 = vld [vmem:[%s7071_s8 + $0x44] sm:$0x1] }
  0x33   : > { %v2252_v53 = vshrl.u32 %v7176_v15, 16  ;;  %v5617_v18 = vcombine.low %v2227_v37, %v2237_v50  ;;  %v347_v57 = vor.u32 %v346_v43, %v342_v34  ;;  %v2244_v58 = vrot.slane %v2242_v46, 5  ;;  %v209_v41 = vld [vmem:[%s7071_s8 + $0x3c] sm:$0xf] }
  0x34   : > { %v2250_v54 = vrot.slane %v2248_v47, 5  ;;  %v343_v59 = vsel %vm7098_vm2, %v338_v51, %v342_v34  ;;  %v2258_v0 = vshll.u32 %v7192_v40, 16  ;;  %v355_v2 = vshrl.u32 %v207_v49, 16  ;;  %6267 = vmatpush3.bf16.msra.mxu1 %v6869_v23 }
  0x35   : > { %v2254_v61 = vrot.slane %v2252_v53, 4  ;;  %6392 = vmatprep.mubr.msk.bf16.mxu0 %vm723_vm3, %v5617_v18  ;;  %v348_v3 = vrot.slane %v347_v57, 4  ;;  %v2245_v4 = vor.u32 %v2244_v58, %v2241_v52  ;;  %v358_v6 = vshll.u32 %v207_v49, 16  ;;  %6425 = vmatpush3.bf16.msra.mxu0 %v6865_v31  ;;  %v210_v49 = vld [vmem:[%s7071_s8 + $0x40] sm:$0xf] }
  0x36   : > { %v364_v7 = vshll.u32 %v208_v55, 16  ;;  %v2260_v9 = vrot.slane %v2258_v0, 5  ;;  %v357_v10 = vrot.slane %v355_v2, 4  ;;  %v368_v11 = vshrl.u32 %v208_v55, 16  ;;  %6426 = vmatprep.subr.bf16.mxu0 %v6866_v42  ;;  %6300 = vmatprep.subr.bf16.mxu1 %v6872_v56  ;;  %v244_v56 = vld [vmem:[%s7071_s8 + $0x44] sm:$0x1] }
  0x37   : > { %v2255_v8 = vor.u32 %v2254_v61, %v2250_v54  ;;  %v353_v14 = vsel %vm7098_vm2, %v348_v3, %v352_v45  ;;  %v2246_v16 = vrot.slane %v2245_v4, 4  ;;  %v360_v17 = vrot.slane %v358_v6, 5  ;;  %v5574_v58 = vld [vmem:[%s7071_s8 + $0x48] sm:$0xf]  ;;  %v7245_v2 = vld [vmem:[%s7071_s8 + $0x4c] sm:$0xf] }
  0x38   : > { %v366_v19 = vrot.slane %v364_v7, 5  ;;  %v5354_v22 = vcombine.low %v343_v59, %v353_v14  ;;  %v370_v28 = vrot.slane %v368_v11, 4  ;;  %v374_v30 = vshll.u32 %v243_v5, 16  ;;  %v7248_v7 = vld [vmem:[%s7071_s8 + $0x50] sm:$0x1] }
  0x39   : > { %v2256_v24 = vrot.slane %v2255_v8, 4  ;;  %v2251_v31 = vsel %vm7098_vm2, %v2246_v16, %v2250_v54  ;;  %v361_v23 = vor.u32 %v360_v17, %v357_v10  ;;  %v2263_v34 = vshrl.u32 %v5571_v12, 16  ;;  %6427 = vmatpush3.bf16.msra.mxu0 %v6866_v42 }
  0x3a   : > { %v2266_v35 = vshll.u32 %v5571_v12, 16  ;;  %6233 = vmatmul.mubr.msk.bf16.gmra.mrb[4].mxu1 %vm723_vm3, %v5354_v22  ;;  %v371_v37 = vor.u32 %v370_v28, %v366_v19  ;;  %v376_v38 = vrot.slane %v374_v30, 5  ;;  %v2272_v39 = vshll.u32 %v7221_v21, 16  ;;  %6460 = vmatprep.subr.bf16.mxu0 %v7216_v13 }
  0x3b   : > { %v2261_v36 = vsel %vm7098_vm2, %v2256_v24, %v2260_v9  ;;  %v362_v45 = vrot.slane %v361_v23, 4  ;;  %v2265_v46 = vrot.slane %v2263_v34, 4  ;;  %v2276_v51 = vshrl.u32 %v7221_v21, 16 }
  0x3c   : > { %v5618_v43 = vcombine.low %v2251_v31, %v2261_v36  ;;  %v2268_v47 = vrot.slane %v2266_v35, 5  ;;  %v372_v42 = vrot.slane %v371_v37, 4  ;;  %v2274_v50 = vrot.slane %v2272_v39, 5 }
  0x3d   : > { %v2282_v52 = vshll.u32 %v7226_v33, 16  ;;  %v367_v53 = vsel %vm7098_vm2, %v362_v45, %v366_v19  ;;  %v379_v18 = vshrl.u32 %v209_v41, 16  ;;  %v382_v57 = vshll.u32 %v209_v41, 16  ;;  %v211_v19 = vld [vmem:[%s7071_s8 + $0x48] sm:$0xf] }
  0x3e   : > { %6393 = vmatmul.mubr.msk.bf16.gmra.mrb[4].mxu0 %vm723_vm3, %v5618_v43  ;;  %v2269_v55 = vor.u32 %v2268_v47, %v2265_v46  ;;  %v377_v54 = vsel %vm7098_vm2, %v372_v42, %v376_v38  ;;  %v2278_v59 = vrot.slane %v2276_v51, 4  ;;  %v388_v0 = vshll.u32 %v210_v49, 16  ;;  %v212_v41 = vld [vmem:[%s7071_s8 + $0x4c] sm:$0xf] }
  0x3f   : > { %v2284_v61 = vrot.slane %v2282_v52, 5  ;;  %v5355_v3 = vcombine.low %v367_v53, %v377_v54  ;;  %v381_v5 = vrot.slane %v379_v18, 4  ;;  %v384_v6 = vrot.slane %v382_v57, 5  ;;  %v5577_v57 = vld [vmem:[%s7071_s8 + $0x54] sm:$0xf] }
  0x40   : > { %v2270_v4 = vrot.slane %v2269_v55, 4  ;;  %v2279_v8 = vor.u32 %v2278_v59, %v2274_v50  ;;  %v390_v9 = vrot.slane %v388_v0, 5  ;;  %v392_v10 = vshrl.u32 %v210_v49, 16  ;;  %v245_v49 = vld [vmem:[%s7071_s8 + $0x50] sm:$0x1] }
  0x41   : > { %v398_v11 = vshll.u32 %v244_v56, 16  ;;  %6236 = vmatprep.mubr.msk.bf16.mxu1 %vm723_vm3, %v5355_v3  ;;  %v385_v14 = vor.u32 %v384_v6, %v381_v5  ;;  %v2287_v16 = vshrl.u32 %v5574_v58, 16  ;;  %v2290_v17 = vshll.u32 %v5574_v58, 16  ;;  %v7268_v0 = vld [vmem:[%s7071_s8 + $0x58] sm:$0xf] }
  0x42   : > { %v2275_v12 = vsel %vm7098_vm2, %v2270_v4, %v2274_v50  ;;  %v2280_v22 = vrot.slane %v2279_v8, 4  ;;  %v394_v24 = vrot.slane %v392_v10, 4  ;;  %v2296_v30 = vshll.u32 %v7245_v2, 16 }
  0x43   : > { %v400_v28 = vrot.slane %v398_v11, 5  ;;  %v386_v31 = vrot.slane %v385_v14, 4  ;;  %v2289_v23 = vrot.slane %v2287_v16, 4  ;;  %v2292_v34 = vrot.slane %v2290_v17, 5  ;;  %v7273_v11 = vld [vmem:[%s7071_s8 + $0x5c] sm:$0x1] }
  0x44   : > { %v2300_v35 = vshrl.u32 %v7245_v2, 16  ;;  %v2285_v36 = vsel %vm7098_vm2, %v2280_v22, %v2284_v61  ;;  %v395_v37 = vor.u32 %v394_v24, %v390_v9  ;;  %v2298_v38 = vrot.slane %v2296_v30, 5  ;;  %v7281_v22 = vld [vmem:[%s7071_s8 + $0x54] sm:$0xf] }
  0x45   : > { %v2306_v39 = vshll.u32 %v7248_v7, 16  ;;  %v5619_v43 = vcombine.low %v2275_v12, %v2285_v36  ;;  %v391_v45 = vsel %vm7098_vm2, %v386_v31, %v390_v9  ;;  %v2293_v46 = vor.u32 %v2292_v34, %v2289_v23  ;;  %v7284_v23 = vld [vmem:[%s7071_s8 + $0x58] sm:$0xf] }
  0x46   : > { %v2302_v47 = vrot.slane %v2300_v35, 4  ;;  %v396_v42 = vrot.slane %v395_v37, 4  ;;  %v403_v51 = vshrl.u32 %v211_v19, 16  ;;  %v406_v52 = vshll.u32 %v211_v19, 16 }
  0x47   : > { %v2308_v50 = vrot.slane %v2306_v39, 5  ;;  %6396 = vmatprep.mubr.msk.bf16.mxu0 %vm723_vm3, %v5619_v43  ;;  %v2294_v53 = vrot.slane %v2293_v46, 4  ;;  %v412_v56 = vshll.u32 %v212_v41, 16  ;;  %v416_v18 = vshrl.u32 %v212_v41, 16  ;;  %v5580_v46 = vld [vmem:[%s7071_s8 + $0x60] sm:$0xf] }
  0x48   : > { %v2303_v55 = vor.u32 %v2302_v47, %v2298_v38  ;;  %v401_v58 = vsel %vm7098_vm2, %v396_v42, %v400_v28  ;;  %v405_v54 = vrot.slane %v403_v51, 4  ;;  %v408_v59 = vrot.slane %v406_v52, 5 }
  0x49   : > { %v422_v61 = vshll.u32 %v245_v49, 16  ;;  %v5356_v3 = vcombine.low %v391_v45, %v401_v58  ;;  %v2299_v4 = vsel %vm7098_vm2, %v2294_v53, %v2298_v38  ;;  %v414_v6 = vrot.slane %v412_v56, 5  ;;  %v246_v38 = vld [vmem:[%s7071_s8 + $0x5c] sm:$0x1]  ;;  %v7299_v56 = vld [vmem:[%s7071_s8 + $0x64] sm:$0xf] }
  0x4a   : > { %v2304_v5 = vrot.slane %v2303_v55, 4  ;;  %v409_v8 = vor.u32 %v408_v59, %v405_v54  ;;  %v418_v9 = vrot.slane %v416_v18, 4  ;;  %v2311_v12 = vshrl.u32 %v5577_v57, 16 }
  0x4b   : > { %v424_v10 = vrot.slane %v422_v61, 5  ;;  %6237 = vmatmul.mubr.msk.bf16.gmra.mrb[8].mxu1 %vm723_vm3, %v5356_v3  ;;  %v2314_v16 = vshll.u32 %v5577_v57, 16  ;;  %v2320_v17 = vshll.u32 %v7268_v0, 16  ;;  %v2324_v19 = vshrl.u32 %v7268_v0, 16 }
  0x4c   : > { %v2309_v14 = vsel %vm7098_vm2, %v2304_v5, %v2308_v50  ;;  %v410_v28 = vrot.slane %v409_v8, 4  ;;  %v419_v30 = vor.u32 %v418_v9, %v414_v6  ;;  %v2313_v31 = vrot.slane %v2311_v12, 4  ;;  %v7307_v8 = vld [vmem:[%s7071_s8 + $0x68] sm:$0x1]  ;;  %v7311_v12 = vld [vmem:[%s7071_s8 + $0x60] sm:$0xf] }
  0x4d   : > { %v5620_v24 = vcombine.low %v2299_v4, %v2309_v14  ;;  %v2316_v34 = vrot.slane %v2314_v16, 5  ;;  %v2322_v35 = vrot.slane %v2320_v17, 5  ;;  %v2326_v36 = vrot.slane %v2324_v19, 4 }
  0x4e   : > { %v2330_v37 = vshll.u32 %v7273_v11, 16  ;;  %v415_v39 = vsel %vm7098_vm2, %v410_v28, %v414_v6  ;;  %v420_v41 = vrot.slane %v419_v30, 4  ;;  %v427_v43 = vshrl.u32 %v7281_v22, 16 }
  0x4f   : > { %6397 = vmatmul.mubr.msk.bf16.gmra.mrb[8].mxu0 %vm723_vm3, %v5620_v24  ;;  %v430_v45 = vshll.u32 %v7281_v22, 16  ;;  %v2317_v47 = vor.u32 %v2316_v34, %v2313_v31  ;;  %v2327_v49 = vor.u32 %v2326_v36, %v2322_v35  ;;  %v436_v50 = vshll.u32 %v7284_v23, 16  ;;  %v7314_v24 = vld [vmem:[%s7071_s8 + $0x64] sm:$0xf] }
  0x50   : > { %v2332_v42 = vrot.slane %v2330_v37, 5  ;;  %v425_v51 = vsel %vm7098_vm2, %v420_v41, %v424_v10  ;;  %v429_v52 = vrot.slane %v427_v43, 4  ;;  %v440_v55 = vshrl.u32 %v7284_v23, 16 }
  0x51   : > { %v432_v53 = vrot.slane %v430_v45, 5  ;;  %v5357_v18 = vcombine.low %v415_v39, %v425_v51  ;;  %v2318_v57 = vrot.slane %v2317_v47, 4  ;;  %v2328_v58 = vrot.slane %v2327_v49, 4  ;;  %v5651_v47 = vld [vmem:[%s7071_s8 + $0xc] sm:$0xe] }
  0x52   : > { %v438_v54 = vrot.slane %v436_v50, 5  ;;  %v442_v61 = vrot.slane %v440_v55, 4  ;;  %v446_v3 = vshll.u32 %v246_v38, 16  ;;  %v2335_v4 = vshrl.u32 %v5580_v46, 16  ;;  %v247_v38 = vld [vmem:[%s7071_s8 + $0x68] sm:$0x1] }
  0x53   : > { %v433_v59 = vor.u32 %v432_v53, %v429_v52  ;;  %6240 = vmatprep.mubr.msk.bf16.mxu1 %vm723_vm3, %v5357_v18  ;;  %v2323_v5 = vsel %vm7098_vm2, %v2318_v57, %v2322_v35  ;;  %v2333_v6 = vsel %vm7098_vm2, %v2328_v58, %v2332_v42  ;;  %v2338_v9 = vshll.u32 %v5580_v46, 16  ;;  %v7336_v58 = vld [vmem:[%s7071_s8 + $0x6c] sm:$0xf] }
  0x54   : > { %v2344_v10 = vshll.u32 %v7299_v56, 16  ;;  %v5621_v14 = vcombine.low %v2323_v5, %v2333_v6  ;;  %v443_v17 = vor.u32 %v442_v61, %v438_v54  ;;  %v448_v19 = vrot.slane %v446_v3, 5 }
  0x55   : > { %v434_v16 = vrot.slane %v433_v59, 4  ;;  %v2337_v28 = vrot.slane %v2335_v4, 4  ;;  %v2340_v30 = vrot.slane %v2338_v9, 5  ;;  %v2348_v34 = vshrl.u32 %v7299_v56, 16 }
  0x56   : > { %v2346_v31 = vrot.slane %v2344_v10, 5  ;;  %6400 = vmatprep.mubr.msk.bf16.mxu0 %vm723_vm3, %v5621_v14  ;;  %v444_v36 = vrot.slane %v443_v17, 4  ;;  %v2354_v37 = vshll.u32 %v7307_v8, 16  ;;  %v451_v39 = vshrl.u32 %v7311_v12, 16  ;;  %v7348_v17 = vld [vmem:[%s7071_s8 + $0x70] sm:$0xf] }
  0x57   : > { %v439_v35 = vsel %vm7098_vm2, %v434_v16, %v438_v54  ;;  %v2341_v41 = vor.u32 %v2340_v30, %v2337_v28  ;;  %v2350_v43 = vrot.slane %v2348_v34, 4  ;;  %v454_v45 = vshll.u32 %v7311_v12, 16  ;;  %v248_v34 = vld [vmem:[%s7071_s8 + $0x74] sm:$0x1] }
  0x58   : > { %v460_v46 = vshll.u32 %v7314_v24, 16  ;;  %v449_v49 = vsel %vm7098_vm2, %v444_v36, %v448_v19  ;;  %v2356_v42 = vrot.slane %v2354_v37, 5  ;;  %v453_v50 = vrot.slane %v451_v39, 4 }
  0x59   : > { %v464_v51 = vshrl.u32 %v7314_v24, 16  ;;  %v5358_v52 = vcombine.low %v439_v35, %v449_v49  ;;  %v2342_v53 = vrot.slane %v2341_v41, 4  ;;  %v2351_v55 = vor.u32 %v2350_v43, %v2346_v31  ;;  %v5652_v35 = vld [vmem:[%s7071_s8 + $0x18] sm:$0xe] }
  0x5a   : > { %v456_v18 = vrot.slane %v454_v45, 5  ;;  %v462_v54 = vrot.slane %v460_v46, 5  ;;  %v470_v61 = vshll.u32 %v247_v38, 16  ;;  %v5667_v3 = vrot.slane %v5651_v47, 9  ;;  %v7365_v45 = vld [vmem:[%s7071_s8 + $0x78] sm:$0xf] }
  0x5b   : > { %v466_v59 = vrot.slane %v464_v51, 4  ;;  %6241 = vmatmul.mubr.msk.bf16.gmra.mrb[12].mxu1 %vm723_vm3, %v5358_v52  ;;  %v2347_v4 = vsel %vm7098_vm2, %v2342_v53, %v2346_v31  ;;  %v2352_v5 = vrot.slane %v2351_v55, 4  ;;  %v2940_v9 = vrot.slane %v2938_v62, 4  ;;  %v249_v55 = vld [vmem:[%s7071_s8 + $0x80] sm:$0x1] }
  0x5c   : > { %v457_v6 = vor.u32 %v456_v18, %v453_v50  ;;  %v472_v14 = vrot.slane %v470_v61, 5  ;;  %v2939_v16 = vsel %vm7331_vm6, %v5667_v3, %v2938_v62  ;;  %v475_v19 = vshrl.u32 %v7336_v58, 16 }
  0x5d   : > { %v467_v10 = vor.u32 %v466_v59, %v462_v54  ;;  %v2357_v28 = vsel %vm7098_vm2, %v2352_v5, %v2356_v42  ;;  %v2942_v31 = vsel %vm7331_vm6, %v2940_v9, %v2941_v63  ;;  %v478_v25 = vshll.u32 %v7336_v58, 16  ;;  %v7376_v42 = vld [vmem:[%s7071_s8 + $0x7c] sm:$0xf]  ;;  %v7390_v5 = vld [vmem:[%s7071_s8 + $0x84] sm:$0xf] }
  0x5e   : > { %v458_v30 = vrot.slane %v457_v6, 4  ;;  %v5622_v62 = vcombine.low %v2347_v4, %v2357_v28  ;;  %v5691_v37 = vcombine.low %v2939_v16, %v2942_v31  ;;  %v477_v38 = vrot.slane %v475_v19, 4 }
  0x5f   : > { %v468_v36 = vrot.slane %v467_v10, 4  ;;  %v480_v41 = vrot.slane %v478_v25, 5  ;;  %v484_v43 = vshll.u32 %v7348_v17, 16  ;;  %v488_v26 = vshrl.u32 %v7348_v17, 16  ;;  %v7394_v10 = vld [vmem:[%s7071_s8 + $0x88] sm:$0xf] }
  0x60   : > { %v463_v39 = vsel %vm7098_vm2, %v458_v30, %v462_v54  ;;  %6401 = vmatmul.mubr.msk.bf16.gmra.mrb[12].mxu0 %vm723_vm3, %v5622_v62  ;;  %v494_v46 = vshll.u32 %v248_v34, 16  ;;  %v5668_v47 = vrot.slane %v5652_v35, 9  ;;  %v2949_v49 = vsel %vm7331_vm6, %v7143_v32, %v2948_v27  ;;  %v5653_v32 = vld [vmem:[%s7071_s8 + $0x24] sm:$0xe]  ;;  %v6870_v35 = vld [vmem:[%s8986_s1 + $0xc8] sm:$0xff]  }
  0x61   : > { %v473_v63 = vsel %vm7098_vm2, %v468_v36, %v472_v14  ;;  %6428 = vmatprep.mubr.msk.bf16.mxu0 %vm723_vm3, %v5691_v37  ;;  %v481_v51 = vor.u32 %v480_v41, %v477_v38  ;;  %v486_v52 = vrot.slane %v484_v43, 5  ;;  %v490_v53 = vrot.slane %v488_v26, 4  ;;  %v250_v37 = vld [vmem:[%s7071_s8 + $0x8c] sm:$0x1] }
  0x62   : > { %v5359_v50 = vcombine.low %v463_v39, %v473_v63  ;;  %v496_v18 = vrot.slane %v494_v46, 5  ;;  %v2946_v1 = vsel %vm7331_vm6, %v5668_v47, %v2945_v20  ;;  %v499_v54 = vshrl.u32 %v7365_v45, 16  ;;  %v5654_v63 = vld [vmem:[%s7071_s8 + $0x30] sm:$0xe] }
  0x63   : > { %v502_v27 = vshll.u32 %v7365_v45, 16  ;;  %v482_v59 = vrot.slane %v481_v51, 4  ;;  %v491_v61 = vor.u32 %v490_v53, %v486_v52  ;;  %v5692_v3 = vcombine.low %v2946_v1, %v2949_v49 }
  0x64   : > { %6244 = vmatprep.mubr.msk.bf16.mxu1 %vm723_vm3, %v5359_v50  ;;  %v508_v4 = vshll.u32 %v7376_v42, 16  ;;  %v501_v6 = vrot.slane %v499_v54, 4  ;;  %v512_v9 = vshrl.u32 %v7376_v42, 16  ;;  %v518_v20 = vshll.u32 %v249_v55, 16 }
  0x65   : > { %v504_v60 = vrot.slane %v502_v27, 5  ;;  %v487_v14 = vsel %vm7098_vm2, %v482_v59, %v486_v52  ;;  %v492_v16 = vrot.slane %v491_v61, 4  ;;  %v5669_v28 = vrot.slane %v5653_v32, 9  ;;  %v7424_v27 = vld [vmem:[%s7071_s8 + $0x90] sm:$0xf] }
  0x66   : > { %v510_v19 = vrot.slane %v508_v4, 5  ;;  %v514_v31 = vrot.slane %v512_v9, 4  ;;  %v520_v34 = vrot.slane %v518_v20, 5  ;;  %v2952_v25 = vrot.slane %v7150_v44, 5  ;;  %v7427_v32 = vld [vmem:[%s7071_s8 + $0x94] sm:$0xf] }
  0x67   : > { %v505_v30 = vor.u32 %v504_v60, %v501_v6  ;;  %v497_v62 = vsel %vm7098_vm2, %v492_v16, %v496_v18  ;;  %v2955_v36 = vrot.slane %v7154_v48, 5  ;;  %v523_v38 = vshrl.u32 %v7390_v5, 16 }
  0x68   : > { %v526_v39 = vshll.u32 %v7390_v5, 16  ;;  %v5360_v41 = vcombine.low %v487_v14, %v497_v62  ;;  %6429 = vmatmul.mubr.msk.bf16.vlgmr.msra.gmra.mrb[0].mxu0 %vm723_vm3, %v5692_v3  ;;  %v515_v26 = vor.u32 %v514_v31, %v510_v19  ;;  %v2953_v44 = vsel %vm7331_vm6, %v5669_v28, %v2952_v25  ;;  %v251_v14 = vld [vmem:[%s7071_s8 + $0x98] sm:$0x1]  ;;  %v5655_v31 = vld [vmem:[%s7071_s8 + $0x3c] sm:$0xe] }
  0x69   : > { %v506_v43 = vrot.slane %v505_v30, 4  ;;  %6461 = vmatpush3.bf16.msra.mxu0 %v7216_v13  ;;  %v2954_v46 = vrot.slane %v2952_v25, 4  ;;  %v525_v48 = vrot.slane %v523_v38, 4  ;;  %v532_v49 = vshll.u32 %v7394_v10, 16  ;;  %v6873_v13 = vld [vmem:[%s8986_s1 + $0xd0] sm:$0xff]  }
  0x6a   : > { %v528_v47 = vrot.slane %v526_v39, 5  ;;  %6245 = vmatmul.mubr.msk.bf16.gmra.mrb[16].mxu1 %vm723_vm3, %v5360_v41  ;;  %v516_v51 = vrot.slane %v515_v26, 4  ;;  %v536_v52 = vshrl.u32 %v7394_v10, 16  ;;  %v542_v53 = vshll.u32 %v250_v37, 16  ;;  %6462 = vmatprep.subr.bf16.mxu0 %v6870_v35  ;;  %v7449_v62 = vld [vmem:[%s7071_s8 + $0x9c] sm:$0xf] }
  0x6b   : > { %v511_v50 = vsel %vm7098_vm2, %v506_v43, %v510_v19  ;;  %v2956_v55 = vsel %vm7331_vm6, %v2954_v46, %v2955_v36  ;;  %v534_v1 = vrot.slane %v532_v49, 5  ;;  %v5670_v54 = vrot.slane %v5654_v63, 9  ;;  %v7452_v41 = vld [vmem:[%s7071_s8 + $0xa0] sm:$0xf]  ;;  %v252_v46 = vld [vmem:[%s7071_s8 + $0xa4] sm:$0x1] }
  0x6c   : > { %v529_v18 = vor.u32 %v528_v47, %v525_v48  ;;  %v521_v59 = vsel %vm7098_vm2, %v516_v51, %v520_v34  ;;  %v5693_v61 = vcombine.low %v2953_v44, %v2956_v55  ;;  %v538_v3 = vrot.slane %v536_v52, 4  ;;  %v7463_v51 = vld [vmem:[%s8986_s1 + $0xe0] sm:$0xff]  }
  0x6d   : > { %v544_v4 = vrot.slane %v542_v53, 5  ;;  %v5361_v6 = vcombine.low %v511_v50, %v521_v59  ;;  %v2959_v9 = vrot.slane %v7176_v15, 5  ;;  %v2962_v20 = vrot.slane %v7192_v40, 5  ;;  %6463 = vmatpush3.bf16.msra.mxu0 %v6870_v35  ;;  %v6879_v15 = vld [vmem:[%s8986_s1 + $0xd8] sm:$0xff]  }
  0x6e   : > { %v530_v60 = vrot.slane %v529_v18, 4  ;;  %6432 = vmatprep.mubr.msk.bf16.mxu0 %vm723_vm3, %v5693_v61  ;;  %v539_v16 = vor.u32 %v538_v3, %v534_v1  ;;  %v547_v19 = vshrl.u32 %v7424_v27, 16  ;;  %v550_v28 = vshll.u32 %v7424_v27, 16  ;;  %6464 = vmatprep.subr.bf16.mxu0 %v6873_v13  ;;  %v5656_v18 = vld [vmem:[%s7071_s8 + $0x48] sm:$0xe] }
  0x6f   : > { %v556_v30 = vshll.u32 %v7427_v32, 16  ;;  %6248 = vmatprep.mubr.msk.bf16.mxu1 %vm723_vm3, %v5361_v6  ;;  %v2960_v34 = vsel %vm7331_vm6, %v5670_v54, %v2959_v9  ;;  %v2961_v25 = vrot.slane %v2959_v9, 4  ;;  %v560_v35 = vshrl.u32 %v7427_v32, 16  ;;  %v7472_v61 = vld [vmem:[%s7071_s8 + $0xa8] sm:$0xf] }
  0x70   : > { %v535_v40 = vsel %vm7098_vm2, %v530_v60, %v534_v1  ;;  %v540_v36 = vrot.slane %v539_v16, 4  ;;  %v549_v37 = vrot.slane %v547_v19, 4  ;;  %v552_v38 = vrot.slane %v550_v28, 5  ;;  %v7479_v60 = vld [vmem:[%s7071_s8 + $0xac] sm:$0xf] }
  0x71   : > { %v558_v39 = vrot.slane %v556_v30, 5  ;;  %v2963_v43 = vsel %vm7331_vm6, %v2961_v25, %v2962_v20  ;;  %v562_v26 = vrot.slane %v560_v35, 4  ;;  %v566_v44 = vshll.u32 %v251_v14, 16  ;;  %6465 = vmatpush3.bf16.msra.mxu0 %v6873_v13  ;;  %v253_v35 = vld [vmem:[%s7071_s8 + $0xb0] sm:$0x1] }
  0x72   : > { %v5671_v63 = vrot.slane %v5655_v31, 9  ;;  %v545_v48 = vsel %vm7098_vm2, %v540_v36, %v544_v4  ;;  %v5694_v47 = vcombine.low %v2960_v34, %v2963_v43  ;;  %v553_v49 = vor.u32 %v552_v38, %v549_v37  ;;  %6466 = vmatprep.subr.bf16.mxu0 %v6879_v15  ;;  %v5657_v36 = vld [vmem:[%s7071_s8 + $0x54] sm:$0xe] }
  0x73   : > { %v2966_v50 = vrot.slane %v7221_v21, 5  ;;  %v5362_v52 = vcombine.low %v535_v40, %v545_v48  ;;  %v563_v53 = vor.u32 %v562_v26, %v558_v39  ;;  %v568_v55 = vrot.slane %v566_v44, 5 }
  0x74   : > { %v2969_v13 = vrot.slane %v7226_v33, 5  ;;  %6433 = vmatmul.mubr.msk.bf16.gmra.mrb[4].mxu0 %vm723_vm3, %v5694_v47  ;;  %v554_v1 = vrot.slane %v553_v49, 4  ;;  %v571_v59 = vshrl.u32 %v7449_v62, 16  ;;  %v574_v4 = vshll.u32 %v7449_v62, 16 }
  0x75   : > { %v2967_v54 = vsel %vm7331_vm6, %v5671_v63, %v2966_v50  ;;  %v2968_v21 = vrot.slane %v2966_v50, 4  ;;  %6249 = vmatmul.mubr.msk.bf16.gmra.mrb[20].mxu1 %vm723_vm3, %v5362_v52  ;;  %v564_v3 = vrot.slane %v563_v53, 4  ;;  %v580_v6 = vshll.u32 %v7452_v41, 16  ;;  %6467 = vmatpush3.bf16.msra.mxu0 %v6879_v15  ;;  %v7501_v50 = vld [vmem:[%s7071_s8 + $0xb4] sm:$0xf] }
  0x76   : > { %v584_v33 = vshrl.u32 %v7452_v41, 16  ;;  %v559_v9 = vsel %vm7098_vm2, %v554_v1, %v558_v39  ;;  %v573_v14 = vrot.slane %v571_v59, 4  ;;  %v590_v16 = vshll.u32 %v252_v46, 16  ;;  %6500 = vmatprep.subr.bf16.mxu0 %v7463_v51 }
  0x77   : > { %v2970_v20 = vsel %vm7331_vm6, %v2968_v21, %v2969_v13  ;;  %v569_v19 = vsel %vm7098_vm2, %v564_v3, %v568_v55  ;;  %v576_v30 = vrot.slane %v574_v4, 5  ;;  %v582_v31 = vrot.slane %v580_v6, 5  ;;  %v7504_v13 = vld [vmem:[%s7071_s8 + $0xb8] sm:$0xf] }
  0x78   : > { %v5695_v28 = vcombine.low %v2967_v54, %v2970_v20  ;;  %v5363_v40 = vcombine.low %v559_v9, %v569_v19  ;;  %v586_v34 = vrot.slane %v584_v33, 4  ;;  %v592_v25 = vrot.slane %v590_v16, 5  ;;  %v254_v16 = vld [vmem:[%s7071_s8 + $0xbc] sm:$0x1]  ;;  %v5658_v19 = vld [vmem:[%s7071_s8 + $0x60] sm:$0xe] }
  0x79   : > { %v5672_v15 = vrot.slane %v5656_v18, 9  ;;  %v577_v37 = vor.u32 %v576_v30, %v573_v14  ;;  %v2973_v38 = vrot.slane %v7245_v2, 5  ;;  %v2976_v39 = vrot.slane %v7248_v7, 5 }
  0x7a   : > { %6436 = vmatprep.mubr.msk.bf16.mxu0 %vm723_vm3, %v5695_v28  ;;  %v595_v43 = vshrl.u32 %v7472_v61, 16  ;;  %6252 = vmatprep.mubr.msk.bf16.mxu1 %vm723_vm3, %v5363_v40  ;;  %v587_v26 = vor.u32 %v586_v34, %v582_v31  ;;  %v598_v44 = vshll.u32 %v7472_v61, 16  ;;  %v604_v63 = vshll.u32 %v7479_v60, 16 }
  0x7b   : > { %v608_v46 = vshrl.u32 %v7479_v60, 16  ;;  %v578_v48 = vrot.slane %v577_v37, 4  ;;  %v2974_v47 = vsel %vm7331_vm6, %v5672_v15, %v2973_v38  ;;  %v2975_v49 = vrot.slane %v2973_v38, 4  ;;  %v5584_v15 = vld [vmem:[%s7071_s8 + $0x70] sm:$0xf] }
  0x7c   : > { %v597_v2 = vrot.slane %v595_v43, 4  ;;  %v588_v7 = vrot.slane %v587_v26, 4  ;;  %v600_v52 = vrot.slane %v598_v44, 5  ;;  %v606_v53 = vrot.slane %v604_v63, 5  ;;  %v5659_v43 = vld [vmem:[%s7071_s8 + $0x6c] sm:$0xe] }
  0x7d   : > { %v610_v55 = vrot.slane %v608_v46, 4  ;;  %v583_v18 = vsel %vm7098_vm2, %v578_v48, %v582_v31  ;;  %v2977_v1 = vsel %vm7331_vm6, %v2975_v49, %v2976_v39  ;;  %v614_v54 = vshll.u32 %v253_v35, 16  ;;  %v5585_v35 = vld [vmem:[%s7071_s8 + $0x74] sm:$0x1] }
  0x7e   : > { %v5673_v21 = vrot.slane %v5657_v36, 9  ;;  %v593_v59 = vsel %vm7098_vm2, %v588_v7, %v592_v25  ;;  %v5696_v3 = vcombine.low %v2974_v47, %v2977_v1  ;;  %v601_v4 = vor.u32 %v600_v52, %v597_v2 }
  0x7f   : > { %v611_v6 = vor.u32 %v610_v55, %v606_v53  ;;  %v5364_v33 = vcombine.low %v583_v18, %v593_v59  ;;  %v616_v9 = vrot.slane %v614_v54, 5  ;;  %v2980_v20 = vrot.slane %v7268_v0, 5  ;;  %v5660_v59 = vld [vmem:[%s7071_s8 + $0x78] sm:$0xe] }
  0x80   : > { %v2983_v14 = vrot.slane %v7273_v11, 5  ;;  %6437 = vmatmul.mubr.msk.bf16.gmra.mrb[8].mxu0 %vm723_vm3, %v5696_v3  ;;  %v602_v28 = vrot.slane %v601_v4, 4  ;;  %v619_v31 = vshrl.u32 %v7501_v50, 16  ;;  %v622_v40 = vshll.u32 %v7501_v50, 16 }
  0x81   : > { %v612_v30 = vrot.slane %v611_v6, 4  ;;  %6253 = vmatmul.mubr.msk.bf16.gmra.mrb[24].mxu1 %vm723_vm3, %v5364_v33  ;;  %v2981_v34 = vsel %vm7331_vm6, %v5673_v21, %v2980_v20  ;;  %v2982_v25 = vrot.slane %v2980_v20, 4  ;;  %v628_v0 = vshll.u32 %v7504_v13, 16  ;;  %v7541_v6 = vld [vmem:[%s7071_s8 + $0x7c] sm:$0xf] }
  0x82   : > { %v632_v11 = vshrl.u32 %v7504_v13, 16  ;;  %v607_v36 = vsel %vm7098_vm2, %v602_v28, %v606_v53  ;;  %v621_v38 = vrot.slane %v619_v31, 4  ;;  %v624_v39 = vrot.slane %v622_v40, 5  ;;  %v6937_v28 = vld [vmem:[%s7071_s8] sm:$0xf] }
  0x83   : > { %v617_v37 = vsel %vm7098_vm2, %v612_v30, %v616_v9  ;;  %v2984_v44 = vsel %vm7331_vm6, %v2982_v25, %v2983_v14  ;;  %v630_v63 = vrot.slane %v628_v0, 5  ;;  %v638_v49 = vshll.u32 %v254_v16, 16  ;;  %v5590_v14 = vld [vmem:[%s7071_s8 + $0x88] sm:$0xf]  ;;  %v7557_v30 = vld [vmem:[%s7071_s8 + $0x4] sm:$0xf] }
  0x84   : > { %v5365_v26 = vcombine.low %v607_v36, %v617_v37  ;;  %v634_v46 = vrot.slane %v632_v11, 4  ;;  %v5697_v48 = vcombine.low %v2981_v34, %v2984_v44  ;;  %v625_v47 = vor.u32 %v624_v39, %v621_v38  ;;  %v5591_v40 = vld [vmem:[%s7071_s8 + $0x8c] sm:$0x1]  ;;  %v5661_v34 = vld [vmem:[%s7071_s8 + $0x84] sm:$0xe] }
  0x85   : > { %v5674_v2 = vrot.slane %v5658_v19, 9  ;;  %v2987_v52 = vrot.slane %v7299_v56, 5  ;;  %v2990_v53 = vrot.slane %v7307_v8, 5  ;;  %v5675_v55 = vrot.slane %v5659_v43, 9  ;;  %v7544_v8 = vld [vmem:[%s7071_s8 + $0x80] sm:$0x1] }
  0x86   : > { %6256 = vmatprep.mubr.msk.bf16.mxu1 %vm723_vm3, %v5365_v26  ;;  %v635_v7 = vor.u32 %v634_v46, %v630_v63  ;;  %6440 = vmatprep.mubr.msk.bf16.mxu0 %vm723_vm3, %v5697_v48  ;;  %v626_v18 = vrot.slane %v625_v47, 4  ;;  %v640_v1 = vrot.slane %v638_v49, 5  ;;  %v2994_v54 = vrot.slane %v5584_v15, 5  ;;  %v5593_v15 = vld [vmem:[%s7071_s8 + $0x94] sm:$0xf] }
  0x87   : > { %v2997_v21 = vrot.slane %v5585_v35, 5  ;;  %v2988_v4 = vsel %vm7331_vm6, %v5674_v2, %v2987_v52  ;;  %v2989_v56 = vrot.slane %v2987_v52, 4  ;;  %v5387_v31 = vcombine.low %v6937_v28, %v7557_v30  ;;  %v5594_v37 = vld [vmem:[%s7071_s8 + $0x98] sm:$0x1]  ;;  %v5662_v38 = vld [vmem:[%s7071_s8 + $0x90] sm:$0xe] }
  0x88   : > { %v636_v3 = vrot.slane %v635_v7, 4  ;;  %v631_v33 = vsel %vm7098_vm2, %v626_v18, %v630_v63  ;;  %v2995_v9 = vsel %vm7331_vm6, %v5675_v55, %v2994_v54  ;;  %v2996_v20 = vrot.slane %v2994_v54, 4  ;;  %v5596_v44 = vld [vmem:[%s7071_s8 + $0xa0] sm:$0xf]  ;;  %v5597_v2 = vld [vmem:[%s7071_s8 + $0xa4] sm:$0x1] }
  0x89   : > { %v2991_v19 = vsel %vm7331_vm6, %v2989_v56, %v2990_v53  ;;  %v5676_v36 = vrot.slane %v5660_v59, 9  ;;  %v3001_v39 = vrot.slane %v7541_v6, 5  ;;  %v3004_v43 = vrot.slane %v7544_v8, 5  ;;  %v6939_v7 = vld [vmem:[%s7071_s8 + $0xc] sm:$0xf] }
  0x8a   : > { %v641_v16 = vsel %vm7098_vm2, %v636_v3, %v640_v1  ;;  %v5698_v0 = vcombine.low %v2988_v4, %v2991_v19  ;;  %v2998_v11 = vsel %vm7331_vm6, %v2996_v20, %v2997_v21  ;;  %v5677_v26 = vrot.slane %v5661_v34, 9  ;;  %v7579_v52 = vld [vmem:[%s7071_s8 + $0x10] sm:$0xf]  ;;  %v5663_v1 = vld [vmem:[%s7071_s8 + $0x9c] sm:$0xe] }
  0x8b   : > { %v5366_v25 = vcombine.low %v631_v33, %v641_v16  ;;  %v5699_v35 = vcombine.low %v2995_v9, %v2998_v11  ;;  %v3008_v63 = vrot.slane %v5590_v14, 5  ;;  %v3011_v46 = vrot.slane %v5591_v40, 5  ;;  %v6941_v21 = vld [vmem:[%s7071_s8 + $0x18] sm:$0xf]  ;;  %v7589_v59 = vld [vmem:[%s7071_s8 + $0x1c] sm:$0xf] }
  0x8c   : > { %6441 = vmatmul.mubr.msk.bf16.gmra.mrb[12].mxu0 %vm723_vm3, %v5698_v0  ;;  %v3002_v48 = vsel %vm7331_vm6, %v5676_v36, %v3001_v39  ;;  %v3003_v47 = vrot.slane %v3001_v39, 4  ;;  %v3015_v49 = vrot.slane %v5593_v15, 5  ;;  %v5388_v53 = vcombine.low %v6939_v7, %v7579_v52  ;;  %v6878_v33 = vld [vmem:[%s8986_s1 + $0x48] sm:$0xff]   ;;  %v5600_v0 = vld [vmem:[%s7071_s8 + $0xb0] sm:$0x1]  ;;  %v6943_v11 = vld [vmem:[%s8986_s1 + $0x40] sm:$0xff]  }
  0x8d   : > { %6257 = vmatmul.mubr.msk.bf16.gmra.mrb[28].mxu1 %vm723_vm3, %v5366_v25  ;;  %6444 = vmatprep.mubr.msk.bf16.mxu0 %vm723_vm3, %v5699_v35  ;;  %v3009_v55 = vsel %vm7331_vm6, %v5677_v26, %v3008_v63  ;;  %v3010_v18 = vrot.slane %v3008_v63, 4  ;;  %v5389_v3 = vcombine.low %v6941_v21, %v7589_v59  ;;  %v5678_v4 = vrot.slane %v5662_v38, 9  ;;  %v5599_v40 = vld [vmem:[%s7071_s8 + $0xac] sm:$0xf]  ;;  %v5602_v25 = vld [vmem:[%s7071_s8 + $0xb8] sm:$0xf] }
  0x8e   : > { %6268 = vmatprep.mubr.msk.bf16.mxu1 %vm723_vm3, %v5387_v31  ;;  %v3005_v54 = vsel %vm7331_vm6, %v3003_v47, %v3004_v43  ;;  %v3018_v56 = vrot.slane %v5594_v37, 5  ;;  %v3017_v14 = vrot.slane %v3015_v49, 4  ;;  %v3022_v16 = vrot.slane %v5596_v44, 5  ;;  %v5664_v36 = vld [vmem:[%s7071_s8 + $0xa8] sm:$0xe]  ;;  %v6884_v26 = vld [vmem:[%s8986_s1 + $0x50] sm:$0xff]  }
  0x8f   : > { %v5700_v9 = vcombine.low %v3002_v48, %v3005_v54  ;;  %v3012_v20 = vsel %vm7331_vm6, %v3010_v18, %v3011_v46  ;;  %v5679_v28 = vrot.slane %v5663_v1, 9  ;;  %v3025_v31 = vrot.slane %v5597_v2, 5  ;;  %v5603_v44 = vld [vmem:[%s7071_s8 + $0xbc] sm:$0x1]  ;;  %v5665_v63 = vld [vmem:[%s7071_s8 + $0xb4] sm:$0xe] }
  0x90   : > { %v5701_v19 = vcombine.low %v3009_v55, %v3012_v20  ;;  %v3024_v34 = vrot.slane %v3022_v16, 4  ;;  %v3016_v15 = vsel %vm7331_vm6, %v5678_v4, %v3015_v49  ;;  %v3019_v35 = vsel %vm7331_vm6, %v3017_v14, %v3018_v56  ;;  %v6944_v46 = vld [vmem:[%s7071_s8 + $0x24] sm:$0xf]  ;;  %v7623_v48 = vld [vmem:[%s7071_s8 + $0x28] sm:$0xf] }
  0x91   : > { %v3029_v37 = vrot.slane %v5599_v40, 5  ;;  %v3023_v38 = vsel %vm7331_vm6, %v5679_v28, %v3022_v16  ;;  %v3036_v43 = vrot.slane %v5602_v25, 5  ;;  %v5390_v47 = vcombine.low %v6944_v46, %v7623_v48  ;;  %v6946_v2 = vld [vmem:[%s7071_s8 + $0x30] sm:$0xf]  ;;  %v7628_v7 = vld [vmem:[%s7071_s8 + $0x34] sm:$0xf] }
  0x92   : > { %v3026_v39 = vsel %vm7331_vm6, %v3024_v34, %v3025_v31  ;;  %v5702_v49 = vcombine.low %v3016_v15, %v3019_v35  ;;  %v5680_v18 = vrot.slane %v5664_v36, 9  ;;  %v3032_v54 = vrot.slane %v5600_v0, 5  ;;  %v5605_v56 = vld [vmem:[%s7071_s8 + $0xc4] sm:$0xf]  ;;  %v5666_v14 = vld [vmem:[%s7071_s8 + $0xc0] sm:$0xe] }
  0x93   : > { %v5703_v55 = vcombine.low %v3023_v38, %v3026_v39  ;;  %v3031_v1 = vrot.slane %v3029_v37, 4  ;;  %v5681_v21 = vrot.slane %v5665_v63, 9  ;;  %v3039_v4 = vrot.slane %v5603_v44, 5  ;;  %v5606_v31 = vld [vmem:[%s7071_s8 + $0xc8] sm:$0x1]  ;;  %v7652_v40 = vld [vmem:[%s8986_s1 + $0x60] sm:$0xff]  }
  0x94   : > { %6445 = vmatmul.mubr.msk.bf16.gmra.mrb[16].mxu0 %vm723_vm3, %v5700_v9  ;;  %v6894_v9 = vld [vmem:[%s8986_s1 + $0x58] sm:$0xff]   ;;  %v3043_v16 = vrot.slane %v5605_v56, 5  ;;  %v7656_v25 = vld [vmem:[%s7071_s8 + $0x40] sm:$0xf]  ;;  %v5682_v15 = vrot.slane %v5666_v14, 9  ;;  %v2392_v63 = vshll.u32 %v7541_v6, 16 }
  0x95   : > { %6269 = vmatmul.mubr.msk.bf16.vlgmr.msra.gmra.mrb[0].mxu1 %vm723_vm3, %v5388_v53  ;;  %6448 = vmatprep.mubr.msk.bf16.mxu0 %vm723_vm3, %v5701_v19  ;;  %v5391_v53 = vcombine.low %v6946_v2, %v7628_v7  ;;  %v3033_v20 = vsel %vm7331_vm6, %v3031_v1, %v3032_v54  ;;  %v3037_v19 = vsel %vm7331_vm6, %v5681_v21, %v3036_v43  ;;  %v6948_v34 = vld [vmem:[%s7071_s8 + $0x3c] sm:$0xf]  ;;  %v6950_v35 = vld [vmem:[%s7071_s8 + $0x48] sm:$0xf]  ;;  %v7661_v36 = vld [vmem:[%s7071_s8 + $0x4c] sm:$0xf] }
  0x96   : > { %6301 = vmatpush3.bf16.msra.mxu1 %v6943_v11  ;;  %6272 = vmatprep.mubr.msk.bf16.mxu1 %vm723_vm3, %v5389_v3  ;;  %v3038_v3 = vrot.slane %v3036_v43, 4  ;;  %v5392_v0 = vcombine.low %v6948_v34, %v7656_v25  ;;  %v3045_v39 = vrot.slane %v3043_v16, 4  ;;  %v3046_v43 = vrot.slane %v5606_v31, 5  ;;  %v1249_v56 = vld [vmem:[%s7071_s8 + $0x24] sm:$0xe] }
  0x97   : > { %6302 = vmatprep.subr.bf16.mxu1 %v6878_v33  ;;  %v2396_v46 = vshrl.u32 %v7541_v6, 16  ;;  %v5395_v2 = vcombine.low %v7311_v12, %v7314_v24  ;;  %v7681_v1 = vrot.slane %v2392_v63, 5  ;;  %v1306_v21 = vrot.slane %v7579_v52, 5  ;;  %v1247_v12 = vld [vmem:[%s7071_s8 + $0xc] sm:$0xe] }
  0x98   : > { %v3040_v28 = vsel %vm7331_vm6, %v3038_v3, %v3039_v4  ;;  %v3047_v44 = vsel %vm7331_vm6, %v3045_v39, %v3046_v43  ;;  %v6953_v24 = vld [vmem:[%s7071_s8 + $0x14] sm:$0x1]  ;;  %v1248_v3 = vld [vmem:[%s7071_s8 + $0x18] sm:$0xe]  ;;  %v1313_v52 = vrot.slane %v7589_v59, 5  ;;  %v2402_v4 = vshll.u32 %v7544_v8, 16 }
  0x99   : > { %v5705_v38 = vcombine.low %v3037_v19, %v3040_v28  ;;  %9005 = vst [vmem:[#allocation2_spill] sm:$0xff] %v7681_v1  ;;  %v7683_v54 = vrot.slane %v2396_v46, 4  ;;  %v1309_v6 = vrot.slane %v6953_v24, 5  ;;  %v5397_v19 = vcombine.low %v7365_v45, %v7376_v42  ;;  %v6890_v59 = vld [vmem:[%s7071_s8 + $0x30] sm:$0xff]   ;;  %v6896_v8 = vld [vmem:[%s8986_s1 + $0xe8] sm:$0xff]  }
  0x9a   : > { %6303 = vmatpush3.bf16.msra.mxu1 %v6878_v33  ;;  %v3030_v33 = vsel %vm7331_vm6, %v5680_v18, %v3029_v37  ;;  %v5393_v37 = vcombine.low %v6950_v35, %v7661_v36  ;;  %v5425_v31 = vrot.slane %v1248_v3, 9  ;;  %v1250_v34 = vld [vmem:[%s7071_s8 + $0x30] sm:$0xe]  ;;  %v5398_v35 = vcombine.low %v7390_v5, %v7394_v10  ;;  %v5803_v24 = vld [vmem:[%s7071_s8 + $0x18] sm:$0xf] }
  0x9b   : > { %6304 = vmatprep.subr.bf16.mxu1 %v6884_v26  ;;  %v5704_v11 = vcombine.low %v3030_v33, %v3033_v20  ;;  %v5396_v33 = vcombine.low %v7336_v58, %v7348_v17  ;;  %v6888_v20 = vld [vmem:[%s7071_s8 + $0x24] sm:$0xff]   ;;  %v5426_v58 = vrot.slane %v1249_v56, 9  ;;  %v1327_v17 = vrot.slane %v7628_v7, 5 }
  0x9c   : > { %6449 = vmatmul.mubr.msk.bf16.gmra.mrb[20].mxu0 %vm723_vm3, %v5702_v49  ;;  %v5399_v45 = vcombine.low %v7424_v27, %v7427_v32  ;;  %v5400_v39 = vcombine.low %v7449_v62, %v7452_v41  ;;  %v6961_v10 = vld [vmem:[%s7071_s8 + $0x64] sm:$0xf] }
  0x9d   : > { %6273 = vmatmul.mubr.msk.bf16.gmra.mrb[4].mxu1 %vm723_vm3, %v5390_v47  ;;  %6452 = vmatprep.mubr.msk.bf16.mxu0 %vm723_vm3, %v5703_v55  ;;  %v5394_v47 = vcombine.low %v7281_v22, %v7284_v23  ;;  %v6952_v55 = vld [vmem:[%s7071_s8 + $0x8] sm:$0x1]  ;;  %v1246_v22 = vld [vmem:[%s7071_s8] sm:$0xe]  ;;  %v1299_v23 = vrot.slane %v7557_v30, 5 }
  0x9e   : > { %6276 = vmatprep.mubr.msk.bf16.mxu1 %vm723_vm3, %v5391_v53  ;;  %6305 = vmatpush3.bf16.msra.mxu1 %v6884_v26  ;;  %v3044_v26 = vsel %vm7331_vm6, %v5682_v15, %v3043_v16  ;;  %v6885_v53 = vld [vmem:[%s7071_s8 + $0x18] sm:$0xff]   ;;  %v1302_v18 = vrot.slane %v6952_v55, 5  ;;  %v5423_v14 = vrot.slane %v1246_v22, 9  ;;  %v5424_v16 = vrot.slane %v1247_v12, 9  ;;  %v1252_v22 = vld [vmem:[%s7071_s8 + $0x48] sm:$0xe] }
  0x9f   : > { %6306 = vmatprep.subr.bf16.mxu1 %v6894_v9  ;;  %v5706_v49 = vcombine.low %v3044_v26, %v3047_v44  ;;  %v1301_v28 = vrot.slane %v1299_v23, 4  ;;  %v1334_v26 = vrot.slane %v7656_v25, 5  ;;  %v7729_v44 = vrot.slane %v2402_v4, 5  ;;  %v1251_v25 = vld [vmem:[%s7071_s8 + $0x3c] sm:$0xe] }
  0xa0   : > { %v7722_v43 = vsel %vm7331_vm6, %v5423_v14, %v1299_v23  ;;  %v7726_v7 = vsel %vm7331_vm6, %v5424_v16, %v1306_v21  ;;  %v1329_v55 = vrot.slane %v1327_v17, 4  ;;  %v5428_v3 = vrot.slane %v1251_v25, 9  ;;  %v6957_v4 = vld [vmem:[%s7071_s8 + $0x44] sm:$0x1]  ;;  %v6895_v14 = vld [vmem:[%s7071_s8 + $0x48] sm:$0xff]  }
  0xa1   : > { %9006 = vst [vmem:[#allocation3_spill] sm:$0xff] %v7729_v44  ;;  %v7735_v63 = vsel %vm7331_vm6, %v1301_v28, %v1302_v18  ;;  %v6956_v18 = vld [vmem:[%s7071_s8 + $0x38] sm:$0x1]  ;;  %v1337_v56 = vrot.slane %v6957_v4, 5  ;;  %v7783_v28 = vld [vmem:[%s7071_s8 + $0x54] sm:$0xe] }
  0xa2   : > { %6307 = vmatpush3.bf16.msra.mxu1 %v6894_v9  ;;  %v1320_v9 = vrot.slane %v7623_v48, 5  ;;  %v1308_v48 = vrot.slane %v1306_v21, 4  ;;  %v1330_v21 = vrot.slane %v6956_v18, 5  ;;  %v6958_v25 = vld [vmem:[%s7071_s8 + $0x50] sm:$0x1] }
  0xa3   : > { %6340 = vmatprep.subr.bf16.mxu1 %v7652_v40  ;;  %v5806_v18 = vld [vmem:[%s7071_s8 + $0x24] sm:$0xf] }
  0xa4   : > { %6453 = vmatmul.mubr.msk.bf16.gmra.mrb[24].mxu0 %vm723_vm3, %v5704_v11  ;;  %v6954_v11 = vld [vmem:[%s7071_s8 + $0x20] sm:$0x1]  ;;  %v1322_v42 = vrot.slane %v1320_v9, 4  ;;  %v7739_v46 = vsel %vm7331_vm6, %v1308_v48, %v1309_v6  ;;  %v7762_v23 = vsel %vm7331_vm6, %v5426_v58, %v1320_v9  ;;  %v5804_v6 = vld [vmem:[%s7071_s8 + $0x1c] sm:$0xf]  ;;  %v7791_v48 = vsel %vm7331_vm6, %v1329_v55, %v1330_v21 }
  0xa5   : > { %6277 = vmatmul.mubr.msk.bf16.gmra.mrb[8].mxu1 %vm723_vm3, %v5392_v0  ;;  %6456 = vmatprep.mubr.msk.bf16.mxu0 %vm723_vm3, %v5705_v38  ;;  %v1315_v0 = vrot.slane %v1313_v52, 4  ;;  %v1316_v15 = vrot.slane %v6954_v11, 5  ;;  %v3815_v58 = vshll.u32 %v5804_v6, 16  ;;  %v5805_v55 = vld [vmem:[%s7071_s8 + $0x20] sm:$0x1]  ;;  %v5430_v21 = vrot.slane %v7783_v28, 9 }
  0xa6   : > { %6280 = vmatprep.mubr.msk.bf16.mxu1 %vm723_vm3, %v5393_v37  ;;  %v6955_v37 = vld [vmem:[%s7071_s8 + $0x2c] sm:$0x1]  ;;  %v6898_v28 = vld [vmem:[%s7071_s8 + $0x54] sm:$0xff]  }
  0xa7   : > { %v1323_v38 = vrot.slane %v6955_v37, 5  ;;  %v7838_v32 = vrot.slane %v3815_v58, 5  ;;  %v5810_v58 = vld [vmem:[%s7071_s8 + $0x34] sm:$0xf] }
  0xa8   : > { %v3863_v9 = vshll.u32 %v5810_v58, 16 }
  0xa9   : > { %v7766_v12 = vsel %vm7331_vm6, %v1322_v42, %v1323_v38  ;;  %v7803_v42 = vsel %vm7331_vm6, %v5428_v3, %v1334_v26 }
  0xac   : > { %6457 = vmatmul.mubr.msk.bf16.gmra.mrb[28].mxu0 %vm723_vm3, %v5706_v49  ;;  %v6905_v49 = vld [vmem:[%s8986_s1 + $0xf0] sm:$0xff]  }
  0xad   : > { %6281 = vmatmul.mubr.msk.bf16.gmra.mrb[12].mxu1 %vm723_vm3, %v5394_v47  ;;  %6468 = vmatprep.mubr.msk.bf16.mxu0 %vm723_vm3, %v6885_v53  ;;  %v7743_v47 = vsel %vm7331_vm6, %v5425_v31, %v1313_v52  ;;  %v5427_v53 = vrot.slane %v1250_v34, 9  ;;  %v1336_v52 = vrot.slane %v1334_v26, 4  ;;  %v7794_v31 = vld [vmem:[%s7071_s8 + $0x60] sm:$0xe]  ;;  %v3806_v34 = vshrl.u32 %v5803_v24, 16 }
  0xae   : > { %6284 = vmatprep.mubr.msk.bf16.mxu1 %vm723_vm3, %v5395_v2  ;;  %v7753_v2 = vsel %vm7331_vm6, %v1315_v0, %v1316_v15  ;;  %v3809_v0 = vshll.u32 %v5803_v24, 16  ;;  %v5429_v15 = vrot.slane %v1252_v22, 9  ;;  %v6959_v22 = vld [vmem:[%s7071_s8 + $0x58] sm:$0xf]  ;;  %v5431_v5 = vrot.slane %v7794_v31, 9  ;;  %v6900_v31 = vld [vmem:[%s7071_s8 + $0x60] sm:$0xff]  }
  0xaf   : > { %v7807_v37 = vsel %vm7331_vm6, %v1336_v52, %v1337_v56  ;;  %v1348_v24 = vrot.slane %v6959_v22, 5  ;;  %v5807_v52 = vld [vmem:[%s7071_s8 + $0x28] sm:$0xf]  ;;  %v3808_v4 = vrot.slane %v3806_v34, 4  ;;  %v6962_v22 = vld [vmem:[%s7071_s8 + $0x70] sm:$0xf] }
  0xb0   : > { %v3811_v56 = vrot.slane %v3809_v0, 5  ;;  %v7851_v0 = vld [vmem:[%s8986_s1 + $0x100] sm:$0xff]   ;;  %v6963_v26 = vld [vmem:[%s7071_s8 + $0x68] sm:$0x1] }
  0xb1   : > { %v1358_v11 = vrot.slane %v6963_v26, 5  ;;  %v6964_v26 = vld [vmem:[%s7071_s8 + $0x74] sm:$0x1]  ;;  %v7878_v62 = vsel %vm7331_vm6, %v5430_v21, %v1348_v24 }
  0xb4   : > { %6469 = vmatmul.mubr.msk.bf16.vlgmr.msra.gmra.mrb[0].mxu0 %vm723_vm3, %v6888_v20  ;;  %v6892_v20 = vld [vmem:[%s7071_s8 + $0x3c] sm:$0xff]  }
  0xb5   : > { %6285 = vmatmul.mubr.msk.bf16.gmra.mrb[16].mxu1 %vm723_vm3, %v5396_v33  ;;  %6501 = vmatpush3.bf16.msra.mxu0 %v7463_v51  ;;  %v1341_v33 = vrot.slane %v7661_v36, 5  ;;  %v7787_v36 = vsel %vm7331_vm6, %v5427_v53, %v1327_v17  ;;  %v3819_v17 = vshrl.u32 %v5804_v6, 16  ;;  %v1344_v53 = vrot.slane %v6958_v25, 5  ;;  %v6960_v6 = vld [vmem:[%s7071_s8 + $0x5c] sm:$0x1] }
  0xb6   : > { %6288 = vmatprep.mubr.msk.bf16.mxu1 %vm723_vm3, %v5397_v19  ;;  %6472 = vmatprep.mubr.msk.bf16.mxu0 %vm723_vm3, %v6890_v59  ;;  %v1351_v3 = vrot.slane %v6960_v6, 5  ;;  %v1362_v6 = vrot.slane %v6962_v22, 5  ;;  %v3843_v25 = vshrl.u32 %v5807_v52, 16  ;;  %v5808_v19 = vld [vmem:[%s7071_s8 + $0x2c] sm:$0x1] }
  0xb7   : > { %6502 = vmatprep.subr.bf16.mxu0 %v6896_v8  ;;  %v1343_v38 = vrot.slane %v1341_v33, 4  ;;  %v7836_v27 = vsel %vm7331_vm6, %v5429_v15, %v1341_v33  ;;  %v3830_v33 = vshrl.u32 %v5806_v18, 16  ;;  %v3833_v15 = vshll.u32 %v5806_v18, 16 }
  0xb8   : > { %v3867_v18 = vshrl.u32 %v5810_v58, 16  ;;  %v1256_v58 = vld [vmem:[%s7071_s8 + $0x78] sm:$0xe] }
  0xb9   : > { %6503 = vmatpush3.bf16.msra.mxu0 %v6896_v8  ;;  %v6911_v8 = vld [vmem:[%s8986_s1 + $0xf8] sm:$0xff]   ;;  %v7846_v34 = vsel %vm7331_vm6, %v1343_v38, %v1344_v53  ;;  %v3832_v22 = vrot.slane %v3830_v33, 4  ;;  %v3835_v51 = vrot.slane %v3833_v15, 5  ;;  %v3849_v33 = vshll.u32 %v5808_v19, 16 }
  0xba   : > { %6504 = vmatprep.subr.bf16.mxu0 %v6905_v49  ;;  %v6904_v15 = vld [vmem:[%s7071_s8 + $0x78] sm:$0xff]  }
  0xbc   : > { %6473 = vmatmul.mubr.msk.bf16.gmra.mrb[4].mxu0 %vm723_vm3, %v6892_v20  ;;  %v5809_v20 = vld [vmem:[%s7071_s8 + $0x30] sm:$0xf] }
  0xbd   : > { %6289 = vmatmul.mubr.msk.bf16.gmra.mrb[20].mxu1 %vm723_vm3, %v5398_v35  ;;  %6476 = vmatprep.mubr.msk.bf16.mxu0 %vm723_vm3, %v6895_v14  ;;  %v1355_v35 = vrot.slane %v6961_v10, 5  ;;  %v7841_v14 = vld [vmem:[%s7071_s8 + $0x6c] sm:$0xe]  ;;  %v3839_v10 = vshll.u32 %v5807_v52, 16  ;;  %v3854_v38 = vshrl.u32 %v5809_v20, 16  ;;  %v3857_v53 = vshll.u32 %v5809_v20, 16 }
  0xbe   : > { %6292 = vmatprep.mubr.msk.bf16.mxu1 %vm723_vm3, %v5399_v45  ;;  %6505 = vmatpush3.bf16.msra.mxu0 %v6905_v49  ;;  %v3821_v45 = vrot.slane %v3819_v17, 4  ;;  %v3825_v49 = vshll.u32 %v5805_v55, 16  ;;  %v1350_v17 = vrot.slane %v1348_v24, 4  ;;  %v3812_v55 = vor.u32 %v3811_v56, %v3808_v4 }
  0xbf   : > { %6506 = vmatprep.subr.bf16.mxu0 %v6911_v8  ;;  %v1357_v30 = vrot.slane %v1355_v35, 4  ;;  %v5432_v52 = vrot.slane %v7841_v14, 9  ;;  %v1365_v4 = vrot.slane %v6964_v26, 5  ;;  %v7868_v56 = vrot.slane %v3839_v10, 5 }
  0xc0   : > { %v3822_v59 = vor.u32 %v3821_v45, %v7838_v32  ;;  %v7858_v16 = vrot.slane %v3825_v49, 5  ;;  %v3845_v20 = vrot.slane %v3843_v25, 4  ;;  %v5811_v45 = vld [vmem:[%s7071_s8 + $0x38] sm:$0x1]  ;;  %v9007_v14 = vcombine.low %v7472_v61, %v7479_v60 }
  0xc1   : > { %v7882_v41 = vsel %vm7331_vm6, %v1350_v17, %v1351_v3  ;;  %v3813_v25 = vrot.slane %v3812_v55, 4  ;;  %v7884_v61 = vrot.slane %v3863_v9, 5  ;;  %v3869_v60 = vrot.slane %v3867_v18, 4  ;;  %v6902_v3 = vld [vmem:[%s7071_s8 + $0x6c] sm:$0xff]   ;;  %v6965_v17 = vld [vmem:[%s7071_s8 + $0x7c] sm:$0xf] }
  0xc2   : > { %6507 = vmatpush3.bf16.msra.mxu0 %v6911_v8  ;;  %v1364_v8 = vrot.slane %v1362_v6, 4  ;;  %v3823_v49 = vrot.slane %v3822_v59, 4  ;;  %v7890_v21 = vsel %vm7331_vm6, %v5431_v5, %v1355_v35  ;;  %v3836_v24 = vor.u32 %v3835_v51, %v3832_v22  ;;  %v6966_v22 = vld [vmem:[%s7071_s8 + $0x88] sm:$0xf] }
  0xc3   : > { %6540 = vmatprep.subr.bf16.mxu0 %v7851_v0  ;;  %v3846_v9 = vor.u32 %v3845_v20, %v7868_v56  ;;  %v1369_v10 = vrot.slane %v6965_v17, 5  ;;  %v7901_v5 = vsel %vm7331_vm6, %v1357_v30, %v1358_v11  ;;  %v7905_v51 = vsel %vm7331_vm6, %v5432_v52, %v1362_v6  ;;  %v1257_v11 = vld [vmem:[%s7071_s8 + $0x84] sm:$0xe]  ;;  %v5813_v52 = vld [vmem:[%s7071_s8 + $0x40] sm:$0xf] }
  0xc4   : > { %6477 = vmatmul.mubr.msk.bf16.gmra.mrb[8].mxu0 %vm723_vm3, %v6898_v28  ;;  %v3859_v28 = vrot.slane %v3857_v53, 5  ;;  %v7909_v19 = vsel %vm7331_vm6, %v1364_v8, %v1365_v4  ;;  %v5812_v53 = vld [vmem:[%s7071_s8 + $0x3c] sm:$0xf]  ;;  %v3818_v55 = vsel %vm7098_vm2, %v3813_v25, %v7838_v32  ;;  %v3828_v18 = vsel %vm7098_vm2, %v3823_v49, %v7858_v16  ;;  %v6967_v20 = vld [vmem:[%s7071_s8 + $0x80] sm:$0x1] }
  0xc5   : > { %6293 = vmatmul.mubr.msk.bf16.gmra.mrb[24].mxu1 %vm723_vm3, %v5400_v39  ;;  %6480 = vmatprep.mubr.msk.bf16.mxu0 %vm723_vm3, %v6900_v31  ;;  %v3856_v39 = vrot.slane %v3854_v38, 4  ;;  %v3873_v38 = vshll.u32 %v5811_v45, 16  ;;  %v3870_v30 = vor.u32 %v3869_v60, %v7884_v61  ;;  %v1376_v6 = vrot.slane %v6966_v22, 5  ;;  %v6907_v22 = vld [vmem:[%s7071_s8 + $0x90] sm:$0xff]  }
  0xc6   : > { %6296 = vmatprep.mubr.msk.bf16.mxu1 %vm723_vm3, %v9007_v14  ;;  %v3837_v26 = vrot.slane %v3836_v24, 4  ;;  %v3851_v8 = vrot.slane %v3849_v33, 5  ;;  %v5433_v4 = vrot.slane %v1256_v58, 9  ;;  %v1372_v45 = vrot.slane %v6967_v20, 5  ;;  %v6906_v33 = vld [vmem:[%s7071_s8 + $0x84] sm:$0xff]  }
  0xc7   : > { %v3860_v35 = vor.u32 %v3859_v28, %v3856_v39  ;;  %v9008_v32 = vcombine.low %v7501_v50, %v7504_v13  ;;  %v3847_v16 = vrot.slane %v3846_v9, 4  ;;  %v1371_v14 = vrot.slane %v1369_v10, 4  ;;  %v5814_v13 = vld [vmem:[%s7071_s8 + $0x44] sm:$0x1]  ;;  %v6968_v58 = vld [vmem:[%s7071_s8 + $0x8c] sm:$0x1] }
  0xc8   : > { %v3875_v39 = vrot.slane %v3873_v38, 5  ;;  %v3878_v28 = vshrl.u32 %v5812_v53, 16  ;;  %v9009_v25 = vcombine.low %v7722_v43, %v7735_v63  ;;  %v5434_v50 = vrot.slane %v1257_v11, 9  ;;  %v5815_v43 = vld [vmem:[%s7071_s8 + $0x48] sm:$0xf] }
  0xc9   : > { %v3861_v49 = vrot.slane %v3860_v35, 4  ;;  %v3881_v60 = vshll.u32 %v5812_v53, 16  ;;  %v3887_v24 = vshll.u32 %v5813_v52, 16  ;;  %v1378_v9 = vrot.slane %v1376_v6, 4  ;;  %v7948_v11 = vld [vmem:[%s7071_s8 + $0x4c] sm:$0xf] }
  0xca   : > { %v1379_v17 = vrot.slane %v6968_v58, 5  ;;  %v3891_v38 = vshrl.u32 %v5813_v52, 16  ;;  %v7945_v53 = vsel %vm7331_vm6, %v5433_v4, %v1369_v10  ;;  %v6909_v52 = vld [vmem:[%s8986_s1 + $0x68] sm:$0xff]   ;;  %v7962_v10 = vsel %vm7331_vm6, %v1371_v14, %v1372_v45  ;;  %v7965_v20 = vld [vmem:[%s7071_s8 + $0x58] sm:$0xf] }
  0xcb   : > { %v3880_v4 = vrot.slane %v3878_v28, 4  ;;  %v3897_v14 = vshll.u32 %v5814_v13, 16  ;;  %v1258_v28 = vld [vmem:[%s7071_s8 + $0x90] sm:$0xe]  ;;  %v3902_v58 = vshrl.u32 %v5815_v43, 16  ;;  %v3905_v35 = vshll.u32 %v5815_v43, 16 }
  0xcc   : > { %6481 = vmatmul.mubr.msk.bf16.gmra.mrb[12].mxu0 %vm723_vm3, %v6902_v3  ;;  %v3871_v3 = vrot.slane %v3870_v30, 4  ;;  %v5818_v30 = vld [vmem:[%s7071_s8 + $0x54] sm:$0xf]  ;;  %v7980_v45 = vsel %vm7331_vm6, %v1378_v9, %v1379_v17  ;;  %v5435_v9 = vrot.slane %v1258_v28, 9  ;;  %v5821_v17 = vld [vmem:[%s7071_s8 + $0x60] sm:$0xf] }
  0xcd   : > { %6297 = vmatmul.mubr.msk.bf16.gmra.mrb[28].mxu1 %vm723_vm3, %v9008_v32  ;;  %6484 = vmatprep.mubr.msk.bf16.mxu0 %vm723_vm3, %v6904_v15  ;;  %v7939_v15 = vcombine.low %v3818_v55, %v3828_v18  ;;  %v3842_v55 = vsel %vm7098_vm2, %v3837_v26, %v7868_v56  ;;  %v3852_v18 = vsel %vm7098_vm2, %v3847_v16, %v3851_v8  ;;  %v3883_v56 = vrot.slane %v3881_v60, 5  ;;  %v6970_v63 = vld [vmem:[%s7071_s8 + $0x98] sm:$0x1] }
  0xce   : > { %6308 = vmatprep.mubr.msk.bf16.mxu1 %vm723_vm3, %v9009_v25  ;;  %v3866_v32 = vsel %vm7098_vm2, %v3861_v49, %v7884_v61  ;;  %v7972_v25 = vsel %vm7331_vm6, %v5434_v50, %v1376_v6  ;;  %v7974_v26 = vrot.slane %v3887_v24, 5  ;;  %v3876_v8 = vsel %vm7098_vm2, %v3871_v3, %v3875_v39  ;;  %v7991_v39 = vld [vmem:[%s7071_s8 + $0x50] sm:$0x1] }
  0xcf   : > { %v3893_v16 = vrot.slane %v3891_v38, 4  ;;  %v3911_v61 = vshll.u32 %v7948_v11, 16  ;;  %v3915_v6 = vshrl.u32 %v7948_v11, 16  ;;  %v9010_v49 = vcombine.low %v7726_v7, %v7739_v46  ;;  %v8006_v38 = vld [vmem:[%s7071_s8 + $0x64] sm:$0xf] }
  0xd0   : > { %v3926_v50 = vshrl.u32 %v5818_v30, 16  ;;  %v3929_v13 = vshll.u32 %v5818_v30, 16  ;;  %v3935_v60 = vshll.u32 %v7965_v20, 16  ;;  %v3939_v24 = vshrl.u32 %v7965_v20, 16  ;;  %9012 = vst [vmem:[#allocation4_spill] sm:$0xff] %v8006_v38 }
  0xd1   : > { %v9011_v3 = vcombine.low %v7743_v47, %v7753_v2  ;;  %v8000_v7 = vcombine.low %v3842_v55, %v3852_v18  ;;  %v6915_v47 = vld [vmem:[%s8986_s1 + $0x70] sm:$0xff]   ;;  %v8013_v2 = vcombine.low %v3866_v32, %v3876_v8  ;;  %v3894_v30 = vor.u32 %v3893_v16, %v7974_v26  ;;  %v6910_v18 = vld [vmem:[%s7071_s8 + $0xa8] sm:$0xff]  }
  0xd2   : > { %v8018_v55 = vrot.slane %v3897_v14, 5  ;;  %v3917_v28 = vrot.slane %v3915_v6, 4  ;;  %v3928_v32 = vrot.slane %v3926_v50, 4  ;;  %v3931_v8 = vrot.slane %v3929_v13, 5  ;;  %v6969_v16 = vld [vmem:[%s7071_s8 + $0x94] sm:$0xf] }
  0xd3   : > { %v3941_v46 = vrot.slane %v3939_v24, 4  ;;  %v1383_v14 = vrot.slane %v6969_v16, 5  ;;  %v3950_v6 = vshrl.u32 %v5821_v17, 16  ;;  %v3953_v59 = vshll.u32 %v5821_v17, 16 }
  0xd4   : > { %6485 = vmatmul.mubr.msk.bf16.gmra.mrb[16].mxu0 %vm723_vm3, %v6906_v33  ;;  %v3884_v33 = vor.u32 %v3883_v56, %v3880_v4  ;;  %v3904_v4 = vrot.slane %v3902_v58, 4  ;;  %v8021_v56 = vrot.slane %v3911_v61, 5  ;;  %v1386_v58 = vrot.slane %v6970_v63, 5  ;;  %v8034_v61 = vld [vmem:[%s7071_s8 + $0x5c] sm:$0x1] }
  0xd5   : > { %6309 = vmatmul.mubr.msk.bf16.vlgmr.msra.gmra.mrb[0].mxu1 %vm723_vm3, %v9010_v49  ;;  %6488 = vmatprep.mubr.msk.bf16.mxu0 %vm723_vm3, %v6907_v22  ;;  %v3907_v22 = vrot.slane %v3905_v35, 5  ;;  %v8024_v49 = vld [vmem:[%s7071_s8 + $0x9c] sm:$0xe]  ;;  %v3921_v35 = vshll.u32 %v7991_v39, 16  ;;  %9013 = vst [vmem:[#allocation5_spill] sm:$0xff] %v8034_v61  ;;  %v3959_v50 = vshll.u32 %v8006_v38, 16  ;;  %v9014_v17 = vcombine.low %v7762_v23, %v7766_v12 }
  0xd6   : > { %6341 = vmatpush3.bf16.msra.mxu1 %v7652_v40  ;;  %6312 = vmatprep.mubr.msk.bf16.mxu1 %vm723_vm3, %v9011_v3  ;;  %v6908_v40 = vld [vmem:[%s7071_s8 + $0x9c] sm:$0xff]   ;;  %v8026_v3 = vrot.slane %v3935_v60, 5  ;;  %v8028_v43 = vrot.slane %v3884_v33, 4  ;;  %v3963_v13 = vshrl.u32 %v8006_v38, 16  ;;  %v8038_v60 = vrot.slane %v3894_v30, 4 }
  0xd7   : > { %6342 = vmatprep.subr.bf16.mxu1 %v6909_v52  ;;  %v3908_v24 = vor.u32 %v3907_v22, %v3904_v4  ;;  %v3918_v63 = vor.u32 %v3917_v28, %v8021_v56  ;;  %v6971_v33 = vld [vmem:[%s7071_s8 + $0xa0] sm:$0xf]  ;;  %v8052_v30 = vsel %vm7331_vm6, %v5435_v9, %v1383_v14  ;;  %v3932_v31 = vor.u32 %v3931_v8, %v3928_v32  ;;  %v1260_v9 = vld [vmem:[%s7071_s8 + $0xa8] sm:$0xe]  ;;  %v6972_v28 = vld [vmem:[%s7071_s8 + $0xac] sm:$0xf] }
  0xd8   : > { %v1390_v16 = vrot.slane %v6971_v33, 5  ;;  %v3942_v44 = vor.u32 %v3941_v46, %v8026_v3  ;;  %v3945_v4 = vshll.u32 %v8034_v61, 16  ;;  %v9015_v22 = vcombine.low %v7787_v36, %v7791_v48  ;;  %v1261_v61 = vld [vmem:[%s7071_s8 + $0xb4] sm:$0xe] }
  0xd9   : > { %v1385_v23 = vrot.slane %v1383_v14, 4  ;;  %v3923_v12 = vrot.slane %v3921_v35, 5  ;;  %v1397_v32 = vrot.slane %v6972_v28, 5  ;;  %v3952_v46 = vrot.slane %v3950_v6, 4  ;;  %v6973_v35 = vld [vmem:[%s7071_s8 + $0xa4] sm:$0x1] }
  0xda   : > { %6343 = vmatpush3.bf16.msra.mxu1 %v6909_v52  ;;  %v6917_v52 = vld [vmem:[%s8986_s1 + $0x78] sm:$0xff]   ;;  %v3955_v8 = vrot.slane %v3953_v59, 5  ;;  %v8064_v33 = vrot.slane %v3959_v50, 5  ;;  %v3965_v36 = vrot.slane %v3963_v13, 4  ;;  %v3909_v48 = vrot.slane %v3908_v24, 4  ;;  %v6913_v59 = vld [vmem:[%s7071_s8 + $0xc0] sm:$0xff]  }
  0xdb   : > { %6344 = vmatprep.subr.bf16.mxu1 %v6915_v47  ;;  %v1392_v14 = vrot.slane %v1390_v16, 4  ;;  %v3933_v38 = vrot.slane %v3932_v31, 4  ;;  %v3947_v6 = vrot.slane %v3945_v4, 5  ;;  %v5437_v28 = vrot.slane %v1260_v9, 9 }
  0xdc   : > { %6489 = vmatmul.mubr.msk.bf16.gmra.mrb[20].mxu0 %vm723_vm3, %v6908_v40  ;;  %v5436_v40 = vrot.slane %v8024_v49, 9  ;;  %v6912_v49 = vld [vmem:[%s7071_s8 + $0xb4] sm:$0xff]   ;;  %v3890_v50 = vsel %vm7098_vm2, %v8028_v43, %v7974_v26  ;;  %v3900_v13 = vsel %vm7098_vm2, %v8038_v60, %v8018_v55  ;;  %v1399_v24 = vrot.slane %v1397_v32, 4  ;;  %v5824_v26 = vld [vmem:[%s7071_s8 + $0x6c] sm:$0xf] }
  0xdd   : > { %6313 = vmatmul.mubr.msk.bf16.gmra.mrb[4].mxu1 %vm723_vm3, %v9014_v17  ;;  %6492 = vmatprep.mubr.msk.bf16.mxu0 %vm723_vm3, %v6910_v18  ;;  %v3919_v18 = vrot.slane %v3918_v63, 4  ;;  %v1393_v17 = vrot.slane %v6973_v35, 5  ;;  %v6974_v63 = vld [vmem:[%s7071_s8 + $0xb0] sm:$0x1]  ;;  %v8083_v31 = vsel %vm7331_vm6, %v1385_v23, %v1386_v58  ;;  %v3966_v4 = vor.u32 %v3965_v36, %v8064_v33 }
  0xde   : > { %6316 = vmatprep.mubr.msk.bf16.mxu1 %vm723_vm3, %v9015_v22  ;;  %6345 = vmatpush3.bf16.msra.mxu1 %v6915_v47  ;;  %v8068_v22 = vld [vmem:[%s7071_s8 + $0x68] sm:$0x1]  ;;  %v3943_v47 = vrot.slane %v3942_v44, 4  ;;  %v1400_v35 = vrot.slane %v6974_v63, 5  ;;  %v3956_v44 = vor.u32 %v3955_v8, %v3952_v46  ;;  %v3914_v43 = vsel %vm7098_vm2, %v3909_v48, %v8021_v56 }
  0xdf   : > { %6346 = vmatprep.subr.bf16.mxu1 %v6917_v52  ;;  %v3969_v9 = vshll.u32 %v8068_v22, 16  ;;  %v3924_v55 = vsel %vm7098_vm2, %v3919_v18, %v3923_v12  ;;  %v8096_v58 = vsel %vm7331_vm6, %v5436_v40, %v1390_v16  ;;  %v8100_v60 = vsel %vm7331_vm6, %v1392_v14, %v1393_v17 }
  0xe0   : > { %v9017_v56 = vor.u32 %v7683_v54, %v7681_v1  ;;  %v9019_v16 = vcombine.low %v7803_v42, %v7807_v37  ;;  %v3938_v12 = vsel %vm7098_vm2, %v3933_v38, %v8026_v3  ;;  %v3948_v40 = vsel %vm7098_vm2, %v3943_v47, %v3947_v6  ;;  %v6976_v38 = vld [vmem:[%s7071_s8 + $0xb8] sm:$0xf]  ;;  %v8158_v47 = vld [vmem:[%s7071_s8 + $0x7c] sm:$0xf]  ;;  %v5830_v6 = vld [vmem:[%s7071_s8 + $0x84] sm:$0xf] }
  0xe1   : > { %v8125_v46 = vsel %vm7331_vm6, %v5437_v28, %v1397_v32  ;;  %v9020_v54 = vcombine.low %v7836_v27, %v7846_v34  ;;  %v8134_v42 = vsel %vm7331_vm6, %v1399_v24, %v1400_v35  ;;  %v5438_v37 = vrot.slane %v1261_v61, 9  ;;  %v8138_v32 = vld [vmem:[%s7071_s8 + $0x70] sm:$0xf]  ;;  %9022 = vst [vmem:[#allocation9_spill] sm:$0xff] %v8158_v47  ;;  %v8170_v35 = vld [vmem:[%s7071_s8 + $0x88] sm:$0xf] }
  0xe2   : > { %6347 = vmatpush3.bf16.msra.mxu1 %v6917_v52  ;;  %v8105_v52 = vld [vmem:[%s8986_s1 + $0x80] sm:$0xff]   ;;  %v8111_v23 = vrot.slane %v9017_v56, 4  ;;  %v1404_v3 = vrot.slane %v6976_v38, 5  ;;  %9021 = vst [vmem:[#allocation8_spill] sm:$0xff] %v8138_v32  ;;  %v3974_v8 = vshrl.u32 %v5824_v26, 16  ;;  %v8140_v27 = vcombine.low %v3890_v50, %v3900_v13  ;;  %v6914_v28 = vld [vmem:[%s7071_s8 + $0xcc] sm:$0xff]  }
  0xe3   : > { %9016 = vst [vmem:[#allocation6_spill] sm:$0xff] %v8105_v52  ;;  %6580 = vmatprep.subr.bf16.mxu1 %v8105_v52  ;;  %v8142_v34 = vrot.slane %v3956_v44, 4  ;;  %v8144_v36 = vrot.slane %v3966_v4, 4  ;;  %v8146_v48 = vrot.slane %v3969_v9, 5  ;;  %v8150_v61 = vcombine.low %v3914_v43, %v3924_v55  ;;  %v8165_v50 = vld [vmem:[%s7071_s8 + $0xbc] sm:$0x1] }
  0xe4   : > { %9018 = vst [vmem:[#allocation7_spill] sm:$0xff] %v8111_v23  ;;  %6493 = vmatmul.mubr.msk.bf16.gmra.mrb[24].mxu0 %vm723_vm3, %v6912_v49  ;;  %v8154_v17 = vcombine.low %v3938_v12, %v3948_v40  ;;  %v5827_v49 = vld [vmem:[%s7071_s8 + $0x78] sm:$0xf]  ;;  %v3977_v24 = vshll.u32 %v5824_v26, 16  ;;  %v3983_v63 = vshll.u32 %v8138_v32, 16  ;;  %9023 = vst [vmem:[#allocation10_spill] sm:$0xff] %v8170_v35  ;;  %v8174_v44 = vsel %vm7331_vm6, %v5438_v37, %v1404_v3 }
  0xe5   : > { %6317 = vmatmul.mubr.msk.bf16.gmra.mrb[8].mxu1 %vm723_vm3, %v9019_v16  ;;  %6496 = vmatprep.mubr.msk.bf16.mxu0 %vm723_vm3, %v6913_v59  ;;  %v8176_v4 = vrot.slane %v1404_v3, 4  ;;  %v8178_v9 = vrot.slane %v3974_v8, 4  ;;  %v3987_v43 = vshrl.u32 %v8138_v32, 16  ;;  %v5833_v55 = vld [vmem:[%s7071_s8 + $0x90] sm:$0xf]  ;;  %v3998_v16 = vshrl.u32 %v5827_v49, 16 }
  0xe6   : > { %6320 = vmatprep.mubr.msk.bf16.mxu1 %vm723_vm3, %v9020_v54  ;;  %v4001_v12 = vshll.u32 %v5827_v49, 16  ;;  %v8191_v40 = vld [vmem:[%s7071_s8 + $0x94] sm:$0xf]  ;;  %v4007_v37 = vshll.u32 %v8158_v47, 16  ;;  %v4011_v38 = vshrl.u32 %v8158_v47, 16  ;;  %v4022_v3 = vshrl.u32 %v5830_v6, 16 }
  0xe7   : > { %9024 = vst [vmem:[#allocation11_spill] sm:$0xff] %v8191_v40  ;;  %v8194_v54 = vld [vmem:[%s7071_s8 + $0x74] sm:$0x1]  ;;  %v4025_v8 = vshll.u32 %v5830_v6, 16  ;;  %v9026_v59 = vcombine.low %v7878_v62, %v7882_v41  ;;  %v4031_v49 = vshll.u32 %v8170_v35, 16  ;;  %v4035_v14 = vshrl.u32 %v8170_v35, 16 }
  0xe8   : > { %9025 = vst [vmem:[#allocation12_spill] sm:$0xff] %v8194_v54  ;;  %v4046_v26 = vshrl.u32 %v5833_v55, 16  ;;  %v4049_v56 = vshll.u32 %v5833_v55, 16  ;;  %v9027_v18 = vcombine.low %v7890_v21, %v7901_v5  ;;  %v3979_v62 = vrot.slane %v3977_v24, 5  ;;  %v8214_v6 = vld [vmem:[%s7071_s8 + $0x80] sm:$0x1] }
  0xe9   : > { %v8211_v41 = vrot.slane %v3983_v63, 5  ;;  %v3989_v55 = vrot.slane %v3987_v43, 4  ;;  %v3993_v13 = vshll.u32 %v8194_v54, 16  ;;  %v4000_v21 = vrot.slane %v3998_v16, 4  ;;  %v8223_v24 = vld [vmem:[%s7071_s8 + $0x8c] sm:$0x1] }
  0xea   : > { %v4003_v5 = vrot.slane %v4001_v12, 5  ;;  %v8220_v1 = vrot.slane %v4007_v37, 5  ;;  %v4024_v63 = vrot.slane %v4022_v3, 4  ;;  %v4027_v52 = vrot.slane %v4025_v8, 5  ;;  %v8231_v43 = vld [vmem:[%s7071_s8 + $0x98] sm:$0x1] }
  0xeb   : > { %v8225_v35 = vrot.slane %v4031_v49, 5  ;;  %v4037_v23 = vrot.slane %v4035_v14, 4  ;;  %v4048_v47 = vrot.slane %v4046_v26, 4  ;;  %v4051_v32 = vrot.slane %v4049_v56, 5  ;;  %9029 = vst [vmem:[#allocation14_spill] sm:$0xff] %v8231_v43 }
  0xec   : > { %6497 = vmatmul.mubr.msk.bf16.gmra.mrb[28].mxu0 %vm723_vm3, %v6914_v28  ;;  %v4055_v28 = vshll.u32 %v8191_v40, 16  ;;  %v3980_v3 = vor.u32 %v3979_v62, %v8178_v9  ;;  %v3990_v8 = vor.u32 %v3989_v55, %v8211_v41  ;;  %v4004_v14 = vor.u32 %v4003_v5, %v4000_v21 }
  0xed   : > { %6321 = vmatmul.mubr.msk.bf16.gmra.mrb[12].mxu1 %vm723_vm3, %v9026_v59  ;;  %6508 = vmatprep.mubr.msk.bf16.mxu0 %vm723_vm3, %v7939_v15  ;;  %v4059_v59 = vshrl.u32 %v8191_v40, 16  ;;  %v4013_v15 = vrot.slane %v4011_v38, 4  ;;  %v8228_v40 = vld [vmem:[%s7071_s8 + $0xa0] sm:$0xf]  ;;  %v6918_v38 = vld [vmem:[%s8986_s1 + $0x108] sm:$0xff]   ;;  %v4017_v26 = vshll.u32 %v8214_v6, 16  ;;  %v4028_v49 = vor.u32 %v4027_v52, %v4024_v63 }
  0xee   : > { %6324 = vmatprep.mubr.msk.bf16.mxu1 %vm723_vm3, %v9027_v18  ;;  %v5836_v18 = vld [vmem:[%s7071_s8 + $0x9c] sm:$0xf]  ;;  %9028 = vst [vmem:[#allocation13_spill] sm:$0xff] %v8228_v40  ;;  %v8233_v54 = vrot.slane %v4055_v28, 5  ;;  %v4079_v28 = vshll.u32 %v8228_v40, 16  ;;  %v4038_v9 = vor.u32 %v4037_v23, %v8225_v35  ;;  %v4041_v62 = vshll.u32 %v8223_v24, 16 }
  0xef   : > { %v4061_v16 = vrot.slane %v4059_v59, 4  ;;  %v4070_v12 = vshrl.u32 %v5836_v18, 16  ;;  %v4073_v37 = vshll.u32 %v5836_v18, 16  ;;  %v4014_v56 = vor.u32 %v4013_v15, %v8220_v1 }
  0xf0   : > { %v4083_v59 = vshrl.u32 %v8228_v40, 16  ;;  %v9030_v18 = vcombine.low %v7905_v51, %v7909_v19  ;;  %v4052_v55 = vor.u32 %v4051_v32, %v4048_v47  ;;  %v4065_v52 = vshll.u32 %v8231_v43, 16  ;;  %v6920_v19 = vld [vmem:[%s8986_s1 + $0x110] sm:$0xff]   ;;  %v5839_v47 = vld [vmem:[%s7071_s8 + $0xa8] sm:$0xf] }
  0xf1   : > { %v9031_v21 = vcombine.low %v7945_v53, %v7962_v10  ;;  %v3995_v51 = vrot.slane %v3993_v13, 5  ;;  %v4072_v23 = vrot.slane %v4070_v12, 4  ;;  %v4075_v5 = vrot.slane %v4073_v37, 5  ;;  %v8268_v40 = vld [vmem:[%s7071_s8 + $0xa4] sm:$0x1] }
  0xf2   : > { %v3991_v32 = vrot.slane %v3990_v8, 4  ;;  %v4005_v53 = vrot.slane %v4004_v14, 4  ;;  %v4019_v10 = vrot.slane %v4017_v26, 5  ;;  %v4015_v13 = vrot.slane %v4014_v56, 4 }
  0xf3   : > { %v4029_v15 = vrot.slane %v4028_v49, 4  ;;  %v8265_v63 = vrot.slane %v4079_v28, 5  ;;  %v4053_v12 = vrot.slane %v4052_v55, 4  ;;  %v4067_v37 = vrot.slane %v4065_v52, 5 }
  0xf4   : > { %6509 = vmatmul.mubr.msk.bf16.vlgmr.msra.gmra.mrb[0].mxu0 %vm723_vm3, %v8000_v7  ;;  %v4062_v7 = vor.u32 %v4061_v16, %v8233_v54  ;;  %v4043_v16 = vrot.slane %v4041_v62, 5  ;;  %v4076_v43 = vor.u32 %v4075_v5, %v4072_v23  ;;  %v4094_v8 = vshrl.u32 %v5839_v47, 16 }
  0xf5   : > { %6325 = vmatmul.mubr.msk.bf16.gmra.mrb[16].mxu1 %vm723_vm3, %v9030_v18  ;;  %6541 = vmatpush3.bf16.msra.mxu0 %v7851_v0  ;;  %v3981_v0 = vrot.slane %v3980_v3, 4  ;;  %v4085_v18 = vrot.slane %v4083_v59, 4  ;;  %v8271_v3 = vld [vmem:[%s7071_s8 + $0xac] sm:$0xf]  ;;  %v4097_v14 = vshll.u32 %v5839_v47, 16  ;;  %v9032_v26 = vrot.slane %v8165_v50, 5 }
  0xf6   : > { %6328 = vmatprep.mubr.msk.bf16.mxu1 %vm723_vm3, %v9031_v21  ;;  %6512 = vmatprep.mubr.msk.bf16.mxu0 %vm723_vm3, %v8013_v2  ;;  %v4039_v21 = vrot.slane %v4038_v9, 4  ;;  %v4063_v2 = vrot.slane %v4062_v7, 4  ;;  %v4010_v28 = vsel %vm7098_vm2, %v4005_v53, %v8220_v1  ;;  %v4020_v50 = vsel %vm7098_vm2, %v4015_v13, %v4019_v10  ;;  %v6925_v9 = vld [vmem:[%s8986_s1 + $0x118] sm:$0xff]   ;;  %v5900_v47 = vld [vmem:[%s7071_s8 + $0x54] sm:$0xe] }
  0xf7   : > { %6542 = vmatprep.subr.bf16.mxu0 %v6918_v38  ;;  %v8278_v56 = vsel %vm7331_vm6, %v8176_v4, %v9032_v26  ;;  %v3986_v49 = vsel %vm7098_vm2, %v3981_v0, %v8211_v41  ;;  %v4034_v4 = vsel %vm7098_vm2, %v4029_v15, %v8225_v35  ;;  %v4086_v59 = vor.u32 %v4085_v18, %v8265_v63 }
  0xf8   : > { %v4089_v41 = vshll.u32 %v8268_v40, 16  ;;  %v9033_v1 = vcombine.low %v7972_v25, %v7980_v45  ;;  %v4044_v62 = vsel %vm7098_vm2, %v4039_v21, %v4043_v16  ;;  %v4058_v35 = vsel %vm7098_vm2, %v4053_v12, %v8233_v54  ;;  %v8323_v54 = vld [vmem:[%s7071_s8 + $0xb0] sm:$0x1]  ;;  %v5901_v12 = vld [vmem:[%s7071_s8 + $0x60] sm:$0xe] }
  0xf9   : > { %6543 = vmatpush3.bf16.msra.mxu0 %v6918_v38  ;;  %v3996_v38 = vsel %vm7098_vm2, %v3991_v32, %v3995_v51  ;;  %v4103_v55 = vshll.u32 %v8271_v3, 16  ;;  %v4107_v52 = vshrl.u32 %v8271_v3, 16  ;;  %v5899_v51 = vld [vmem:[%s7071_s8 + $0x48] sm:$0xe]  ;;  %v9034_v25 = vcombine.low %v8052_v30, %v8083_v31  ;;  %v5842_v32 = vld [vmem:[%s7071_s8 + $0xb4] sm:$0xf] }
  0xfa   : > { %6544 = vmatprep.subr.bf16.mxu0 %v6920_v19  ;;  %v4068_v45 = vsel %vm7098_vm2, %v4063_v2, %v4067_v37  ;;  %v4096_v7 = vrot.slane %v4094_v8, 4  ;;  %v4099_v23 = vrot.slane %v4097_v14, 5  ;;  %v9035_v30 = vsel %vm7098_vm2, %v8144_v36, %v8146_v48  ;;  %v9037_v14 = vld [vmem:[#allocation5_spill] sm:$0xff] }
  0xfb   : > { %v9036_v31 = vsel %vm7098_vm2, %v8142_v34, %v8064_v33  ;;  %v5462_v5 = vcombine.low %v8174_v44, %v8278_v56  ;;  %v8339_v0 = vcombine.low %v4010_v28, %v4020_v50  ;;  %v8342_v53 = vcombine.low %v4034_v4, %v4044_v62  ;;  %v8374_v50 = vld [vmem:[%s7071_s8 + $0xb8] sm:$0xf] }
  0xfc   : > { %6513 = vmatmul.mubr.msk.bf16.gmra.mrb[4].mxu0 %vm723_vm3, %v8140_v27  ;;  %v8320_v27 = vrot.slane %v4076_v43, 4  ;;  %v8337_v43 = vcombine.low %v3986_v49, %v3996_v38  ;;  %v4087_v10 = vrot.slane %v4086_v59, 4  ;;  %v4091_v36 = vrot.slane %v4089_v41, 5  ;;  %v5902_v49 = vld [vmem:[%s7071_s8 + $0x6c] sm:$0xe] }
  0xfd   : > { %6329 = vmatmul.mubr.msk.bf16.gmra.mrb[20].mxu1 %vm723_vm3, %v9033_v1  ;;  %6516 = vmatprep.mubr.msk.bf16.mxu0 %vm723_vm3, %v8150_v61  ;;  %v5865_v61 = vcombine.low %v9036_v31, %v9035_v30  ;;  %v5915_v48 = vrot.slane %v5899_v51, 9  ;;  %v8345_v33 = vcombine.low %v4058_v35, %v4068_v45  ;;  %v8347_v34 = vrot.slane %v4103_v55, 5  ;;  %v5845_v45 = vld [vmem:[%s7071_s8 + $0xc0] sm:$0xf] }
  0xfe   : > { %6332 = vmatprep.mubr.msk.bf16.mxu1 %vm723_vm3, %v9034_v25  ;;  %6545 = vmatpush3.bf16.msra.mxu0 %v6920_v19  ;;  %v4109_v13 = vrot.slane %v4107_v52, 4  ;;  %v4113_v15 = vshll.u32 %v8323_v54, 16  ;;  %v4082_v19 = vsel %vm7098_vm2, %v8320_v27, %v8265_v63  ;;  %v4100_v18 = vor.u32 %v4099_v23, %v4096_v7  ;;  %v9042_v52 = vld [vmem:[#allocation12_spill] sm:$0xff] }
  0xff   : > { %6546 = vmatprep.subr.bf16.mxu0 %v6925_v9  ;;  %v4605_v21 = vrot.slane %v7948_v11, 5  ;;  %v4608_v16 = vrot.slane %v7991_v39, 5  ;;  %v4118_v37 = vshrl.u32 %v5842_v32, 16  ;;  %v5916_v2 = vrot.slane %v5900_v47, 9 }
 0x100   : > { %v4612_v8 = vrot.slane %v7965_v20, 5  ;;  %v4615_v26 = vrot.slane %v9037_v14, 5  ;;  %v4092_v38 = vsel %vm7098_vm2, %v4087_v10, %v4091_v36  ;;  %v4121_v28 = vshll.u32 %v5842_v32, 16  ;;  %v5903_v32 = vld [vmem:[%s7071_s8 + $0x78] sm:$0xe]  ;;  %v6919_v10 = vld [vmem:[%s7071_s8 + $0xc] sm:$0xff]  }
 0x101   : > { %v8364_v63 = vsel %vm7331_vm6, %v5915_v48, %v4605_v21  ;;  %v4607_v11 = vrot.slane %v4605_v21, 4  ;;  %v9038_v39 = vcombine.low %v8096_v58, %v8100_v60  ;;  %v4110_v20 = vor.u32 %v4109_v13, %v8347_v34  ;;  %v9040_v60 = vld [vmem:[#allocation4_spill] sm:$0xff] }
 0x102   : > { %6547 = vmatpush3.bf16.msra.mxu0 %v6925_v9  ;;  %v8378_v4 = vsel %vm7331_vm6, %v5916_v2, %v4612_v8  ;;  %v4614_v59 = vrot.slane %v4612_v8, 4  ;;  %v5917_v41 = vrot.slane %v5901_v12, 9  ;;  %v9039_v9 = vcombine.low %v8125_v46, %v8134_v42  ;;  %v9041_v42 = vld [vmem:[#allocation8_spill] sm:$0xff]  ;;  %v8432_v12 = vld [vmem:[%s7071_s8 + $0xc4] sm:$0xf] }
 0x103   : > { %v8387_v58 = vsel %vm7331_vm6, %v4607_v11, %v4608_v16  ;;  %v4622_v1 = vrot.slane %v8068_v22, 5  ;;  %v5918_v62 = vrot.slane %v5902_v49, 9  ;;  %v4626_v55 = vrot.slane %v9041_v42, 5  ;;  %v8452_v49 = vld [vmem:[%s7071_s8 + $0xbc] sm:$0x1]  ;;  %v9046_v42 = vld [vmem:[#allocation10_spill] sm:$0xff] }
 0x104   : > { %6517 = vmatmul.mubr.msk.bf16.gmra.mrb[8].mxu0 %vm723_vm3, %v8154_v17  ;;  %v4619_v17 = vrot.slane %v9040_v60, 5  ;;  %v5939_v35 = vcombine.low %v8364_v63, %v8387_v58  ;;  %v8395_v46 = vsel %vm7331_vm6, %v4614_v59, %v4615_v26  ;;  %v4629_v51 = vrot.slane %v9042_v52, 5  ;;  %v5904_v26 = vld [vmem:[%s7071_s8 + $0x84] sm:$0xe]  ;;  %v9045_v59 = vld [vmem:[#allocation7_spill] sm:$0xff]  ;;  %v6921_v52 = vld [vmem:[%s7071_s8 + $0x18] sm:$0xff]  }
 0x105   : > { %6333 = vmatmul.mubr.msk.bf16.gmra.mrb[24].mxu1 %vm723_vm3, %v9038_v39  ;;  %6520 = vmatprep.mubr.msk.bf16.mxu0 %vm723_vm3, %v5865_v61  ;;  %v4127_v25 = vshll.u32 %v8374_v50, 16  ;;  %v5940_v22 = vcombine.low %v8378_v4, %v8395_v46  ;;  %v8407_v23 = vrot.slane %v4113_v15, 5  ;;  %v4131_v30 = vshrl.u32 %v8374_v50, 16  ;;  %v5586_v15 = vld [vmem:[%s7071_s8 + $0x78] sm:$0xf] }
 0x106   : > { %6336 = vmatprep.mubr.msk.bf16.mxu1 %vm723_vm3, %v9039_v9  ;;  %v8405_v27 = vsel %vm7331_vm6, %v5917_v41, %v4619_v17  ;;  %v4621_v7 = vrot.slane %v4619_v17, 4  ;;  %v8412_v31 = vsel %vm7331_vm6, %v5918_v62, %v4626_v55  ;;  %v4628_v61 = vrot.slane %v4626_v55, 4  ;;  %v6994_v46 = vld [vmem:[%s7071_s8 + $0x8c] sm:$0x1] }
 0x107   : > { %v8416_v36 = vcombine.low %v4082_v19, %v4092_v38  ;;  %v8418_v48 = vrot.slane %v4100_v18, 4  ;;  %v8420_v47 = vrot.slane %v4118_v37, 4  ;;  %v8427_v21 = vrot.slane %v4110_v20, 4 }
 0x108   : > { %v8424_v13 = vsel %vm7331_vm6, %v4621_v7, %v4622_v1  ;;  %v8429_v16 = vrot.slane %v4121_v28, 5  ;;  %v8438_v18 = vsel %vm7331_vm6, %v4628_v61, %v4629_v51  ;;  %v8440_v37 = vrot.slane %v4127_v25, 5  ;;  %v9043_v28 = vld [vmem:[#allocation9_spill] sm:$0xff]  ;;  %v6922_v61 = vld [vmem:[%s7071_s8 + $0x24] sm:$0xff]  }
 0x109   : > { %v5941_v19 = vcombine.low %v8405_v27, %v8424_v13  ;;  %v4142_v2 = vshrl.u32 %v5845_v45, 16  ;;  %v5942_v8 = vcombine.low %v8412_v31, %v8438_v18  ;;  %v5919_v14 = vrot.slane %v5903_v32, 9 }
 0x10a   : > { %v4145_v38 = vshll.u32 %v5845_v45, 16  ;;  %v4633_v11 = vrot.slane %v9043_v28, 5  ;;  %v4636_v39 = vrot.slane %v8214_v6, 5  ;;  %v2383_v20 = vshrl.u32 %v5586_v15, 16  ;;  %v5848_v45 = vld [vmem:[%s7071_s8 + $0xcc] sm:$0xf] }
 0x10b   : > { %v4151_v44 = vshll.u32 %v8432_v12, 16  ;;  %v4155_v56 = vshrl.u32 %v8432_v12, 16  ;;  %v5920_v17 = vrot.slane %v5904_v26, 9  ;;  %v4137_v1 = vshll.u32 %v8452_v49, 16  ;;  %v5905_v26 = vld [vmem:[%s7071_s8 + $0x90] sm:$0xe] }
 0x10c   : > { %6521 = vmatmul.mubr.msk.bf16.gmra.mrb[12].mxu0 %vm723_vm3, %v8337_v43  ;;  %v9044_v43 = vld [vmem:[#allocation3_spill] sm:$0xff]  ;;  %v8467_v6 = vsel %vm7331_vm6, %v5919_v14, %v4633_v11  ;;  %v4635_v9 = vrot.slane %v4633_v11, 4  ;;  %v2385_v60 = vrot.slane %v2383_v20, 4  ;;  %v4640_v55 = vrot.slane %v9046_v42, 5 }
 0x10d   : > { %6337 = vmatmul.mubr.msk.bf16.gmra.mrb[28].mxu1 %vm723_vm3, %v5462_v5  ;;  %6524 = vmatprep.mubr.msk.bf16.mxu0 %vm723_vm3, %v8339_v0  ;;  %v2386_v5 = vshll.u32 %v5586_v15, 16  ;;  %v2405_v41 = vsel %vm7098_vm2, %v9045_v59, %v9044_v43  ;;  %v4133_v0 = vrot.slane %v4131_v30, 4  ;;  %v4106_v51 = vsel %vm7098_vm2, %v8418_v48, %v8347_v34 }
 0x10e   : > { %6348 = vmatprep.mubr.msk.bf16.mxu1 %vm723_vm3, %v6919_v10  ;;  %v4124_v25 = vor.u32 %v8429_v16, %v8420_v47  ;;  %v8481_v7 = vsel %vm7331_vm6, %v4635_v9, %v4636_v39  ;;  %v4643_v30 = vrot.slane %v8223_v24, 5  ;;  %v4144_v32 = vrot.slane %v4142_v2, 4  ;;  %v8491_v47 = vld [vmem:[%s7071_s8 + $0xd0] sm:$0xf]  ;;  %v9049_v9 = vld [vmem:[#allocation2_spill] sm:$0xff] }
 0x10f   : > { %v2388_v62 = vrot.slane %v2386_v5, 5  ;;  %v4147_v10 = vrot.slane %v4145_v38, 5  ;;  %v5943_v15 = vcombine.low %v8467_v6, %v8481_v7  ;;  %v8488_v34 = vrot.slane %v4151_v44, 5  ;;  %v8503_v38 = vld [vmem:[%s7071_s8 + $0xc8] sm:$0x1] }
 0x110   : > { %v4157_v48 = vrot.slane %v4155_v56, 4  ;;  %v8495_v16 = vsel %vm7331_vm6, %v5920_v17, %v4640_v55  ;;  %v4642_v28 = vrot.slane %v4640_v55, 4  ;;  %v4116_v24 = vsel %vm7098_vm2, %v8427_v21, %v8407_v23  ;;  %v9047_v5 = vld [vmem:[#allocation11_spill] sm:$0xff]  ;;  %v9048_v23 = vld [vmem:[#allocation6_spill] sm:$0xff] }
 0x111   : > { %v2389_v14 = vor.u32 %v2388_v62, %v2385_v60  ;;  %v4134_v2 = vor.u32 %v4133_v0, %v8440_v37  ;;  %v4166_v11 = vshrl.u32 %v5848_v45, 16  ;;  %v4169_v20 = vshll.u32 %v5848_v45, 16  ;;  %v6978_v17 = vld [vmem:[%s8986_s1 + $0x88] sm:$0xff]  }
 0x112   : > { %v8510_v44 = vsel %vm7331_vm6, %v4642_v28, %v4643_v30  ;;  %v5921_v56 = vrot.slane %v5905_v26, 9  ;;  %v4647_v43 = vrot.slane %v9047_v5, 5  ;;  %v4175_v21 = vshll.u32 %v8491_v47, 16  ;;  %v9050_v30 = vld [vmem:[#allocation14_spill] sm:$0xff] }
 0x113   : > { %v2390_v39 = vrot.slane %v2389_v14, 4  ;;  %v4179_v59 = vshrl.u32 %v8491_v47, 16  ;;  %v5944_v60 = vcombine.low %v8495_v16, %v8510_v44  ;;  %v4148_v0 = vor.u32 %v4147_v10, %v4144_v32  ;;  %v6923_v14 = vld [vmem:[%s7071_s8 + $0x30] sm:$0xff]   ;;  %v5906_v10 = vld [vmem:[%s7071_s8 + $0x9c] sm:$0xe] }
 0x114   : > { %6525 = vmatmul.mubr.msk.bf16.gmra.mrb[16].mxu0 %vm723_vm3, %v8342_v53  ;;  %v4158_v62 = vor.u32 %v4157_v48, %v8488_v34  ;;  %v4161_v42 = vshll.u32 %v8503_v38, 16  ;;  %v8533_v45 = vsel %vm7331_vm6, %v5921_v56, %v4647_v43  ;;  %v5871_v26 = vcombine.low %v4106_v51, %v4116_v24  ;;  %v6924_v5 = vld [vmem:[%s7071_s8 + $0x3c] sm:$0xff]   ;;  %v8540_v48 = vld [vmem:[%s7071_s8 + $0xd4] sm:$0x1]  ;;  %v7000_v16 = vld [vmem:[%s7071_s8 + $0xc4] sm:$0xf] }
 0x115   : > { %6349 = vmatmul.mubr.msk.bf16.vlgmr.msra.gmra.mrb[0].mxu1 %vm723_vm3, %v6921_v52  ;;  %v2395_v53 = vsel %vm7098_vm2, %v2390_v39, %v9049_v9  ;;  %6528 = vmatprep.mubr.msk.bf16.mxu0 %vm723_vm3, %v8345_v33  ;;  %v4139_v52 = vrot.slane %v4137_v1, 5  ;;  %v4649_v33 = vrot.slane %v4647_v43, 4  ;;  %v4125_v28 = vrot.slane %v4124_v25, 4  ;;  %v6979_v51 = vld [vmem:[%s8986_s1 + $0x90] sm:$0xff]  }
 0x116   : > { %6584 = vmatpush3.bf16.msra.mxu1 %v9048_v23  ;;  %6352 = vmatprep.mubr.msk.bf16.mxu1 %vm723_vm3, %v6922_v61  ;;  %v8529_v55 = vcombine.low %v2395_v53, %v2405_v41  ;;  %v4650_v61 = vrot.slane %v9050_v30, 5  ;;  %v4135_v39 = vrot.slane %v4134_v2, 4  ;;  %v4168_v32 = vrot.slane %v4166_v11, 4  ;;  %v9051_v2 = vld [vmem:[#allocation13_spill] sm:$0xff] }
 0x117   : > { %6581 = vmatprep.subr.bf16.mxu1 %v6978_v17  ;;  %v4171_v41 = vrot.slane %v4169_v20, 5  ;;  %v8542_v23 = vrot.slane %v4175_v21, 5  ;;  %v4181_v1 = vrot.slane %v4179_v59, 4  ;;  %v4149_v43 = vrot.slane %v4148_v0, 4 }
 0x118   : > { %v8546_v56 = vsel %vm7331_vm6, %v4649_v33, %v4650_v61  ;;  %v4159_v9 = vrot.slane %v4158_v62, 4  ;;  %v4163_v53 = vrot.slane %v4161_v42, 5  ;;  %v5922_v24 = vrot.slane %v5906_v10, 9  ;;  %v5895_v62 = vld [vmem:[%s7071_s8 + $0x18] sm:$0xe] }
 0x119   : > { %v5945_v25 = vcombine.low %v8533_v45, %v8546_v56  ;;  %v4654_v11 = vrot.slane %v9051_v2, 5  ;;  %v4130_v20 = vsel %vm7098_vm2, %v4125_v28, %v8440_v37  ;;  %v4140_v21 = vsel %vm7098_vm2, %v4135_v39, %v4139_v52  ;;  %v6980_v33 = vld [vmem:[%s7071_s8 + $0x1c] sm:$0xf]  ;;  %v6926_v28 = vld [vmem:[%s7071_s8 + $0x48] sm:$0xff]  }
 0x11a   : > { %6585 = vmatpush3.bf16.msra.mxu1 %v6978_v17  ;;  %v4185_v59 = vshll.u32 %v8540_v48, 16  ;;  %v4657_v17 = vrot.slane %v8268_v40, 5  ;;  %v4172_v0 = vor.u32 %v4171_v41, %v4168_v32  ;;  %v4154_v40 = vsel %vm7098_vm2, %v4149_v43, %v8488_v34  ;;  %v6981_v61 = vld [vmem:[%s8986_s1 + $0x98] sm:$0xff]  }
 0x11b   : > { %6582 = vmatprep.subr.bf16.mxu1 %v6979_v51  ;;  %v8570_v37 = vsel %vm7331_vm6, %v5922_v24, %v4654_v11  ;;  %v4656_v42 = vrot.slane %v4654_v11, 4  ;;  %v4164_v52 = vsel %vm7098_vm2, %v4159_v9, %v4163_v53  ;;  %v4577_v30 = vrot.slane %v6980_v33, 5  ;;  %v6982_v9 = vld [vmem:[%s7071_s8 + $0x20] sm:$0x1] }
 0x11c   : > { %6529 = vmatmul.mubr.msk.bf16.gmra.mrb[20].mxu0 %vm723_vm3, %v8416_v36  ;;  %v4182_v36 = vor.u32 %v4181_v1, %v8542_v23  ;;  %v5872_v34 = vcombine.low %v4130_v20, %v4140_v21  ;;  %v4187_v39 = vrot.slane %v4185_v59, 5  ;;  %v5911_v32 = vrot.slane %v5895_v62, 9  ;;  %v5908_v20 = vld [vmem:[%s7071_s8 + $0xb4] sm:$0xe] }
 0x11d   : > { %6353 = vmatmul.mubr.msk.bf16.gmra.mrb[4].mxu1 %vm723_vm3, %v6923_v14  ;;  %6532 = vmatprep.mubr.msk.bf16.mxu0 %vm723_vm3, %v5871_v26  ;;  %v8583_v14 = vsel %vm7331_vm6, %v4656_v42, %v4657_v17  ;;  %v5907_v26 = vld [vmem:[%s7071_s8 + $0xa8] sm:$0xe]  ;;  %v5873_v41 = vcombine.low %v4154_v40, %v4164_v52  ;;  %v4173_v1 = vrot.slane %v4172_v0, 4  ;;  %v4580_v53 = vrot.slane %v6982_v9, 5  ;;  %v5896_v0 = vld [vmem:[%s7071_s8 + $0x24] sm:$0xe] }
 0x11e   : > { %6356 = vmatprep.mubr.msk.bf16.mxu1 %vm723_vm3, %v6924_v5  ;;  %6586 = vmatpush3.bf16.msra.mxu1 %v6979_v51  ;;  %v5946_v10 = vcombine.low %v8570_v37, %v8583_v14  ;;  %v6927_v5 = vld [vmem:[%s7071_s8 + $0x54] sm:$0xff]   ;;  %v4183_v43 = vrot.slane %v4182_v36, 4  ;;  %v4579_v51 = vrot.slane %v4577_v30, 4  ;;  %v5923_v24 = vrot.slane %v5907_v26, 9  ;;  %v6983_v36 = vld [vmem:[%s7071_s8 + $0x28] sm:$0xf] }
 0x11f   : > { %6583 = vmatprep.subr.bf16.mxu1 %v6981_v61  ;;  %v4661_v2 = vrot.slane %v8271_v3, 5  ;;  %v4664_v11 = vrot.slane %v8323_v54, 5  ;;  %v4178_v3 = vsel %vm7098_vm2, %v4173_v1, %v8542_v23  ;;  %v4578_v17 = vsel %vm7331_vm6, %v5911_v32, %v4577_v30  ;;  %v6984_v40 = vld [vmem:[%s7071_s8 + $0x34] sm:$0xf]  ;;  %v6985_v32 = vld [vmem:[%s7071_s8 + $0x2c] sm:$0x1] }
 0x120   : > { %v4188_v54 = vsel %vm7098_vm2, %v4183_v43, %v4187_v39  ;;  %v4584_v62 = vrot.slane %v6983_v36, 5  ;;  %v4581_v42 = vsel %vm7331_vm6, %v4579_v51, %v4580_v53  ;;  %v4591_v52 = vrot.slane %v6984_v40, 5  ;;  %v6929_v1 = vld [vmem:[%s7071_s8 + $0x6c] sm:$0xff]  }
 0x121   : > { %v8598_v21 = vsel %vm7331_vm6, %v5923_v24, %v4661_v2  ;;  %v4663_v59 = vrot.slane %v4661_v2, 4  ;;  %v5924_v23 = vrot.slane %v5908_v20, 9  ;;  %v4668_v30 = vrot.slane %v8374_v50, 5  ;;  %v6986_v50 = vld [vmem:[%s7071_s8 + $0x38] sm:$0x1] }
 0x122   : > { %6587 = vmatpush3.bf16.msra.mxu1 %v6981_v61  ;;  %v5897_v61 = vld [vmem:[%s7071_s8 + $0x30] sm:$0xe]  ;;  %v5912_v39 = vrot.slane %v5896_v0, 9  ;;  %v5935_v43 = vcombine.low %v4578_v17, %v4581_v42  ;;  %v4586_v9 = vrot.slane %v4584_v62, 4  ;;  %v4593_v2 = vrot.slane %v4591_v52, 4 }
 0x123   : > { %v8616_v33 = vsel %vm7331_vm6, %v4663_v59, %v4664_v11  ;;  %v8628_v53 = vsel %vm7331_vm6, %v5924_v23, %v4668_v30  ;;  %v4670_v51 = vrot.slane %v4668_v30, 4  ;;  %v5913_v24 = vrot.slane %v5897_v61, 9  ;;  %v5909_v20 = vld [vmem:[%s7071_s8 + $0xc0] sm:$0xe]  ;;  %v5898_v23 = vld [vmem:[%s7071_s8 + $0x3c] sm:$0xe] }
 0x124   : > { %6533 = vmatmul.mubr.msk.bf16.gmra.mrb[24].mxu0 %vm723_vm3, %v5872_v34  ;;  %v5947_v26 = vcombine.low %v8598_v21, %v8616_v33  ;;  %v5874_v34 = vcombine.low %v4178_v3, %v4188_v54  ;;  %v4594_v11 = vrot.slane %v6986_v50, 5  ;;  %v4585_v3 = vsel %vm7331_vm6, %v5912_v39, %v4584_v62  ;;  %v6987_v17 = vld [vmem:[%s7071_s8 + $0x40] sm:$0xf]  ;;  %v5583_v62 = vld [vmem:[%s7071_s8 + $0x6c] sm:$0xf] }
 0x125   : > { %6357 = vmatmul.mubr.msk.bf16.gmra.mrb[8].mxu1 %vm723_vm3, %v6926_v28  ;;  %6536 = vmatprep.mubr.msk.bf16.mxu0 %vm723_vm3, %v5873_v41  ;;  %v6928_v28 = vld [vmem:[%s7071_s8 + $0x60] sm:$0xff]   ;;  %v4671_v41 = vrot.slane %v8452_v49, 5  ;;  %v4598_v0 = vrot.slane %v6987_v17, 5  ;;  %v5925_v36 = vrot.slane %v5909_v20, 9  ;;  %v4592_v42 = vsel %vm7331_vm6, %v5913_v24, %v4591_v52 }
 0x126   : > { %6360 = vmatprep.mubr.msk.bf16.mxu1 %vm723_vm3, %v6927_v5  ;;  %v4587_v5 = vrot.slane %v6985_v32, 5  ;;  %v4595_v40 = vsel %vm7331_vm6, %v4593_v2, %v4594_v11  ;;  %v4675_v61 = vrot.slane %v8432_v12, 5  ;;  %v4678_v30 = vrot.slane %v8503_v38, 5  ;;  %v6989_v11 = vld [vmem:[%s7071_s8 + $0x70] sm:$0xf] }
 0x127   : > { %v8634_v59 = vsel %vm7331_vm6, %v4670_v51, %v4671_v41  ;;  %v6931_v41 = vld [vmem:[%s7071_s8 + $0x84] sm:$0xff]   ;;  %v5937_v52 = vcombine.low %v4592_v42, %v4595_v40  ;;  %v2359_v24 = vshrl.u32 %v5583_v62, 16  ;;  %v2362_v12 = vshll.u32 %v5583_v62, 16 }
 0x128   : > { %v5948_v49 = vcombine.low %v8628_v53, %v8634_v59  ;;  %v4588_v54 = vsel %vm7331_vm6, %v4586_v9, %v4587_v5  ;;  %v8659_v32 = vsel %vm7331_vm6, %v5925_v36, %v4675_v61  ;;  %v4677_v5 = vrot.slane %v4675_v61, 4  ;;  %v6988_v9 = vld [vmem:[%s7071_s8 + $0x44] sm:$0x1] }
 0x129   : > { %v5936_v39 = vcombine.low %v4585_v3, %v4588_v54  ;;  %v4601_v51 = vrot.slane %v6988_v9, 5  ;;  %v2368_v20 = vshll.u32 %v6989_v11, 16  ;;  %v2372_v3 = vshrl.u32 %v6989_v11, 16  ;;  %v5592_v11 = vld [vmem:[%s7071_s8 + $0x90] sm:$0xf] }
 0x12a   : > { %v8665_v38 = vsel %vm7331_vm6, %v4677_v5, %v4678_v30  ;;  %v4682_v54 = vrot.slane %v8491_v47, 5  ;;  %v4685_v17 = vrot.slane %v8540_v48, 5  ;;  %v2361_v40 = vrot.slane %v2359_v24, 4  ;;  %v6932_v30 = vld [vmem:[%s7071_s8 + $0x90] sm:$0xff]  }
 0x12b   : > { %v5949_v50 = vcombine.low %v8659_v32, %v8665_v38  ;;  %v2370_v62 = vrot.slane %v2368_v20, 5  ;;  %v6934_v20 = vld [vmem:[%s7071_s8 + $0xa8] sm:$0xff]   ;;  %v2431_v63 = vshrl.u32 %v5592_v11, 16  ;;  %v2434_v58 = vshll.u32 %v5592_v11, 16  ;;  %v6936_v11 = vld [vmem:[%s7071_s8 + $0xc0] sm:$0xff]  }
 0x12c   : > { %6537 = vmatmul.mubr.msk.bf16.gmra.mrb[28].mxu0 %vm723_vm3, %v5874_v34  ;;  %v6930_v34 = vld [vmem:[%s7071_s8 + $0x78] sm:$0xff]   ;;  %v4684_v47 = vrot.slane %v4682_v54, 4  ;;  %v2536_v44 = vshll.u32 %v7000_v16, 16 }
 0x12d   : > { %6361 = vmatmul.mubr.msk.bf16.gmra.mrb[12].mxu1 %vm723_vm3, %v6928_v28  ;;  %6548 = vmatprep.mubr.msk.bf16.mxu0 %vm723_vm3, %v5935_v43  ;;  %v5910_v28 = vld [vmem:[%s7071_s8 + $0xcc] sm:$0xe]  ;;  %v4600_v43 = vrot.slane %v4598_v0, 4 }
 0x12e   : > { %6364 = vmatprep.mubr.msk.bf16.mxu1 %vm723_vm3, %v6929_v1  ;;  %v5914_v1 = vrot.slane %v5898_v23, 9  ;;  %v5926_v2 = vrot.slane %v5910_v28, 9  ;;  %v2364_v23 = vrot.slane %v2362_v12, 5  ;;  %v2374_v28 = vrot.slane %v2372_v3, 4 }
 0x12f   : > { %v4602_v42 = vsel %vm7331_vm6, %v4600_v43, %v4601_v51  ;;  %v6991_v51 = vld [vmem:[%s7071_s8 + $0x88] sm:$0xf]  ;;  %v2538_v45 = vrot.slane %v2536_v44, 5 }
 0x130   : > { %v4599_v36 = vsel %vm7331_vm6, %v5914_v1, %v4598_v0  ;;  %v8682_v61 = vsel %vm7331_vm6, %v5926_v2, %v4682_v54  ;;  %v6933_v0 = vld [vmem:[%s7071_s8 + $0x9c] sm:$0xff]   ;;  %v6990_v1 = vld [vmem:[%s7071_s8 + $0x74] sm:$0x1]  ;;  %v2416_v24 = vshll.u32 %v6991_v51, 16  ;;  %v2420_v12 = vshrl.u32 %v6991_v51, 16 }
 0x131   : > { %v5938_v48 = vcombine.low %v4599_v36, %v4602_v42  ;;  %v2378_v43 = vshll.u32 %v6990_v1, 16  ;;  %v5595_v42 = vld [vmem:[%s7071_s8 + $0x9c] sm:$0xf]  ;;  %v6993_v1 = vld [vmem:[%s7071_s8 + $0xa0] sm:$0xf] }
 0x133   : > { %v2380_v54 = vrot.slane %v2378_v43, 5  ;;  %v2468_v43 = vshrl.u32 %v6993_v1, 16 }
 0x134   : > { %6549 = vmatmul.mubr.msk.bf16.vlgmr.msra.gmra.mrb[0].mxu0 %vm723_vm3, %v5936_v39  ;;  %v5589_v39 = vld [vmem:[%s7071_s8 + $0x84] sm:$0xf] }
 0x135   : > { %6365 = vmatmul.mubr.msk.bf16.gmra.mrb[16].mxu1 %vm723_vm3, %v6930_v34  ;;  %6552 = vmatprep.mubr.msk.bf16.mxu0 %vm723_vm3, %v5937_v52  ;;  %v8687_v34 = vsel %vm7331_vm6, %v4684_v47, %v4685_v17  ;;  %v2375_v52 = vor.u32 %v2374_v28, %v2370_v62  ;;  %v2407_v57 = vshrl.u32 %v5589_v39, 16  ;;  %v2410_v9 = vshll.u32 %v5589_v39, 16 }
 0x136   : > { %6368 = vmatprep.mubr.msk.bf16.mxu1 %vm723_vm3, %v6931_v41  ;;  %v5950_v5 = vcombine.low %v8682_v61, %v8687_v34  ;;  %v2365_v41 = vor.u32 %v2364_v23, %v2361_v40  ;;  %v6935_v40 = vld [vmem:[%s7071_s8 + $0xb4] sm:$0xff]   ;;  %v8706_v23 = vrot.slane %v2416_v24, 5  ;;  %v2422_v47 = vrot.slane %v2420_v12, 4 }
 0x137   : > { %v2376_v3 = vrot.slane %v2375_v52, 4  ;;  %v2409_v17 = vrot.slane %v2407_v57, 4  ;;  %v2412_v36 = vrot.slane %v2410_v9, 5  ;;  %v2458_v39 = vshll.u32 %v5595_v42, 16 }
 0x138   : > { %v2366_v2 = vrot.slane %v2365_v41, 4  ;;  %v2423_v4 = vor.u32 %v2422_v47, %v8706_v23  ;;  %v2433_v57 = vrot.slane %v2431_v63, 4  ;;  %v2436_v9 = vrot.slane %v2434_v58, 5  ;;  %v6996_v58 = vld [vmem:[%s7071_s8 + $0xa4] sm:$0x1] }
 0x139   : > { %v2381_v41 = vsel %vm7098_vm2, %v2376_v3, %v2380_v54  ;;  %v2413_v52 = vor.u32 %v2412_v36, %v2409_v17  ;;  %v5598_v3 = vld [vmem:[%s7071_s8 + $0xa8] sm:$0xf] }
 0x13a   : > { %v2424_v54 = vrot.slane %v2423_v4, 4  ;;  %v2437_v36 = vor.u32 %v2436_v9, %v2433_v57  ;;  %v6998_v4 = vld [vmem:[%s7071_s8 + $0xb8] sm:$0xf] }
 0x13b   : > { %v2414_v27 = vrot.slane %v2413_v52, 4 }
 0x13c   : > { %6553 = vmatmul.mubr.msk.bf16.gmra.mrb[4].mxu0 %vm723_vm3, %v5938_v48  ;;  %v2438_v18 = vrot.slane %v2437_v36, 4 }
 0x13d   : > { %6369 = vmatmul.mubr.msk.bf16.gmra.mrb[20].mxu1 %vm723_vm3, %v6932_v30  ;;  %6556 = vmatprep.mubr.msk.bf16.mxu0 %vm723_vm3, %v5939_v35  ;;  %v2371_v35 = vsel %vm7098_vm2, %v2366_v2, %v2370_v62  ;;  %v6992_v30 = vld [vmem:[%s7071_s8 + $0x94] sm:$0xf]  ;;  %v2464_v62 = vshll.u32 %v6993_v1, 16  ;;  %v2460_v2 = vrot.slane %v2458_v39, 5  ;;  %v6997_v39 = vld [vmem:[%s7071_s8 + $0xac] sm:$0xf]  ;;  %v2419_v1 = vsel %vm7098_vm2, %v2414_v27, %v8706_v23 }
 0x13e   : > { %6372 = vmatprep.mubr.msk.bf16.mxu1 %vm723_vm3, %v6933_v0  ;;  %v2440_v48 = vshll.u32 %v6992_v30, 16  ;;  %v2444_v28 = vshrl.u32 %v6992_v30, 16  ;;  %v2455_v0 = vshrl.u32 %v5595_v42, 16  ;;  %v6995_v42 = vld [vmem:[%s7071_s8 + $0x98] sm:$0x1]  ;;  %v2474_v30 = vshll.u32 %v6996_v58, 16 }
 0x13f   : > { %v8729_v13 = vrot.slane %v2464_v62, 5  ;;  %v2492_v52 = vshrl.u32 %v6997_v39, 16  ;;  %v2540_v58 = vshrl.u32 %v7000_v16, 16 }
 0x140   : > { %v8726_v51 = vrot.slane %v2440_v48, 5  ;;  %v2446_v24 = vrot.slane %v2444_v28, 4  ;;  %v2457_v12 = vrot.slane %v2455_v0, 4  ;;  %v2479_v48 = vshrl.u32 %v5598_v3, 16  ;;  %v5601_v28 = vld [vmem:[%s7071_s8 + $0xb4] sm:$0xf] }
 0x141   : > { %v2482_v0 = vshll.u32 %v5598_v3, 16  ;;  %v2503_v62 = vshrl.u32 %v5601_v28, 16  ;;  %v2476_v6 = vrot.slane %v2474_v30, 5  ;;  %v2494_v23 = vrot.slane %v2492_v52, 4  ;;  %v5604_v3 = vld [vmem:[%s7071_s8 + $0xc0] sm:$0xf] }
 0x142   : > { %v2447_v47 = vor.u32 %v2446_v24, %v8726_v51  ;;  %v2461_v63 = vor.u32 %v2460_v2, %v2457_v12  ;;  %v2481_v7 = vrot.slane %v2479_v48, 4  ;;  %v7001_v48 = vld [vmem:[%s7071_s8 + $0xbc] sm:$0x1]  ;;  %v2542_v56 = vrot.slane %v2540_v58, 4 }
 0x143   : > { %v2484_v24 = vrot.slane %v2482_v0, 5 }
 0x144   : > { %6557 = vmatmul.mubr.msk.bf16.gmra.mrb[8].mxu0 %vm723_vm3, %v5940_v22  ;;  %v2426_v22 = vshll.u32 %v6994_v46, 16  ;;  %v2512_v46 = vshll.u32 %v6998_v4, 16  ;;  %v2448_v57 = vrot.slane %v2447_v47, 4  ;;  %v2462_v9 = vrot.slane %v2461_v63, 4  ;;  %v6999_v47 = vld [vmem:[%s7071_s8 + $0xb0] sm:$0x1] }
 0x145   : > { %6373 = vmatmul.mubr.msk.bf16.gmra.mrb[24].mxu1 %vm723_vm3, %v6934_v20  ;;  %6560 = vmatprep.mubr.msk.bf16.mxu0 %vm723_vm3, %v5941_v19  ;;  %v5623_v20 = vcombine.low %v2371_v35, %v2381_v41  ;;  %v2470_v19 = vrot.slane %v2468_v43, 4  ;;  %v2488_v41 = vshll.u32 %v6997_v39, 16  ;;  %v2506_v43 = vshll.u32 %v5601_v28, 16 }
 0x146   : > { %6376 = vmatprep.mubr.msk.bf16.mxu1 %vm723_vm3, %v6935_v40  ;;  %v2428_v17 = vrot.slane %v2426_v22, 5  ;;  %v2450_v40 = vshll.u32 %v6995_v42, 16  ;;  %v2516_v22 = vshrl.u32 %v6998_v4, 16  ;;  %v2514_v27 = vrot.slane %v2512_v46, 5 }
 0x147   : > { %v2471_v35 = vor.u32 %v2470_v19, %v8729_v13  ;;  %v2490_v12 = vrot.slane %v2488_v41, 5  ;;  %v2467_v36 = vsel %vm7098_vm2, %v2462_v9, %v8729_v13  ;;  %v2498_v63 = vshll.u32 %v6999_v47, 16 }
 0x148   : > { %v2429_v31 = vsel %vm7098_vm2, %v2424_v54, %v2428_v17  ;;  %v2518_v19 = vrot.slane %v2516_v22, 4  ;;  %v2443_v54 = vsel %vm7098_vm2, %v2438_v18, %v8726_v51  ;;  %v2485_v51 = vor.u32 %v2484_v24, %v2481_v7  ;;  %v7002_v22 = vld [vmem:[%s7071_s8 + $0xc8] sm:$0x1] }
 0x149   : > { %v5625_v2 = vcombine.low %v2419_v1, %v2429_v31  ;;  %v2530_v13 = vshll.u32 %v5604_v3, 16  ;;  %v2522_v28 = vshll.u32 %v7001_v48, 16  ;;  %v2500_v52 = vrot.slane %v2498_v63, 5 }
 0x14a   : > { %v2519_v30 = vor.u32 %v2518_v19, %v2514_v27  ;;  %v2486_v39 = vrot.slane %v2485_v51, 4  ;;  %v2543_v46 = vor.u32 %v2542_v56, %v2538_v45  ;;  %v8834_v19 = vld [vmem:[%s8987_s2] ss:$0 sm:$0xff] }
 0x14b   : > { %v2532_v31 = vrot.slane %v2530_v13, 5 }
 0x14c   : > { %6561 = vmatmul.mubr.msk.bf16.gmra.mrb[12].mxu0 %vm723_vm3, %v5942_v8  ;;  %v2452_v8 = vrot.slane %v2450_v40, 5  ;;  %v2495_v40 = vor.u32 %v2494_v23, %v2490_v12  ;;  %v2520_v18 = vrot.slane %v2519_v30, 4  ;;  %v2544_v7 = vrot.slane %v2543_v46, 4 }
 0x14d   : > { %6377 = vmatmul.mubr.msk.bf16.gmra.mrb[28].mxu1 %vm723_vm3, %v6936_v11  ;;  %6564 = vmatprep.mubr.msk.bf16.mxu0 %vm723_vm3, %v5943_v15  ;;  %v2472_v15 = vrot.slane %v2471_v35, 4  ;;  %v2505_v11 = vrot.slane %v2503_v62, 4  ;;  %v2491_v62 = vsel %vm7098_vm2, %v2486_v39, %v2490_v12 }
 0x14e   : > { %6404 = vmatprep.mubr.msk.bf16.mxu1 %vm723_vm3, %v5623_v20  ;;  %v2508_v20 = vrot.slane %v2506_v43, 5  ;;  %v2453_v17 = vsel %vm7098_vm2, %v2448_v57, %v2452_v8  ;;  %v2496_v41 = vrot.slane %v2495_v40, 4  ;;  %v2524_v8 = vrot.slane %v2522_v28, 5 }
 0x14f   : > { %v2477_v42 = vsel %vm7098_vm2, %v2472_v15, %v2476_v6  ;;  %v5626_v35 = vcombine.low %v2443_v54, %v2453_v17  ;;  %v2546_v57 = vshll.u32 %v7002_v22, 16  ;;  %v8839_v17 = vld [vmem:[%s8988_s3] ss:$0 sm:$0xff] }
 0x150   : > { %v5627_v0 = vcombine.low %v2467_v36, %v2477_v42  ;;  %v2501_v43 = vsel %vm7098_vm2, %v2496_v41, %v2500_v52  ;;  %v2525_v14 = vsel %vm7098_vm2, %v2520_v18, %v2524_v8 }
 0x151   : > { %v2548_v21 = vrot.slane %v2546_v57, 5 }
 0x154   : > { %6565 = vmatmul.mubr.msk.bf16.gmra.mrb[16].mxu0 %vm723_vm3, %v5944_v60  ;;  %v2509_v60 = vor.u32 %v2508_v20, %v2505_v11 }
 0x155   : > { %6405 = vmatmul.mubr.msk.bf16.vlgmr.msra.gmra.mrb[16].mxu1 %vm723_vm3, %v8529_v55  ;;  %6568 = vmatprep.mubr.msk.bf16.mxu0 %vm723_vm3, %v5945_v25  ;;  %v2527_v55 = vshrl.u32 %v5604_v3, 16 }
 0x156   : > { %6408 = vmatprep.mubr.msk.bf16.mxu1 %vm723_vm3, %v5625_v2  ;;  %v2510_v25 = vrot.slane %v2509_v60, 4 }
 0x157   : > { %v2529_v1 = vrot.slane %v2527_v55, 4 }
 0x158   : > { %v2515_v37 = vsel %vm7098_vm2, %v2510_v25, %v2514_v27 }
 0x159   : > { %v2533_v4 = vor.u32 %v2532_v31, %v2529_v1  ;;  %v5629_v9 = vcombine.low %v2515_v37, %v2525_v14 }
 0x15b   : > { %v2534_v6 = vrot.slane %v2533_v4, 4 }
 0x15c   : > { %6569 = vmatmul.mubr.msk.bf16.gmra.mrb[20].mxu0 %vm723_vm3, %v5946_v10  ;;  %v5628_v10 = vcombine.low %v2491_v62, %v2501_v43 }
 0x15d   : > { %6409 = vmatmul.mubr.msk.bf16.gmra.mrb[20].mxu1 %vm723_vm3, %v5626_v35  ;;  %6572 = vmatprep.mubr.msk.bf16.mxu0 %vm723_vm3, %v5947_v26  ;;  %v2539_v33 = vsel %vm7098_vm2, %v2534_v6, %v2538_v45  ;;  %v2549_v26 = vsel %vm7098_vm2, %v2544_v7, %v2548_v21 }
 0x15e   : > { %6412 = vmatprep.mubr.msk.bf16.mxu1 %vm723_vm3, %v5627_v0  ;;  %v5630_v15 = vcombine.low %v2539_v33, %v2549_v26 }
 0x164   : > { %6573 = vmatmul.mubr.msk.bf16.gmra.mrb[24].mxu0 %vm723_vm3, %v5948_v49 }
 0x165   : > { %6413 = vmatmul.mubr.msk.bf16.gmra.mrb[24].mxu1 %vm723_vm3, %v5628_v10  ;;  %6576 = vmatprep.mubr.msk.bf16.mxu0 %vm723_vm3, %v5949_v50 }
 0x166   : > { %6416 = vmatprep.mubr.msk.bf16.mxu1 %vm723_vm3, %v5629_v9 }
 0x16c   : > { %6577 = vmatmul.mubr.msk.bf16.gmra.mrb[28].mxu0 %vm723_vm3, %v5950_v5 }
 0x16d   : > { %6417 = vmatmul.mubr.msk.bf16.gmra.mrb[28].mxu1 %vm723_vm3, %v5630_v15 }
 0x1e8   : > { %v6350_v53 = vpop.f32.mrb[0].mxu1 }
 0x1e9   : > { %v1959_v59 = vpop.f32.mrb[1].mxu1 }
 0x1ea   : > { %v6351_v49 = vpop.f32.mrb[2].mxu1 }
 0x1eb   : > { %v1962_v32 = vpop.f32.mrb[3].mxu1 }
 0x1f0   : > { %v6354_v38 = vpop.f32.mrb[4].mxu1 }
 0x1f1   : > { %v1975_v50 = vpop.f32.mrb[5].mxu1 }
 0x1f2   : > { %v6355_v24 = vpop.f32.mrb[6].mxu1 }
 0x1f3   : > { %v1978_v12 = vpop.f32.mrb[7].mxu1 }
 0x1f8   : > { %v6358_v23 = vpop.f32.mrb[8].mxu1 }
 0x1f9   : > { %v8817_v2 = vpop.f32.mrb[9].mxu1 }
 0x1fa   : > { %v8819_v29 = vpop.f32.mrb[10].mxu1 }
 0x1fb   : > { %v8821_v11 = vpop.f32.mrb[11].mxu1 }
 0x200   : > { %v8823_v20 = vpop.f32.mrb[12].mxu1 }
 0x201   : > { %v8825_v61 = vpop.f32.mrb[13].mxu1 }
 0x202   : > { %v8827_v34 = vpop.f32.mrb[14].mxu1 }
 0x203   : > { %v8829_v5 = vpop.f32.mrb[15].mxu1 }
 0x207   : > { %v6550_v27 = vpop.f32.mrb[0].mxu0 }
 0x208   : > { %v6588_v3 = vadd.f32 %v6550_v27, %v6350_v53  ;;  %v4850_v54 = vpop.f32.mrb[1].mxu0 }
 0x209   : > { %v6589_v36 = vadd.f32 %v4850_v54, %v1959_v59  ;;  %v6551_v42 = vpop.f32.mrb[2].mxu0 }
 0x20a   : > { %v5018_v51 = vmul.f32 %v6588_v3, %v8834_v19  ;;  %v6590_v40 = vadd.f32 %v6551_v42, %v6351_v49  ;;  %v4853_v47 = vpop.f32.mrb[3].mxu0 }
 0x20b   : > { %v5016_v63 = vmul.f32 %v6589_v36, %v8834_v19  ;;  %v6591_v55 = vadd.f32 %v4853_v47, %v1962_v32 }
 0x20c   : > { %v5057_v13 = vadd.f32 %v8839_v17, %v5018_v51  ;;  %v5019_v16 = vmul.f32 %v6590_v40, %v8834_v19 }
 0x20d   : > { %v5055_v44 = vadd.f32 %v8839_v17, %v5016_v63  ;;  %v5017_v58 = vmul.f32 %v6591_v55, %v8834_v19 }
 0x20e   : > { %v5089_v60 = vmax.f32 %v5057_v13, 0.0  ;;  %v5058_v30 = vadd.f32 %v8839_v17, %v5019_v16 }
 0x20f   : > { %v5087_v48 = vmax.f32 %v5055_v44, 0.0  ;;  %v5056_v28 = vadd.f32 %v8839_v17, %v5017_v58  ;;  %v6554_v35 = vpop.f32.mrb[4].mxu0 }
 0x210   : > { %v6010_v0 = vpack.c.bf16 %v5089_v60, %v5089_v60  ;;  %v5090_v39 = vmax.f32 %v5058_v30, 0.0  ;;  %v6592_v41 = vadd.f32 %v6554_v35, %v6354_v38  ;;  %v4866_v52 = vpop.f32.mrb[5].mxu0 }
 0x211   : > { %v6008_v1 = vpack.c.bf16 %v5087_v48, %v5087_v48  ;;  %v5088_v31 = vmax.f32 %v5056_v28, 0.0  ;;  %v6593_v45 = vadd.f32 %v4866_v52, %v1975_v50  ;;  %v6555_v56 = vpop.f32.mrb[6].mxu0 }
 0x212   : > { %5250 = vst.msk [vmem:[%s8852_s14 + $0x8] sm:$0xf] %vm5247_vm7, %v6010_v0  ;;  %v6011_v25 = vpack.c.bf16 %v5090_v39, %v5090_v39  ;;  %v5022_v18 = vmul.f32 %v6592_v41, %v8834_v19  ;;  %v6594_v8 = vadd.f32 %v6555_v56, %v6355_v24  ;;  %v4869_v62 = vpop.f32.mrb[7].mxu0 }
 0x213   : > { %5248 = vst.msk [vmem:[%s8852_s14] sm:$0xf] %vm5247_vm7, %v6008_v1  ;;  %v6009_v43 = vpack.c.bf16 %v5088_v31, %v5088_v31  ;;  %v5020_v4 = vmul.f32 %v6593_v45, %v8834_v19  ;;  %v6595_v46 = vadd.f32 %v4869_v62, %v1978_v12 }
 0x214   : > { %5251 = vst.msk [vmem:[%s8852_s14 + $0xc] sm:$0xf] %vm5247_vm7, %v6011_v25  ;;  %v5061_v22 = vadd.f32 %v8839_v17, %v5022_v18  ;;  %v5023_v57 = vmul.f32 %v6594_v8, %v8834_v19 }
 0x215   : > { %5249 = vst.msk [vmem:[%s8852_s14 + $0x4] sm:$0xf] %vm5247_vm7, %v6009_v43  ;;  %v5059_v37 = vadd.f32 %v8839_v17, %v5020_v4  ;;  %v5021_v14 = vmul.f32 %v6595_v46, %v8834_v19 }
 0x216   : > { %v5093_v10 = vmax.f32 %v5061_v22, 0.0  ;;  %v5062_v9 = vadd.f32 %v8839_v17, %v5023_v57 }
 0x217   : > { %v5091_v6 = vmax.f32 %v5059_v37, 0.0  ;;  %v5060_v7 = vadd.f32 %v8839_v17, %v5021_v14  ;;  %v6558_v21 = vpop.f32.mrb[8].mxu0 }
 0x218   : > { %v6014_v33 = vpack.c.bf16 %v5093_v10, %v5093_v10  ;;  %v5094_v26 = vmax.f32 %v5062_v9, 0.0  ;;  %v6596_v15 = vadd.f32 %v6558_v21, %v6358_v23  ;;  %v4882_v53 = vpop.f32.mrb[9].mxu0 }
 0x219   : > { %v6012_v59 = vpack.c.bf16 %v5091_v6, %v5091_v6  ;;  %v5092_v49 = vmax.f32 %v5060_v7, 0.0  ;;  %v6597_v32 = vadd.f32 %v4882_v53, %v8817_v2  ;;  %v6559_v38 = vpop.f32.mrb[10].mxu0 }
 0x21a   : > { %5254 = vst.msk [vmem:[%s8852_s14 + $0x18] sm:$0xf] %vm5247_vm7, %v6014_v33  ;;  %v6015_v50 = vpack.c.bf16 %v5094_v26, %v5094_v26  ;;  %v5026_v24 = vmul.f32 %v6596_v15, %v8834_v19  ;;  %v6598_v12 = vadd.f32 %v6559_v38, %v8819_v29  ;;  %v4885_v27 = vpop.f32.mrb[11].mxu0 }
 0x21b   : > { %5252 = vst.msk [vmem:[%s8852_s14 + $0x10] sm:$0xf] %vm5247_vm7, %v6012_v59  ;;  %v6013_v3 = vpack.c.bf16 %v5092_v49, %v5092_v49  ;;  %v5024_v23 = vmul.f32 %v6597_v32, %v8834_v19  ;;  %v6599_v54 = vadd.f32 %v4885_v27, %v8821_v11 }
 0x21c   : > { %5255 = vst.msk [vmem:[%s8852_s14 + $0x1c] sm:$0xf] %vm5247_vm7, %v6015_v50  ;;  %v5065_v2 = vadd.f32 %v8839_v17, %v5026_v24  ;;  %v5027_v36 = vmul.f32 %v6598_v12, %v8834_v19 }
 0x21d   : > { %5253 = vst.msk [vmem:[%s8852_s14 + $0x14] sm:$0xf] %vm5247_vm7, %v6013_v3  ;;  %v5063_v42 = vadd.f32 %v8839_v17, %v5024_v23  ;;  %v5025_v29 = vmul.f32 %v6599_v54, %v8834_v19 }
 0x21e   : > { %v5097_v51 = vmax.f32 %v5065_v2, 0.0  ;;  %v5066_v40 = vadd.f32 %v8839_v17, %v5027_v36 }
 0x21f   : > { %v5095_v47 = vmax.f32 %v5063_v42, 0.0  ;;  %v5064_v11 = vadd.f32 %v8839_v17, %v5025_v29  ;;  %v6562_v63 = vpop.f32.mrb[12].mxu0 }
 0x220   : > { %v6018_v55 = vpack.c.bf16 %v5097_v51, %v5097_v51  ;;  %v5098_v13 = vmax.f32 %v5066_v40, 0.0  ;;  %v6600_v16 = vadd.f32 %v6562_v63, %v8823_v20  ;;  %v4898_v44 = vpop.f32.mrb[13].mxu0 }
 0x221   : > { %v6016_v58 = vpack.c.bf16 %v5095_v47, %v5095_v47  ;;  %v5096_v60 = vmax.f32 %v5064_v11, 0.0  ;;  %v6601_v30 = vadd.f32 %v4898_v44, %v8825_v61  ;;  %v6563_v48 = vpop.f32.mrb[14].mxu0 }
 0x222   : > { %5258 = vst.msk [vmem:[%s8852_s14 + $0x28] sm:$0xf] %vm5247_vm7, %v6018_v55  ;;  %v6019_v28 = vpack.c.bf16 %v5098_v13, %v5098_v13  ;;  %v5030_v35 = vmul.f32 %v6600_v16, %v8834_v19  ;;  %v6602_v0 = vadd.f32 %v6563_v48, %v8827_v34  ;;  %v4901_v39 = vpop.f32.mrb[15].mxu0 }
 0x223   : > { %5256 = vst.msk [vmem:[%s8852_s14 + $0x20] sm:$0xf] %vm5247_vm7, %v6016_v58  ;;  %v6017_v41 = vpack.c.bf16 %v5096_v60, %v5096_v60  ;;  %v5028_v20 = vmul.f32 %v6601_v30, %v8834_v19  ;;  %v6603_v52 = vadd.f32 %v4901_v39, %v8829_v5 }
 0x224   : > { %5259 = vst.msk [vmem:[%s8852_s14 + $0x2c] sm:$0xf] %vm5247_vm7, %v6019_v28  ;;  %v5069_v61 = vadd.f32 %v8839_v17, %v5030_v35  ;;  %v5031_v1 = vmul.f32 %v6602_v0, %v8834_v19 }
 0x225   : > { %5257 = vst.msk [vmem:[%s8852_s14 + $0x24] sm:$0xf] %vm5247_vm7, %v6017_v41  ;;  %v5067_v31 = vadd.f32 %v8839_v17, %v5028_v20  ;;  %v5029_v34 = vmul.f32 %v6603_v52, %v8834_v19 }
 0x226   : > { %v5101_v45 = vmax.f32 %v5069_v61, 0.0  ;;  %v5070_v56 = vadd.f32 %v8839_v17, %v5031_v1 }
 0x227   : > { %v5099_v25 = vmax.f32 %v5067_v31, 0.0  ;;  %v5068_v18 = vadd.f32 %v8839_v17, %v5029_v34  ;;  %v6566_v8 = vpop.f32.mrb[16].mxu0 }
 0x228   : > { %v6406_v5 = vpop.f32.mrb[16].mxu1  ;;  %v6022_v62 = vpack.c.bf16 %v5101_v45, %v5101_v45  ;;  %v5102_v43 = vmax.f32 %v5070_v56, 0.0  ;;  %v4914_v22 = vpop.f32.mrb[17].mxu0 }
 0x229   : > { %v6604_v4 = vadd.f32 %v6566_v8, %v6406_v5  ;;  %v2777_v46 = vpop.f32.mrb[17].mxu1  ;;  %v6020_v57 = vpack.c.bf16 %v5099_v25, %v5099_v25  ;;  %v5100_v37 = vmax.f32 %v5068_v18, 0.0  ;;  %v6567_v9 = vpop.f32.mrb[18].mxu0 }
 0x22a   : > { %v6605_v14 = vadd.f32 %v4914_v22, %v2777_v46  ;;  %v6407_v10 = vpop.f32.mrb[18].mxu1  ;;  %5262 = vst.msk [vmem:[%s8852_s14 + $0x38] sm:$0xf] %vm5247_vm7, %v6022_v62  ;;  %v6023_v6 = vpack.c.bf16 %v5102_v43, %v5102_v43  ;;  %v4917_v26 = vpop.f32.mrb[19].mxu0 }
 0x22b   : > { %v5034_v7 = vmul.f32 %v6604_v4, %v8834_v19  ;;  %v6606_v21 = vadd.f32 %v6567_v9, %v6407_v10  ;;  %v2780_v33 = vpop.f32.mrb[19].mxu1  ;;  %5260 = vst.msk [vmem:[%s8852_s14 + $0x30] sm:$0xf] %vm5247_vm7, %v6020_v57  ;;  %v6021_v15 = vpack.c.bf16 %v5100_v37, %v5100_v37 }
 0x22c   : > { %v5032_v53 = vmul.f32 %v6605_v14, %v8834_v19  ;;  %v6607_v59 = vadd.f32 %v4917_v26, %v2780_v33  ;;  %5263 = vst.msk [vmem:[%s8852_s14 + $0x3c] sm:$0xf] %vm5247_vm7, %v6023_v6 }
 0x22d   : > { %v5073_v49 = vadd.f32 %v8839_v17, %v5034_v7  ;;  %v5035_v32 = vmul.f32 %v6606_v21, %v8834_v19  ;;  %5261 = vst.msk [vmem:[%s8852_s14 + $0x34] sm:$0xf] %vm5247_vm7, %v6021_v15 }
 0x22e   : > { %v5071_v38 = vadd.f32 %v8839_v17, %v5032_v53  ;;  %v5033_v50 = vmul.f32 %v6607_v59, %v8834_v19 }
 0x22f   : > { %v5105_v24 = vmax.f32 %v5073_v49, 0.0  ;;  %v5074_v12 = vadd.f32 %v8839_v17, %v5035_v32  ;;  %v6570_v54 = vpop.f32.mrb[20].mxu0 }
 0x230   : > { %v5103_v27 = vmax.f32 %v5071_v38, 0.0  ;;  %v5072_v3 = vadd.f32 %v8839_v17, %v5033_v50  ;;  %v6410_v23 = vpop.f32.mrb[20].mxu1  ;;  %v4930_v51 = vpop.f32.mrb[21].mxu0 }
 0x231   : > { %v6026_v2 = vpack.c.bf16 %v5105_v24, %v5105_v24  ;;  %v5106_v36 = vmax.f32 %v5074_v12, 0.0  ;;  %v6608_v42 = vadd.f32 %v6570_v54, %v6410_v23  ;;  %v2793_v29 = vpop.f32.mrb[21].mxu1  ;;  %v6571_v55 = vpop.f32.mrb[22].mxu0 }
 0x232   : > { %v6024_v40 = vpack.c.bf16 %v5103_v27, %v5103_v27  ;;  %v5104_v47 = vmax.f32 %v5072_v3, 0.0  ;;  %v6609_v11 = vadd.f32 %v4930_v51, %v2793_v29  ;;  %v6411_v63 = vpop.f32.mrb[22].mxu1  ;;  %v4933_v60 = vpop.f32.mrb[23].mxu0 }
 0x233   : > { %5266 = vst.msk [vmem:[%s8852_s14 + $0x48] sm:$0xf] %vm5247_vm7, %v6026_v2  ;;  %v6027_v13 = vpack.c.bf16 %v5106_v36, %v5106_v36  ;;  %v5038_v16 = vmul.f32 %v6608_v42, %v8834_v19  ;;  %v6610_v44 = vadd.f32 %v6571_v55, %v6411_v63  ;;  %v2796_v58 = vpop.f32.mrb[23].mxu1 }
 0x234   : > { %5264 = vst.msk [vmem:[%s8852_s14 + $0x40] sm:$0xf] %vm5247_vm7, %v6024_v40  ;;  %v6025_v30 = vpack.c.bf16 %v5104_v47, %v5104_v47  ;;  %v5036_v48 = vmul.f32 %v6609_v11, %v8834_v19  ;;  %v6611_v28 = vadd.f32 %v4933_v60, %v2796_v58 }
 0x235   : > { %5267 = vst.msk [vmem:[%s8852_s14 + $0x4c] sm:$0xf] %vm5247_vm7, %v6027_v13  ;;  %v5077_v35 = vadd.f32 %v8839_v17, %v5038_v16  ;;  %v5039_v0 = vmul.f32 %v6610_v44, %v8834_v19 }
 0x236   : > { %5265 = vst.msk [vmem:[%s8852_s14 + $0x44] sm:$0xf] %vm5247_vm7, %v6025_v30  ;;  %v5075_v39 = vadd.f32 %v8839_v17, %v5036_v48  ;;  %v5037_v41 = vmul.f32 %v6611_v28, %v8834_v19 }
 0x237   : > { %v5109_v20 = vmax.f32 %v5077_v35, 0.0  ;;  %v5078_v52 = vadd.f32 %v8839_v17, %v5039_v0  ;;  %v6574_v34 = vpop.f32.mrb[24].mxu0 }
 0x238   : > { %v5107_v61 = vmax.f32 %v5075_v39, 0.0  ;;  %v5076_v1 = vadd.f32 %v8839_v17, %v5037_v41  ;;  %v6414_v31 = vpop.f32.mrb[24].mxu1  ;;  %v4946_v5 = vpop.f32.mrb[25].mxu0 }
 0x239   : > { %v6030_v45 = vpack.c.bf16 %v5109_v20, %v5109_v20  ;;  %v5110_v56 = vmax.f32 %v5078_v52, 0.0  ;;  %v6612_v25 = vadd.f32 %v6574_v34, %v6414_v31  ;;  %v2809_v18 = vpop.f32.mrb[25].mxu1  ;;  %v6575_v46 = vpop.f32.mrb[26].mxu0 }
 0x23a   : > { %v6028_v8 = vpack.c.bf16 %v5107_v61, %v5107_v61  ;;  %v5108_v62 = vmax.f32 %v5076_v1, 0.0  ;;  %v6613_v43 = vadd.f32 %v4946_v5, %v2809_v18  ;;  %v6415_v4 = vpop.f32.mrb[26].mxu1  ;;  %v4949_v10 = vpop.f32.mrb[27].mxu0 }
 0x23b   : > { %5270 = vst.msk [vmem:[%s8852_s14 + $0x58] sm:$0xf] %vm5247_vm7, %v6030_v45  ;;  %v6031_v22 = vpack.c.bf16 %v5110_v56, %v5110_v56  ;;  %v5042_v57 = vmul.f32 %v6612_v25, %v8834_v19  ;;  %v6614_v37 = vadd.f32 %v6575_v46, %v6415_v4  ;;  %v2812_v14 = vpop.f32.mrb[27].mxu1 }
 0x23c   : > { %5268 = vst.msk [vmem:[%s8852_s14 + $0x50] sm:$0xf] %vm5247_vm7, %v6028_v8  ;;  %v6029_v9 = vpack.c.bf16 %v5108_v62, %v5108_v62  ;;  %v5040_v6 = vmul.f32 %v6613_v43, %v8834_v19  ;;  %v6615_v7 = vadd.f32 %v4949_v10, %v2812_v14 }
 0x23d   : > { %5271 = vst.msk [vmem:[%s8852_s14 + $0x5c] sm:$0xf] %vm5247_vm7, %v6031_v22  ;;  %v5081_v21 = vadd.f32 %v8839_v17, %v5042_v57  ;;  %v5043_v33 = vmul.f32 %v6614_v37, %v8834_v19 }
 0x23e   : > { %5269 = vst.msk [vmem:[%s8852_s14 + $0x54] sm:$0xf] %vm5247_vm7, %v6029_v9  ;;  %v5079_v26 = vadd.f32 %v8839_v17, %v5040_v6  ;;  %v5041_v15 = vmul.f32 %v6615_v7, %v8834_v19 }
 0x23f   : > { %v5113_v53 = vmax.f32 %v5081_v21, 0.0  ;;  %v5082_v59 = vadd.f32 %v8839_v17, %v5043_v33  ;;  %v6578_v50 = vpop.f32.mrb[28].mxu0 }
 0x240   : > { %v5111_v49 = vmax.f32 %v5079_v26, 0.0  ;;  %v5080_v32 = vadd.f32 %v8839_v17, %v5041_v15  ;;  %v6418_v38 = vpop.f32.mrb[28].mxu1  ;;  %v4962_v23 = vpop.f32.mrb[29].mxu0 }
 0x241   : > { %v6034_v24 = vpack.c.bf16 %v5113_v53, %v5113_v53  ;;  %v5114_v12 = vmax.f32 %v5082_v59, 0.0  ;;  %v6616_v27 = vadd.f32 %v6578_v50, %v6418_v38  ;;  %v2825_v3 = vpop.f32.mrb[29].mxu1  ;;  %v6579_v29 = vpop.f32.mrb[30].mxu0 }
 0x242   : > { %v6032_v54 = vpack.c.bf16 %v5111_v49, %v5111_v49  ;;  %v5112_v2 = vmax.f32 %v5080_v32, 0.0  ;;  %v6617_v36 = vadd.f32 %v4962_v23, %v2825_v3  ;;  %v6419_v42 = vpop.f32.mrb[30].mxu1  ;;  %v4965_v63 = vpop.f32.mrb[31].mxu0 }
 0x243   : > { %5274 = vst.msk [vmem:[%s8852_s14 + $0x68] sm:$0xf] %vm5247_vm7, %v6034_v24  ;;  %v6035_v51 = vpack.c.bf16 %v5114_v12, %v5114_v12  ;;  %v5046_v40 = vmul.f32 %v6616_v27, %v8834_v19  ;;  %v6618_v47 = vadd.f32 %v6579_v29, %v6419_v42  ;;  %v2828_v11 = vpop.f32.mrb[31].mxu1 }
 0x244   : > { %5272 = vst.msk [vmem:[%s8852_s14 + $0x60] sm:$0xf] %vm5247_vm7, %v6032_v54  ;;  %v6033_v55 = vpack.c.bf16 %v5112_v2, %v5112_v2  ;;  %v5044_v13 = vmul.f32 %v6617_v36, %v8834_v19  ;;  %v6619_v16 = vadd.f32 %v4965_v63, %v2828_v11 }
 0x245   : > { %5275 = vst.msk [vmem:[%s8852_s14 + $0x6c] sm:$0xf] %vm5247_vm7, %v6035_v51  ;;  %v5085_v44 = vadd.f32 %v8839_v17, %v5046_v40  ;;  %v5047_v58 = vmul.f32 %v6618_v47, %v8834_v19 }
 0x246   : > { %5273 = vst.msk [vmem:[%s8852_s14 + $0x64] sm:$0xf] %vm5247_vm7, %v6033_v55  ;;  %v5083_v60 = vadd.f32 %v8839_v17, %v5044_v13  ;;  %v5045_v30 = vmul.f32 %v6619_v16, %v8834_v19 }
 0x247   : > { %v5117_v48 = vmax.f32 %v5085_v44, 0.0  ;;  %v5086_v28 = vadd.f32 %v8839_v17, %v5047_v58 }
 0x248   : > { %v5115_v35 = vmax.f32 %v5083_v60, 0.0  ;;  %v5084_v0 = vadd.f32 %v8839_v17, %v5045_v30 }
 0x249   : > { %v6038_v39 = vpack.c.bf16 %v5117_v48, %v5117_v48  ;;  %v5118_v41 = vmax.f32 %v5086_v28, 0.0 }
 0x24a   : > { %v6036_v20 = vpack.c.bf16 %v5115_v35, %v5115_v35  ;;  %v5116_v52 = vmax.f32 %v5084_v0, 0.0 }
 0x24b   : > { %5278 = vst.msk [vmem:[%s8852_s14 + $0x78] sm:$0xf] %vm5247_vm7, %v6038_v39  ;;  %v6039_v61 = vpack.c.bf16 %v5118_v41, %v5118_v41 }
 0x24c   : > { %5276 = vst.msk [vmem:[%s8852_s14 + $0x70] sm:$0xf] %vm5247_vm7, %v6036_v20  ;;  %v6037_v1 = vpack.c.bf16 %v5116_v52, %v5116_v52 }
 0x24d   : > { %5279 = vst.msk [vmem:[%s8852_s14 + $0x7c] sm:$0xf] %vm5247_vm7, %v6039_v61 }
 0x24e   : > { %5277 = vst.msk [vmem:[%s8852_s14 + $0x74] sm:$0xf] %vm5247_vm7, %v6037_v1 }
 0x24f PF: > { %s14_s15 = sadd.s32 1, %s7009_s15  }
 0x250   : > { %p11_p4 = scmp.ge.s32.totalorder %s14_s15, 4  }
 0x252   :  { %13 = sbr.rel (!%p11_p4) target bundleno = 1 (0x1), region = 76 }

</bundles_post_ra>
